<compile_context>
chip_gen: v6e
topology: v6e:2x2x1
jax: 0.10.0
libtpu: 0.0.40
codegen_flags: <defaults>
</compile_context>

<pallas_src>
import functools
import math

import jax
import jax.numpy as jnp
import numpy as np
from jax.experimental import pallas as pl
from jax.experimental.pallas import tpu as pltpu

DTYPE = jnp.bfloat16  # activation / weight storage dtype (f32 accumulation in-kernel)
VMEM_LIMIT_BYTES = 48 * 1024 * 1024

# SqueezeNetBackEnd.features layout: (inplanes, squeeze, expand1x1, expand3x3) or "pool"
FIRE_CFG = [
    (64, 16, 64, 64),
    (128, 16, 64, 64),
    "pool",
    (128, 32, 128, 128),
    (256, 32, 128, 128),
    "pool",
    (256, 48, 192, 192),
    (384, 48, 192, 192),
    (384, 64, 256, 256),
    (512, 64, 256, 256),
]
N_TAIL_FIRES = 6  # fires after the second pool, fused with the classifier head


def _pool_out(n):
    # MaxPool2d(kernel=3, stride=2, ceil_mode=True) output size
    return -(-(n - 3) // 2) + 1


# ------------------------------ in-kernel building blocks ------------------------------

def _fire_body(x, wsq, bsq, wex, bex, W):
    """One Fire module on VMEM-resident values.

    x   : (HW, Cin)            bf16 flattened NHWC image
    wsq : (Cin, cs)            bf16
    bsq : (1, cs)              f32
    wex : (9*cs, ce1+ce3)      bf16 fused [expand1x1 | expand3x3] weight; rows are
                               tap-major (t = dy*3 + dx), the 1x1 weight occupies the
                               centre-tap rows of the first ce1 columns.
    bex : (1, ce1+ce3)         f32
    returns (HW, ce1+ce3) bf16
    """
    HW = x.shape[0]
    cs = wsq.shape[1]
    cdt = x.dtype

    # squeeze 1x1 + ReLU (never leaves VMEM)
    s = jnp.dot(x, wsq, preferred_element_type=jnp.float32) + bsq
    s = jnp.maximum(s, 0.0)                                    # (HW, cs) f32

    # Column-validity masking for the 3x3 SAME padding, hoisted out of the tap loop
    # and applied in f32 (v5e has no bf16 VPU):
    #   dx=0 taps read column w-1  -> zero source rows whose column is W-1
    #   dx=2 taps read column w+1  -> zero source rows whose column is 0
    col = jax.lax.broadcasted_iota(jnp.int32, (HW, 1), 0) % W
    s_dx1 = s.astype(cdt)
    s_dx0 = jnp.where(col == W - 1, 0.0, s).astype(cdt)
    s_dx2 = jnp.where(col == 0, 0.0, s).astype(cdt)

    # One zero-padded buffer per dx variant; the 9 taps are static row slices of these.
    P = W + 1
    zpad = jnp.zeros((P, cs), cdt)
    pads = [jnp.concatenate([zpad, v, zpad], axis=0)           # (HW + 2W + 2, cs)
            for v in (s_dx0, s_dx1, s_dx2)]

    # In-VMEM im2col: lane-concatenate the 9 shifted taps -> single large-K matmul.
    taps = []
    for dy in range(3):
        for dx in range(3):
            start = P + (dy - 1) * W + (dx - 1)
            taps.append(pads[dx][start:start + HW, :])
    s9 = jnp.concatenate(taps, axis=-1)                        # (HW, 9*cs) bf16

    y = jnp.dot(s9, wex, preferred_element_type=jnp.float32) + bex
    return jnp.maximum(y, 0.0).astype(cdt)                     # (HW, ce1+ce3) bf16


# ------------------------------ Pallas kernels ------------------------------

def _fire_kernel(x_ref, wsq_ref, bsq_ref, wex_ref, bex_ref, o_ref, *, W):
    """One Fire module for one image (two matmuls total)."""
    o_ref[0] = _fire_body(x_ref[0], wsq_ref[...], bsq_ref[...],
                          wex_ref[...], bex_ref[...], W)


def _maxpool_kernel(x_ref, o_ref, *, Ho, Wo, C):
    """MaxPool2d(kernel=3, stride=2, ceil_mode=True) for one image, even H and W.

    x_ref: (1, H, W//2, 2*C) -- even/odd columns paired into the lane dim (free HBM
           reshape, no -inf padding).  For even W, Wo == W//2 and Ho == H//2.
    o_ref: (1, Ho, Wo, C)
    """
    x = x_ref[0]                        # (H, W//2, 2C)
    xe = x[:, :, :C]                    # even columns (H, Wo, C)
    xo = x[:, :, C:]                    # odd  columns (H, Wo, C)

    # pool along W: window j -> cols (2j, 2j+1, 2j+2); the last window has no col 2j+2.
    m = jnp.maximum(xe[:, :Wo, :], xo[:, :Wo, :])              # (H, Wo, C)
    if Wo > 1:
        m_main = jnp.maximum(m[:, :Wo - 1, :], xe[:, 1:Wo, :])
        m = jnp.concatenate([m_main, m[:, Wo - 1:, :]], axis=1)

    # pool along H via even/odd row split (leading dims only; trivial reshape).
    H = m.shape[0]
    m2 = m.reshape(H // 2, 2, Wo, C)
    me = m2[:, 0]                       # even rows (Ho, Wo, C)
    mo = m2[:, 1]                       # odd rows
    r = jnp.maximum(me, mo)             # (Ho, Wo, C)
    if Ho > 1:
        r_main = jnp.maximum(r[:Ho - 1], me[1:Ho])
        r = jnp.concatenate([r_main, r[Ho - 1:]], axis=0)

    o_ref[0] = r.astype(o_ref.dtype)


def _tail_kernel(*refs, W, n_fires):
    """Fused tail for one image: n_fires Fire modules + 1x1 classifier conv + ReLU +
    global average pool.  All activations stay resident in VMEM.

    refs = (x_ref, [sq_w, sq_b, ex_w, ex_b] * n_fires, cls_w, cls_b, o_ref)
    """
    x_ref = refs[0]
    o_ref = refs[-1]
    cls_w_ref, cls_b_ref = refs[-3], refs[-2]

    x = x_ref[0]                        # (HW, 256) bf16
    for f in range(n_fires):
        wsq, bsq, wex, bex = refs[1 + 4 * f: 5 + 4 * f]
        x = _fire_body(x, wsq[...], bsq[...], wex[...], bex[...], W)

    # classifier: 1x1 conv + ReLU + AdaptiveAvgPool2d((1,1)) + flatten.
    y = jnp.dot(x, cls_w_ref[...], preferred_element_type=jnp.float32) + cls_b_ref[...]
    y = jnp.maximum(y, 0.0)
    o_ref[...] = jnp.mean(y, axis=0, keepdims=True).reshape(1, 1, -1)


# ------------------------------ wrappers ------------------------------

def fire(x, p, N, H, W):
    """x: (N, H*W, Cin) bf16 -> (N, H*W, ce1+ce3) bf16."""
    HW = H * W
    Cin = x.shape[-1]
    cs = p["sq_w"].shape[1]
    cout = p["ex_w"].shape[1]
    return pl.pallas_call(
        functools.partial(_fire_kernel, W=W),
        out_shape=jax.ShapeDtypeStruct((N, HW, cout), DTYPE),
        grid=(N,),
        in_specs=[
            pl.BlockSpec((1, HW, Cin), lambda i: (i, 0, 0)),
            pl.BlockSpec((Cin, cs), lambda i: (0, 0)),
            pl.BlockSpec((1, cs), lambda i: (0, 0)),
            pl.BlockSpec((9 * cs, cout), lambda i: (0, 0)),
            pl.BlockSpec((1, cout), lambda i: (0, 0)),
        ],
        out_specs=pl.BlockSpec((1, HW, cout), lambda i: (i, 0, 0)),
        compiler_params=pltpu.CompilerParams(
            dimension_semantics=("parallel",),
            vmem_limit_bytes=VMEM_LIMIT_BYTES),
    )(x, p["sq_w"], p["sq_b"], p["ex_w"], p["ex_b"])


def maxpool3x3s2_ceil(x, N, H, W):
    """x: (N, H*W, C) bf16 -> ((N, Ho*Wo, C) bf16, Ho, Wo). No HBM padding."""
    C = x.shape[-1]
    Ho, Wo = _pool_out(H), _pool_out(W)
    # TODO(synk): odd H/W would need the -inf pad fallback; SqueezeNetBackEnd pools
    # only see even sizes (56->28->14 in production, 16->8->4 here).
    assert H % 2 == 0 and W % 2 == 0 and Ho == H // 2 and Wo == W // 2
    xp = x.reshape(N, H, W // 2, 2 * C)   # free HBM reshape: pair even/odd cols into lanes
    out = pl.pallas_call(
        functools.partial(_maxpool_kernel, Ho=Ho, Wo=Wo, C=C),
        out_shape=jax.ShapeDtypeStruct((N, Ho, Wo, C), DTYPE),
        grid=(N,),
        in_specs=[pl.BlockSpec((1, H, W // 2, 2 * C), lambda i: (i, 0, 0, 0))],
        out_specs=pl.BlockSpec((1, Ho, Wo, C), lambda i: (i, 0, 0, 0)),
        compiler_params=pltpu.CompilerParams(
            dimension_semantics=("parallel",),
            vmem_limit_bytes=VMEM_LIMIT_BYTES),
    )(xp)
    return out.reshape(N, Ho * Wo, C), Ho, Wo


def tail_head(x, fire_ps, cls_w, cls_b, N, H, W):
    """Fused (fires[4:] + classifier) -> (N, num_classes) f32."""
    HW = H * W
    Cin = x.shape[-1]
    nc = cls_w.shape[1]

    args = [x]
    in_specs = [pl.BlockSpec((1, HW, Cin), lambda i: (i, 0, 0))]
    for p in fire_ps:
        for name in ("sq_w", "sq_b", "ex_w", "ex_b"):
            a = p[name]
            args.append(a)
            in_specs.append(pl.BlockSpec(a.shape, lambda i: (0, 0)))
    args += [cls_w, cls_b]
    in_specs += [pl.BlockSpec(cls_w.shape, lambda i: (0, 0)),
                 pl.BlockSpec(cls_b.shape, lambda i: (0, 0))]

    out = pl.pallas_call(
        functools.partial(_tail_kernel, W=W, n_fires=len(fire_ps)),
        out_shape=jax.ShapeDtypeStruct((N, 1, nc), jnp.float32),
        grid=(N,),
        in_specs=in_specs,
        out_specs=pl.BlockSpec((1, 1, nc), lambda i: (i, 0, 0)),
        compiler_params=pltpu.CompilerParams(
            dimension_semantics=("parallel",),
            vmem_limit_bytes=VMEM_LIMIT_BYTES),
    )(*args)
    return out.reshape(N, nc)


def squeezenet_backend_forward(params, x_nchw):
    # NCHW -> NHWC once at the boundary; activations then stay as (N, H*W, C) bf16
    # slabs between kernels (all reshapes below are metadata-only).
    x = jnp.transpose(x_nchw, (0, 2, 3, 1)).astype(DTYPE)
    N, H, W, C = x.shape
    x = x.reshape(N, H * W, C)
    fires = params["fires"]

    x = fire(x, fires[0], N, H, W)
    x = fire(x, fires[1], N, H, W)
    x, H, W = maxpool3x3s2_ceil(x, N, H, W)
    x = fire(x, fires[2], N, H, W)
    x = fire(x, fires[3], N, H, W)
    x, H, W = maxpool3x3s2_ceil(x, N, H, W)
    # classifier tail; nn.Dropout(p=0.5) is identity at inference.
    # TODO(synk): train-mode dropout not implemented.
    return tail_head(x, fires[4:], params["cls_w"], params["cls_b"], N, H, W)


# ------------------------------ parameter init ------------------------------

def _kaiming_uniform(key, fan_in, shape):
    bound = math.sqrt(6.0 / fan_in)
    return jax.random.uniform(key, shape, jnp.float32, -bound, bound)


def init_params(key, num_classes=1000):
    fires = []
    for cfg in FIRE_CFG:
        if cfg == "pool":
            continue
        cin, cs, ce1, ce3 = cfg
        key, k1, k2, k3 = jax.random.split(key, 4)
        sq_w = _kaiming_uniform(k1, cin, (cin, cs))
        e1_w = _kaiming_uniform(k2, cs, (cs, ce1))
        e3_w = _kaiming_uniform(k3, cs * 9, (9, cs, ce3))   # tap-major, t = dy*3 + dx
        # Fused expand weight: one (9*cs, ce1+ce3) matmul produces [expand1x1|expand3x3]
        # lane-dense; the 1x1 weight lives in the centre-tap (t=4) row block.
        ex_w = jnp.zeros((9 * cs, ce1 + ce3), jnp.float32)
        ex_w = ex_w.at[4 * cs:5 * cs, :ce1].set(e1_w)
        ex_w = ex_w.at[:, ce1:].set(e3_w.reshape(9 * cs, ce3))
        fires.append(dict(
            sq_w=sq_w.astype(DTYPE),
            sq_b=jnp.zeros((1, cs), jnp.float32),
            ex_w=ex_w.astype(DTYPE),
            ex_b=jnp.zeros((1, ce1 + ce3), jnp.float32),
        ))
    key, kc = jax.random.split(key)
    cls_w = (0.01 * jax.random.normal(kc, (512, num_classes), jnp.float32)).astype(DTYPE)
    cls_b = jnp.zeros((1, num_classes), jnp.float32)
    return dict(fires=fires, cls_w=cls_w, cls_b=cls_b)


# ------------------------------ pure-JAX reference ------------------------------

def _ref_forward(params, x_nchw):
    """Independent formulation (lax.conv / window stack) with matching bf16 staging."""
    def relu(v):
        return jnp.maximum(v, 0.0)

    def pool(x):
        N, H, W, C = x.shape
        Ho, Wo = _pool_out(H), _pool_out(W)
        xp = jnp.pad(x, ((0, 0), (0, 2 * Ho + 1 - H), (0, 2 * Wo + 1 - W), (0, 0)),
                     constant_values=-jnp.inf)
        wins = jnp.stack([xp[:, dy:dy + 2 * Ho:2, dx:dx + 2 * Wo:2, :]
                          for dy in range(3) for dx in range(3)], axis=0)
        return jnp.max(wins, axis=0)

    x = jnp.transpose(x_nchw, (0, 2, 3, 1)).astype(DTYPE)
    fi = 0
    for cfg in FIRE_CFG:
        if cfg == "pool":
            x = pool(x)
            continue
        cin, cs, ce1, ce3 = cfg
        p = params["fires"][fi]
        fi += 1
        s = relu(jnp.einsum("nhwc,cd->nhwd", x, p["sq_w"],
                            preferred_element_type=jnp.float32) + p["sq_b"]).astype(DTYPE)
        e1_w = p["ex_w"][4 * cs:5 * cs, :ce1]
        e1_b = p["ex_b"][:, :ce1]
        e3_w = p["ex_w"][:, ce1:].reshape(3, 3, cs, ce3)
        e3_b = p["ex_b"][:, ce1:]
        e1 = relu(jnp.einsum("nhwc,cd->nhwd", s, e1_w,
                             preferred_element_type=jnp.float32) + e1_b)
        e3 = relu(jax.lax.conv_general_dilated(
            s, e3_w, window_strides=(1, 1), padding="SAME",
            dimension_numbers=("NHWC", "HWIO", "NHWC"),
            preferred_element_type=jnp.float32) + e3_b)
        x = jnp.concatenate([e1, e3], axis=-1).astype(DTYPE)
    y = jnp.einsum("nhwc,cd->nhwd", x, params["cls_w"],
                   preferred_element_type=jnp.float32) + params["cls_b"]
    y = jnp.maximum(y, 0.0)
    return jnp.mean(y, axis=(1, 2))


# ------------------------------ main ------------------------------

if __name__ == "__main__":
    num_classes = 16  # small; module default is 1000
    key = jax.random.PRNGKey(0)
    kp, kx = jax.random.split(key)
    params = init_params(kp, num_classes=num_classes)

    # input like PyTorch: NCHW, 64 channels (required by Fire(64, ...))
    x = jax.random.normal(kx, (2, 64, 16, 16), jnp.float32)

    fwd = jax.jit(squeezenet_backend_forward)
    y = jax.block_until_ready(fwd(params, x))
    assert y.shape == (2, num_classes)
    assert bool(jnp.all(jnp.isfinite(y)))

    # smoke-check against an independent pure-JAX formulation (bf16 staging in both
    # paths; loose tol covers MXU / accumulation-order differences).
    y_ref = jax.block_until_ready(jax.jit(_ref_forward)(params, x))
    np.testing.assert_allclose(np.asarray(y, np.float32),
                               np.asarray(y_ref, np.float32),
                               rtol=0.1, atol=0.05)

    print("KERNEL_OK")
</pallas_src>

<mosaic_0001>
module attributes {stable_mosaic.version = 11 : i64} {
  func.func @_fire_kernel(%arg0: i32, %arg1: memref<1x256x64xbf16, #tpu.memory_space<vmem>>, %arg2: memref<64x16xbf16, #tpu.memory_space<vmem>>, %arg3: memref<1x16xf32, #tpu.memory_space<vmem>>, %arg4: memref<144x128xbf16, #tpu.memory_space<vmem>>, %arg5: memref<1x128xf32, #tpu.memory_space<vmem>>, %arg6: memref<1x256x128xbf16, #tpu.memory_space<vmem>>) attributes {dimension_semantics = [#tpu.dimension_semantics<parallel>], iteration_bounds = array<i64: 2>, scalar_prefetch = 0 : i64, scratch_operands = 0 : i64, tpu.core_type = #tpu.core_type<tc>, window_params = [{transform_indices = @transform_0, window_bounds = array<i64: 1, 256, 64>}, {pipeline_mode = #tpu.pipeline_mode<synchronous>, transform_indices = @transform_1, window_bounds = array<i64: 64, 16>}, {pipeline_mode = #tpu.pipeline_mode<synchronous>, transform_indices = @transform_2, window_bounds = array<i64: 1, 16>}, {pipeline_mode = #tpu.pipeline_mode<synchronous>, transform_indices = @transform_3, window_bounds = array<i64: 144, 128>}, {pipeline_mode = #tpu.pipeline_mode<synchronous>, transform_indices = @transform_4, window_bounds = array<i64: 1, 128>}, {transform_indices = @transform_5, window_bounds = array<i64: 1, 256, 128>}]} {
    %c0 = arith.constant 0 : index
    %c0_0 = arith.constant 0 : index
    %c0_1 = arith.constant 0 : index
    %0 = vector.load %arg1[%c0, %c0_0, %c0_1] : memref<1x256x64xbf16, #tpu.memory_space<vmem>>, vector<1x256x64xbf16>
    %1 = vector.shape_cast %0 : vector<1x256x64xbf16> to vector<256x64xbf16>
    %c0_2 = arith.constant 0 : index
    %c0_3 = arith.constant 0 : index
    %2 = vector.load %arg2[%c0_2, %c0_3] : memref<64x16xbf16, #tpu.memory_space<vmem>>, vector<64x16xbf16>
    %c0_4 = arith.constant 0 : index
    %c0_5 = arith.constant 0 : index
    %3 = vector.load %arg3[%c0_4, %c0_5] : memref<1x16xf32, #tpu.memory_space<vmem>>, vector<1x16xf32>
    %c0_6 = arith.constant 0 : index
    %c0_7 = arith.constant 0 : index
    %4 = vector.load %arg4[%c0_6, %c0_7] : memref<144x128xbf16, #tpu.memory_space<vmem>>, vector<144x128xbf16>
    %c0_8 = arith.constant 0 : index
    %c0_9 = arith.constant 0 : index
    %5 = vector.load %arg5[%c0_8, %c0_9] : memref<1x128xf32, #tpu.memory_space<vmem>>, vector<1x128xf32>
    %cst = arith.constant dense<0.000000e+00> : vector<256x16xf32>
    %6 = tpu.matmul %1, %2, %cst {dimension_numbers = #tpu.dot_dimension_numbers<[1], [0], [0], [1], [0, 0, 1, 1], [], []>} : vector<256x64xbf16>, vector<64x16xbf16>, vector<256x16xf32> -> vector<256x16xf32>
    %7 = vector.broadcast %3 : vector<1x16xf32> to vector<256x16xf32>
    %8 = arith.addf %6, %7 : vector<256x16xf32>
    %cst_10 = arith.constant 0.000000e+00 : f32
    %9 = vector.broadcast %cst_10 : f32 to vector<256x16xf32>
    %10 = arith.maximumf %8, %9 : vector<256x16xf32>
    %11 = tpu.iota {dimensions = array<i32: 0>} : vector<256x1xi32>
    %c16_i32 = arith.constant 16 : i32
    %c0_i32 = arith.constant 0 : i32
    %12 = arith.cmpi eq, %c16_i32, %c0_i32 : i32
    %c1_i32 = arith.constant 1 : i32
    %13 = arith.select %12, %c1_i32, %c16_i32 : i32
    %14 = vector.broadcast %13 : i32 to vector<256x1xi32>
    %15 = arith.remsi %11, %14 : vector<256x1xi32>
    %c0_i32_11 = arith.constant 0 : i32
    %16 = vector.broadcast %c0_i32_11 : i32 to vector<256x1xi32>
    %17 = arith.cmpi ne, %15, %16 : vector<256x1xi32>
    %c0_i32_12 = arith.constant 0 : i32
    %18 = vector.broadcast %c0_i32_12 : i32 to vector<256x1xi32>
    %19 = arith.cmpi slt, %15, %18 : vector<256x1xi32>
    %c0_i32_13 = arith.constant 0 : i32
    %20 = arith.cmpi slt, %13, %c0_i32_13 : i32
    %21 = vector.broadcast %20 : i1 to vector<256x1xi1>
    %22 = vector.broadcast %21 : vector<256x1xi1> to vector<256x1xi1>
    %23 = arith.xori %19, %22 : vector<256x1xi1>
    %24 = arith.andi %23, %17 : vector<256x1xi1>
    %25 = vector.broadcast %13 : i32 to vector<256x1xi32>
    %26 = arith.addi %15, %25 : vector<256x1xi32>
    %27 = arith.select %24, %26, %15 : vector<256x1xi1>, vector<256x1xi32>
    %28 = arith.truncf %10 : vector<256x16xf32> to vector<256x16xbf16>
    %c15_i32 = arith.constant 15 : i32
    %29 = vector.broadcast %c15_i32 : i32 to vector<256x1xi32>
    %30 = arith.cmpi eq, %27, %29 : vector<256x1xi32>
    %cst_14 = arith.constant 0.000000e+00 : f32
    %31 = vector.shape_cast %30 : vector<256x1xi1> to vector<256x1xi1>
    %32 = vector.broadcast %31 : vector<256x1xi1> to vector<256x16xi1>
    %33 = vector.broadcast %cst_14 : f32 to vector<256x16xf32>
    %34 = arith.select %32, %33, %10 : vector<256x16xi1>, vector<256x16xf32>
    %35 = arith.truncf %34 : vector<256x16xf32> to vector<256x16xbf16>
    %c0_i32_15 = arith.constant 0 : i32
    %36 = vector.broadcast %c0_i32_15 : i32 to vector<256x1xi32>
    %37 = arith.cmpi eq, %27, %36 : vector<256x1xi32>
    %cst_16 = arith.constant 0.000000e+00 : f32
    %38 = vector.shape_cast %37 : vector<256x1xi1> to vector<256x1xi1>
    %39 = vector.broadcast %38 : vector<256x1xi1> to vector<256x16xi1>
    %40 = vector.broadcast %cst_16 : f32 to vector<256x16xf32>
    %41 = arith.select %39, %40, %10 : vector<256x16xi1>, vector<256x16xf32>
    %42 = arith.truncf %41 : vector<256x16xf32> to vector<256x16xbf16>
    %cst_17 = arith.constant 0.000000e+00 : bf16
    %43 = vector.broadcast %cst_17 : bf16 to vector<17x16xbf16>
    %44 = tpu.concatenate %43, %35, %43 in 0 : vector<17x16xbf16>, vector<256x16xbf16>, vector<17x16xbf16> -> vector<290x16xbf16>
    %45 = tpu.concatenate %43, %28, %43 in 0 : vector<17x16xbf16>, vector<256x16xbf16>, vector<17x16xbf16> -> vector<290x16xbf16>
    %46 = tpu.concatenate %43, %42, %43 in 0 : vector<17x16xbf16>, vector<256x16xbf16>, vector<17x16xbf16> -> vector<290x16xbf16>
    %47 = vector.extract_strided_slice %44 {offsets = [0, 0], sizes = [256, 16], strides = [1, 1]} : vector<290x16xbf16> to vector<256x16xbf16>
    %48 = vector.extract_strided_slice %45 {offsets = [1, 0], sizes = [256, 16], strides = [1, 1]} : vector<290x16xbf16> to vector<256x16xbf16>
    %49 = vector.extract_strided_slice %46 {offsets = [2, 0], sizes = [256, 16], strides = [1, 1]} : vector<290x16xbf16> to vector<256x16xbf16>
    %50 = vector.extract_strided_slice %44 {offsets = [16, 0], sizes = [256, 16], strides = [1, 1]} : vector<290x16xbf16> to vector<256x16xbf16>
    %51 = vector.extract_strided_slice %45 {offsets = [17, 0], sizes = [256, 16], strides = [1, 1]} : vector<290x16xbf16> to vector<256x16xbf16>
    %52 = vector.extract_strided_slice %46 {offsets = [18, 0], sizes = [256, 16], strides = [1, 1]} : vector<290x16xbf16> to vector<256x16xbf16>
    %53 = vector.extract_strided_slice %44 {offsets = [32, 0], sizes = [256, 16], strides = [1, 1]} : vector<290x16xbf16> to vector<256x16xbf16>
    %54 = vector.extract_strided_slice %45 {offsets = [33, 0], sizes = [256, 16], strides = [1, 1]} : vector<290x16xbf16> to vector<256x16xbf16>
    %55 = vector.extract_strided_slice %46 {offsets = [34, 0], sizes = [256, 16], strides = [1, 1]} : vector<290x16xbf16> to vector<256x16xbf16>
    %56 = tpu.concatenate %47, %48, %49, %50, %51, %52, %53, %54, %55 in 1 : vector<256x16xbf16>, vector<256x16xbf16>, vector<256x16xbf16>, vector<256x16xbf16>, vector<256x16xbf16>, vector<256x16xbf16>, vector<256x16xbf16>, vector<256x16xbf16>, vector<256x16xbf16> -> vector<256x144xbf16>
    %cst_18 = arith.constant dense<0.000000e+00> : vector<256x128xf32>
    %57 = tpu.matmul %56, %4, %cst_18 {dimension_numbers = #tpu.dot_dimension_numbers<[1], [0], [0], [1], [0, 0, 1, 1], [], []>} : vector<256x144xbf16>, vector<144x128xbf16>, vector<256x128xf32> -> vector<256x128xf32>
    %58 = vector.broadcast %5 : vector<1x128xf32> to vector<256x128xf32>
    %59 = arith.addf %57, %58 : vector<256x128xf32>
    %cst_19 = arith.constant 0.000000e+00 : f32
    %60 = vector.broadcast %cst_19 : f32 to vector<256x128xf32>
    %61 = arith.maximumf %59, %60 : vector<256x128xf32>
    %62 = arith.truncf %61 : vector<256x128xf32> to vector<256x128xbf16>
    %c0_20 = arith.constant 0 : index
    %c0_21 = arith.constant 0 : index
    %c0_22 = arith.constant 0 : index
    %63 = vector.load %arg6[%c0_20, %c0_21, %c0_22] : memref<1x256x128xbf16, #tpu.memory_space<vmem>>, vector<1x256x128xbf16>
    %64 = vector.shape_cast %63 : vector<1x256x128xbf16> to vector<256x128xbf16>
    %65 = vector.shape_cast %62 : vector<256x128xbf16> to vector<1x256x128xbf16>
    tpu.vector_store %arg6[%c0_20, %c0_21, %c0_22], %65 {strides = array<i32>} : memref<1x256x128xbf16, #tpu.memory_space<vmem>>, vector<1x256x128xbf16>,
    return
  }
  func.func @transform_0(%arg0: i32) -> (i32, i32, i32) {
    %c0_i32 = arith.constant 0 : i32
    %c0_i32_0 = arith.constant 0 : i32
    %c0_i32_1 = arith.constant 0 : i32
    return %arg0, %c0_i32, %c0_i32_0 : i32, i32, i32
  }
  func.func @transform_1(%arg0: i32) -> (i32, i32) {
    %c0_i32 = arith.constant 0 : i32
    %c0_i32_0 = arith.constant 0 : i32
    %c0_i32_1 = arith.constant 0 : i32
    return %c0_i32, %c0_i32_0 : i32, i32
  }
  func.func @transform_2(%arg0: i32) -> (i32, i32) {
    %c0_i32 = arith.constant 0 : i32
    %c0_i32_0 = arith.constant 0 : i32
    %c0_i32_1 = arith.constant 0 : i32
    return %c0_i32, %c0_i32_0 : i32, i32
  }
  func.func @transform_3(%arg0: i32) -> (i32, i32) {
    %c0_i32 = arith.constant 0 : i32
    %c0_i32_0 = arith.constant 0 : i32
    %c0_i32_1 = arith.constant 0 : i32
    return %c0_i32, %c0_i32_0 : i32, i32
  }
  func.func @transform_4(%arg0: i32) -> (i32, i32) {
    %c0_i32 = arith.constant 0 : i32
    %c0_i32_0 = arith.constant 0 : i32
    %c0_i32_1 = arith.constant 0 : i32
    return %c0_i32, %c0_i32_0 : i32, i32
  }
  func.func @transform_5(%arg0: i32) -> (i32, i32, i32) {
    %c0_i32 = arith.constant 0 : i32
    %c0_i32_0 = arith.constant 0 : i32
    %c0_i32_1 = arith.constant 0 : i32
    return %arg0, %c0_i32, %c0_i32_0 : i32, i32, i32
  }
}

module attributes {stable_mosaic.version = 11 : i64} {
  func.func @_fire_kernel(%arg0: i32, %arg1: memref<1x256x128xbf16, #tpu.memory_space<vmem>>, %arg2: memref<128x16xbf16, #tpu.memory_space<vmem>>, %arg3: memref<1x16xf32, #tpu.memory_space<vmem>>, %arg4: memref<144x128xbf16, #tpu.memory_space<vmem>>, %arg5: memref<1x128xf32, #tpu.memory_space<vmem>>, %arg6: memref<1x256x128xbf16, #tpu.memory_space<vmem>>) attributes {dimension_semantics = [#tpu.dimension_semantics<parallel>], iteration_bounds = array<i64: 2>, scalar_prefetch = 0 : i64, scratch_operands = 0 : i64, tpu.core_type = #tpu.core_type<tc>, window_params = [{transform_indices = @transform_0, window_bounds = array<i64: 1, 256, 128>}, {pipeline_mode = #tpu.pipeline_mode<synchronous>, transform_indices = @transform_1, window_bounds = array<i64: 128, 16>}, {pipeline_mode = #tpu.pipeline_mode<synchronous>, transform_indices = @transform_2, window_bounds = array<i64: 1, 16>}, {pipeline_mode = #tpu.pipeline_mode<synchronous>, transform_indices = @transform_3, window_bounds = array<i64: 144, 128>}, {pipeline_mode = #tpu.pipeline_mode<synchronous>, transform_indices = @transform_4, window_bounds = array<i64: 1, 128>}, {transform_indices = @transform_5, window_bounds = array<i64: 1, 256, 128>}]} {
    %c0 = arith.constant 0 : index
    %c0_0 = arith.constant 0 : index
    %c0_1 = arith.constant 0 : index
    %0 = vector.load %arg1[%c0, %c0_0, %c0_1] : memref<1x256x128xbf16, #tpu.memory_space<vmem>>, vector<1x256x128xbf16>
    %1 = vector.shape_cast %0 : vector<1x256x128xbf16> to vector<256x128xbf16>
    %c0_2 = arith.constant 0 : index
    %c0_3 = arith.constant 0 : index
    %2 = vector.load %arg2[%c0_2, %c0_3] : memref<128x16xbf16, #tpu.memory_space<vmem>>, vector<128x16xbf16>
    %c0_4 = arith.constant 0 : index
    %c0_5 = arith.constant 0 : index
    %3 = vector.load %arg3[%c0_4, %c0_5] : memref<1x16xf32, #tpu.memory_space<vmem>>, vector<1x16xf32>
    %c0_6 = arith.constant 0 : index
    %c0_7 = arith.constant 0 : index
    %4 = vector.load %arg4[%c0_6, %c0_7] : memref<144x128xbf16, #tpu.memory_space<vmem>>, vector<144x128xbf16>
    %c0_8 = arith.constant 0 : index
    %c0_9 = arith.constant 0 : index
    %5 = vector.load %arg5[%c0_8, %c0_9] : memref<1x128xf32, #tpu.memory_space<vmem>>, vector<1x128xf32>
    %cst = arith.constant dense<0.000000e+00> : vector<256x16xf32>
    %6 = tpu.matmul %1, %2, %cst {dimension_numbers = #tpu.dot_dimension_numbers<[1], [0], [0], [1], [0, 0, 1, 1], [], []>} : vector<256x128xbf16>, vector<128x16xbf16>, vector<256x16xf32> -> vector<256x16xf32>
    %7 = vector.broadcast %3 : vector<1x16xf32> to vector<256x16xf32>
    %8 = arith.addf %6, %7 : vector<256x16xf32>
    %cst_10 = arith.constant 0.000000e+00 : f32
    %9 = vector.broadcast %cst_10 : f32 to vector<256x16xf32>
    %10 = arith.maximumf %8, %9 : vector<256x16xf32>
    %11 = tpu.iota {dimensions = array<i32: 0>} : vector<256x1xi32>
    %c16_i32 = arith.constant 16 : i32
    %c0_i32 = arith.constant 0 : i32
    %12 = arith.cmpi eq, %c16_i32, %c0_i32 : i32
    %c1_i32 = arith.constant 1 : i32
    %13 = arith.select %12, %c1_i32, %c16_i32 : i32
    %14 = vector.broadcast %13 : i32 to vector<256x1xi32>
    %15 = arith.remsi %11, %14 : vector<256x1xi32>
    %c0_i32_11 = arith.constant 0 : i32
    %16 = vector.broadcast %c0_i32_11 : i32 to vector<256x1xi32>
    %17 = arith.cmpi ne, %15, %16 : vector<256x1xi32>
    %c0_i32_12 = arith.constant 0 : i32
    %18 = vector.broadcast %c0_i32_12 : i32 to vector<256x1xi32>
    %19 = arith.cmpi slt, %15, %18 : vector<256x1xi32>
    %c0_i32_13 = arith.constant 0 : i32
    %20 = arith.cmpi slt, %13, %c0_i32_13 : i32
    %21 = vector.broadcast %20 : i1 to vector<256x1xi1>
    %22 = vector.broadcast %21 : vector<256x1xi1> to vector<256x1xi1>
    %23 = arith.xori %19, %22 : vector<256x1xi1>
    %24 = arith.andi %23, %17 : vector<256x1xi1>
    %25 = vector.broadcast %13 : i32 to vector<256x1xi32>
    %26 = arith.addi %15, %25 : vector<256x1xi32>
    %27 = arith.select %24, %26, %15 : vector<256x1xi1>, vector<256x1xi32>
    %28 = arith.truncf %10 : vector<256x16xf32> to vector<256x16xbf16>
    %c15_i32 = arith.constant 15 : i32
    %29 = vector.broadcast %c15_i32 : i32 to vector<256x1xi32>
    %30 = arith.cmpi eq, %27, %29 : vector<256x1xi32>
    %cst_14 = arith.constant 0.000000e+00 : f32
    %31 = vector.shape_cast %30 : vector<256x1xi1> to vector<256x1xi1>
    %32 = vector.broadcast %31 : vector<256x1xi1> to vector<256x16xi1>
    %33 = vector.broadcast %cst_14 : f32 to vector<256x16xf32>
    %34 = arith.select %32, %33, %10 : vector<256x16xi1>, vector<256x16xf32>
    %35 = arith.truncf %34 : vector<256x16xf32> to vector<256x16xbf16>
    %c0_i32_15 = arith.constant 0 : i32
    %36 = vector.broadcast %c0_i32_15 : i32 to vector<256x1xi32>
    %37 = arith.cmpi eq, %27, %36 : vector<256x1xi32>
    %cst_16 = arith.constant 0.000000e+00 : f32
    %38 = vector.shape_cast %37 : vector<256x1xi1> to vector<256x1xi1>
    %39 = vector.broadcast %38 : vector<256x1xi1> to vector<256x16xi1>
    %40 = vector.broadcast %cst_16 : f32 to vector<256x16xf32>
    %41 = arith.select %39, %40, %10 : vector<256x16xi1>, vector<256x16xf32>
    %42 = arith.truncf %41 : vector<256x16xf32> to vector<256x16xbf16>
    %cst_17 = arith.constant 0.000000e+00 : bf16
    %43 = vector.broadcast %cst_17 : bf16 to vector<17x16xbf16>
    %44 = tpu.concatenate %43, %35, %43 in 0 : vector<17x16xbf16>, vector<256x16xbf16>, vector<17x16xbf16> -> vector<290x16xbf16>
    %45 = tpu.concatenate %43, %28, %43 in 0 : vector<17x16xbf16>, vector<256x16xbf16>, vector<17x16xbf16> -> vector<290x16xbf16>
    %46 = tpu.concatenate %43, %42, %43 in 0 : vector<17x16xbf16>, vector<256x16xbf16>, vector<17x16xbf16> -> vector<290x16xbf16>
    %47 = vector.extract_strided_slice %44 {offsets = [0, 0], sizes = [256, 16], strides = [1, 1]} : vector<290x16xbf16> to vector<256x16xbf16>
    %48 = vector.extract_strided_slice %45 {offsets = [1, 0], sizes = [256, 16], strides = [1, 1]} : vector<290x16xbf16> to vector<256x16xbf16>
    %49 = vector.extract_strided_slice %46 {offsets = [2, 0], sizes = [256, 16], strides = [1, 1]} : vector<290x16xbf16> to vector<256x16xbf16>
    %50 = vector.extract_strided_slice %44 {offsets = [16, 0], sizes = [256, 16], strides = [1, 1]} : vector<290x16xbf16> to vector<256x16xbf16>
    %51 = vector.extract_strided_slice %45 {offsets = [17, 0], sizes = [256, 16], strides = [1, 1]} : vector<290x16xbf16> to vector<256x16xbf16>
    %52 = vector.extract_strided_slice %46 {offsets = [18, 0], sizes = [256, 16], strides = [1, 1]} : vector<290x16xbf16> to vector<256x16xbf16>
    %53 = vector.extract_strided_slice %44 {offsets = [32, 0], sizes = [256, 16], strides = [1, 1]} : vector<290x16xbf16> to vector<256x16xbf16>
    %54 = vector.extract_strided_slice %45 {offsets = [33, 0], sizes = [256, 16], strides = [1, 1]} : vector<290x16xbf16> to vector<256x16xbf16>
    %55 = vector.extract_strided_slice %46 {offsets = [34, 0], sizes = [256, 16], strides = [1, 1]} : vector<290x16xbf16> to vector<256x16xbf16>
    %56 = tpu.concatenate %47, %48, %49, %50, %51, %52, %53, %54, %55 in 1 : vector<256x16xbf16>, vector<256x16xbf16>, vector<256x16xbf16>, vector<256x16xbf16>, vector<256x16xbf16>, vector<256x16xbf16>, vector<256x16xbf16>, vector<256x16xbf16>, vector<256x16xbf16> -> vector<256x144xbf16>
    %cst_18 = arith.constant dense<0.000000e+00> : vector<256x128xf32>
    %57 = tpu.matmul %56, %4, %cst_18 {dimension_numbers = #tpu.dot_dimension_numbers<[1], [0], [0], [1], [0, 0, 1, 1], [], []>} : vector<256x144xbf16>, vector<144x128xbf16>, vector<256x128xf32> -> vector<256x128xf32>
    %58 = vector.broadcast %5 : vector<1x128xf32> to vector<256x128xf32>
    %59 = arith.addf %57, %58 : vector<256x128xf32>
    %cst_19 = arith.constant 0.000000e+00 : f32
    %60 = vector.broadcast %cst_19 : f32 to vector<256x128xf32>
    %61 = arith.maximumf %59, %60 : vector<256x128xf32>
    %62 = arith.truncf %61 : vector<256x128xf32> to vector<256x128xbf16>
    %c0_20 = arith.constant 0 : index
    %c0_21 = arith.constant 0 : index
    %c0_22 = arith.constant 0 : index
    %63 = vector.load %arg6[%c0_20, %c0_21, %c0_22] : memref<1x256x128xbf16, #tpu.memory_space<vmem>>, vector<1x256x128xbf16>
    %64 = vector.shape_cast %63 : vector<1x256x128xbf16> to vector<256x128xbf16>
    %65 = vector.shape_cast %62 : vector<256x128xbf16> to vector<1x256x128xbf16>
    tpu.vector_store %arg6[%c0_20, %c0_21, %c0_22], %65 {strides = array<i32>} : memref<1x256x128xbf16, #tpu.memory_space<vmem>>, vector<1x256x128xbf16>,
    return
  }
  func.func @transform_0(%arg0: i32) -> (i32, i32, i32) {
    %c0_i32 = arith.constant 0 : i32
    %c0_i32_0 = arith.constant 0 : i32
    %c0_i32_1 = arith.constant 0 : i32
    return %arg0, %c0_i32, %c0_i32_0 : i32, i32, i32
  }
  func.func @transform_1(%arg0: i32) -> (i32, i32) {
    %c0_i32 = arith.constant 0 : i32
    %c0_i32_0 = arith.constant 0 : i32
    %c0_i32_1 = arith.constant 0 : i32
    return %c0_i32, %c0_i32_0 : i32, i32
  }
  func.func @transform_2(%arg0: i32) -> (i32, i32) {
    %c0_i32 = arith.constant 0 : i32
    %c0_i32_0 = arith.constant 0 : i32
    %c0_i32_1 = arith.constant 0 : i32
    return %c0_i32, %c0_i32_0 : i32, i32
  }
  func.func @transform_3(%arg0: i32) -> (i32, i32) {
    %c0_i32 = arith.constant 0 : i32
    %c0_i32_0 = arith.constant 0 : i32
    %c0_i32_1 = arith.constant 0 : i32
    return %c0_i32, %c0_i32_0 : i32, i32
  }
  func.func @transform_4(%arg0: i32) -> (i32, i32) {
    %c0_i32 = arith.constant 0 : i32
    %c0_i32_0 = arith.constant 0 : i32
    %c0_i32_1 = arith.constant 0 : i32
    return %c0_i32, %c0_i32_0 : i32, i32
  }
  func.func @transform_5(%arg0: i32) -> (i32, i32, i32) {
    %c0_i32 = arith.constant 0 : i32
    %c0_i32_0 = arith.constant 0 : i32
    %c0_i32_1 = arith.constant 0 : i32
    return %arg0, %c0_i32, %c0_i32_0 : i32, i32, i32
  }
}

module attributes {stable_mosaic.version = 11 : i64} {
  func.func @_maxpool_kernel(%arg0: i32, %arg1: memref<1x16x8x256xbf16, #tpu.memory_space<vmem>>, %arg2: memref<1x8x8x128xbf16, #tpu.memory_space<vmem>>) attributes {dimension_semantics = [#tpu.dimension_semantics<parallel>], iteration_bounds = array<i64: 2>, scalar_prefetch = 0 : i64, scratch_operands = 0 : i64, tpu.core_type = #tpu.core_type<tc>, window_params = [{transform_indices = @transform_0, window_bounds = array<i64: 1, 16, 8, 256>}, {transform_indices = @transform_1, window_bounds = array<i64: 1, 8, 8, 128>}]} {
    %c0 = arith.constant 0 : index
    %c0_0 = arith.constant 0 : index
    %c0_1 = arith.constant 0 : index
    %c0_2 = arith.constant 0 : index
    %0 = vector.load %arg1[%c0, %c0_0, %c0_1, %c0_2] : memref<1x16x8x256xbf16, #tpu.memory_space<vmem>>, vector<1x16x8x256xbf16>
    %1 = vector.shape_cast %0 : vector<1x16x8x256xbf16> to vector<16x8x256xbf16>
    %2 = vector.extract_strided_slice %1 {offsets = [0, 0, 0], sizes = [16, 8, 128], strides = [1, 1, 1]} : vector<16x8x256xbf16> to vector<16x8x128xbf16>
    %3 = vector.extract_strided_slice %1 {offsets = [0, 0, 128], sizes = [16, 8, 128], strides = [1, 1, 1]} : vector<16x8x256xbf16> to vector<16x8x128xbf16>
    %4 = arith.maximumf %2, %3 : vector<16x8x128xbf16>
    %5 = vector.extract_strided_slice %4 {offsets = [0, 0, 0], sizes = [16, 7, 128], strides = [1, 1, 1]} : vector<16x8x128xbf16> to vector<16x7x128xbf16>
    %6 = vector.extract_strided_slice %2 {offsets = [0, 1, 0], sizes = [16, 7, 128], strides = [1, 1, 1]} : vector<16x8x128xbf16> to vector<16x7x128xbf16>
    %7 = arith.maximumf %5, %6 : vector<16x7x128xbf16>
    %8 = vector.extract_strided_slice %4 {offsets = [0, 7, 0], sizes = [16, 1, 128], strides = [1, 1, 1]} : vector<16x8x128xbf16> to vector<16x1x128xbf16>
    %9 = tpu.concatenate %7, %8 in 1 : vector<16x7x128xbf16>, vector<16x1x128xbf16> -> vector<16x8x128xbf16>
    %10 = vector.shape_cast %9 : vector<16x8x128xbf16> to vector<8x2x8x128xbf16>
    %11 = vector.extract_strided_slice %10 {offsets = [0, 0, 0, 0], sizes = [8, 1, 8, 128], strides = [1, 1, 1, 1]} : vector<8x2x8x128xbf16> to vector<8x1x8x128xbf16>
    %12 = vector.shape_cast %11 : vector<8x1x8x128xbf16> to vector<8x8x128xbf16>
    %13 = vector.extract_strided_slice %10 {offsets = [0, 1, 0, 0], sizes = [8, 1, 8, 128], strides = [1, 1, 1, 1]} : vector<8x2x8x128xbf16> to vector<8x1x8x128xbf16>
    %14 = vector.shape_cast %13 : vector<8x1x8x128xbf16> to vector<8x8x128xbf16>
    %15 = arith.maximumf %12, %14 : vector<8x8x128xbf16>
    %16 = vector.extract_strided_slice %15 {offsets = [0, 0, 0], sizes = [7, 8, 128], strides = [1, 1, 1]} : vector<8x8x128xbf16> to vector<7x8x128xbf16>
    %17 = vector.extract_strided_slice %12 {offsets = [1, 0, 0], sizes = [7, 8, 128], strides = [1, 1, 1]} : vector<8x8x128xbf16> to vector<7x8x128xbf16>
    %18 = arith.maximumf %16, %17 : vector<7x8x128xbf16>
    %19 = vector.extract_strided_slice %15 {offsets = [7, 0, 0], sizes = [1, 8, 128], strides = [1, 1, 1]} : vector<8x8x128xbf16> to vector<1x8x128xbf16>
    %20 = tpu.concatenate %18, %19 in 0 : vector<7x8x128xbf16>, vector<1x8x128xbf16> -> vector<8x8x128xbf16>
    %c0_3 = arith.constant 0 : index
    %c0_4 = arith.constant 0 : index
    %c0_5 = arith.constant 0 : index
    %c0_6 = arith.constant 0 : index
    %21 = vector.load %arg2[%c0_3, %c0_4, %c0_5, %c0_6] : memref<1x8x8x128xbf16, #tpu.memory_space<vmem>>, vector<1x8x8x128xbf16>
    %22 = vector.shape_cast %21 : vector<1x8x8x128xbf16> to vector<8x8x128xbf16>
    %23 = vector.shape_cast %20 : vector<8x8x128xbf16> to vector<1x8x8x128xbf16>
    tpu.vector_store %arg2[%c0_3, %c0_4, %c0_5, %c0_6], %23 {strides = array<i32>} : memref<1x8x8x128xbf16, #tpu.memory_space<vmem>>, vector<1x8x8x128xbf16>,
    return
  }
  func.func @transform_0(%arg0: i32) -> (i32, i32, i32, i32) {
    %c0_i32 = arith.constant 0 : i32
    %c0_i32_0 = arith.constant 0 : i32
    %c0_i32_1 = arith.constant 0 : i32
    %c0_i32_2 = arith.constant 0 : i32
    return %arg0, %c0_i32, %c0_i32_0, %c0_i32_1 : i32, i32, i32, i32
  }
  func.func @transform_1(%arg0: i32) -> (i32, i32, i32, i32) {
    %c0_i32 = arith.constant 0 : i32
    %c0_i32_0 = arith.constant 0 : i32
    %c0_i32_1 = arith.constant 0 : i32
    %c0_i32_2 = arith.constant 0 : i32
    return %arg0, %c0_i32, %c0_i32_0, %c0_i32_1 : i32, i32, i32, i32
  }
}

module attributes {stable_mosaic.version = 11 : i64} {
  func.func @_fire_kernel(%arg0: i32, %arg1: memref<1x64x128xbf16, #tpu.memory_space<vmem>>, %arg2: memref<128x32xbf16, #tpu.memory_space<vmem>>, %arg3: memref<1x32xf32, #tpu.memory_space<vmem>>, %arg4: memref<288x256xbf16, #tpu.memory_space<vmem>>, %arg5: memref<1x256xf32, #tpu.memory_space<vmem>>, %arg6: memref<1x64x256xbf16, #tpu.memory_space<vmem>>) attributes {dimension_semantics = [#tpu.dimension_semantics<parallel>], iteration_bounds = array<i64: 2>, scalar_prefetch = 0 : i64, scratch_operands = 0 : i64, tpu.core_type = #tpu.core_type<tc>, window_params = [{transform_indices = @transform_0, window_bounds = array<i64: 1, 64, 128>}, {pipeline_mode = #tpu.pipeline_mode<synchronous>, transform_indices = @transform_1, window_bounds = array<i64: 128, 32>}, {pipeline_mode = #tpu.pipeline_mode<synchronous>, transform_indices = @transform_2, window_bounds = array<i64: 1, 32>}, {pipeline_mode = #tpu.pipeline_mode<synchronous>, transform_indices = @transform_3, window_bounds = array<i64: 288, 256>}, {pipeline_mode = #tpu.pipeline_mode<synchronous>, transform_indices = @transform_4, window_bounds = array<i64: 1, 256>}, {transform_indices = @transform_5, window_bounds = array<i64: 1, 64, 256>}]} {
    %c0 = arith.constant 0 : index
    %c0_0 = arith.constant 0 : index
    %c0_1 = arith.constant 0 : index
    %0 = vector.load %arg1[%c0, %c0_0, %c0_1] : memref<1x64x128xbf16, #tpu.memory_space<vmem>>, vector<1x64x128xbf16>
    %1 = vector.shape_cast %0 : vector<1x64x128xbf16> to vector<64x128xbf16>
    %c0_2 = arith.constant 0 : index
    %c0_3 = arith.constant 0 : index
    %2 = vector.load %arg2[%c0_2, %c0_3] : memref<128x32xbf16, #tpu.memory_space<vmem>>, vector<128x32xbf16>
    %c0_4 = arith.constant 0 : index
    %c0_5 = arith.constant 0 : index
    %3 = vector.load %arg3[%c0_4, %c0_5] : memref<1x32xf32, #tpu.memory_space<vmem>>, vector<1x32xf32>
    %c0_6 = arith.constant 0 : index
    %c0_7 = arith.constant 0 : index
    %4 = vector.load %arg4[%c0_6, %c0_7] : memref<288x256xbf16, #tpu.memory_space<vmem>>, vector<288x256xbf16>
    %c0_8 = arith.constant 0 : index
    %c0_9 = arith.constant 0 : index
    %5 = vector.load %arg5[%c0_8, %c0_9] : memref<1x256xf32, #tpu.memory_space<vmem>>, vector<1x256xf32>
    %cst = arith.constant dense<0.000000e+00> : vector<64x32xf32>
    %6 = tpu.matmul %1, %2, %cst {dimension_numbers = #tpu.dot_dimension_numbers<[1], [0], [0], [1], [0, 0, 1, 1], [], []>} : vector<64x128xbf16>, vector<128x32xbf16>, vector<64x32xf32> -> vector<64x32xf32>
    %7 = vector.broadcast %3 : vector<1x32xf32> to vector<64x32xf32>
    %8 = arith.addf %6, %7 : vector<64x32xf32>
    %cst_10 = arith.constant 0.000000e+00 : f32
    %9 = vector.broadcast %cst_10 : f32 to vector<64x32xf32>
    %10 = arith.maximumf %8, %9 : vector<64x32xf32>
    %11 = tpu.iota {dimensions = array<i32: 0>} : vector<64x1xi32>
    %c8_i32 = arith.constant 8 : i32
    %c0_i32 = arith.constant 0 : i32
    %12 = arith.cmpi eq, %c8_i32, %c0_i32 : i32
    %c1_i32 = arith.constant 1 : i32
    %13 = arith.select %12, %c1_i32, %c8_i32 : i32
    %14 = vector.broadcast %13 : i32 to vector<64x1xi32>
    %15 = arith.remsi %11, %14 : vector<64x1xi32>
    %c0_i32_11 = arith.constant 0 : i32
    %16 = vector.broadcast %c0_i32_11 : i32 to vector<64x1xi32>
    %17 = arith.cmpi ne, %15, %16 : vector<64x1xi32>
    %c0_i32_12 = arith.constant 0 : i32
    %18 = vector.broadcast %c0_i32_12 : i32 to vector<64x1xi32>
    %19 = arith.cmpi slt, %15, %18 : vector<64x1xi32>
    %c0_i32_13 = arith.constant 0 : i32
    %20 = arith.cmpi slt, %13, %c0_i32_13 : i32
    %21 = vector.broadcast %20 : i1 to vector<64x1xi1>
    %22 = vector.broadcast %21 : vector<64x1xi1> to vector<64x1xi1>
    %23 = arith.xori %19, %22 : vector<64x1xi1>
    %24 = arith.andi %23, %17 : vector<64x1xi1>
    %25 = vector.broadcast %13 : i32 to vector<64x1xi32>
    %26 = arith.addi %15, %25 : vector<64x1xi32>
    %27 = arith.select %24, %26, %15 : vector<64x1xi1>, vector<64x1xi32>
    %28 = arith.truncf %10 : vector<64x32xf32> to vector<64x32xbf16>
    %c7_i32 = arith.constant 7 : i32
    %29 = vector.broadcast %c7_i32 : i32 to vector<64x1xi32>
    %30 = arith.cmpi eq, %27, %29 : vector<64x1xi32>
    %cst_14 = arith.constant 0.000000e+00 : f32
    %31 = vector.shape_cast %30 : vector<64x1xi1> to vector<64x1xi1>
    %32 = vector.broadcast %31 : vector<64x1xi1> to vector<64x32xi1>
    %33 = vector.broadcast %cst_14 : f32 to vector<64x32xf32>
    %34 = arith.select %32, %33, %10 : vector<64x32xi1>, vector<64x32xf32>
    %35 = arith.truncf %34 : vector<64x32xf32> to vector<64x32xbf16>
    %c0_i32_15 = arith.constant 0 : i32
    %36 = vector.broadcast %c0_i32_15 : i32 to vector<64x1xi32>
    %37 = arith.cmpi eq, %27, %36 : vector<64x1xi32>
    %cst_16 = arith.constant 0.000000e+00 : f32
    %38 = vector.shape_cast %37 : vector<64x1xi1> to vector<64x1xi1>
    %39 = vector.broadcast %38 : vector<64x1xi1> to vector<64x32xi1>
    %40 = vector.broadcast %cst_16 : f32 to vector<64x32xf32>
    %41 = arith.select %39, %40, %10 : vector<64x32xi1>, vector<64x32xf32>
    %42 = arith.truncf %41 : vector<64x32xf32> to vector<64x32xbf16>
    %cst_17 = arith.constant 0.000000e+00 : bf16
    %43 = vector.broadcast %cst_17 : bf16 to vector<9x32xbf16>
    %44 = tpu.concatenate %43, %35, %43 in 0 : vector<9x32xbf16>, vector<64x32xbf16>, vector<9x32xbf16> -> vector<82x32xbf16>
    %45 = tpu.concatenate %43, %28, %43 in 0 : vector<9x32xbf16>, vector<64x32xbf16>, vector<9x32xbf16> -> vector<82x32xbf16>
    %46 = tpu.concatenate %43, %42, %43 in 0 : vector<9x32xbf16>, vector<64x32xbf16>, vector<9x32xbf16> -> vector<82x32xbf16>
    %47 = vector.extract_strided_slice %44 {offsets = [0, 0], sizes = [64, 32], strides = [1, 1]} : vector<82x32xbf16> to vector<64x32xbf16>
    %48 = vector.extract_strided_slice %45 {offsets = [1, 0], sizes = [64, 32], strides = [1, 1]} : vector<82x32xbf16> to vector<64x32xbf16>
    %49 = vector.extract_strided_slice %46 {offsets = [2, 0], sizes = [64, 32], strides = [1, 1]} : vector<82x32xbf16> to vector<64x32xbf16>
    %50 = vector.extract_strided_slice %44 {offsets = [8, 0], sizes = [64, 32], strides = [1, 1]} : vector<82x32xbf16> to vector<64x32xbf16>
    %51 = vector.extract_strided_slice %45 {offsets = [9, 0], sizes = [64, 32], strides = [1, 1]} : vector<82x32xbf16> to vector<64x32xbf16>
    %52 = vector.extract_strided_slice %46 {offsets = [10, 0], sizes = [64, 32], strides = [1, 1]} : vector<82x32xbf16> to vector<64x32xbf16>
    %53 = vector.extract_strided_slice %44 {offsets = [16, 0], sizes = [64, 32], strides = [1, 1]} : vector<82x32xbf16> to vector<64x32xbf16>
    %54 = vector.extract_strided_slice %45 {offsets = [17, 0], sizes = [64, 32], strides = [1, 1]} : vector<82x32xbf16> to vector<64x32xbf16>
    %55 = vector.extract_strided_slice %46 {offsets = [18, 0], sizes = [64, 32], strides = [1, 1]} : vector<82x32xbf16> to vector<64x32xbf16>
    %56 = tpu.concatenate %47, %48, %49, %50, %51, %52, %53, %54, %55 in 1 : vector<64x32xbf16>, vector<64x32xbf16>, vector<64x32xbf16>, vector<64x32xbf16>, vector<64x32xbf16>, vector<64x32xbf16>, vector<64x32xbf16>, vector<64x32xbf16>, vector<64x32xbf16> -> vector<64x288xbf16>
    %cst_18 = arith.constant dense<0.000000e+00> : vector<64x256xf32>
    %57 = tpu.matmul %56, %4, %cst_18 {dimension_numbers = #tpu.dot_dimension_numbers<[1], [0], [0], [1], [0, 0, 1, 1], [], []>} : vector<64x288xbf16>, vector<288x256xbf16>, vector<64x256xf32> -> vector<64x256xf32>
    %58 = vector.broadcast %5 : vector<1x256xf32> to vector<64x256xf32>
    %59 = arith.addf %57, %58 : vector<64x256xf32>
    %cst_19 = arith.constant 0.000000e+00 : f32
    %60 = vector.broadcast %cst_19 : f32 to vector<64x256xf32>
    %61 = arith.maximumf %59, %60 : vector<64x256xf32>
    %62 = arith.truncf %61 : vector<64x256xf32> to vector<64x256xbf16>
    %c0_20 = arith.constant 0 : index
    %c0_21 = arith.constant 0 : index
    %c0_22 = arith.constant 0 : index
    %63 = vector.load %arg6[%c0_20, %c0_21, %c0_22] : memref<1x64x256xbf16, #tpu.memory_space<vmem>>, vector<1x64x256xbf16>
    %64 = vector.shape_cast %63 : vector<1x64x256xbf16> to vector<64x256xbf16>
    %65 = vector.shape_cast %62 : vector<64x256xbf16> to vector<1x64x256xbf16>
    tpu.vector_store %arg6[%c0_20, %c0_21, %c0_22], %65 {strides = array<i32>} : memref<1x64x256xbf16, #tpu.memory_space<vmem>>, vector<1x64x256xbf16>,
    return
  }
  func.func @transform_0(%arg0: i32) -> (i32, i32, i32) {
    %c0_i32 = arith.constant 0 : i32
    %c0_i32_0 = arith.constant 0 : i32
    %c0_i32_1 = arith.constant 0 : i32
    return %arg0, %c0_i32, %c0_i32_0 : i32, i32, i32
  }
  func.func @transform_1(%arg0: i32) -> (i32, i32) {
    %c0_i32 = arith.constant 0 : i32
    %c0_i32_0 = arith.constant 0 : i32
    %c0_i32_1 = arith.constant 0 : i32
    return %c0_i32, %c0_i32_0 : i32, i32
  }
  func.func @transform_2(%arg0: i32) -> (i32, i32) {
    %c0_i32 = arith.constant 0 : i32
    %c0_i32_0 = arith.constant 0 : i32
    %c0_i32_1 = arith.constant 0 : i32
    return %c0_i32, %c0_i32_0 : i32, i32
  }
  func.func @transform_3(%arg0: i32) -> (i32, i32) {
    %c0_i32 = arith.constant 0 : i32
    %c0_i32_0 = arith.constant 0 : i32
    %c0_i32_1 = arith.constant 0 : i32
    return %c0_i32, %c0_i32_0 : i32, i32
  }
  func.func @transform_4(%arg0: i32) -> (i32, i32) {
    %c0_i32 = arith.constant 0 : i32
    %c0_i32_0 = arith.constant 0 : i32
    %c0_i32_1 = arith.constant 0 : i32
    return %c0_i32, %c0_i32_0 : i32, i32
  }
  func.func @transform_5(%arg0: i32) -> (i32, i32, i32) {
    %c0_i32 = arith.constant 0 : i32
    %c0_i32_0 = arith.constant 0 : i32
    %c0_i32_1 = arith.constant 0 : i32
    return %arg0, %c0_i32, %c0_i32_0 : i32, i32, i32
  }
}

module attributes {stable_mosaic.version = 11 : i64} {
  func.func @_fire_kernel(%arg0: i32, %arg1: memref<1x64x256xbf16, #tpu.memory_space<vmem>>, %arg2: memref<256x32xbf16, #tpu.memory_space<vmem>>, %arg3: memref<1x32xf32, #tpu.memory_space<vmem>>, %arg4: memref<288x256xbf16, #tpu.memory_space<vmem>>, %arg5: memref<1x256xf32, #tpu.memory_space<vmem>>, %arg6: memref<1x64x256xbf16, #tpu.memory_space<vmem>>) attributes {dimension_semantics = [#tpu.dimension_semantics<parallel>], iteration_bounds = array<i64: 2>, scalar_prefetch = 0 : i64, scratch_operands = 0 : i64, tpu.core_type = #tpu.core_type<tc>, window_params = [{transform_indices = @transform_0, window_bounds = array<i64: 1, 64, 256>}, {pipeline_mode = #tpu.pipeline_mode<synchronous>, transform_indices = @transform_1, window_bounds = array<i64: 256, 32>}, {pipeline_mode = #tpu.pipeline_mode<synchronous>, transform_indices = @transform_2, window_bounds = array<i64: 1, 32>}, {pipeline_mode = #tpu.pipeline_mode<synchronous>, transform_indices = @transform_3, window_bounds = array<i64: 288, 256>}, {pipeline_mode = #tpu.pipeline_mode<synchronous>, transform_indices = @transform_4, window_bounds = array<i64: 1, 256>}, {transform_indices = @transform_5, window_bounds = array<i64: 1, 64, 256>}]} {
    %c0 = arith.constant 0 : index
    %c0_0 = arith.constant 0 : index
    %c0_1 = arith.constant 0 : index
    %0 = vector.load %arg1[%c0, %c0_0, %c0_1] : memref<1x64x256xbf16, #tpu.memory_space<vmem>>, vector<1x64x256xbf16>
    %1 = vector.shape_cast %0 : vector<1x64x256xbf16> to vector<64x256xbf16>
    %c0_2 = arith.constant 0 : index
    %c0_3 = arith.constant 0 : index
    %2 = vector.load %arg2[%c0_2, %c0_3] : memref<256x32xbf16, #tpu.memory_space<vmem>>, vector<256x32xbf16>
    %c0_4 = arith.constant 0 : index
    %c0_5 = arith.constant 0 : index
    %3 = vector.load %arg3[%c0_4, %c0_5] : memref<1x32xf32, #tpu.memory_space<vmem>>, vector<1x32xf32>
    %c0_6 = arith.constant 0 : index
    %c0_7 = arith.constant 0 : index
    %4 = vector.load %arg4[%c0_6, %c0_7] : memref<288x256xbf16, #tpu.memory_space<vmem>>, vector<288x256xbf16>
    %c0_8 = arith.constant 0 : index
    %c0_9 = arith.constant 0 : index
    %5 = vector.load %arg5[%c0_8, %c0_9] : memref<1x256xf32, #tpu.memory_space<vmem>>, vector<1x256xf32>
    %cst = arith.constant dense<0.000000e+00> : vector<64x32xf32>
    %6 = tpu.matmul %1, %2, %cst {dimension_numbers = #tpu.dot_dimension_numbers<[1], [0], [0], [1], [0, 0, 1, 1], [], []>} : vector<64x256xbf16>, vector<256x32xbf16>, vector<64x32xf32> -> vector<64x32xf32>
    %7 = vector.broadcast %3 : vector<1x32xf32> to vector<64x32xf32>
    %8 = arith.addf %6, %7 : vector<64x32xf32>
    %cst_10 = arith.constant 0.000000e+00 : f32
    %9 = vector.broadcast %cst_10 : f32 to vector<64x32xf32>
    %10 = arith.maximumf %8, %9 : vector<64x32xf32>
    %11 = tpu.iota {dimensions = array<i32: 0>} : vector<64x1xi32>
    %c8_i32 = arith.constant 8 : i32
    %c0_i32 = arith.constant 0 : i32
    %12 = arith.cmpi eq, %c8_i32, %c0_i32 : i32
    %c1_i32 = arith.constant 1 : i32
    %13 = arith.select %12, %c1_i32, %c8_i32 : i32
    %14 = vector.broadcast %13 : i32 to vector<64x1xi32>
    %15 = arith.remsi %11, %14 : vector<64x1xi32>
    %c0_i32_11 = arith.constant 0 : i32
    %16 = vector.broadcast %c0_i32_11 : i32 to vector<64x1xi32>
    %17 = arith.cmpi ne, %15, %16 : vector<64x1xi32>
    %c0_i32_12 = arith.constant 0 : i32
    %18 = vector.broadcast %c0_i32_12 : i32 to vector<64x1xi32>
    %19 = arith.cmpi slt, %15, %18 : vector<64x1xi32>
    %c0_i32_13 = arith.constant 0 : i32
    %20 = arith.cmpi slt, %13, %c0_i32_13 : i32
    %21 = vector.broadcast %20 : i1 to vector<64x1xi1>
    %22 = vector.broadcast %21 : vector<64x1xi1> to vector<64x1xi1>
    %23 = arith.xori %19, %22 : vector<64x1xi1>
    %24 = arith.andi %23, %17 : vector<64x1xi1>
    %25 = vector.broadcast %13 : i32 to vector<64x1xi32>
    %26 = arith.addi %15, %25 : vector<64x1xi32>
    %27 = arith.select %24, %26, %15 : vector<64x1xi1>, vector<64x1xi32>
    %28 = arith.truncf %10 : vector<64x32xf32> to vector<64x32xbf16>
    %c7_i32 = arith.constant 7 : i32
    %29 = vector.broadcast %c7_i32 : i32 to vector<64x1xi32>
    %30 = arith.cmpi eq, %27, %29 : vector<64x1xi32>
    %cst_14 = arith.constant 0.000000e+00 : f32
    %31 = vector.shape_cast %30 : vector<64x1xi1> to vector<64x1xi1>
    %32 = vector.broadcast %31 : vector<64x1xi1> to vector<64x32xi1>
    %33 = vector.broadcast %cst_14 : f32 to vector<64x32xf32>
    %34 = arith.select %32, %33, %10 : vector<64x32xi1>, vector<64x32xf32>
    %35 = arith.truncf %34 : vector<64x32xf32> to vector<64x32xbf16>
    %c0_i32_15 = arith.constant 0 : i32
    %36 = vector.broadcast %c0_i32_15 : i32 to vector<64x1xi32>
    %37 = arith.cmpi eq, %27, %36 : vector<64x1xi32>
    %cst_16 = arith.constant 0.000000e+00 : f32
    %38 = vector.shape_cast %37 : vector<64x1xi1> to vector<64x1xi1>
    %39 = vector.broadcast %38 : vector<64x1xi1> to vector<64x32xi1>
    %40 = vector.broadcast %cst_16 : f32 to vector<64x32xf32>
    %41 = arith.select %39, %40, %10 : vector<64x32xi1>, vector<64x32xf32>
    %42 = arith.truncf %41 : vector<64x32xf32> to vector<64x32xbf16>
    %cst_17 = arith.constant 0.000000e+00 : bf16
    %43 = vector.broadcast %cst_17 : bf16 to vector<9x32xbf16>
    %44 = tpu.concatenate %43, %35, %43 in 0 : vector<9x32xbf16>, vector<64x32xbf16>, vector<9x32xbf16> -> vector<82x32xbf16>
    %45 = tpu.concatenate %43, %28, %43 in 0 : vector<9x32xbf16>, vector<64x32xbf16>, vector<9x32xbf16> -> vector<82x32xbf16>
    %46 = tpu.concatenate %43, %42, %43 in 0 : vector<9x32xbf16>, vector<64x32xbf16>, vector<9x32xbf16> -> vector<82x32xbf16>
    %47 = vector.extract_strided_slice %44 {offsets = [0, 0], sizes = [64, 32], strides = [1, 1]} : vector<82x32xbf16> to vector<64x32xbf16>
    %48 = vector.extract_strided_slice %45 {offsets = [1, 0], sizes = [64, 32], strides = [1, 1]} : vector<82x32xbf16> to vector<64x32xbf16>
    %49 = vector.extract_strided_slice %46 {offsets = [2, 0], sizes = [64, 32], strides = [1, 1]} : vector<82x32xbf16> to vector<64x32xbf16>
    %50 = vector.extract_strided_slice %44 {offsets = [8, 0], sizes = [64, 32], strides = [1, 1]} : vector<82x32xbf16> to vector<64x32xbf16>
    %51 = vector.extract_strided_slice %45 {offsets = [9, 0], sizes = [64, 32], strides = [1, 1]} : vector<82x32xbf16> to vector<64x32xbf16>
    %52 = vector.extract_strided_slice %46 {offsets = [10, 0], sizes = [64, 32], strides = [1, 1]} : vector<82x32xbf16> to vector<64x32xbf16>
    %53 = vector.extract_strided_slice %44 {offsets = [16, 0], sizes = [64, 32], strides = [1, 1]} : vector<82x32xbf16> to vector<64x32xbf16>
    %54 = vector.extract_strided_slice %45 {offsets = [17, 0], sizes = [64, 32], strides = [1, 1]} : vector<82x32xbf16> to vector<64x32xbf16>
    %55 = vector.extract_strided_slice %46 {offsets = [18, 0], sizes = [64, 32], strides = [1, 1]} : vector<82x32xbf16> to vector<64x32xbf16>
    %56 = tpu.concatenate %47, %48, %49, %50, %51, %52, %53, %54, %55 in 1 : vector<64x32xbf16>, vector<64x32xbf16>, vector<64x32xbf16>, vector<64x32xbf16>, vector<64x32xbf16>, vector<64x32xbf16>, vector<64x32xbf16>, vector<64x32xbf16>, vector<64x32xbf16> -> vector<64x288xbf16>
    %cst_18 = arith.constant dense<0.000000e+00> : vector<64x256xf32>
    %57 = tpu.matmul %56, %4, %cst_18 {dimension_numbers = #tpu.dot_dimension_numbers<[1], [0], [0], [1], [0, 0, 1, 1], [], []>} : vector<64x288xbf16>, vector<288x256xbf16>, vector<64x256xf32> -> vector<64x256xf32>
    %58 = vector.broadcast %5 : vector<1x256xf32> to vector<64x256xf32>
    %59 = arith.addf %57, %58 : vector<64x256xf32>
    %cst_19 = arith.constant 0.000000e+00 : f32
    %60 = vector.broadcast %cst_19 : f32 to vector<64x256xf32>
    %61 = arith.maximumf %59, %60 : vector<64x256xf32>
    %62 = arith.truncf %61 : vector<64x256xf32> to vector<64x256xbf16>
    %c0_20 = arith.constant 0 : index
    %c0_21 = arith.constant 0 : index
    %c0_22 = arith.constant 0 : index
    %63 = vector.load %arg6[%c0_20, %c0_21, %c0_22] : memref<1x64x256xbf16, #tpu.memory_space<vmem>>, vector<1x64x256xbf16>
    %64 = vector.shape_cast %63 : vector<1x64x256xbf16> to vector<64x256xbf16>
    %65 = vector.shape_cast %62 : vector<64x256xbf16> to vector<1x64x256xbf16>
    tpu.vector_store %arg6[%c0_20, %c0_21, %c0_22], %65 {strides = array<i32>} : memref<1x64x256xbf16, #tpu.memory_space<vmem>>, vector<1x64x256xbf16>,
    return
  }
  func.func @transform_0(%arg0: i32) -> (i32, i32, i32) {
    %c0_i32 = arith.constant 0 : i32
    %c0_i32_0 = arith.constant 0 : i32
    %c0_i32_1 = arith.constant 0 : i32
    return %arg0, %c0_i32, %c0_i32_0 : i32, i32, i32
  }
  func.func @transform_1(%arg0: i32) -> (i32, i32) {
    %c0_i32 = arith.constant 0 : i32
    %c0_i32_0 = arith.constant 0 : i32
    %c0_i32_1 = arith.constant 0 : i32
    return %c0_i32, %c0_i32_0 : i32, i32
  }
  func.func @transform_2(%arg0: i32) -> (i32, i32) {
    %c0_i32 = arith.constant 0 : i32
    %c0_i32_0 = arith.constant 0 : i32
    %c0_i32_1 = arith.constant 0 : i32
    return %c0_i32, %c0_i32_0 : i32, i32
  }
  func.func @transform_3(%arg0: i32) -> (i32, i32) {
    %c0_i32 = arith.constant 0 : i32
    %c0_i32_0 = arith.constant 0 : i32
    %c0_i32_1 = arith.constant 0 : i32
    return %c0_i32, %c0_i32_0 : i32, i32
  }
  func.func @transform_4(%arg0: i32) -> (i32, i32) {
    %c0_i32 = arith.constant 0 : i32
    %c0_i32_0 = arith.constant 0 : i32
    %c0_i32_1 = arith.constant 0 : i32
    return %c0_i32, %c0_i32_0 : i32, i32
  }
  func.func @transform_5(%arg0: i32) -> (i32, i32, i32) {
    %c0_i32 = arith.constant 0 : i32
    %c0_i32_0 = arith.constant 0 : i32
    %c0_i32_1 = arith.constant 0 : i32
    return %arg0, %c0_i32, %c0_i32_0 : i32, i32, i32
  }
}

module attributes {stable_mosaic.version = 11 : i64} {
  func.func @_maxpool_kernel(%arg0: i32, %arg1: memref<1x8x4x512xbf16, #tpu.memory_space<vmem>>, %arg2: memref<1x4x4x256xbf16, #tpu.memory_space<vmem>>) attributes {dimension_semantics = [#tpu.dimension_semantics<parallel>], iteration_bounds = array<i64: 2>, scalar_prefetch = 0 : i64, scratch_operands = 0 : i64, tpu.core_type = #tpu.core_type<tc>, window_params = [{transform_indices = @transform_0, window_bounds = array<i64: 1, 8, 4, 512>}, {transform_indices = @transform_1, window_bounds = array<i64: 1, 4, 4, 256>}]} {
    %c0 = arith.constant 0 : index
    %c0_0 = arith.constant 0 : index
    %c0_1 = arith.constant 0 : index
    %c0_2 = arith.constant 0 : index
    %0 = vector.load %arg1[%c0, %c0_0, %c0_1, %c0_2] : memref<1x8x4x512xbf16, #tpu.memory_space<vmem>>, vector<1x8x4x512xbf16>
    %1 = vector.shape_cast %0 : vector<1x8x4x512xbf16> to vector<8x4x512xbf16>
    %2 = vector.extract_strided_slice %1 {offsets = [0, 0, 0], sizes = [8, 4, 256], strides = [1, 1, 1]} : vector<8x4x512xbf16> to vector<8x4x256xbf16>
    %3 = vector.extract_strided_slice %1 {offsets = [0, 0, 256], sizes = [8, 4, 256], strides = [1, 1, 1]} : vector<8x4x512xbf16> to vector<8x4x256xbf16>
    %4 = arith.maximumf %2, %3 : vector<8x4x256xbf16>
    %5 = vector.extract_strided_slice %4 {offsets = [0, 0, 0], sizes = [8, 3, 256], strides = [1, 1, 1]} : vector<8x4x256xbf16> to vector<8x3x256xbf16>
    %6 = vector.extract_strided_slice %2 {offsets = [0, 1, 0], sizes = [8, 3, 256], strides = [1, 1, 1]} : vector<8x4x256xbf16> to vector<8x3x256xbf16>
    %7 = arith.maximumf %5, %6 : vector<8x3x256xbf16>
    %8 = vector.extract_strided_slice %4 {offsets = [0, 3, 0], sizes = [8, 1, 256], strides = [1, 1, 1]} : vector<8x4x256xbf16> to vector<8x1x256xbf16>
    %9 = tpu.concatenate %7, %8 in 1 : vector<8x3x256xbf16>, vector<8x1x256xbf16> -> vector<8x4x256xbf16>
    %10 = vector.shape_cast %9 : vector<8x4x256xbf16> to vector<4x2x4x256xbf16>
    %11 = vector.extract_strided_slice %10 {offsets = [0, 0, 0, 0], sizes = [4, 1, 4, 256], strides = [1, 1, 1, 1]} : vector<4x2x4x256xbf16> to vector<4x1x4x256xbf16>
    %12 = vector.shape_cast %11 : vector<4x1x4x256xbf16> to vector<4x4x256xbf16>
    %13 = vector.extract_strided_slice %10 {offsets = [0, 1, 0, 0], sizes = [4, 1, 4, 256], strides = [1, 1, 1, 1]} : vector<4x2x4x256xbf16> to vector<4x1x4x256xbf16>
    %14 = vector.shape_cast %13 : vector<4x1x4x256xbf16> to vector<4x4x256xbf16>
    %15 = arith.maximumf %12, %14 : vector<4x4x256xbf16>
    %16 = vector.extract_strided_slice %15 {offsets = [0, 0, 0], sizes = [3, 4, 256], strides = [1, 1, 1]} : vector<4x4x256xbf16> to vector<3x4x256xbf16>
    %17 = vector.extract_strided_slice %12 {offsets = [1, 0, 0], sizes = [3, 4, 256], strides = [1, 1, 1]} : vector<4x4x256xbf16> to vector<3x4x256xbf16>
    %18 = arith.maximumf %16, %17 : vector<3x4x256xbf16>
    %19 = vector.extract_strided_slice %15 {offsets = [3, 0, 0], sizes = [1, 4, 256], strides = [1, 1, 1]} : vector<4x4x256xbf16> to vector<1x4x256xbf16>
    %20 = tpu.concatenate %18, %19 in 0 : vector<3x4x256xbf16>, vector<1x4x256xbf16> -> vector<4x4x256xbf16>
    %c0_3 = arith.constant 0 : index
    %c0_4 = arith.constant 0 : index
    %c0_5 = arith.constant 0 : index
    %c0_6 = arith.constant 0 : index
    %21 = vector.load %arg2[%c0_3, %c0_4, %c0_5, %c0_6] : memref<1x4x4x256xbf16, #tpu.memory_space<vmem>>, vector<1x4x4x256xbf16>
    %22 = vector.shape_cast %21 : vector<1x4x4x256xbf16> to vector<4x4x256xbf16>
    %23 = vector.shape_cast %20 : vector<4x4x256xbf16> to vector<1x4x4x256xbf16>
    tpu.vector_store %arg2[%c0_3, %c0_4, %c0_5, %c0_6], %23 {strides = array<i32>} : memref<1x4x4x256xbf16, #tpu.memory_space<vmem>>, vector<1x4x4x256xbf16>,
    return
  }
  func.func @transform_0(%arg0: i32) -> (i32, i32, i32, i32) {
    %c0_i32 = arith.constant 0 : i32
    %c0_i32_0 = arith.constant 0 : i32
    %c0_i32_1 = arith.constant 0 : i32
    %c0_i32_2 = arith.constant 0 : i32
    return %arg0, %c0_i32, %c0_i32_0, %c0_i32_1 : i32, i32, i32, i32
  }
  func.func @transform_1(%arg0: i32) -> (i32, i32, i32, i32) {
    %c0_i32 = arith.constant 0 : i32
    %c0_i32_0 = arith.constant 0 : i32
    %c0_i32_1 = arith.constant 0 : i32
    %c0_i32_2 = arith.constant 0 : i32
    return %arg0, %c0_i32, %c0_i32_0, %c0_i32_1 : i32, i32, i32, i32
  }
}

module attributes {stable_mosaic.version = 11 : i64} {
  func.func @_tail_kernel(%arg0: i32, %arg1: memref<1x16x256xbf16, #tpu.memory_space<vmem>>, %arg2: memref<256x48xbf16, #tpu.memory_space<vmem>>, %arg3: memref<1x48xf32, #tpu.memory_space<vmem>>, %arg4: memref<432x384xbf16, #tpu.memory_space<vmem>>, %arg5: memref<1x384xf32, #tpu.memory_space<vmem>>, %arg6: memref<384x48xbf16, #tpu.memory_space<vmem>>, %arg7: memref<1x48xf32, #tpu.memory_space<vmem>>, %arg8: memref<432x384xbf16, #tpu.memory_space<vmem>>, %arg9: memref<1x384xf32, #tpu.memory_space<vmem>>, %arg10: memref<384x64xbf16, #tpu.memory_space<vmem>>, %arg11: memref<1x64xf32, #tpu.memory_space<vmem>>, %arg12: memref<576x512xbf16, #tpu.memory_space<vmem>>, %arg13: memref<1x512xf32, #tpu.memory_space<vmem>>, %arg14: memref<512x64xbf16, #tpu.memory_space<vmem>>, %arg15: memref<1x64xf32, #tpu.memory_space<vmem>>, %arg16: memref<576x512xbf16, #tpu.memory_space<vmem>>, %arg17: memref<1x512xf32, #tpu.memory_space<vmem>>, %arg18: memref<512x16xbf16, #tpu.memory_space<vmem>>, %arg19: memref<1x16xf32, #tpu.memory_space<vmem>>, %arg20: memref<1x1x16xf32, #tpu.memory_space<vmem>>) attributes {dimension_semantics = [#tpu.dimension_semantics<parallel>], iteration_bounds = array<i64: 2>, scalar_prefetch = 0 : i64, scratch_operands = 0 : i64, tpu.core_type = #tpu.core_type<tc>, window_params = [{transform_indices = @transform_0, window_bounds = array<i64: 1, 16, 256>}, {pipeline_mode = #tpu.pipeline_mode<synchronous>, transform_indices = @transform_1, window_bounds = array<i64: 256, 48>}, {pipeline_mode = #tpu.pipeline_mode<synchronous>, transform_indices = @transform_2, window_bounds = array<i64: 1, 48>}, {pipeline_mode = #tpu.pipeline_mode<synchronous>, transform_indices = @transform_3, window_bounds = array<i64: 432, 384>}, {pipeline_mode = #tpu.pipeline_mode<synchronous>, transform_indices = @transform_4, window_bounds = array<i64: 1, 384>}, {pipeline_mode = #tpu.pipeline_mode<synchronous>, transform_indices = @transform_5, window_bounds = array<i64: 384, 48>}, {pipeline_mode = #tpu.pipeline_mode<synchronous>, transform_indices = @transform_6, window_bounds = array<i64: 1, 48>}, {pipeline_mode = #tpu.pipeline_mode<synchronous>, transform_indices = @transform_7, window_bounds = array<i64: 432, 384>}, {pipeline_mode = #tpu.pipeline_mode<synchronous>, transform_indices = @transform_8, window_bounds = array<i64: 1, 384>}, {pipeline_mode = #tpu.pipeline_mode<synchronous>, transform_indices = @transform_9, window_bounds = array<i64: 384, 64>}, {pipeline_mode = #tpu.pipeline_mode<synchronous>, transform_indices = @transform_10, window_bounds = array<i64: 1, 64>}, {pipeline_mode = #tpu.pipeline_mode<synchronous>, transform_indices = @transform_11, window_bounds = array<i64: 576, 512>}, {pipeline_mode = #tpu.pipeline_mode<synchronous>, transform_indices = @transform_12, window_bounds = array<i64: 1, 512>}, {pipeline_mode = #tpu.pipeline_mode<synchronous>, transform_indices = @transform_13, window_bounds = array<i64: 512, 64>}, {pipeline_mode = #tpu.pipeline_mode<synchronous>, transform_indices = @transform_14, window_bounds = array<i64: 1, 64>}, {pipeline_mode = #tpu.pipeline_mode<synchronous>, transform_indices = @transform_15, window_bounds = array<i64: 576, 512>}, {pipeline_mode = #tpu.pipeline_mode<synchronous>, transform_indices = @transform_16, window_bounds = array<i64: 1, 512>}, {pipeline_mode = #tpu.pipeline_mode<synchronous>, transform_indices = @transform_17, window_bounds = array<i64: 512, 16>}, {pipeline_mode = #tpu.pipeline_mode<synchronous>, transform_indices = @transform_18, window_bounds = array<i64: 1, 16>}, {transform_indices = @transform_19, window_bounds = array<i64: 1, 1, 16>}]} {
    %c0 = arith.constant 0 : index
    %c0_0 = arith.constant 0 : index
    %c0_1 = arith.constant 0 : index
    %0 = vector.load %arg1[%c0, %c0_0, %c0_1] : memref<1x16x256xbf16, #tpu.memory_space<vmem>>, vector<1x16x256xbf16>
    %1 = vector.shape_cast %0 : vector<1x16x256xbf16> to vector<16x256xbf16>
    %c0_2 = arith.constant 0 : index
    %c0_3 = arith.constant 0 : index
    %2 = vector.load %arg2[%c0_2, %c0_3] : memref<256x48xbf16, #tpu.memory_space<vmem>>, vector<256x48xbf16>
    %c0_4 = arith.constant 0 : index
    %c0_5 = arith.constant 0 : index
    %3 = vector.load %arg3[%c0_4, %c0_5] : memref<1x48xf32, #tpu.memory_space<vmem>>, vector<1x48xf32>
    %c0_6 = arith.constant 0 : index
    %c0_7 = arith.constant 0 : index
    %4 = vector.load %arg4[%c0_6, %c0_7] : memref<432x384xbf16, #tpu.memory_space<vmem>>, vector<432x384xbf16>
    %c0_8 = arith.constant 0 : index
    %c0_9 = arith.constant 0 : index
    %5 = vector.load %arg5[%c0_8, %c0_9] : memref<1x384xf32, #tpu.memory_space<vmem>>, vector<1x384xf32>
    %cst = arith.constant dense<0.000000e+00> : vector<16x48xf32>
    %6 = tpu.matmul %1, %2, %cst {dimension_numbers = #tpu.dot_dimension_numbers<[1], [0], [0], [1], [0, 0, 1, 1], [], []>} : vector<16x256xbf16>, vector<256x48xbf16>, vector<16x48xf32> -> vector<16x48xf32>
    %7 = vector.broadcast %3 : vector<1x48xf32> to vector<16x48xf32>
    %8 = arith.addf %6, %7 : vector<16x48xf32>
    %cst_10 = arith.constant 0.000000e+00 : f32
    %9 = vector.broadcast %cst_10 : f32 to vector<16x48xf32>
    %10 = arith.maximumf %8, %9 : vector<16x48xf32>
    %11 = tpu.iota {dimensions = array<i32: 0>} : vector<16x1xi32>
    %c4_i32 = arith.constant 4 : i32
    %c0_i32 = arith.constant 0 : i32
    %12 = arith.cmpi eq, %c4_i32, %c0_i32 : i32
    %c1_i32 = arith.constant 1 : i32
    %13 = arith.select %12, %c1_i32, %c4_i32 : i32
    %14 = vector.broadcast %13 : i32 to vector<16x1xi32>
    %15 = arith.remsi %11, %14 : vector<16x1xi32>
    %c0_i32_11 = arith.constant 0 : i32
    %16 = vector.broadcast %c0_i32_11 : i32 to vector<16x1xi32>
    %17 = arith.cmpi ne, %15, %16 : vector<16x1xi32>
    %c0_i32_12 = arith.constant 0 : i32
    %18 = vector.broadcast %c0_i32_12 : i32 to vector<16x1xi32>
    %19 = arith.cmpi slt, %15, %18 : vector<16x1xi32>
    %c0_i32_13 = arith.constant 0 : i32
    %20 = arith.cmpi slt, %13, %c0_i32_13 : i32
    %21 = vector.broadcast %20 : i1 to vector<16x1xi1>
    %22 = vector.broadcast %21 : vector<16x1xi1> to vector<16x1xi1>
    %23 = arith.xori %19, %22 : vector<16x1xi1>
    %24 = arith.andi %23, %17 : vector<16x1xi1>
    %25 = vector.broadcast %13 : i32 to vector<16x1xi32>
    %26 = arith.addi %15, %25 : vector<16x1xi32>
    %27 = arith.select %24, %26, %15 : vector<16x1xi1>, vector<16x1xi32>
    %28 = arith.truncf %10 : vector<16x48xf32> to vector<16x48xbf16>
    %c3_i32 = arith.constant 3 : i32
    %29 = vector.broadcast %c3_i32 : i32 to vector<16x1xi32>
    %30 = arith.cmpi eq, %27, %29 : vector<16x1xi32>
    %cst_14 = arith.constant 0.000000e+00 : f32
    %31 = vector.shape_cast %30 : vector<16x1xi1> to vector<16x1xi1>
    %32 = vector.broadcast %31 : vector<16x1xi1> to vector<16x48xi1>
    %33 = vector.broadcast %cst_14 : f32 to vector<16x48xf32>
    %34 = arith.select %32, %33, %10 : vector<16x48xi1>, vector<16x48xf32>
    %35 = arith.truncf %34 : vector<16x48xf32> to vector<16x48xbf16>
    %c0_i32_15 = arith.constant 0 : i32
    %36 = vector.broadcast %c0_i32_15 : i32 to vector<16x1xi32>
    %37 = arith.cmpi eq, %27, %36 : vector<16x1xi32>
    %cst_16 = arith.constant 0.000000e+00 : f32
    %38 = vector.shape_cast %37 : vector<16x1xi1> to vector<16x1xi1>
    %39 = vector.broadcast %38 : vector<16x1xi1> to vector<16x48xi1>
    %40 = vector.broadcast %cst_16 : f32 to vector<16x48xf32>
    %41 = arith.select %39, %40, %10 : vector<16x48xi1>, vector<16x48xf32>
    %42 = arith.truncf %41 : vector<16x48xf32> to vector<16x48xbf16>
    %cst_17 = arith.constant 0.000000e+00 : bf16
    %43 = vector.broadcast %cst_17 : bf16 to vector<5x48xbf16>
    %44 = tpu.concatenate %43, %35, %43 in 0 : vector<5x48xbf16>, vector<16x48xbf16>, vector<5x48xbf16> -> vector<26x48xbf16>
    %45 = tpu.concatenate %43, %28, %43 in 0 : vector<5x48xbf16>, vector<16x48xbf16>, vector<5x48xbf16> -> vector<26x48xbf16>
    %46 = tpu.concatenate %43, %42, %43 in 0 : vector<5x48xbf16>, vector<16x48xbf16>, vector<5x48xbf16> -> vector<26x48xbf16>
    %47 = vector.extract_strided_slice %44 {offsets = [0, 0], sizes = [16, 48], strides = [1, 1]} : vector<26x48xbf16> to vector<16x48xbf16>
    %48 = vector.extract_strided_slice %45 {offsets = [1, 0], sizes = [16, 48], strides = [1, 1]} : vector<26x48xbf16> to vector<16x48xbf16>
    %49 = vector.extract_strided_slice %46 {offsets = [2, 0], sizes = [16, 48], strides = [1, 1]} : vector<26x48xbf16> to vector<16x48xbf16>
    %50 = vector.extract_strided_slice %44 {offsets = [4, 0], sizes = [16, 48], strides = [1, 1]} : vector<26x48xbf16> to vector<16x48xbf16>
    %51 = vector.extract_strided_slice %45 {offsets = [5, 0], sizes = [16, 48], strides = [1, 1]} : vector<26x48xbf16> to vector<16x48xbf16>
    %52 = vector.extract_strided_slice %46 {offsets = [6, 0], sizes = [16, 48], strides = [1, 1]} : vector<26x48xbf16> to vector<16x48xbf16>
    %53 = vector.extract_strided_slice %44 {offsets = [8, 0], sizes = [16, 48], strides = [1, 1]} : vector<26x48xbf16> to vector<16x48xbf16>
    %54 = vector.extract_strided_slice %45 {offsets = [9, 0], sizes = [16, 48], strides = [1, 1]} : vector<26x48xbf16> to vector<16x48xbf16>
    %55 = vector.extract_strided_slice %46 {offsets = [10, 0], sizes = [16, 48], strides = [1, 1]} : vector<26x48xbf16> to vector<16x48xbf16>
    %56 = tpu.concatenate %47, %48, %49, %50, %51, %52, %53, %54, %55 in 1 : vector<16x48xbf16>, vector<16x48xbf16>, vector<16x48xbf16>, vector<16x48xbf16>, vector<16x48xbf16>, vector<16x48xbf16>, vector<16x48xbf16>, vector<16x48xbf16>, vector<16x48xbf16> -> vector<16x432xbf16>
    %cst_18 = arith.constant dense<0.000000e+00> : vector<16x384xf32>
    %57 = tpu.matmul %56, %4, %cst_18 {dimension_numbers = #tpu.dot_dimension_numbers<[1], [0], [0], [1], [0, 0, 1, 1], [], []>} : vector<16x432xbf16>, vector<432x384xbf16>, vector<16x384xf32> -> vector<16x384xf32>
    %58 = vector.broadcast %5 : vector<1x384xf32> to vector<16x384xf32>
    %59 = arith.addf %57, %58 : vector<16x384xf32>
    %cst_19 = arith.constant 0.000000e+00 : f32
    %60 = vector.broadcast %cst_19 : f32 to vector<16x384xf32>
    %61 = arith.maximumf %59, %60 : vector<16x384xf32>
    %62 = arith.truncf %61 : vector<16x384xf32> to vector<16x384xbf16>
    %c0_20 = arith.constant 0 : index
    %c0_21 = arith.constant 0 : index
    %63 = vector.load %arg6[%c0_20, %c0_21] : memref<384x48xbf16, #tpu.memory_space<vmem>>, vector<384x48xbf16>
    %c0_22 = arith.constant 0 : index
    %c0_23 = arith.constant 0 : index
    %64 = vector.load %arg7[%c0_22, %c0_23] : memref<1x48xf32, #tpu.memory_space<vmem>>, vector<1x48xf32>
    %c0_24 = arith.constant 0 : index
    %c0_25 = arith.constant 0 : index
    %65 = vector.load %arg8[%c0_24, %c0_25] : memref<432x384xbf16, #tpu.memory_space<vmem>>, vector<432x384xbf16>
    %c0_26 = arith.constant 0 : index
    %c0_27 = arith.constant 0 : index
    %66 = vector.load %arg9[%c0_26, %c0_27] : memref<1x384xf32, #tpu.memory_space<vmem>>, vector<1x384xf32>
    %cst_28 = arith.constant dense<0.000000e+00> : vector<16x48xf32>
    %67 = tpu.matmul %62, %63, %cst_28 {dimension_numbers = #tpu.dot_dimension_numbers<[1], [0], [0], [1], [0, 0, 1, 1], [], []>} : vector<16x384xbf16>, vector<384x48xbf16>, vector<16x48xf32> -> vector<16x48xf32>
    %68 = vector.broadcast %64 : vector<1x48xf32> to vector<16x48xf32>
    %69 = arith.addf %67, %68 : vector<16x48xf32>
    %cst_29 = arith.constant 0.000000e+00 : f32
    %70 = vector.broadcast %cst_29 : f32 to vector<16x48xf32>
    %71 = arith.maximumf %69, %70 : vector<16x48xf32>
    %72 = tpu.iota {dimensions = array<i32: 0>} : vector<16x1xi32>
    %c4_i32_30 = arith.constant 4 : i32
    %c0_i32_31 = arith.constant 0 : i32
    %73 = arith.cmpi eq, %c4_i32_30, %c0_i32_31 : i32
    %c1_i32_32 = arith.constant 1 : i32
    %74 = arith.select %73, %c1_i32_32, %c4_i32_30 : i32
    %75 = vector.broadcast %74 : i32 to vector<16x1xi32>
    %76 = arith.remsi %72, %75 : vector<16x1xi32>
    %c0_i32_33 = arith.constant 0 : i32
    %77 = vector.broadcast %c0_i32_33 : i32 to vector<16x1xi32>
    %78 = arith.cmpi ne, %76, %77 : vector<16x1xi32>
    %c0_i32_34 = arith.constant 0 : i32
    %79 = vector.broadcast %c0_i32_34 : i32 to vector<16x1xi32>
    %80 = arith.cmpi slt, %76, %79 : vector<16x1xi32>
    %c0_i32_35 = arith.constant 0 : i32
    %81 = arith.cmpi slt, %74, %c0_i32_35 : i32
    %82 = vector.broadcast %81 : i1 to vector<16x1xi1>
    %83 = vector.broadcast %82 : vector<16x1xi1> to vector<16x1xi1>
    %84 = arith.xori %80, %83 : vector<16x1xi1>
    %85 = arith.andi %84, %78 : vector<16x1xi1>
    %86 = vector.broadcast %74 : i32 to vector<16x1xi32>
    %87 = arith.addi %76, %86 : vector<16x1xi32>
    %88 = arith.select %85, %87, %76 : vector<16x1xi1>, vector<16x1xi32>
    %89 = arith.truncf %71 : vector<16x48xf32> to vector<16x48xbf16>
    %c3_i32_36 = arith.constant 3 : i32
    %90 = vector.broadcast %c3_i32_36 : i32 to vector<16x1xi32>
    %91 = arith.cmpi eq, %88, %90 : vector<16x1xi32>
    %cst_37 = arith.constant 0.000000e+00 : f32
    %92 = vector.shape_cast %91 : vector<16x1xi1> to vector<16x1xi1>
    %93 = vector.broadcast %92 : vector<16x1xi1> to vector<16x48xi1>
    %94 = vector.broadcast %cst_37 : f32 to vector<16x48xf32>
    %95 = arith.select %93, %94, %71 : vector<16x48xi1>, vector<16x48xf32>
    %96 = arith.truncf %95 : vector<16x48xf32> to vector<16x48xbf16>
    %c0_i32_38 = arith.constant 0 : i32
    %97 = vector.broadcast %c0_i32_38 : i32 to vector<16x1xi32>
    %98 = arith.cmpi eq, %88, %97 : vector<16x1xi32>
    %cst_39 = arith.constant 0.000000e+00 : f32
    %99 = vector.shape_cast %98 : vector<16x1xi1> to vector<16x1xi1>
    %100 = vector.broadcast %99 : vector<16x1xi1> to vector<16x48xi1>
    %101 = vector.broadcast %cst_39 : f32 to vector<16x48xf32>
    %102 = arith.select %100, %101, %71 : vector<16x48xi1>, vector<16x48xf32>
    %103 = arith.truncf %102 : vector<16x48xf32> to vector<16x48xbf16>
    %cst_40 = arith.constant 0.000000e+00 : bf16
    %104 = vector.broadcast %cst_40 : bf16 to vector<5x48xbf16>
    %105 = tpu.concatenate %104, %96, %104 in 0 : vector<5x48xbf16>, vector<16x48xbf16>, vector<5x48xbf16> -> vector<26x48xbf16>
    %106 = tpu.concatenate %104, %89, %104 in 0 : vector<5x48xbf16>, vector<16x48xbf16>, vector<5x48xbf16> -> vector<26x48xbf16>
    %107 = tpu.concatenate %104, %103, %104 in 0 : vector<5x48xbf16>, vector<16x48xbf16>, vector<5x48xbf16> -> vector<26x48xbf16>
    %108 = vector.extract_strided_slice %105 {offsets = [0, 0], sizes = [16, 48], strides = [1, 1]} : vector<26x48xbf16> to vector<16x48xbf16>
    %109 = vector.extract_strided_slice %106 {offsets = [1, 0], sizes = [16, 48], strides = [1, 1]} : vector<26x48xbf16> to vector<16x48xbf16>
    %110 = vector.extract_strided_slice %107 {offsets = [2, 0], sizes = [16, 48], strides = [1, 1]} : vector<26x48xbf16> to vector<16x48xbf16>
    %111 = vector.extract_strided_slice %105 {offsets = [4, 0], sizes = [16, 48], strides = [1, 1]} : vector<26x48xbf16> to vector<16x48xbf16>
    %112 = vector.extract_strided_slice %106 {offsets = [5, 0], sizes = [16, 48], strides = [1, 1]} : vector<26x48xbf16> to vector<16x48xbf16>
    %113 = vector.extract_strided_slice %107 {offsets = [6, 0], sizes = [16, 48], strides = [1, 1]} : vector<26x48xbf16> to vector<16x48xbf16>
    %114 = vector.extract_strided_slice %105 {offsets = [8, 0], sizes = [16, 48], strides = [1, 1]} : vector<26x48xbf16> to vector<16x48xbf16>
    %115 = vector.extract_strided_slice %106 {offsets = [9, 0], sizes = [16, 48], strides = [1, 1]} : vector<26x48xbf16> to vector<16x48xbf16>
    %116 = vector.extract_strided_slice %107 {offsets = [10, 0], sizes = [16, 48], strides = [1, 1]} : vector<26x48xbf16> to vector<16x48xbf16>
    %117 = tpu.concatenate %108, %109, %110, %111, %112, %113, %114, %115, %116 in 1 : vector<16x48xbf16>, vector<16x48xbf16>, vector<16x48xbf16>, vector<16x48xbf16>, vector<16x48xbf16>, vector<16x48xbf16>, vector<16x48xbf16>, vector<16x48xbf16>, vector<16x48xbf16> -> vector<16x432xbf16>
    %cst_41 = arith.constant dense<0.000000e+00> : vector<16x384xf32>
    %118 = tpu.matmul %117, %65, %cst_41 {dimension_numbers = #tpu.dot_dimension_numbers<[1], [0], [0], [1], [0, 0, 1, 1], [], []>} : vector<16x432xbf16>, vector<432x384xbf16>, vector<16x384xf32> -> vector<16x384xf32>
    %119 = vector.broadcast %66 : vector<1x384xf32> to vector<16x384xf32>
    %120 = arith.addf %118, %119 : vector<16x384xf32>
    %cst_42 = arith.constant 0.000000e+00 : f32
    %121 = vector.broadcast %cst_42 : f32 to vector<16x384xf32>
    %122 = arith.maximumf %120, %121 : vector<16x384xf32>
    %123 = arith.truncf %122 : vector<16x384xf32> to vector<16x384xbf16>
    %c0_43 = arith.constant 0 : index
    %c0_44 = arith.constant 0 : index
    %124 = vector.load %arg10[%c0_43, %c0_44] : memref<384x64xbf16, #tpu.memory_space<vmem>>, vector<384x64xbf16>
    %c0_45 = arith.constant 0 : index
    %c0_46 = arith.constant 0 : index
    %125 = vector.load %arg11[%c0_45, %c0_46] : memref<1x64xf32, #tpu.memory_space<vmem>>, vector<1x64xf32>
    %c0_47 = arith.constant 0 : index
    %c0_48 = arith.constant 0 : index
    %126 = vector.load %arg12[%c0_47, %c0_48] : memref<576x512xbf16, #tpu.memory_space<vmem>>, vector<576x512xbf16>
    %c0_49 = arith.constant 0 : index
    %c0_50 = arith.constant 0 : index
    %127 = vector.load %arg13[%c0_49, %c0_50] : memref<1x512xf32, #tpu.memory_space<vmem>>, vector<1x512xf32>
    %cst_51 = arith.constant dense<0.000000e+00> : vector<16x64xf32>
    %128 = tpu.matmul %123, %124, %cst_51 {dimension_numbers = #tpu.dot_dimension_numbers<[1], [0], [0], [1], [0, 0, 1, 1], [], []>} : vector<16x384xbf16>, vector<384x64xbf16>, vector<16x64xf32> -> vector<16x64xf32>
    %129 = vector.broadcast %125 : vector<1x64xf32> to vector<16x64xf32>
    %130 = arith.addf %128, %129 : vector<16x64xf32>
    %cst_52 = arith.constant 0.000000e+00 : f32
    %131 = vector.broadcast %cst_52 : f32 to vector<16x64xf32>
    %132 = arith.maximumf %130, %131 : vector<16x64xf32>
    %133 = tpu.iota {dimensions = array<i32: 0>} : vector<16x1xi32>
    %c4_i32_53 = arith.constant 4 : i32
    %c0_i32_54 = arith.constant 0 : i32
    %134 = arith.cmpi eq, %c4_i32_53, %c0_i32_54 : i32
    %c1_i32_55 = arith.constant 1 : i32
    %135 = arith.select %134, %c1_i32_55, %c4_i32_53 : i32
    %136 = vector.broadcast %135 : i32 to vector<16x1xi32>
    %137 = arith.remsi %133, %136 : vector<16x1xi32>
    %c0_i32_56 = arith.constant 0 : i32
    %138 = vector.broadcast %c0_i32_56 : i32 to vector<16x1xi32>
    %139 = arith.cmpi ne, %137, %138 : vector<16x1xi32>
    %c0_i32_57 = arith.constant 0 : i32
    %140 = vector.broadcast %c0_i32_57 : i32 to vector<16x1xi32>
    %141 = arith.cmpi slt, %137, %140 : vector<16x1xi32>
    %c0_i32_58 = arith.constant 0 : i32
    %142 = arith.cmpi slt, %135, %c0_i32_58 : i32
    %143 = vector.broadcast %142 : i1 to vector<16x1xi1>
    %144 = vector.broadcast %143 : vector<16x1xi1> to vector<16x1xi1>
    %145 = arith.xori %141, %144 : vector<16x1xi1>
    %146 = arith.andi %145, %139 : vector<16x1xi1>
    %147 = vector.broadcast %135 : i32 to vector<16x1xi32>
    %148 = arith.addi %137, %147 : vector<16x1xi32>
    %149 = arith.select %146, %148, %137 : vector<16x1xi1>, vector<16x1xi32>
    %150 = arith.truncf %132 : vector<16x64xf32> to vector<16x64xbf16>
    %c3_i32_59 = arith.constant 3 : i32
    %151 = vector.broadcast %c3_i32_59 : i32 to vector<16x1xi32>
    %152 = arith.cmpi eq, %149, %151 : vector<16x1xi32>
    %cst_60 = arith.constant 0.000000e+00 : f32
    %153 = vector.shape_cast %152 : vector<16x1xi1> to vector<16x1xi1>
    %154 = vector.broadcast %153 : vector<16x1xi1> to vector<16x64xi1>
    %155 = vector.broadcast %cst_60 : f32 to vector<16x64xf32>
    %156 = arith.select %154, %155, %132 : vector<16x64xi1>, vector<16x64xf32>
    %157 = arith.truncf %156 : vector<16x64xf32> to vector<16x64xbf16>
    %c0_i32_61 = arith.constant 0 : i32
    %158 = vector.broadcast %c0_i32_61 : i32 to vector<16x1xi32>
    %159 = arith.cmpi eq, %149, %158 : vector<16x1xi32>
    %cst_62 = arith.constant 0.000000e+00 : f32
    %160 = vector.shape_cast %159 : vector<16x1xi1> to vector<16x1xi1>
    %161 = vector.broadcast %160 : vector<16x1xi1> to vector<16x64xi1>
    %162 = vector.broadcast %cst_62 : f32 to vector<16x64xf32>
    %163 = arith.select %161, %162, %132 : vector<16x64xi1>, vector<16x64xf32>
    %164 = arith.truncf %163 : vector<16x64xf32> to vector<16x64xbf16>
    %cst_63 = arith.constant 0.000000e+00 : bf16
    %165 = vector.broadcast %cst_63 : bf16 to vector<5x64xbf16>
    %166 = tpu.concatenate %165, %157, %165 in 0 : vector<5x64xbf16>, vector<16x64xbf16>, vector<5x64xbf16> -> vector<26x64xbf16>
    %167 = tpu.concatenate %165, %150, %165 in 0 : vector<5x64xbf16>, vector<16x64xbf16>, vector<5x64xbf16> -> vector<26x64xbf16>
    %168 = tpu.concatenate %165, %164, %165 in 0 : vector<5x64xbf16>, vector<16x64xbf16>, vector<5x64xbf16> -> vector<26x64xbf16>
    %169 = vector.extract_strided_slice %166 {offsets = [0, 0], sizes = [16, 64], strides = [1, 1]} : vector<26x64xbf16> to vector<16x64xbf16>
    %170 = vector.extract_strided_slice %167 {offsets = [1, 0], sizes = [16, 64], strides = [1, 1]} : vector<26x64xbf16> to vector<16x64xbf16>
    %171 = vector.extract_strided_slice %168 {offsets = [2, 0], sizes = [16, 64], strides = [1, 1]} : vector<26x64xbf16> to vector<16x64xbf16>
    %172 = vector.extract_strided_slice %166 {offsets = [4, 0], sizes = [16, 64], strides = [1, 1]} : vector<26x64xbf16> to vector<16x64xbf16>
    %173 = vector.extract_strided_slice %167 {offsets = [5, 0], sizes = [16, 64], strides = [1, 1]} : vector<26x64xbf16> to vector<16x64xbf16>
    %174 = vector.extract_strided_slice %168 {offsets = [6, 0], sizes = [16, 64], strides = [1, 1]} : vector<26x64xbf16> to vector<16x64xbf16>
    %175 = vector.extract_strided_slice %166 {offsets = [8, 0], sizes = [16, 64], strides = [1, 1]} : vector<26x64xbf16> to vector<16x64xbf16>
    %176 = vector.extract_strided_slice %167 {offsets = [9, 0], sizes = [16, 64], strides = [1, 1]} : vector<26x64xbf16> to vector<16x64xbf16>
    %177 = vector.extract_strided_slice %168 {offsets = [10, 0], sizes = [16, 64], strides = [1, 1]} : vector<26x64xbf16> to vector<16x64xbf16>
    %178 = tpu.concatenate %169, %170, %171, %172, %173, %174, %175, %176, %177 in 1 : vector<16x64xbf16>, vector<16x64xbf16>, vector<16x64xbf16>, vector<16x64xbf16>, vector<16x64xbf16>, vector<16x64xbf16>, vector<16x64xbf16>, vector<16x64xbf16>, vector<16x64xbf16> -> vector<16x576xbf16>
    %cst_64 = arith.constant dense<0.000000e+00> : vector<16x512xf32>
    %179 = tpu.matmul %178, %126, %cst_64 {dimension_numbers = #tpu.dot_dimension_numbers<[1], [0], [0], [1], [0, 0, 1, 1], [], []>} : vector<16x576xbf16>, vector<576x512xbf16>, vector<16x512xf32> -> vector<16x512xf32>
    %180 = vector.broadcast %127 : vector<1x512xf32> to vector<16x512xf32>
    %181 = arith.addf %179, %180 : vector<16x512xf32>
    %cst_65 = arith.constant 0.000000e+00 : f32
    %182 = vector.broadcast %cst_65 : f32 to vector<16x512xf32>
    %183 = arith.maximumf %181, %182 : vector<16x512xf32>
    %184 = arith.truncf %183 : vector<16x512xf32> to vector<16x512xbf16>
    %c0_66 = arith.constant 0 : index
    %c0_67 = arith.constant 0 : index
    %185 = vector.load %arg14[%c0_66, %c0_67] : memref<512x64xbf16, #tpu.memory_space<vmem>>, vector<512x64xbf16>
    %c0_68 = arith.constant 0 : index
    %c0_69 = arith.constant 0 : index
    %186 = vector.load %arg15[%c0_68, %c0_69] : memref<1x64xf32, #tpu.memory_space<vmem>>, vector<1x64xf32>
    %c0_70 = arith.constant 0 : index
    %c0_71 = arith.constant 0 : index
    %187 = vector.load %arg16[%c0_70, %c0_71] : memref<576x512xbf16, #tpu.memory_space<vmem>>, vector<576x512xbf16>
    %c0_72 = arith.constant 0 : index
    %c0_73 = arith.constant 0 : index
    %188 = vector.load %arg17[%c0_72, %c0_73] : memref<1x512xf32, #tpu.memory_space<vmem>>, vector<1x512xf32>
    %cst_74 = arith.constant dense<0.000000e+00> : vector<16x64xf32>
    %189 = tpu.matmul %184, %185, %cst_74 {dimension_numbers = #tpu.dot_dimension_numbers<[1], [0], [0], [1], [0, 0, 1, 1], [], []>} : vector<16x512xbf16>, vector<512x64xbf16>, vector<16x64xf32> -> vector<16x64xf32>
    %190 = vector.broadcast %186 : vector<1x64xf32> to vector<16x64xf32>
    %191 = arith.addf %189, %190 : vector<16x64xf32>
    %cst_75 = arith.constant 0.000000e+00 : f32
    %192 = vector.broadcast %cst_75 : f32 to vector<16x64xf32>
    %193 = arith.maximumf %191, %192 : vector<16x64xf32>
    %194 = tpu.iota {dimensions = array<i32: 0>} : vector<16x1xi32>
    %c4_i32_76 = arith.constant 4 : i32
    %c0_i32_77 = arith.constant 0 : i32
    %195 = arith.cmpi eq, %c4_i32_76, %c0_i32_77 : i32
    %c1_i32_78 = arith.constant 1 : i32
    %196 = arith.select %195, %c1_i32_78, %c4_i32_76 : i32
    %197 = vector.broadcast %196 : i32 to vector<16x1xi32>
    %198 = arith.remsi %194, %197 : vector<16x1xi32>
    %c0_i32_79 = arith.constant 0 : i32
    %199 = vector.broadcast %c0_i32_79 : i32 to vector<16x1xi32>
    %200 = arith.cmpi ne, %198, %199 : vector<16x1xi32>
    %c0_i32_80 = arith.constant 0 : i32
    %201 = vector.broadcast %c0_i32_80 : i32 to vector<16x1xi32>
    %202 = arith.cmpi slt, %198, %201 : vector<16x1xi32>
    %c0_i32_81 = arith.constant 0 : i32
    %203 = arith.cmpi slt, %196, %c0_i32_81 : i32
    %204 = vector.broadcast %203 : i1 to vector<16x1xi1>
    %205 = vector.broadcast %204 : vector<16x1xi1> to vector<16x1xi1>
    %206 = arith.xori %202, %205 : vector<16x1xi1>
    %207 = arith.andi %206, %200 : vector<16x1xi1>
    %208 = vector.broadcast %196 : i32 to vector<16x1xi32>
    %209 = arith.addi %198, %208 : vector<16x1xi32>
    %210 = arith.select %207, %209, %198 : vector<16x1xi1>, vector<16x1xi32>
    %211 = arith.truncf %193 : vector<16x64xf32> to vector<16x64xbf16>
    %c3_i32_82 = arith.constant 3 : i32
    %212 = vector.broadcast %c3_i32_82 : i32 to vector<16x1xi32>
    %213 = arith.cmpi eq, %210, %212 : vector<16x1xi32>
    %cst_83 = arith.constant 0.000000e+00 : f32
    %214 = vector.shape_cast %213 : vector<16x1xi1> to vector<16x1xi1>
    %215 = vector.broadcast %214 : vector<16x1xi1> to vector<16x64xi1>
    %216 = vector.broadcast %cst_83 : f32 to vector<16x64xf32>
    %217 = arith.select %215, %216, %193 : vector<16x64xi1>, vector<16x64xf32>
    %218 = arith.truncf %217 : vector<16x64xf32> to vector<16x64xbf16>
    %c0_i32_84 = arith.constant 0 : i32
    %219 = vector.broadcast %c0_i32_84 : i32 to vector<16x1xi32>
    %220 = arith.cmpi eq, %210, %219 : vector<16x1xi32>
    %cst_85 = arith.constant 0.000000e+00 : f32
    %221 = vector.shape_cast %220 : vector<16x1xi1> to vector<16x1xi1>
    %222 = vector.broadcast %221 : vector<16x1xi1> to vector<16x64xi1>
    %223 = vector.broadcast %cst_85 : f32 to vector<16x64xf32>
    %224 = arith.select %222, %223, %193 : vector<16x64xi1>, vector<16x64xf32>
    %225 = arith.truncf %224 : vector<16x64xf32> to vector<16x64xbf16>
    %cst_86 = arith.constant 0.000000e+00 : bf16
    %226 = vector.broadcast %cst_86 : bf16 to vector<5x64xbf16>
    %227 = tpu.concatenate %226, %218, %226 in 0 : vector<5x64xbf16>, vector<16x64xbf16>, vector<5x64xbf16> -> vector<26x64xbf16>
    %228 = tpu.concatenate %226, %211, %226 in 0 : vector<5x64xbf16>, vector<16x64xbf16>, vector<5x64xbf16> -> vector<26x64xbf16>
    %229 = tpu.concatenate %226, %225, %226 in 0 : vector<5x64xbf16>, vector<16x64xbf16>, vector<5x64xbf16> -> vector<26x64xbf16>
    %230 = vector.extract_strided_slice %227 {offsets = [0, 0], sizes = [16, 64], strides = [1, 1]} : vector<26x64xbf16> to vector<16x64xbf16>
    %231 = vector.extract_strided_slice %228 {offsets = [1, 0], sizes = [16, 64], strides = [1, 1]} : vector<26x64xbf16> to vector<16x64xbf16>
    %232 = vector.extract_strided_slice %229 {offsets = [2, 0], sizes = [16, 64], strides = [1, 1]} : vector<26x64xbf16> to vector<16x64xbf16>
    %233 = vector.extract_strided_slice %227 {offsets = [4, 0], sizes = [16, 64], strides = [1, 1]} : vector<26x64xbf16> to vector<16x64xbf16>
    %234 = vector.extract_strided_slice %228 {offsets = [5, 0], sizes = [16, 64], strides = [1, 1]} : vector<26x64xbf16> to vector<16x64xbf16>
    %235 = vector.extract_strided_slice %229 {offsets = [6, 0], sizes = [16, 64], strides = [1, 1]} : vector<26x64xbf16> to vector<16x64xbf16>
    %236 = vector.extract_strided_slice %227 {offsets = [8, 0], sizes = [16, 64], strides = [1, 1]} : vector<26x64xbf16> to vector<16x64xbf16>
    %237 = vector.extract_strided_slice %228 {offsets = [9, 0], sizes = [16, 64], strides = [1, 1]} : vector<26x64xbf16> to vector<16x64xbf16>
    %238 = vector.extract_strided_slice %229 {offsets = [10, 0], sizes = [16, 64], strides = [1, 1]} : vector<26x64xbf16> to vector<16x64xbf16>
    %239 = tpu.concatenate %230, %231, %232, %233, %234, %235, %236, %237, %238 in 1 : vector<16x64xbf16>, vector<16x64xbf16>, vector<16x64xbf16>, vector<16x64xbf16>, vector<16x64xbf16>, vector<16x64xbf16>, vector<16x64xbf16>, vector<16x64xbf16>, vector<16x64xbf16> -> vector<16x576xbf16>
    %cst_87 = arith.constant dense<0.000000e+00> : vector<16x512xf32>
    %240 = tpu.matmul %239, %187, %cst_87 {dimension_numbers = #tpu.dot_dimension_numbers<[1], [0], [0], [1], [0, 0, 1, 1], [], []>} : vector<16x576xbf16>, vector<576x512xbf16>, vector<16x512xf32> -> vector<16x512xf32>
    %241 = vector.broadcast %188 : vector<1x512xf32> to vector<16x512xf32>
    %242 = arith.addf %240, %241 : vector<16x512xf32>
    %cst_88 = arith.constant 0.000000e+00 : f32
    %243 = vector.broadcast %cst_88 : f32 to vector<16x512xf32>
    %244 = arith.maximumf %242, %243 : vector<16x512xf32>
    %245 = arith.truncf %244 : vector<16x512xf32> to vector<16x512xbf16>
    %c0_89 = arith.constant 0 : index
    %c0_90 = arith.constant 0 : index
    %246 = vector.load %arg18[%c0_89, %c0_90] : memref<512x16xbf16, #tpu.memory_space<vmem>>, vector<512x16xbf16>
    %cst_91 = arith.constant dense<0.000000e+00> : vector<16x16xf32>
    %247 = tpu.matmul %245, %246, %cst_91 {dimension_numbers = #tpu.dot_dimension_numbers<[1], [0], [0], [1], [0, 0, 1, 1], [], []>} : vector<16x512xbf16>, vector<512x16xbf16>, vector<16x16xf32> -> vector<16x16xf32>
    %c0_92 = arith.constant 0 : index
    %c0_93 = arith.constant 0 : index
    %248 = vector.load %arg19[%c0_92, %c0_93] : memref<1x16xf32, #tpu.memory_space<vmem>>, vector<1x16xf32>
    %249 = vector.broadcast %248 : vector<1x16xf32> to vector<16x16xf32>
    %250 = arith.addf %247, %249 : vector<16x16xf32>
    %cst_94 = arith.constant 0.000000e+00 : f32
    %251 = vector.broadcast %cst_94 : f32 to vector<16x16xf32>
    %252 = arith.maximumf %250, %251 : vector<16x16xf32>
    %cst_95 = arith.constant dense<0.000000e+00> : vector<16xf32>
    %253 = vector.multi_reduction <add>, %252, %cst_95 [0] : vector<16x16xf32> to vector<16xf32>
    %254 = vector.shape_cast %253 : vector<16xf32> to vector<1x16xf32>
    %cst_96 = arith.constant 1.600000e+01 : f32
    %255 = vector.broadcast %cst_96 : f32 to vector<1x16xf32>
    %256 = arith.divf %254, %255 : vector<1x16xf32>
    %257 = vector.shape_cast %256 : vector<1x16xf32> to vector<1x1x16xf32>
    %c0_97 = arith.constant 0 : index
    %c0_98 = arith.constant 0 : index
    %c0_99 = arith.constant 0 : index
    %258 = vector.load %arg20[%c0_97, %c0_98, %c0_99] : memref<1x1x16xf32, #tpu.memory_space<vmem>>, vector<1x1x16xf32>
    tpu.vector_store %arg20[%c0_97, %c0_98, %c0_99], %257 {strides = array<i32>} : memref<1x1x16xf32, #tpu.memory_space<vmem>>, vector<1x1x16xf32>,
    return
  }
  func.func @transform_0(%arg0: i32) -> (i32, i32, i32) {
    %c0_i32 = arith.constant 0 : i32
    %c0_i32_0 = arith.constant 0 : i32
    %c0_i32_1 = arith.constant 0 : i32
    return %arg0, %c0_i32, %c0_i32_0 : i32, i32, i32
  }
  func.func @transform_1(%arg0: i32) -> (i32, i32) {
    %c0_i32 = arith.constant 0 : i32
    %c0_i32_0 = arith.constant 0 : i32
    %c0_i32_1 = arith.constant 0 : i32
    return %c0_i32, %c0_i32_0 : i32, i32
  }
  func.func @transform_2(%arg0: i32) -> (i32, i32) {
    %c0_i32 = arith.constant 0 : i32
    %c0_i32_0 = arith.constant 0 : i32
    %c0_i32_1 = arith.constant 0 : i32
    return %c0_i32, %c0_i32_0 : i32, i32
  }
  func.func @transform_3(%arg0: i32) -> (i32, i32) {
    %c0_i32 = arith.constant 0 : i32
    %c0_i32_0 = arith.constant 0 : i32
    %c0_i32_1 = arith.constant 0 : i32
    return %c0_i32, %c0_i32_0 : i32, i32
  }
  func.func @transform_4(%arg0: i32) -> (i32, i32) {
    %c0_i32 = arith.constant 0 : i32
    %c0_i32_0 = arith.constant 0 : i32
    %c0_i32_1 = arith.constant 0 : i32
    return %c0_i32, %c0_i32_0 : i32, i32
  }
  func.func @transform_5(%arg0: i32) -> (i32, i32) {
    %c0_i32 = arith.constant 0 : i32
    %c0_i32_0 = arith.constant 0 : i32
    %c0_i32_1 = arith.constant 0 : i32
    return %c0_i32, %c0_i32_0 : i32, i32
  }
  func.func @transform_6(%arg0: i32) -> (i32, i32) {
    %c0_i32 = arith.constant 0 : i32
    %c0_i32_0 = arith.constant 0 : i32
    %c0_i32_1 = arith.constant 0 : i32
    return %c0_i32, %c0_i32_0 : i32, i32
  }
  func.func @transform_7(%arg0: i32) -> (i32, i32) {
    %c0_i32 = arith.constant 0 : i32
    %c0_i32_0 = arith.constant 0 : i32
    %c0_i32_1 = arith.constant 0 : i32
    return %c0_i32, %c0_i32_0 : i32, i32
  }
  func.func @transform_8(%arg0: i32) -> (i32, i32) {
    %c0_i32 = arith.constant 0 : i32
    %c0_i32_0 = arith.constant 0 : i32
    %c0_i32_1 = arith.constant 0 : i32
    return %c0_i32, %c0_i32_0 : i32, i32
  }
  func.func @transform_9(%arg0: i32) -> (i32, i32) {
    %c0_i32 = arith.constant 0 : i32
    %c0_i32_0 = arith.constant 0 : i32
    %c0_i32_1 = arith.constant 0 : i32
    return %c0_i32, %c0_i32_0 : i32, i32
  }
  func.func @transform_10(%arg0: i32) -> (i32, i32) {
    %c0_i32 = arith.constant 0 : i32
    %c0_i32_0 = arith.constant 0 : i32
    %c0_i32_1 = arith.constant 0 : i32
    return %c0_i32, %c0_i32_0 : i32, i32
  }
  func.func @transform_11(%arg0: i32) -> (i32, i32) {
    %c0_i32 = arith.constant 0 : i32
    %c0_i32_0 = arith.constant 0 : i32
    %c0_i32_1 = arith.constant 0 : i32
    return %c0_i32, %c0_i32_0 : i32, i32
  }
  func.func @transform_12(%arg0: i32) -> (i32, i32) {
    %c0_i32 = arith.constant 0 : i32
    %c0_i32_0 = arith.constant 0 : i32
    %c0_i32_1 = arith.constant 0 : i32
    return %c0_i32, %c0_i32_0 : i32, i32
  }
  func.func @transform_13(%arg0: i32) -> (i32, i32) {
    %c0_i32 = arith.constant 0 : i32
    %c0_i32_0 = arith.constant 0 : i32
    %c0_i32_1 = arith.constant 0 : i32
    return %c0_i32, %c0_i32_0 : i32, i32
  }
  func.func @transform_14(%arg0: i32) -> (i32, i32) {
    %c0_i32 = arith.constant 0 : i32
    %c0_i32_0 = arith.constant 0 : i32
    %c0_i32_1 = arith.constant 0 : i32
    return %c0_i32, %c0_i32_0 : i32, i32
  }
  func.func @transform_15(%arg0: i32) -> (i32, i32) {
    %c0_i32 = arith.constant 0 : i32
    %c0_i32_0 = arith.constant 0 : i32
    %c0_i32_1 = arith.constant 0 : i32
    return %c0_i32, %c0_i32_0 : i32, i32
  }
  func.func @transform_16(%arg0: i32) -> (i32, i32) {
    %c0_i32 = arith.constant 0 : i32
    %c0_i32_0 = arith.constant 0 : i32
    %c0_i32_1 = arith.constant 0 : i32
    return %c0_i32, %c0_i32_0 : i32, i32
  }
  func.func @transform_17(%arg0: i32) -> (i32, i32) {
    %c0_i32 = arith.constant 0 : i32
    %c0_i32_0 = arith.constant 0 : i32
    %c0_i32_1 = arith.constant 0 : i32
    return %c0_i32, %c0_i32_0 : i32, i32
  }
  func.func @transform_18(%arg0: i32) -> (i32, i32) {
    %c0_i32 = arith.constant 0 : i32
    %c0_i32_0 = arith.constant 0 : i32
    %c0_i32_1 = arith.constant 0 : i32
    return %c0_i32, %c0_i32_0 : i32, i32
  }
  func.func @transform_19(%arg0: i32) -> (i32, i32, i32) {
    %c0_i32 = arith.constant 0 : i32
    %c0_i32_0 = arith.constant 0 : i32
    %c0_i32_1 = arith.constant 0 : i32
    return %arg0, %c0_i32, %c0_i32_0 : i32, i32, i32
  }
}

</mosaic_0001>

<bundles_post_ra>
// kernel: squeezenet_backend_forward.9
= control target key start
LH: loop header
LB: loop body
LE: loop exit
PB: predicated region body
PF: predicated region fallthrough
CT: control target
= control target key end

     0   :  { %s536_s6 = smov 0   ;;  %s619_s0 = inlined_call_operand.vmem [shape: bf16[2,16,8,256], index: 0, kind: input, shape index: {}]   ;;  %s620_s1 = inlined_call_operand.vmem [shape: bf16[2,8,8,128], index: 1, kind: output, shape index: {}]  }
   0x1 LB: > { %s470_s7 = sadd.s32 4294967295, %s524_s6   ;;  %p474_p0 = scmp.ge.s32.totalorder %s524_s6, 1  ;;  %s524_s6 = sphi %s536_s6, %s11_s6  }
   0x2   : > { %p87_p1 = scmp.lt.s32.totalorder %s524_s6, 3 }
   0x4   : > { %p88_p2 = pnand %p474_p0, %p87_p1 }
   0x5   : > { %p107_p3 = scmp.lt.s32.totalorder (!%p88_p2), %s470_s7, 1 }
   0x6   : > { %91 = sbr.rel (%p88_p2) target bundleno = 68 (0x44), region = 24 }
   0xb   : > { %s624_s7 = smov (!%p107_p3, %s470_s7), 1  ;;  %vm373_vm0 = vcmask 1043456   ;;  %vm374_vm1 = vsmask.f32 3328 }
   0xc   : > { %s481_s8 = sshll.u32 %s624_s7, 7  ;;  %vm561_vm2 = vmand %vm373_vm0, %vm374_vm1  ;;  %s482_s12 = sshll.u32 %s624_s7, 5 }
   0xd   : > { %s550_s11 = scalar_lea.vmem %s619_s0, %s481_s8  ;;  %s582_s15 = scalar_lea.vmem %s620_s1, %s482_s12 }
   0xe   : > { %v117_v0 = vld [vmem:[%s550_s11] sm:$0xff]  ;;  %v118_v1 = vld [vmem:[%s550_s11 + $0x8] sm:$0xff]  ;;  %v119_v2 = vld [vmem:[%s550_s11 + $0x10] sm:$0xff] }
   0xf   : > { %v120_v3 = vld [vmem:[%s550_s11 + $0x18] sm:$0xff]  ;;  %v149_v4 = vrot.slane %v117_v0, 4  ;;  %v150_v5 = vrot.slane %v118_v1, 4  ;;  %v151_v6 = vrot.slane %v119_v2, 4  ;;  %v198_v7 = vshrl.u32 %v117_v0, 16  ;;  %v121_v8 = vld [vmem:[%s550_s11 + $0x20] sm:$0xff] }
  0x10   : > { %v152_v9 = vrot.slane %v120_v3, 4  ;;  %v201_v10 = vshll.u32 %v117_v0, 16  ;;  %v207_v11 = vshrl.u32 %v118_v1, 16  ;;  %v153_v12 = vrot.slane %v121_v8, 4  ;;  %v122_v36 = vld [vmem:[%s550_s11 + $0x28] sm:$0xff]  ;;  %v123_v37 = vld [vmem:[%s550_s11 + $0x30] sm:$0xff] }
  0x11   : > { %v181_v13 = vmax.bf16 %v149_v4, %v117_v0  ;;  %v182_v14 = vmax.bf16 %v150_v5, %v118_v1  ;;  %v200_v15 = vrot.slane %v198_v7, 4  ;;  %v183_v16 = vmax.bf16 %v151_v6, %v119_v2  ;;  %v124_v47 = vld [vmem:[%s550_s11 + $0x38] sm:$0xff]  ;;  %v125_v50 = vld [vmem:[%s550_s11 + $0x40] sm:$0xff] }
  0x12   : > { %v184_v17 = vmax.bf16 %v152_v9, %v120_v3  ;;  %v203_v18 = vrot.slane %v201_v10, 5  ;;  %v209_v19 = vrot.slane %v207_v11, 4  ;;  %v210_v20 = vshll.u32 %v118_v1, 16 }
  0x13   : > { %v216_v21 = vshrl.u32 %v119_v2, 16  ;;  %v219_v22 = vshll.u32 %v119_v2, 16  ;;  %v225_v23 = vshrl.u32 %v120_v3, 16  ;;  %v228_v25 = vshll.u32 %v120_v3, 16 }
  0x14   : > { %v204_v24 = vor.u32 %v203_v18, %v200_v15  ;;  %v234_v26 = vshrl.u32 %v121_v8, 16  ;;  %v237_v27 = vshll.u32 %v121_v8, 16  ;;  %v212_v28 = vrot.slane %v210_v20, 5  ;;  %v126_v20 = vld [vmem:[%s550_s11 + $0x48] sm:$0xff] }
  0x15   : > { %v218_v29 = vrot.slane %v216_v21, 4  ;;  %v221_v30 = vrot.slane %v219_v22, 5  ;;  %v227_v31 = vrot.slane %v225_v23, 4  ;;  %v230_v33 = vrot.slane %v228_v25, 5 }
  0x16   : > { %v205_v32 = vrot.slane %v204_v24, 4  ;;  %v236_v34 = vrot.slane %v234_v26, 4  ;;  %v239_v35 = vrot.slane %v237_v27, 5  ;;  %v213_v38 = vor.u32 %v212_v28, %v209_v19 }
  0x17   : > { %v222_v39 = vor.u32 %v221_v30, %v218_v29  ;;  %v154_v40 = vrot.slane %v122_v36, 4  ;;  %v155_v41 = vrot.slane %v123_v37, 4  ;;  %v185_v42 = vmax.bf16 %v153_v12, %v121_v8 }
  0x18   : > { %v231_v43 = vor.u32 %v230_v33, %v227_v31  ;;  %v240_v44 = vor.u32 %v239_v35, %v236_v34  ;;  %v357_v45 = vmax.bf16 %v205_v32, %v181_v13  ;;  %v214_v48 = vrot.slane %v213_v38, 4  ;;  %v127_v32 = vld [vmem:[%s550_s11 + $0x50] sm:$0xff] }
  0x19   : > { %v223_v49 = vrot.slane %v222_v39, 4  ;;  %v156_v51 = vrot.slane %v124_v47, 4  ;;  %v157_v54 = vrot.slane %v125_v50, 4  ;;  %v186_v55 = vmax.bf16 %v154_v40, %v122_v36 }
  0x1a   : > { %v232_v52 = vrot.slane %v231_v43, 4  ;;  %v241_v53 = vrot.slane %v240_v44, 4  ;;  %v358_v56 = vmax.bf16 %v214_v48, %v182_v14  ;;  %v376_v58 = vsel %vm561_vm2, %v357_v45, %v181_v13 }
  0x1b   : > { %v359_v57 = vmax.bf16 %v223_v49, %v183_v16  ;;  %v187_v59 = vmax.bf16 %v155_v41, %v123_v37  ;;  %v243_v62 = vshrl.u32 %v122_v36, 16  ;;  %v246_v63 = vshll.u32 %v122_v36, 16  ;;  %v128_v36 = vld [vmem:[%s550_s11 + $0x58] sm:$0xff] }
  0x1c   : > { %v360_v60 = vmax.bf16 %v232_v52, %v184_v17  ;;  %v361_v61 = vmax.bf16 %v241_v53, %v185_v42  ;;  %v377_v0 = vsel %vm561_vm2, %v358_v56, %v182_v14  ;;  %v252_v2 = vshrl.u32 %v123_v37, 16 }
  0x1d   : > { %v378_v1 = vsel %vm561_vm2, %v359_v57, %v183_v16  ;;  %v255_v3 = vshll.u32 %v123_v37, 16  ;;  %v392_v6 = vmax.bf16 %v377_v0, %v376_v58  ;;  %v245_v7 = vrot.slane %v243_v62, 4  ;;  %v129_v37 = vld [vmem:[%s550_s11 + $0x60] sm:$0xff] }
  0x1e   : > { %v379_v4 = vsel %vm561_vm2, %v360_v60, %v184_v17  ;;  %v380_v5 = vsel %vm561_vm2, %v361_v61, %v185_v42  ;;  %v248_v9 = vrot.slane %v246_v63, 5  ;;  %v254_v10 = vrot.slane %v252_v2, 4 }
  0x1f   : > { %v393_v8 = vmax.bf16 %v379_v4, %v378_v1  ;;  %v257_v11 = vrot.slane %v255_v3, 5  ;;  %v400_v12 = vmax.bf16 %v392_v6, %v378_v1  ;;  %v261_v13 = vshrl.u32 %v124_v47, 16 }
  0x20   : > { %v264_v14 = vshll.u32 %v124_v47, 16  ;;  %v270_v15 = vshrl.u32 %v125_v50, 16  ;;  %v249_v18 = vor.u32 %v248_v9, %v245_v7  ;;  %v273_v17 = vshll.u32 %v125_v50, 16 }
  0x21   : > { %v401_v16 = vmax.bf16 %v393_v8, %v380_v5  ;;  %v258_v19 = vor.u32 %v257_v11, %v254_v10  ;;  %v263_v21 = vrot.slane %v261_v13, 4  ;;  %v158_v24 = vrot.slane %v126_v20, 4 }
  0x22   : > { %v266_v22 = vrot.slane %v264_v14, 5  ;;  %v272_v23 = vrot.slane %v270_v15, 4  ;;  %v250_v26 = vrot.slane %v249_v18, 4  ;;  %v275_v28 = vrot.slane %v273_v17, 5 }
  0x23   : > { %v503_v25 = vcombine.low %v400_v12, %v401_v16  ;;  %v259_v27 = vrot.slane %v258_v19, 4  ;;  %v188_v29 = vmax.bf16 %v156_v51, %v124_v47  ;;  %v189_v30 = vmax.bf16 %v157_v54, %v125_v50  ;;  %v130_v12 = vld [vmem:[%s550_s11 + $0x68] sm:$0xff]  ;;  %v131_v16 = vld [vmem:[%s550_s11 + $0x70] sm:$0xff] }
  0x24   : > { %v267_v31 = vor.u32 %v266_v22, %v263_v21  ;;  %v276_v33 = vor.u32 %v275_v28, %v272_v23  ;;  %v362_v34 = vmax.bf16 %v250_v26, %v186_v55  ;;  %v159_v38 = vrot.slane %v127_v32, 4  ;;  %v132_v21 = vld [vmem:[%s550_s11 + $0x78] sm:$0xff] }
  0x25   : > { %487 = vst [vmem:[%s582_s15] sm:$0xff] %v503_v25   ;;  %v363_v35 = vmax.bf16 %v259_v27, %v187_v59  ;;  %v160_v40 = vrot.slane %v128_v36, 4  ;;  %v161_v41 = vrot.slane %v129_v37, 4  ;;  %v190_v42 = vmax.bf16 %v158_v24, %v126_v20 }
  0x26   : > { %v268_v39 = vrot.slane %v267_v31, 4  ;;  %v277_v43 = vrot.slane %v276_v33, 4  ;;  %v381_v44 = vsel %vm561_vm2, %v362_v34, %v186_v55  ;;  %v279_v47 = vshrl.u32 %v126_v20, 16 }
  0x27   : > { %v382_v45 = vsel %vm561_vm2, %v363_v35, %v187_v59  ;;  %v394_v49 = vmax.bf16 %v381_v44, %v380_v5  ;;  %v282_v50 = vshll.u32 %v126_v20, 16  ;;  %v288_v51 = vshrl.u32 %v127_v32, 16 }
  0x28   : > { %v364_v48 = vmax.bf16 %v268_v39, %v188_v29  ;;  %v365_v52 = vmax.bf16 %v277_v43, %v189_v30  ;;  %v281_v53 = vrot.slane %v279_v47, 4  ;;  %v291_v54 = vshll.u32 %v127_v32, 16 }
  0x29   : > { %v297_v56 = vshrl.u32 %v128_v36, 16  ;;  %v402_v58 = vmax.bf16 %v394_v49, %v382_v45  ;;  %v284_v60 = vrot.slane %v282_v50, 5  ;;  %v290_v61 = vrot.slane %v288_v51, 4 }
  0x2a   : > { %v383_v57 = vsel %vm561_vm2, %v364_v48, %v188_v29  ;;  %v384_v55 = vsel %vm561_vm2, %v365_v52, %v189_v30  ;;  %v293_v62 = vrot.slane %v291_v54, 5  ;;  %v300_v1 = vshll.u32 %v128_v36, 16 }
  0x2b   : > { %v395_v59 = vmax.bf16 %v383_v57, %v382_v45  ;;  %v299_v63 = vrot.slane %v297_v56, 4  ;;  %v285_v0 = vor.u32 %v284_v60, %v281_v53  ;;  %v306_v2 = vshrl.u32 %v129_v37, 16 }
  0x2c   : > { %v309_v3 = vshll.u32 %v129_v37, 16  ;;  %v191_v5 = vmax.bf16 %v159_v38, %v127_v32  ;;  %v192_v6 = vmax.bf16 %v160_v40, %v128_v36  ;;  %v294_v7 = vor.u32 %v293_v62, %v290_v61 }
  0x2d   : > { %v403_v4 = vmax.bf16 %v395_v59, %v384_v55  ;;  %v286_v8 = vrot.slane %v285_v0, 4  ;;  %v302_v9 = vrot.slane %v300_v1, 5  ;;  %v308_v10 = vrot.slane %v306_v2, 4 }
  0x2e   : > { %v311_v11 = vrot.slane %v309_v3, 5  ;;  %v193_v14 = vmax.bf16 %v161_v41, %v129_v37  ;;  %v295_v15 = vrot.slane %v294_v7, 4  ;;  %v162_v18 = vrot.slane %v130_v12, 4 }
  0x2f   : > { %v504_v13 = vcombine.low %v402_v58, %v403_v4  ;;  %v303_v19 = vor.u32 %v302_v9, %v299_v63  ;;  %v366_v20 = vmax.bf16 %v286_v8, %v190_v42  ;;  %v163_v22 = vrot.slane %v131_v16, 4 }
  0x30   : > { %v312_v17 = vor.u32 %v311_v11, %v308_v10  ;;  %v367_v23 = vmax.bf16 %v295_v15, %v191_v5  ;;  %v164_v24 = vrot.slane %v132_v21, 4  ;;  %v315_v25 = vshrl.u32 %v130_v12, 16 }
  0x31   : > { %505 = vst [vmem:[%s582_s15 + $0x8] sm:$0xff] %v504_v13   ;;  %v318_v26 = vshll.u32 %v130_v12, 16  ;;  %v304_v27 = vrot.slane %v303_v19, 4  ;;  %v385_v29 = vsel %vm561_vm2, %v366_v20, %v190_v42  ;;  %v324_v30 = vshrl.u32 %v131_v16, 16 }
  0x32   : > { %v313_v28 = vrot.slane %v312_v17, 4  ;;  %v386_v31 = vsel %vm561_vm2, %v367_v23, %v191_v5  ;;  %v396_v32 = vmax.bf16 %v385_v29, %v384_v55  ;;  %v317_v33 = vrot.slane %v315_v25, 4 }
  0x33   : > { %v320_v34 = vrot.slane %v318_v26, 5  ;;  %v368_v35 = vmax.bf16 %v304_v27, %v192_v6  ;;  %v326_v37 = vrot.slane %v324_v30, 4  ;;  %v327_v38 = vshll.u32 %v131_v16, 16 }
  0x34   : > { %v369_v36 = vmax.bf16 %v313_v28, %v193_v14  ;;  %v194_v39 = vmax.bf16 %v162_v18, %v130_v12  ;;  %v333_v41 = vshrl.u32 %v132_v21, 16  ;;  %v336_v43 = vshll.u32 %v132_v21, 16 }
  0x35   : > { %v321_v40 = vor.u32 %v320_v34, %v317_v33  ;;  %v387_v44 = vsel %vm561_vm2, %v368_v35, %v192_v6  ;;  %v404_v45 = vmax.bf16 %v396_v32, %v386_v31  ;;  %v329_v42 = vrot.slane %v327_v38, 5 }
  0x36   : > { %v397_v47 = vmax.bf16 %v387_v44, %v386_v31  ;;  %v335_v49 = vrot.slane %v333_v41, 4  ;;  %v338_v50 = vrot.slane %v336_v43, 5  ;;  %v388_v51 = vsel %vm561_vm2, %v369_v36, %v193_v14 }
  0x37   : > { %v322_v48 = vrot.slane %v321_v40, 4  ;;  %v195_v52 = vmax.bf16 %v163_v22, %v131_v16  ;;  %v330_v53 = vor.u32 %v329_v42, %v326_v37  ;;  %v196_v56 = vmax.bf16 %v164_v24, %v132_v21 }
  0x38   : > { %v405_v54 = vmax.bf16 %v397_v47, %v388_v51  ;;  %v339_v57 = vor.u32 %v338_v50, %v335_v49 }
  0x39   : > { %v370_v58 = vmax.bf16 %v322_v48, %v194_v39  ;;  %v331_v60 = vrot.slane %v330_v53, 4 }
  0x3a   : > { %v506_v61 = vcombine.low %v404_v45, %v405_v54  ;;  %v340_v55 = vrot.slane %v339_v57, 4 }
  0x3b   : > { %v389_v59 = vsel %vm561_vm2, %v370_v58, %v194_v39  ;;  %v371_v62 = vmax.bf16 %v331_v60, %v195_v52 }
  0x3c   : > { %v398_v63 = vmax.bf16 %v389_v59, %v388_v51  ;;  %507 = vst [vmem:[%s582_s15 + $0x10] sm:$0xff] %v506_v61   ;;  %v372_v0 = vmax.bf16 %v340_v55, %v196_v56 }
  0x3d   : > { %v390_v1 = vsel %vm561_vm2, %v371_v62, %v195_v52 }
  0x3e   : > { %v391_v2 = vsel %vm561_vm2, %v372_v0, %v196_v56  ;;  %v406_v3 = vmax.bf16 %v398_v63, %v390_v1 }
  0x3f   : > { %v399_v4 = vmax.bf16 %v391_v2, %v390_v1 }
  0x41   : > { %v508_v5 = vcombine.low %v406_v3, %v399_v4 }
  0x43   : > { %509 = vst [vmem:[%s582_s15 + $0x18] sm:$0xff] %v508_v5  }
  0x44 PF: > { %s11_s6 = sadd.s32 1, %s524_s6  }
  0x45   : > { %p8_p4 = scmp.ge.s32.totalorder %s11_s6, 4  }
  0x47   :  { %10 = sbr.rel (!%p8_p4) target bundleno = 1 (0x1), region = 54 }

// kernel: squeezenet_backend_forward.10
= control target key start
LH: loop header
LB: loop body
LE: loop exit
PB: predicated region body
PF: predicated region fallthrough
CT: control target
= control target key end

     0   :  { %s1671_s18 = smov 0   ;;  %s2196_s0 = inlined_call_operand.vmem [shape: bf16[2,64,128], index: 0, kind: input, shape index: {}]   ;;  %s2197_s1 = inlined_call_operand.vmem [shape: bf16[128,32], index: 1, kind: input, shape index: {}]   ;;  %s2198_s2 = inlined_call_operand.vmem [shape: f32[1,32], index: 2, kind: input, shape index: {}]   ;;  %s2199_s3 = inlined_call_operand.vmem [shape: bf16[288,256], index: 3, kind: input, shape index: {}]   ;;  %s2200_s4 = inlined_call_operand.vmem [shape: f32[1,256], index: 4, kind: input, shape index: {}]   ;;  %s2201_s5 = inlined_call_operand.vmem [shape: bf16[2,64,256], index: 5, kind: output, shape index: {}]  }
   0x1 LB: > { %s1433_s19 = sadd.s32 4294967295, %s1635_s18   ;;  %p1437_p0 = scmp.ge.s32.totalorder %s1635_s18, 1  ;;  %s1635_s18 = sphi %s1671_s18, %s15_s18  }
   0x2   : > { %p187_p1 = scmp.lt.s32.totalorder %s1635_s18, 3 }
   0x4   : > { %p188_p2 = pnand %p1437_p0, %p187_p1 }
   0x5   : > { %p215_p3 = scmp.lt.s32.totalorder (!%p188_p2), %s1433_s19, 1  ;;  %s1638_s8 = smov (!%p188_p2), 64  }
   0x6   : > { %191 = sbr.rel (%p188_p2) target bundleno = 641 (0x281), region = 40  ;;  %s1639_s13 = smov (!%p188_p2), 32  }
   0x7   : > { %s1640_s20 = smov (!%p188_p2), 96  }
   0xb   : > { %v1563_v0 = vld [vmem:[%s2197_s1 + $0x38] sm:$0xff]   ;;  %v1564_v1 = vld [vmem:[%s2197_s1 + $0x30] sm:$0xff]   ;;  %s2237_s19 = smov (!%p215_p3, %s1433_s19), 1  ;;  %v1565_v2 = vld [vmem:[%s2197_s1 + $0x28] sm:$0xff]   ;;  %v1637_v16 = vmov 0   ;;  %v439_v37 = vlaneseq }
   0xc   : > { %1527 = vmatprep.subr.bf16.mxu0 %v1563_v0  ;;  %s1505_s26 = sshll.u32 %s2237_s19, 5  ;;  %v1566_v3 = vld [vmem:[%s2197_s1 + $0x20] sm:$0xff]   ;;  %v1567_v5 = vld [vmem:[%s2197_s1 + $0x18] sm:$0xff]   ;;  %v1568_v6 = vld [vmem:[%s2197_s1 + $0x10] sm:$0xff]   ;;  %s1506_s27 = sshll.u32 %s2237_s19, 6 }
   0xd   : > { %1528 = vmatpush3.bf16.msra.mxu0 %v1563_v0  ;;  %s219_s29 = scalar_lea.vmem %s2196_s0, %s1505_s26  ;;  %v1569_v7 = vld [vmem:[%s2197_s1 + $0x8] sm:$0xff]   ;;  %v1570_v8 = vld [vmem:[%s2197_s1] sm:$0xff]   ;;  %v1575_v12 = vld [vmem:[%s2199_s3 + $0x110] ss:$8 sps:$4 sm:$0xff]   ;;  %v1782_v38 = vshrl.u32 %v439_v37, 7  ;;  %s2171_s30 = scalar_lea.vmem %s2201_s5, %s1506_s27 }
   0xe   : > { %1529 = vmatprep.subr.bf16.mxu0 %v1564_v1  ;;  %v1571_v4 = vld [vmem:[%s219_s29] sm:$0xff]   ;;  %v1572_v9 = vld [vmem:[%s219_s29 + $0x8] sm:$0xff]   ;;  %v1573_v10 = vld [vmem:[%s219_s29 + $0x10] sm:$0xff]  }
   0xf   : > { %1543 = vmatprep.mubr.bf16.mxu0 %v1571_v4  ;;  %v1574_v11 = vld [vmem:[%s219_s29 + $0x18] sm:$0xff]   ;;  %v1578_v14 = vld [vmem:[%s2199_s3 + $0x100] ss:$8 sps:$4 sm:$0xff]   ;;  %v1580_v15 = vld [vmem:[%s2199_s3 + $0x104] ss:$8 sps:$4 sm:$0xff]   ;;  %v442_v39 = vadd.s32 16, %v1782_v38 }
  0x10   : > { %v1577_v13 = vld [vmem:[%s2199_s3 + $0x114] ss:$8 sps:$4 sm:$0xff]   ;;  %v1583_v18 = vld [vmem:[%s2199_s3 + $0x70] ss:$8 sps:$4 sm:$0xff]   ;;  %v1584_v19 = vld [vmem:[%s2199_s3 + $0x64] ss:$8 sps:$4 sm:$0xff]  }
  0x11   : > { %1530 = vmatpush3.bf16.msra.mxu0 %v1564_v1  ;;  %v1581_v17 = vld [vmem:[%s2199_s3 + $0x74] ss:$8 sps:$4 sm:$0xff]   ;;  %v1586_v20 = vld [vmem:[%s2199_s3 + $0x60] ss:$8 sps:$4 sm:$0xff]   ;;  %v1589_v22 = vld [vmem:[%s2199_s3 + $0x50] ss:$8 sps:$4 sm:$0xff]  }
  0x12   : > { %1531 = vmatprep.subr.bf16.mxu0 %v1565_v2  ;;  %1160 = vmatprep.subr.bf16.mxu1 %v1581_v17  ;;  %v1587_v21 = vld [vmem:[%s2199_s3 + $0x54] ss:$8 sps:$4 sm:$0xff]   ;;  %v1590_v23 = vld [vmem:[%s2199_s3 + $0x44] ss:$8 sps:$4 sm:$0xff]   ;;  %v1592_v24 = vld [vmem:[%s2199_s3 + $0x40] ss:$8 sps:$4 sm:$0xff]  }
  0x13   : > { %1161 = vmatpush1.bf16.msra.mxu1 %v1583_v18  ;;  %v1593_v25 = vld [vmem:[%s2199_s3 + $0x34] ss:$8 sps:$4 sm:$0xff]   ;;  %v1595_v26 = vld [vmem:[%s2199_s3 + $0x30] ss:$8 sps:$4 sm:$0xff]   ;;  %v1596_v27 = vld [vmem:[%s2199_s3 + $0x24] ss:$8 sps:$4 sm:$0xff]  }
  0x14   : > { %1162 = vmatprep.subr.bf16.mxu1 %v1584_v19  ;;  %v1598_v28 = vld [vmem:[%s2199_s3 + $0x20] ss:$8 sps:$4 sm:$0xff]   ;;  %v1599_v29 = vld [vmem:[%s2199_s3 + $0x14] ss:$8 sps:$4 sm:$0xff]   ;;  %v1601_v30 = vld [vmem:[%s2199_s3 + $0x10] ss:$8 sps:$4 sm:$0xff]  }
  0x15   : > { %1532 = vmatpush3.bf16.msra.mxu0 %v1565_v2  ;;  %v1602_v31 = vld [vmem:[%s2199_s3 + $0x4] ss:$8 sps:$4 sm:$0xff]   ;;  %v1604_v32 = vld [vmem:[%s2199_s3] ss:$8 sps:$4 sm:$0xff]   ;;  %v1605_v33 = vld [vmem:[%s2199_s3 + $0xf4] ss:$8 sps:$4 sm:$0xff]  }
  0x16   : > { %1533 = vmatprep.subr.bf16.mxu0 %v1566_v3  ;;  %v1607_v34 = vld [vmem:[%s2199_s3 + $0xf0] ss:$8 sps:$4 sm:$0xff]   ;;  %v1608_v35 = vld [vmem:[%s2199_s3 + $0xe4] ss:$8 sps:$4 sm:$0xff]   ;;  %v1610_v36 = vld [vmem:[%s2199_s3 + $0xe0] ss:$8 sps:$4 sm:$0xff]  }
  0x17   : > { %1163 = vmatpush1.bf16.msra.mxu1 %v1586_v20  ;;  %v1788_v40 = vld [vmem:[%s2198_s2] ss:$0 sm:$0xff]  ;;  %v443_v41 = vadd.s32 24, %v1782_v38  ;;  %v441_v42 = vadd.s32 8, %v1782_v38  ;;  %v466_v45 = vand.u32 7, %v442_v39  ;;  %v452_v46 = vand.u32 7, %v1782_v38 }
  0x18   : > { %1164 = vmatprep.subr.bf16.mxu1 %v1587_v21  ;;  %v446_v49 = vadd.s32 48, %v1782_v38  ;;  %v444_v51 = vadd.s32 32, %v1782_v38  ;;  %v447_v55 = vadd.s32 56, %v1782_v38  ;;  %v445_v56 = vadd.s32 40, %v1782_v38  ;;  %v1613_v57 = vld [vmem:[%s2199_s3 + $0xd0] ss:$8 sps:$4 sm:$0xff]  }
  0x19   : > { %1534 = vmatpush3.bf16.msra.mxu0 %v1566_v3  ;;  %v473_v48 = vand.u32 7, %v443_v41  ;;  %v459_v50 = vand.u32 7, %v441_v42  ;;  %vm1799_vm0 = vcmp.eq.s32.totalorder %v466_v45, 7  ;;  %vm1803_vm1 = vcmp.eq.s32.totalorder %v466_v45, 0 }
  0x1a   : > { %1535 = vmatprep.subr.bf16.mxu0 %v1567_v5  ;;  %vm1807_vm2 = vcmp.eq.s32.totalorder %v452_v46, 7  ;;  %vm1812_vm3 = vcmp.eq.s32.totalorder %v452_v46, 0  ;;  %v494_v1 = vand.u32 7, %v446_v49 }
  0x1b   : > { %1165 = vmatpush1.bf16.msra.mxu1 %v1589_v22  ;;  %vm1816_vm4 = vcmp.eq.s32.totalorder %v473_v48, 7  ;;  %vm1820_vm5 = vcmp.eq.s32.totalorder %v473_v48, 0  ;;  %vm1825_vm6 = vcmp.eq.s32.totalorder %v459_v50, 7  ;;  %vm1837_vm7 = vcmp.eq.s32.totalorder %v459_v50, 0 }
  0x1c   : > { %1166 = vmatprep.subr.bf16.mxu1 %v1590_v23  ;;  %vm1841_vm8 = vcmp.eq.s32.totalorder %v494_v1, 0  ;;  %vm1868_vm12 = vcmp.eq.s32.totalorder %v494_v1, 7 }
  0x1d   : > { %1536 = vmatpush3.bf16.msra.mxu0 %v1567_v5  ;;  %v480_v5 = vand.u32 7, %v444_v51 }
  0x1e   : > { %1537 = vmatprep.subr.bf16.mxu0 %v1568_v6 }
  0x1f   : > { %1167 = vmatpush1.bf16.msra.mxu1 %v1592_v24  ;;  %vm1849_vm9 = vcmp.eq.s32.totalorder %v480_v5, 7  ;;  %vm1872_vm13 = vcmp.eq.s32.totalorder %v480_v5, 0 }
  0x20   : > { %1168 = vmatprep.subr.bf16.mxu1 %v1593_v25 }
  0x21   : > { %1538 = vmatpush3.bf16.msra.mxu0 %v1568_v6 }
  0x22   : > { %1539 = vmatprep.subr.bf16.mxu0 %v1569_v7 }
  0x23   : > { %1169 = vmatpush1.bf16.msra.mxu1 %v1595_v26 }
  0x24   : > { %1170 = vmatprep.subr.bf16.mxu1 %v1596_v27 }
  0x25   : > { %1540 = vmatpush3.bf16.msra.mxu0 %v1569_v7 }
  0x26   : > { %1541 = vmatprep.subr.bf16.mxu0 %v1570_v8 }
  0x27   : > { %1171 = vmatpush1.bf16.msra.mxu1 %v1598_v28 }
  0x28   : > { %1172 = vmatprep.subr.bf16.mxu1 %v1599_v29 }
  0x29   : > { %1542 = vmatpush3.bf16.msra.mxu0 %v1570_v8 }
  0x2a   : > { %1245 = vmatprep.subr.bf16.mxu0 %v1577_v13 }
  0x2b   : > { %1173 = vmatpush1.bf16.msra.mxu1 %v1601_v30 }
  0x2c   : > { %1544 = vmatmul.mubr.bf16.vlgmr.msra.gmra.mxu0 %v1572_v9  ;;  %1174 = vmatprep.subr.bf16.mxu1 %v1602_v31  ;;  %v501_v9 = vand.u32 7, %v447_v55 }
  0x2d   : > { %1547 = vmatprep.mubr.bf16.mxu0 %v1573_v10  ;;  %1246 = vmatpush1.bf16.msra.mxu0 %v1575_v12  ;;  %v487_v10 = vand.u32 7, %v445_v56  ;;  %v1611_v56 = vld [vmem:[%s2199_s3 + $0xd4] ss:$8 sps:$4 sm:$0xff]  }
  0x2e   : > { %1247 = vmatprep.subr.bf16.mxu0 %v1580_v15  ;;  %vm1856_vm10 = vcmp.eq.s32.totalorder %v501_v9, 0  ;;  %vm1878_vm14 = vcmp.eq.s32.totalorder %v501_v9, 7 }
  0x2f   : > { %1175 = vmatpush1.bf16.msra.mxu1 %v1604_v32  ;;  %vm1860_vm11 = vcmp.eq.s32.totalorder %v487_v10, 7  ;;  %vm1882_vm15 = vcmp.eq.s32.totalorder %v487_v10, 0 }
  0x30   : > { %1176 = vmatprep.subr.bf16.mxu1 %v1605_v33 }
  0x31   : > { %1248 = vmatpush1.bf16.msra.mxu0 %v1578_v14 }
  0x33   : > { %1177 = vmatpush2.bf16.msra.mxu1 %v1607_v34 }
  0x34   : > { %1548 = vmatmul.mubr.bf16.gmra.mxu0 %v1574_v11  ;;  %1178 = vmatprep.subr.bf16.mxu1 %v1608_v35 }
  0x35   : > { %1265 = vmatprep.mubr.bf16.mxu0 %v1637_v16 }
  0x37   : > { %1179 = vmatpush2.bf16.msra.mxu1 %v1610_v36 }
  0x38   : > { %1180 = vmatprep.subr.bf16.mxu1 %v1611_v56 }
  0x3b   : > { %1181 = vmatpush2.bf16.msra.mxu1 %v1613_v57 }
  0xec   : > { %v1545_v43 = vpop.f32.mrf.mxu0 }
  0xed   : > { %v409_v44 = vadd.f32 %v1545_v43, %v1788_v40 }
  0xee   : > { %v400_v47 = vpop.f32.mrf.mxu0 }
  0xef   : > { %v433_v52 = vmax.f32 %v409_v44, 0.0  ;;  %v401_v53 = vadd.f32 %v1788_v40, %v400_v47 }
  0xf0   : > { %v1546_v54 = vpop.f32.mrf.mxu0 }
  0xf1   : > { %v412_v60 = vadd.f32 %v1546_v54, %v1788_v40  ;;  %v610_v6 = vsel %vm1803_vm1, 0.0, %v433_v52  ;;  %v431_v7 = vmax.f32 %v401_v53, 0.0  ;;  %v574_v15 = vsel %vm1799_vm0, 0.0, %v433_v52 }
  0xf2   : > { %v403_v0 = vpop.f32.mrf.mxu0  ;;  %vm620_vm0 = vsmask.f32 4352  ;;  %vm658_vm1 = vcmask 1044480  }
  0xf3   : > { %v434_v2 = vmax.f32 %v412_v60, 0.0  ;;  %v404_v3 = vadd.f32 %v1788_v40, %v403_v0  ;;  %v572_v25 = vsel %vm1807_vm2, 0.0, %v431_v7  ;;  %v608_v30 = vsel %vm1812_vm3, 0.0, %v431_v7 }
  0xf4   : > { %v1549_v8 = vpop.f32.mrf.mxu0  ;;  %vm847_vm2 = vcmask 1042432   ;;  %vm787_vm3 = vcmask 1046528  }
  0xf5   : > { %v545_v11 = vpack.c.bf16 %v434_v2, %v433_v52  ;;  %v575_v12 = vsel %vm1816_vm4, 0.0, %v434_v2  ;;  %v611_v13 = vsel %vm1820_vm5, 0.0, %v434_v2  ;;  %v432_v14 = vmax.f32 %v404_v3, 0.0  ;;  %vm1940_vm4 = vmand %vm658_vm1, %vm620_vm0 }
  0xf6   : > { %v617_v17 = vpack.c.bf16 %v611_v13, %v610_v6  ;;  %v416_v20 = vpop.f32.mrf.mxu0  ;;  %v1845_v21 = vpack.c.bf16 %v575_v12, %v574_v15  ;;  %v425_v26 = vadd.f32 %v1549_v8, %v1788_v40  ;;  %v1614_v13 = vld [vmem:[%s2199_s3 + $0xc4] ss:$8 sps:$4 sm:$0xff]   ;;  %vm807_vm5 = vcmask 1043456  }
  0xf7   : > { %v544_v22 = vpack.c.bf16 %v432_v14, %v431_v7  ;;  %v573_v23 = vsel %vm1825_vm6, 0.0, %v432_v14  ;;  %v671_v31 = vshrl.u32 %v545_v11, 16  ;;  %v609_v33 = vsel %vm1837_vm7, 0.0, %v432_v14  ;;  %v1616_v14 = vld [vmem:[%s2199_s3 + $0xc0] ss:$8 sps:$4 sm:$0xff]   ;;  %1182 = vmatprep.subr.bf16.mxu1 %v1614_v13 }
  0xf8   : > { %v1550_v27 = vpop.f32.mrf.mxu0  ;;  %v580_v32 = vpack.c.bf16 %v573_v23, %v572_v25  ;;  %v674_v34 = vshll.u32 %v545_v11, 16  ;;  %v710_v35 = vshrl.u32 %v617_v17, 16  ;;  %v713_v36 = vshll.u32 %v617_v17, 16  ;;  %1183 = vmatpush2.bf16.msra.mxu1 %v1616_v14 }
  0xf9   : > { %v616_v37 = vpack.c.bf16 %v609_v33, %v608_v30  ;;  %v630_v43 = vshrl.u32 %v1845_v21, 16  ;;  %v633_v44 = vshll.u32 %v1845_v21, 16  ;;  %v663_v45 = vshrl.u32 %v544_v22, 16 }
  0xfa   : > { %v419_v42 = vpop.f32.mrf.mxu0  ;;  %v622_v48 = vshrl.u32 %v580_v32, 16  ;;  %v666_v49 = vshll.u32 %v544_v22, 16  ;;  %v1886_v51 = vmax.f32 %v425_v26, 0.0  ;;  %v417_v53 = vadd.f32 %v1788_v40, %v416_v20 }
  0xfb   : > { %v702_v50 = vshrl.u32 %v616_v37, 16  ;;  %v705_v52 = vshll.u32 %v616_v37, 16  ;;  %v428_v54 = vadd.f32 %v1550_v27, %v1788_v40  ;;  %v420_v55 = vadd.f32 %v1788_v40, %v419_v42 }
  0xfc   : > { %v673_v58 = vrot.slane %v671_v31, 3  ;;  %v676_v59 = vrot.slane %v674_v34, 4  ;;  %v712_v60 = vrot.slane %v710_v35, 3  ;;  %v715_v61 = vrot.slane %v713_v36, 4 }
  0xfd   : > { %v625_v62 = vshll.u32 %v580_v32, 16  ;;  %v435_v63 = vmax.f32 %v417_v53, 0.0  ;;  %v1897_v0 = vmax.f32 %v428_v54, 0.0  ;;  %v436_v1 = vmax.f32 %v420_v55, 0.0 }
  0xfe   : > { %v665_v40 = vrot.slane %v663_v45, 3  ;;  %v668_v2 = vrot.slane %v666_v49, 4  ;;  %v704_v3 = vrot.slane %v702_v50, 3  ;;  %v614_v4 = vsel %vm1841_vm8, 0.0, %v1886_v51  ;;  %v1619_v45 = vld [vmem:[%s2199_s3 + $0xb0] ss:$8 sps:$4 sm:$0xff]  }
  0xff   : > { %v707_v5 = vrot.slane %v705_v52, 4  ;;  %v576_v6 = vsel %vm1849_vm9, 0.0, %v435_v63  ;;  %v547_v7 = vpack.c.bf16 %v1897_v0, %v1886_v51  ;;  %v624_v8 = vrot.slane %v622_v48, 3 }
 0x100   : > { %v1906_v9 = vor.u32 %v676_v59, %v673_v58  ;;  %v615_v10 = vsel %vm1856_vm10, 0.0, %v1897_v0  ;;  %v546_v11 = vpack.c.bf16 %v436_v1, %v435_v63  ;;  %v577_v12 = vsel %vm1860_vm11, 0.0, %v436_v1  ;;  %v1620_v59 = vld [vmem:[%s2199_s3 + $0xa4] ss:$8 sps:$4 sm:$0xff]  }
 0x101   : > { %v619_v15 = vpack.c.bf16 %v615_v10, %v614_v4  ;;  %v689_v17 = vshrl.u32 %v547_v7, 16  ;;  %v692_v18 = vshll.u32 %v547_v7, 16  ;;  %v1919_v19 = vpack.c.bf16 %v577_v12, %v576_v6 }
 0x102   : > { %v613_v20 = vsel %vm1882_vm15, 0.0, %v436_v1  ;;  %v627_v21 = vrot.slane %v625_v62, 4  ;;  %v632_v22 = vrot.slane %v630_v43, 3  ;;  %v635_v23 = vrot.slane %v633_v44, 4  ;;  %v1617_v44 = vld [vmem:[%s2199_s3 + $0xb4] ss:$8 sps:$4 sm:$0xff]  }
 0x103   : > { %v578_v24 = vsel %vm1868_vm12, 0.0, %v1886_v51  ;;  %v612_v25 = vsel %vm1872_vm13, 0.0, %v435_v63  ;;  %v728_v26 = vshrl.u32 %v619_v15, 16  ;;  %v680_v27 = vshrl.u32 %v546_v11, 16  ;;  %1184 = vmatprep.subr.bf16.mxu1 %v1617_v44 }
 0x104   : > { %v669_v28 = vor.u32 %v668_v2, %v665_v40  ;;  %v579_v29 = vsel %vm1878_vm14, 0.0, %v1897_v0  ;;  %v1931_v30 = vrot.slane %v689_v17, 3  ;;  %v618_v31 = vpack.c.bf16 %v613_v20, %v612_v25  ;;  %1185 = vmatpush2.bf16.msra.mxu1 %v1619_v45 }
 0x105   : > { %v1933_v32 = vrot.slane %v692_v18, 4  ;;  %v731_v33 = vshll.u32 %v619_v15, 16  ;;  %v639_v34 = vshrl.u32 %v1919_v19, 16  ;;  %v683_v35 = vshll.u32 %v546_v11, 16  ;;  %1186 = vmatprep.subr.bf16.mxu1 %v1620_v59  ;;  %v1623_v18 = vld [vmem:[%s2199_s3 + $0x94] ss:$8 sps:$4 sm:$0xff]  }
 0x106   : > { %v719_v36 = vshrl.u32 %v618_v31, 16  ;;  %v722_v37 = vshll.u32 %v618_v31, 16  ;;  %v628_v41 = vor.u32 %v627_v21, %v624_v8  ;;  %v1936_v42 = vor.u32 %v635_v23, %v632_v22  ;;  %v1625_v22 = vld [vmem:[%s2199_s3 + $0x90] ss:$8 sps:$4 sm:$0xff]   ;;  %v1626_v31 = vld [vmem:[%s2199_s3 + $0x84] ss:$8 sps:$4 sm:$0xff]  }
 0x107   : > { %vm890_vm6 = vcmask 261120   ;;  %v730_v46 = vrot.slane %v728_v26, 3  ;;  %v682_v47 = vrot.slane %v680_v27, 3  ;;  %v708_v48 = vor.u32 %v707_v5, %v704_v3 }
 0x108   : > { %v716_v49 = vor.u32 %v715_v61, %v712_v60  ;;  %vm740_vm7 = vsmask.f32 7424  ;;  %v685_v50 = vrot.slane %v683_v35, 4  ;;  %v721_v52 = vrot.slane %v719_v36, 3  ;;  %v1622_v60 = vld [vmem:[%s2199_s3 + $0xa0] ss:$8 sps:$4 sm:$0xff]  }
 0x109   : > { %v724_v53 = vrot.slane %v722_v37, 4  ;;  %v1952_v54 = vsel %vm620_vm0, %v628_v41, %v1936_v42  ;;  %v733_v55 = vrot.slane %v731_v33, 4  ;;  %v738_v57 = vsel %vm1940_vm4, 0, %v708_v48  ;;  %1187 = vmatpush2.bf16.msra.mxu1 %v1622_v60 }
 0x10a   : > { %865 = vrot.lane.b32.xlu1 %v1952_v54, %s1638_s8  ;;  %v1957_v56 = vsel %vm620_vm0, %v708_v48, %v716_v49  ;;  %v1963_v58 = vsel %vm620_vm0, %v669_v28, %v1906_v9  ;;  %v848_v62 = vrot.slane %v738_v57, 5  ;;  %v788_v0 = vrot.slane %v738_v57, 1  ;;  %1188 = vmatprep.subr.bf16.mxu1 %v1623_v18 }
 0x10b   : > { %v725_v61 = vor.u32 %v724_v53, %v721_v52  ;;  %v849_v63 = vrot.slane %v1957_v56, 5  ;;  %v642_v1 = vshll.u32 %v1919_v19, 16  ;;  %v789_v40 = vrot.slane %v1957_v56, 1 }
 0x10c   : > { %v1976_v2 = vsel %vm1940_vm4, 0, %v669_v28  ;;  %v1980_v3 = vsel %vm1940_vm4, 0, %v628_v41  ;;  %v686_v4 = vor.u32 %v685_v50, %v682_v47  ;;  %v749_v7 = vshll.u32 %v1963_v58, 16 }
 0x10d   : > { %v850_v5 = vsel %vm847_vm2, %v848_v62, %v849_v63  ;;  %v744_v6 = vshll.u32 %v1976_v2, 16  ;;  %v809_v8 = vrot.slane %v1952_v54, 4  ;;  %v790_v10 = vsel %vm787_vm3, %v788_v0, %v789_v40  ;;  %1189 = vmatpush2.bf16.msra.mxu1 %v1625_v22 }
 0x10e   : > { %857 = vrot.lane.b32.xlu0 %v850_v5, %s1639_s13  ;;  %v808_v11 = vrot.slane %v1980_v3, 4  ;;  %v1992_v12 = vsel %vm620_vm0, %v716_v49, %v725_v61  ;;  %v1994_v13 = vor.u32 %v733_v55, %v730_v46  ;;  %797 = vrot.lane.b32.xlu1 %v790_v10, %s1638_s8  ;;  %v742_v14 = vshrl.u32 %v1976_v2, 16 }
 0x10f   : > { %v746_v15 = vrot.slane %v744_v6, 1  ;;  %v791_v17 = vrot.slane %v1992_v12, 1  ;;  %v583_v19 = vpack.c.bf16 %v579_v29, %v578_v24  ;;  %v641_v20 = vrot.slane %v639_v34, 3  ;;  %1190 = vmatprep.subr.bf16.mxu1 %v1626_v31 }
 0x110   : > { %v644_v21 = vrot.slane %v642_v1, 4  ;;  %v2011_v25 = vrot.slane %v749_v7, 1  ;;  %v2016_v27 = vsel %vm620_vm0, %v725_v61, %v1994_v13  ;;  %v810_v39 = vsel %vm807_vm5, %v808_v11, %v809_v8 }
 0x111   : > { %v747_v23 = vor.u32 %v746_v15, %v742_v14  ;;  %v792_v26 = vsel %vm787_vm3, %v789_v40, %v791_v17  ;;  %v2022_v24 = vsel %vm620_vm0, %v1906_v9, %v686_v4  ;;  %v695_v28 = vor.u32 %v1933_v32, %v1931_v30  ;;  %v1628_v9 = vld [vmem:[%s2199_s3 + $0x80] ss:$8 sps:$4 sm:$0xff]  }
 0x112   : > { %1491 = vmatmul.mubr.msk.bf16.vlgmr.msra.gmra.mxu0 %vm890_vm6, %v792_v26  ;;  %v645_v51 = vor.u32 %v644_v21, %v641_v20  ;;  %817 = vrot.lane.b32.xlu1 %v810_v39, %s1640_s20  ;;  %v793_v32 = vrot.slane %v2016_v27, 1  ;;  %v753_v33 = vshrl.u32 %v1963_v58, 16  ;;  %v757_v34 = vshll.u32 %v2022_v24, 16 }
 0x113   : > { %v752_v29 = vsel %vm740_vm7, %v747_v23, %v2011_v25  ;;  %1275 = vmatprep.mubr.bf16.mxu0 %v1637_v16  ;;  %v648_v35 = vshrl.u32 %v583_v19, 16  ;;  %v651_v36 = vshll.u32 %v583_v19, 16  ;;  %v2046_v41 = vsel %vm620_vm0, %v686_v4, %v695_v28  ;;  %1191 = vmatpush2.bf16.msra.mxu1 %v1628_v9 }
 0x114   : > { %777 = vrot.lane.b32.xlu0 %v752_v29, %s1639_s13  ;;  %v2039_v30 = vsel %vm620_vm0, %v1936_v42, %v645_v51  ;;  %v761_v44 = vshrl.u32 %v2022_v24, 16  ;;  %v830_v45 = vrot.slane %v749_v7, 5  ;;  %v851_v42 = vrot.slane %v1992_v12, 5 }
 0x115   : > { %v811_v37 = vrot.slane %v2039_v30, 4  ;;  %v765_v46 = vshll.u32 %v2046_v41, 16  ;;  %v794_v47 = vsel %vm787_vm3, %v791_v17, %v793_v32  ;;  %v853_v48 = vrot.slane %v2016_v27, 5 }
 0x116   : > { %799 = vrot.lane.b32.xlu1 %v792_v26, %s1638_s8  ;;  %v829_v49 = vrot.slane %v753_v33, 4  ;;  %v834_v50 = vrot.slane %v757_v34, 5  ;;  %v650_v53 = vrot.slane %v648_v35, 3  ;;  %v653_v55 = vrot.slane %v651_v36, 4 }
 0x117   : > { %v812_v52 = vsel %vm807_vm5, %v809_v8, %v811_v37  ;;  %v2059_v57 = vsel %vm1940_vm4, %v695_v28, 0  ;;  %v833_v58 = vrot.slane %v761_v44, 4  ;;  %v838_v59 = vrot.slane %v765_v46, 5 }
 0x118   : > { %867 = vrot.lane.b32.xlu0 %v2039_v30, %s1638_s8  ;;  %v769_v60 = vshrl.u32 %v2046_v41, 16  ;;  %v773_v61 = vshll.u32 %v2059_v57, 16  ;;  %v826_v62 = vrot.slane %v742_v14, 4  ;;  %v852_v0 = vsel %vm847_vm2, %v849_v63, %v851_v42 }
 0x119   : > { %v854_v1 = vsel %vm847_vm2, %v851_v42, %v853_v48  ;;  %v739_v40 = vsel %vm1940_vm4, %v1994_v13, 0  ;;  %vm825_vm8 = vsmask.f32 3328  ;;  %v654_v5 = vor.u32 %v653_v55, %v650_v53 }
 0x11a   : > { %1492 = vmatmul.mubr.msk.bf16.gmra.mxu0 %vm890_vm6, %v794_v47  ;;  %819 = vrot.lane.b32.xlu1 %v812_v52, %s1640_s20  ;;  %v837_v4 = vrot.slane %v769_v60, 4  ;;  %v844_v7 = vrot.slane %v773_v61, 5  ;;  %v841_v56 = vshrl.u32 %v2059_v57, 16  ;;  %v827_v63 = vrot.slane %v744_v6, 5 }
 0x11b   : > { %1285 = vmatprep.mubr.bf16.mxu0 %v1637_v16  ;;  %v759_v8 = vrot.slane %v757_v34, 1  ;;  %v831_v10 = vor.u32 %v830_v45, %v829_v49  ;;  %v835_v11 = vor.u32 %v834_v50, %v833_v58  ;;  %v795_v14 = vrot.slane %v739_v40, 1 }
 0x11c   : > { %859 = vrot.lane.b32.xlu0 %v852_v0, %s1639_s13  ;;  %v839_v12 = vor.u32 %v838_v59, %v837_v4  ;;  %v2079_v15 = vsel %vm620_vm0, %v645_v51, %v654_v5  ;;  %v843_v13 = vrot.slane %v841_v56, 4  ;;  %v828_v17 = vor.u32 %v827_v63, %v826_v62 }
 0x11d   : > { %v755_v18 = vor.u32 %v753_v33, %v2011_v25  ;;  %v2084_v19 = vsel %vm825_vm8, %v831_v10, %v835_v11  ;;  %v796_v6 = vsel %vm787_vm3, %v793_v32, %v795_v14  ;;  %v813_v23 = vrot.slane %v2079_v15, 4 }
 0x11e   : > { %801 = vrot.lane.b32.xlu1 %v794_v47, %s1638_s8  ;;  %v2087_v2 = vsel %vm825_vm8, %v835_v11, %v839_v12  ;;  %v832_v20 = vsel %vm825_vm8, %v828_v17, %v831_v10  ;;  %v845_v21 = vor.u32 %v844_v7, %v843_v13  ;;  %v877_v26 = vrot.slane %v1637_v16, 1 }
 0x11f   : > { %v760_v22 = vsel %vm740_vm7, %v755_v18, %v759_v8  ;;  %v814_v27 = vsel %vm807_vm5, %v811_v37, %v813_v23  ;;  %v763_v39 = vor.u32 %v761_v44, %v759_v8  ;;  %v767_v51 = vrot.slane %v765_v46, 1 }
 0x120   : > { %861 = vrot.lane.b32.xlu0 %v854_v1, %s1639_s13  ;;  %v2097_v25 = vsel %vm825_vm8, %v839_v12, %v845_v21  ;;  %v889_v24 = vsel %vm787_vm3, %v795_v14, %v877_v26  ;;  %v775_v9 = vrot.slane %v773_v61, 1  ;;  %v661_v32 = vsel %vm1940_vm4, %v654_v5, 0 }
 0x121   : > { %v768_v28 = vsel %vm740_vm7, %v763_v39, %v767_v51  ;;  %v771_v29 = vor.u32 %v769_v60, %v767_v51  ;;  %v815_v34 = vrot.slane %v661_v32, 4  ;;  %vm903_vm9 = vcmask 523264  }
 0x122   : > { %1493 = vmatmul.mubr.msk.bf16.gmra.mxu0 %vm890_vm6, %v796_v6  ;;  %779 = vrot.lane.b32.xlu1 %v760_v22, %s1639_s13  ;;  %v873_v36 = vor.u32 %v841_v56, %v775_v9  ;;  %vm912_vm10 = vcmask 785408  }
 0x123   : > { %1295 = vmatprep.mubr.bf16.mxu0 %v1637_v16  ;;  %v855_v16 = vrot.slane %v739_v40, 5  ;;  %v776_v33 = vsel %vm740_vm7, %v771_v29, %v775_v9  ;;  %v816_v35 = vsel %vm807_vm5, %v813_v23, %v815_v34  ;;  %v964_v9 = vsub.s32 1, %v1782_v38 }
 0x124   : > { %879 = vrot.lane.b32.xlu0 %v760_v22, %s1640_s20  ;;  %v878_v37 = vsel %vm740_vm7, %v873_v36, %v877_v26 }
 0x125   : > { %v856_v31 = vsel %vm847_vm2, %v853_v48, %v855_v16 }
 0x126   : > { %821 = vrot.lane.b32.xlu1 %v814_v27, %s1640_s20 }
 0x128   : > { %869 = vrot.lane.b32.xlu0 %v2079_v15, %s1638_s8 }
 0x12a   : > { %1494 = vmatmul.mubr.msk.bf16.gmra.mxu0 %vm890_vm6, %v889_v24  ;;  %781 = vrot.lane.b32.xlu1 %v768_v28, %s1639_s13 }
 0x12c   : > { %881 = vrot.lane.b32.xlu0 %v768_v28, %s1640_s20 }
 0x12e   : > { %803 = vrot.lane.b32.xlu1 %v796_v6, %s1638_s8 }
 0x130   : > { %863 = vrot.lane.b32.xlu0 %v856_v31, %s1639_s13  ;;  %v287_v31 = vld [vmem:[%s2200_s4] sm:$0x3] }
 0x131   : > { %v2161_v34 = vrot.slane %v287_v31, %v964_v9 }
 0x132   : > { %783 = vrot.lane.b32.xlu1 %v776_v33, %s1639_s13 }
 0x134   : > { %883 = vrot.lane.b32.xlu0 %v776_v33, %s1640_s20 }
 0x136   : > { %823 = vrot.lane.b32.xlu1 %v816_v35, %s1640_s20 }
 0x138   : > { %871 = vrot.lane.b32.xlu0 %v661_v32, %s1638_s8 }
 0x13c   : > { %885 = vrot.lane.b32.xlu0 %v878_v37, %s1640_s20 }
 0x17c   : > { %v866_v43 = vpop.permute.xlu1 %865 }
 0x180   : > { %v858_v41 = vpop.permute.xlu0 %857  ;;  %v798_v44 = vpop.permute.xlu1 %797 }
 0x181   : > { %v927_v55 = vsel %vm890_vm6, %v832_v20, %v858_v41 }
 0x182   : > { %v938_v60 = vsel %vm903_vm9, %v927_v55, %v866_v43 }
 0x184   : > { %v818_v45 = vpop.permute.xlu1 %817 }
 0x186   : > { %v778_v42 = vpop.permute.xlu0 %777 }
 0x187   : > { %v893_v52 = vsel %vm890_vm6, %v1980_v3, %v778_v42 }
 0x188   : > { %v800_v46 = vpop.permute.xlu1 %799  ;;  %v905_v58 = vsel %vm903_vm9, %v893_v52, %v798_v44 }
 0x189   : > { %v914_v62 = vsel %vm912_vm10, %v905_v58, %v818_v45 }
 0x18a   : > { %v868_v47 = vpop.permute.xlu0 %867 }
 0x18c   : > { %v820_v48 = vpop.permute.xlu1 %819 }
 0x18e   : > { %v860_v49 = vpop.permute.xlu0 %859 }
 0x18f   : > { %v930_v40 = vsel %vm890_vm6, %v2084_v19, %v860_v49 }
 0x190   : > { %v802_v50 = vpop.permute.xlu1 %801  ;;  %v940_v56 = vsel %vm903_vm9, %v930_v40, %v868_v47 }
 0x192   : > { %v862_v53 = vpop.permute.xlu0 %861 }
 0x193   : > { %v933_v12 = vsel %vm890_vm6, %v2087_v2, %v862_v53 }
 0x194   : > { %v780_v57 = vpop.permute.xlu1 %779 }
 0x195   : > { %v896_v3 = vsel %vm890_vm6, %v1952_v54, %v780_v57 }
 0x196   : > { %v880_v59 = vpop.permute.xlu0 %879  ;;  %v907_v5 = vsel %vm903_vm9, %v896_v3, %v800_v46 }
 0x197   : > { %v946_v61 = vsel %vm912_vm10, %v938_v60, %v880_v59  ;;  %v917_v8 = vsel %vm912_vm10, %v907_v5, %v820_v48 }
 0x198   : > { %1192 = vmatprep.mubr.bf16.mxu1 %v946_v61  ;;  %v822_v0 = vpop.permute.xlu1 %821 }
 0x199   : > { %1193 = vmatmul.mubr.bf16.vlgmr.msra.gmra.mxu1 %v914_v62 }
 0x19a   : > { %v870_v1 = vpop.permute.xlu0 %869 }
 0x19b   : > { %v942_v13 = vsel %vm903_vm9, %v933_v12, %v870_v1 }
 0x19c   : > { %v782_v4 = vpop.permute.xlu1 %781 }
 0x19d   : > { %v899_v54 = vsel %vm890_vm6, %v2039_v30, %v782_v4 }
 0x19e   : > { %v882_v7 = vpop.permute.xlu0 %881  ;;  %v909_v14 = vsel %vm903_vm9, %v899_v54, %v802_v50 }
 0x19f   : > { %v949_v63 = vsel %vm912_vm10, %v940_v56, %v882_v7  ;;  %v920_v6 = vsel %vm912_vm10, %v909_v14, %v822_v0 }
 0x1a0   : > { %1202 = vmatprep.mubr.bf16.mxu1 %v949_v63  ;;  %v804_v10 = vpop.permute.xlu1 %803 }
 0x1a1   : > { %1203 = vmatmul.mubr.bf16.gmra.mxu1 %v917_v8 }
 0x1a2   : > { %v864_v11 = vpop.permute.xlu0 %863 }
 0x1a3   : > { %v936_v21 = vsel %vm890_vm6, %v2097_v25, %v864_v11  ;;  %v960_v25 = vsub.s32 0, %v1782_v38 }
 0x1a4   : > { %v784_v18 = vpop.permute.xlu1 %783 }
 0x1a5   : > { %v902_v30 = vsel %vm890_vm6, %v2079_v15, %v784_v18  ;;  %v2159_v33 = vrot.slane %v287_v31, %v960_v25 }
 0x1a6   : > { %v884_v17 = vpop.permute.xlu0 %883  ;;  %v911_v27 = vsel %vm903_vm9, %v902_v30, %v804_v10 }
 0x1a7   : > { %v952_v19 = vsel %vm912_vm10, %v942_v13, %v884_v17 }
 0x1a8   : > { %1212 = vmatprep.mubr.bf16.mxu1 %v952_v19  ;;  %v824_v2 = vpop.permute.xlu1 %823 }
 0x1a9   : > { %1213 = vmatmul.mubr.bf16.gmra.mxu1 %v920_v6  ;;  %v923_v39 = vsel %vm912_vm10, %v911_v27, %v824_v2 }
 0x1aa   : > { %v872_v20 = vpop.permute.xlu0 %871 }
 0x1ab   : > { %v944_v22 = vsel %vm903_vm9, %v936_v21, %v872_v20 }
 0x1ae   : > { %v886_v23 = vpop.permute.xlu0 %885 }
 0x1af   : > { %v955_v26 = vsel %vm912_vm10, %v944_v22, %v886_v23 }
 0x1b0   : > { %1222 = vmatprep.mubr.bf16.mxu1 %v955_v26 }
 0x1b1   : > { %1223 = vmatmul.mubr.bf16.gmra.mxu1 %v923_v39 }
 0x1d2   : > { %v1267_v51 = vpop.f32.mrf.mxu0 }
 0x1d4   : > { %v1269_v24 = vpop.f32.mrf.mxu0 }
 0x1d6   : > { %v1271_v28 = vpop.f32.mrf.mxu0 }
 0x1d8   : > { %v1273_v16 = vpop.f32.mrf.mxu0 }
 0x1da   : > { %v1277_v15 = vpop.f32.mrf.mxu0 }
 0x1dc   : > { %v1279_v29 = vpop.f32.mrf.mxu0 }
 0x1de   : > { %v1281_v32 = vpop.f32.mrf.mxu0 }
 0x1e0   : > { %v1283_v35 = vpop.f32.mrf.mxu0 }
 0x1e2   : > { %v1287_v45 = vpop.f32.mrf.mxu0 }
 0x1e4   : > { %v1289_v53 = vpop.f32.mrf.mxu0 }
 0x1e6   : > { %v1291_v1 = vpop.f32.mrf.mxu0 }
 0x1e8   : > { %v1293_v11 = vpop.f32.mrf.mxu0 }
 0x1ea   : > { %v1297_v21 = vpop.f32.mrf.mxu0 }
 0x259   : > { %v1194_v36 = vpop.f32.mrf.mxu1 }
 0x25a   : > { %v1195_v37 = vadd.f32 %v1194_v36, %v2159_v33 }
 0x25b   : > { %v1196_v43 = vpop.f32.mrf.mxu1 }
 0x25c   : > { %v1268_v41 = vadd.f32 %v1267_v51, %v1195_v37  ;;  %v1197_v44 = vadd.f32 %v1196_v43, %v2161_v34 }
 0x25d   : > { %v1198_v42 = vpop.f32.mrf.mxu1 }
 0x25e   : > { %v1270_v46 = vadd.f32 %v1269_v24, %v1197_v44  ;;  %v1199_v47 = vadd.f32 %v1198_v42, %v2159_v33  ;;  %v1306_v48 = vmax.f32 %v1268_v41, 0.0 }
 0x25f   : > { %v1200_v38 = vpop.f32.mrf.mxu1 }
 0x260   : > { %v1307_v49 = vmax.f32 %v1270_v46, 0.0  ;;  %v1272_v50 = vadd.f32 %v1271_v28, %v1199_v47  ;;  %v1201_v52 = vadd.f32 %v1200_v38, %v2161_v34 }
 0x261   : > { %v1204_v55 = vpop.f32.mrf.mxu1 }
 0x262   : > { %v1507_v57 = vpack.c.bf16 %v1307_v49, %v1306_v48  ;;  %v1274_v58 = vadd.f32 %v1273_v16, %v1201_v52  ;;  %v1205_v59 = vadd.f32 %v1204_v55, %v2159_v33  ;;  %v1308_v61 = vmax.f32 %v1272_v50, 0.0  ;;  %v1299_v16 = vpop.f32.mrf.mxu0 }
 0x263   : > { %v1206_v60 = vpop.f32.mrf.mxu1 }
 0x264   : > { %1370 = vst [vmem:[%s2171_s30] sm:$0xff] %v1507_v57  ;;  %v1309_v62 = vmax.f32 %v1274_v58, 0.0  ;;  %v1278_v0 = vadd.f32 %v1277_v15, %v1205_v59  ;;  %v1207_v3 = vadd.f32 %v1206_v60, %v2161_v34  ;;  %v1301_v43 = vpop.f32.mrf.mxu0 }
 0x265   : > { %v1208_v40 = vpop.f32.mrf.mxu1 }
 0x266   : > { %v1508_v4 = vpack.c.bf16 %v1309_v62, %v1308_v61  ;;  %v1280_v5 = vadd.f32 %v1279_v29, %v1207_v3  ;;  %v1209_v7 = vadd.f32 %v1208_v40, %v2159_v33  ;;  %v1310_v63 = vmax.f32 %v1278_v0, 0.0  ;;  %v1303_v50 = vpop.f32.mrf.mxu0 }
 0x267   : > { %v1210_v56 = vpop.f32.mrf.mxu1 }
 0x268   : > { %1371 = vst [vmem:[%s2171_s30 + $0x8] sm:$0xff] %v1508_v4  ;;  %v1311_v8 = vmax.f32 %v1280_v5, 0.0  ;;  %v1282_v10 = vadd.f32 %v1281_v32, %v1209_v7  ;;  %v1211_v54 = vadd.f32 %v1210_v56, %v2161_v34 }
 0x269   : > { %v1214_v12 = vpop.f32.mrf.mxu1 }
 0x26a   : > { %v1509_v14 = vpack.c.bf16 %v1311_v8, %v1310_v63  ;;  %v1284_v13 = vadd.f32 %v1283_v35, %v1211_v54  ;;  %v1215_v17 = vadd.f32 %v1214_v12, %v2159_v33  ;;  %v1312_v19 = vmax.f32 %v1282_v10, 0.0 }
 0x26b   : > { %v1216_v18 = vpop.f32.mrf.mxu1 }
 0x26c   : > { %1372 = vst [vmem:[%s2171_s30 + $0x10] sm:$0xff] %v1509_v14  ;;  %v1313_v6 = vmax.f32 %v1284_v13, 0.0  ;;  %v1288_v20 = vadd.f32 %v1287_v45, %v1215_v17  ;;  %v1217_v30 = vadd.f32 %v1216_v18, %v2161_v34 }
 0x26d   : > { %v1218_v2 = vpop.f32.mrf.mxu1 }
 0x26e   : > { %v1510_v22 = vpack.c.bf16 %v1313_v6, %v1312_v19  ;;  %v1290_v23 = vadd.f32 %v1289_v53, %v1217_v30  ;;  %v1219_v26 = vadd.f32 %v1218_v2, %v2159_v33  ;;  %v1314_v39 = vmax.f32 %v1288_v20, 0.0 }
 0x26f   : > { %v1220_v27 = vpop.f32.mrf.mxu1 }
 0x270   : > { %1373 = vst [vmem:[%s2171_s30 + $0x18] sm:$0xff] %v1510_v22  ;;  %v1315_v51 = vmax.f32 %v1290_v23, 0.0  ;;  %v1292_v24 = vadd.f32 %v1291_v1, %v1219_v26  ;;  %v1221_v28 = vadd.f32 %v1220_v27, %v2161_v34 }
 0x271   : > { %v1224_v15 = vpop.f32.mrf.mxu1 }
 0x272   : > { %v1511_v29 = vpack.c.bf16 %v1315_v51, %v1314_v39  ;;  %v1294_v25 = vadd.f32 %v1293_v11, %v1221_v28  ;;  %v1225_v31 = vadd.f32 %v1224_v15, %v2159_v33  ;;  %v1316_v32 = vmax.f32 %v1292_v24, 0.0 }
 0x273   : > { %v1226_v9 = vpop.f32.mrf.mxu1 }
 0x274   : > { %1374 = vst [vmem:[%s2171_s30 + $0x20] sm:$0xff] %v1511_v29  ;;  %v1317_v35 = vmax.f32 %v1294_v25, 0.0  ;;  %v1298_v36 = vadd.f32 %v1297_v21, %v1225_v31  ;;  %v1227_v37 = vadd.f32 %v1226_v9, %v2161_v34 }
 0x275   : > { %v1228_v41 = vpop.f32.mrf.mxu1 }
 0x276   : > { %v1512_v44 = vpack.c.bf16 %v1317_v35, %v1316_v32  ;;  %v1300_v45 = vadd.f32 %v1299_v16, %v1227_v37  ;;  %v1229_v42 = vadd.f32 %v1228_v41, %v2159_v33  ;;  %v1318_v47 = vmax.f32 %v1298_v36, 0.0 }
 0x277   : > { %v1230_v46 = vpop.f32.mrf.mxu1 }
 0x278   : > { %1375 = vst [vmem:[%s2171_s30 + $0x28] sm:$0xff] %v1512_v44  ;;  %v1319_v38 = vmax.f32 %v1300_v45, 0.0  ;;  %v1302_v48 = vadd.f32 %v1301_v43, %v1229_v42  ;;  %v1231_v49 = vadd.f32 %v1230_v46, %v2161_v34 }
 0x27a   : > { %v1513_v52 = vpack.c.bf16 %v1319_v38, %v1318_v47  ;;  %v1304_v53 = vadd.f32 %v1303_v50, %v1231_v49  ;;  %v1320_v55 = vmax.f32 %v1302_v48, 0.0 }
 0x27c   : > { %1376 = vst [vmem:[%s2171_s30 + $0x30] sm:$0xff] %v1513_v52  ;;  %v1321_v57 = vmax.f32 %v1304_v53, 0.0 }
 0x27e   : > { %v1514_v58 = vpack.c.bf16 %v1321_v57, %v1320_v55 }
 0x280   : > { %1377 = vst [vmem:[%s2171_s30 + $0x38] sm:$0xff] %v1514_v58 }
 0x281 PF: > { %s15_s18 = sadd.s32 1, %s1635_s18  }
 0x282   : > { %p12_p4 = scmp.ge.s32.totalorder %s15_s18, 4  }
 0x284   :  { %14 = sbr.rel (!%p12_p4) target bundleno = 1 (0x1), region = 70 }

// kernel: squeezenet_backend_forward.7
= control target key start
LH: loop header
LB: loop body
LE: loop exit
PB: predicated region body
PF: predicated region fallthrough
CT: control target
= control target key end

     0   :  { %s3348_s18 = smov 0   ;;  %s4853_s0 = inlined_call_operand.vmem [shape: bf16[2,256,64], index: 0, kind: input, shape index: {}]   ;;  %s4854_s1 = inlined_call_operand.vmem [shape: bf16[64,16], index: 1, kind: input, shape index: {}]   ;;  %s4855_s2 = inlined_call_operand.vmem [shape: f32[1,16], index: 2, kind: input, shape index: {}]   ;;  %s4856_s3 = inlined_call_operand.vmem [shape: bf16[144,128], index: 3, kind: input, shape index: {}]   ;;  %s4857_s4 = inlined_call_operand.vmem [shape: f32[1,128], index: 4, kind: input, shape index: {}]   ;;  %s4858_s5 = inlined_call_operand.vmem [shape: bf16[2,256,128], index: 5, kind: output, shape index: {}]  }
   0x1 LB: > { %s2943_s19 = sadd.s32 4294967295, %s3308_s18   ;;  %p2947_p0 = scmp.ge.s32.totalorder %s3308_s18, 1  ;;  %s3308_s18 = sphi %s3348_s18, %s15_s18  }
   0x2   : > { %p187_p1 = scmp.lt.s32.totalorder %s3308_s18, 3 }
   0x4   : > { %p188_p2 = pnand %p2947_p0, %p187_p1 }
   0x6   : > { %191 = sbr.rel (%p188_p2) target bundleno = 807 (0x327), region = 40 }
   0xb   : > { %v3272_v0 = vld [vmem:[%s4854_s1 + $0x18] sm:$0xff]   ;;  %p215_p3 = scmp.lt.s32.totalorder %s2943_s19, 1  ;;  %v3273_v1 = vld [vmem:[%s4854_s1 + $0x10] sm:$0xff]   ;;  %vm396_vm0 = vcmask 523264   ;;  %v3274_v2 = vld [vmem:[%s4854_s1 + $0x8] sm:$0xff]   ;;  %v4862_v20 = vmov 0   ;;  %v638_v21 = vlaneseq }
   0xc   : > { %3198 = vmatprep.subr.bf16.mxu0 %v3272_v0  ;;  %v3275_v4 = vld [vmem:[%s4854_s1] sm:$0xff]   ;;  %3238 = vmatprep.subr.bf16.mxu1 %v4862_v20  ;;  %vm1359_vm7 = vsmask.f32 256  ;;  %s3311_s9 = smov 96   ;;  %vm1489_vm9 = vcmask 1040384   ;;  %s3312_s10 = smov 48  }
   0xd   : > { %s4981_s19 = smov (!%p215_p3, %s2943_s19), 1  ;;  %3199 = vmatpush3.bf16.msra.mxu0 %v3272_v0  ;;  %v3412_v22 = vshrl.u32 %v638_v21, 7  ;;  %v3419_v28 = vld [vmem:[%s4855_s2] ss:$0 sm:$0xff]  ;;  %vm3529_vm11 = vmand %vm1489_vm9, %vm1359_vm7  ;;  %vm2166_vm15 = vcmask 130048   ;;  %s3313_s11 = smov 32  }
   0xe   : > { %3200 = vmatprep.subr.bf16.mxu0 %v3273_v1  ;;  %s3049_s26 = sshll.u32 %s4981_s19, 7  ;;  %s3314_s12 = smov 80  }
   0xf   : > { %s3373_s29 = scalar_lea.vmem %s4853_s0, %s3049_s26  ;;  %v642_v23 = vadd.s32 24, %v3412_v22  ;;  %v640_v25 = vadd.s32 8, %v3412_v22  ;;  %v641_v36 = vadd.s32 16, %v3412_v22  ;;  %v643_v42 = vadd.s32 32, %v3412_v22  ;;  %s3315_s13 = smov 16  }
  0x10   : > { %v3276_v3 = vld [vmem:[%s3373_s29] sm:$0xff]   ;;  %v3277_v5 = vld [vmem:[%s3373_s29 + $0x8] sm:$0xff]   ;;  %v3278_v6 = vld [vmem:[%s3373_s29 + $0x10] sm:$0xff]   ;;  %v649_v53 = vadd.s32 80, %v3412_v22  ;;  %v675_v56 = vand.u32 15, %v3412_v22  ;;  %v647_v61 = vadd.s32 64, %v3412_v22 }
  0x11   : > { %3201 = vmatpush3.bf16.msra.mxu0 %v3273_v1  ;;  %3206 = vmatprep.mubr.msk.bf16.mxu0 %vm396_vm0, %v3276_v3  ;;  %v3279_v7 = vld [vmem:[%s3373_s29 + $0x18] sm:$0xff]   ;;  %v3280_v8 = vld [vmem:[%s3373_s29 + $0x20] sm:$0xff]   ;;  %v3281_v9 = vld [vmem:[%s3373_s29 + $0x28] sm:$0xff]   ;;  %v696_v27 = vand.u32 15, %v642_v23  ;;  %v682_v31 = vand.u32 15, %v640_v25  ;;  %v689_v44 = vand.u32 15, %v641_v36 }
  0x12   : > { %3202 = vmatprep.subr.bf16.mxu0 %v3274_v2  ;;  %v3282_v10 = vld [vmem:[%s3373_s29 + $0x30] sm:$0xff]   ;;  %v3283_v11 = vld [vmem:[%s3373_s29 + $0x38] sm:$0xff]   ;;  %v3284_v12 = vld [vmem:[%s3373_s29 + $0x40] sm:$0xff]   ;;  %v703_v49 = vand.u32 15, %v643_v42  ;;  %v745_v63 = vand.u32 15, %v649_v53  ;;  %vm3462_vm5 = vcmp.eq.s32.totalorder %v675_v56, 0 }
  0x13   : > { %v3285_v13 = vld [vmem:[%s3373_s29 + $0x48] sm:$0xff]   ;;  %v3286_v14 = vld [vmem:[%s3373_s29 + $0x50] sm:$0xff]   ;;  %v3287_v15 = vld [vmem:[%s3373_s29 + $0x58] sm:$0xff]   ;;  %vm1074_vm1 = vcmp.eq.s32.totalorder %v696_v27, 15  ;;  %vm1072_vm2 = vcmp.eq.s32.totalorder %v682_v31, 15  ;;  %vm1217_vm3 = vcmp.eq.s32.totalorder %v689_v44, 0 }
  0x14   : > { %v3288_v16 = vld [vmem:[%s3373_s29 + $0x60] sm:$0xff]   ;;  %v3289_v17 = vld [vmem:[%s3373_s29 + $0x68] sm:$0xff]   ;;  %v3290_v18 = vld [vmem:[%s3373_s29 + $0x70] sm:$0xff]   ;;  %vm1219_vm4 = vcmp.eq.s32.totalorder %v703_v49, 0  ;;  %vm3471_vm6 = vcmp.eq.s32.totalorder %v745_v63, 0  ;;  %s3316_s20 = smov 64  }
  0x15   : > { %3203 = vmatpush3.bf16.msra.mxu0 %v3274_v2  ;;  %v3291_v19 = vld [vmem:[%s3373_s29 + $0x78] sm:$0xff]   ;;  %s3317_s16 = smov 112  }
  0x16   : > { %3204 = vmatprep.subr.bf16.mxu0 %v3275_v4 }
  0x19   : > { %3205 = vmatpush3.bf16.msra.mxu0 %v3275_v4 }
  0x1a   : > { %2535 = vmatprep.subr.bf16.mxu0 %v4862_v20 }
  0x1c   : > { %3207 = vmatmul.mubr.msk.bf16.vlgmr.msra.gmra.mxu0 %vm396_vm0, %v3277_v5 }
  0x1d   : > { %3210 = vmatprep.mubr.msk.bf16.mxu0 %vm396_vm0, %v3278_v6 }
  0x24   : > { %3211 = vmatmul.mubr.msk.bf16.gmra.mxu0 %vm396_vm0, %v3279_v7 }
  0x25   : > { %3214 = vmatprep.mubr.msk.bf16.mxu0 %vm396_vm0, %v3280_v8 }
  0x2c   : > { %3215 = vmatmul.mubr.msk.bf16.gmra.mxu0 %vm396_vm0, %v3281_v9 }
  0x2d   : > { %3218 = vmatprep.mubr.msk.bf16.mxu0 %vm396_vm0, %v3282_v10  ;;  %v731_v10 = vand.u32 15, %v647_v61 }
  0x2f   : > { %vm3488_vm8 = vcmp.eq.s32.totalorder %v731_v10, 0 }
  0x34   : > { %3219 = vmatmul.mubr.msk.bf16.gmra.mxu0 %vm396_vm0, %v3283_v11 }
  0x35   : > { %3222 = vmatprep.mubr.msk.bf16.mxu0 %vm396_vm0, %v3284_v12  ;;  %v3616_v12 = vadd.s32 120, %v3412_v22 }
  0x3c   : > { %3223 = vmatmul.mubr.msk.bf16.gmra.mxu0 %vm396_vm0, %v3285_v13 }
  0x3d   : > { %3226 = vmatprep.mubr.msk.bf16.mxu0 %vm396_vm0, %v3286_v14 }
  0x44   : > { %3227 = vmatmul.mubr.msk.bf16.gmra.mxu0 %vm396_vm0, %v3287_v15 }
  0x45   : > { %3230 = vmatprep.mubr.msk.bf16.mxu0 %vm396_vm0, %v3288_v16 }
  0x4c   : > { %3231 = vmatmul.mubr.msk.bf16.gmra.mxu0 %vm396_vm0, %v3289_v17 }
  0x4d   : > { %3234 = vmatprep.mubr.msk.bf16.mxu0 %vm396_vm0, %v3290_v18  ;;  %v650_v18 = vadd.s32 88, %v3412_v22 }
  0x54   : > { %3235 = vmatmul.mubr.msk.bf16.gmra.mxu0 %vm396_vm0, %v3291_v19 }
  0xdc   : > { %v3208_v24 = vpop.f32.mrf.mxu0 }
  0xdd   : > { %v488_v33 = vadd.f32 %v3208_v24, %v3419_v28 }
  0xde   : > { %v479_v26 = vpop.f32.mrf.mxu0 }
  0xdf   : > { %v480_v38 = vadd.f32 %v3419_v28, %v479_v26  ;;  %v3434_v43 = vmax.f32 %v488_v33, 0.0 }
  0xe0   : > { %v3209_v29 = vpop.f32.mrf.mxu0 }
  0xe1   : > { %v491_v30 = vadd.f32 %v3209_v29, %v3419_v28  ;;  %v3439_v47 = vmax.f32 %v480_v38, 0.0  ;;  %v1313_v62 = vsel %vm1217_vm3, 0.0, %v3434_v43  ;;  %v752_v38 = vand.u32 15, %v650_v18 }
  0xe2   : > { %v482_v32 = vpop.f32.mrf.mxu0 }
  0xe3   : > { %v3423_v34 = vmax.f32 %v491_v30, 0.0  ;;  %v483_v35 = vadd.f32 %v3419_v28, %v482_v32  ;;  %v1311_v15 = vsel %vm3462_vm5, 0.0, %v3439_v47  ;;  %v648_v30 = vadd.s32 72, %v3412_v22 }
  0xe4   : > { %v3427_v37 = vpop.f32.mrf.mxu0  ;;  %vm3518_vm10 = vcmp.eq.s32.totalorder %v752_v38, 15 }
  0xe5   : > { %v3430_v39 = vmax.f32 %v483_v35, 0.0  ;;  %v1170_v40 = vsel %vm1074_vm1, 0.0, %v3423_v34  ;;  %v1344_v1 = vpack.c.bf16 %v3423_v34, %v1313_v62  ;;  %v653_v35 = vadd.s32 112, %v3412_v22 }
  0xe6   : > { %v495_v41 = vpop.f32.mrf.mxu0  ;;  %v1200_v48 = vpack.c.bf16 %v1170_v40, %v3434_v43  ;;  %vm1922_vm1 = vcmask 1046528  }
  0xe7   : > { %v1168_v45 = vsel %vm1072_vm2, 0.0, %v3430_v39  ;;  %v496_v52 = vadd.f32 %v3419_v28, %v495_v41  ;;  %v1632_v16 = vshrl.u32 %v1344_v1, 16  ;;  %v3482_v21 = vpack.c.bf16 %v3430_v39, %v1311_v15 }
  0xe8   : > { %v3437_v46 = vpop.f32.mrf.mxu0  ;;  %v3443_v51 = vpack.c.bf16 %v1168_v45, %v3439_v47  ;;  %v1368_v57 = vshrl.u32 %v1200_v48, 16  ;;  %v1371_v14 = vshll.u32 %v1200_v48, 16  ;;  %v651_v41 = vadd.s32 96, %v3412_v22 }
  0xe9   : > { %v3449_v58 = vmax.f32 %v496_v52, 0.0  ;;  %v1634_v42 = vrot.slane %v1632_v16, 7  ;;  %v1625_v44 = vshrl.u32 %v3482_v21, 16  ;;  %v773_v56 = vand.u32 15, %v653_v35 }
  0xea   : > { %v498_v50 = vpop.f32.mrf.mxu0  ;;  %v1361_v0 = vshrl.u32 %v3443_v51, 16  ;;  %v3468_v8 = vrot.slane %v1368_v57, 7  ;;  %v759_v61 = vand.u32 15, %v651_v41  ;;  %v1364_v62 = vshll.u32 %v3443_v51, 16 }
  0xeb   : > { %v499_v54 = vadd.f32 %v3419_v28, %v498_v50  ;;  %v1315_v6 = vsel %vm1219_vm4, 0.0, %v3449_v58  ;;  %v738_v50 = vand.u32 15, %v648_v30  ;;  %v1055_v5 = vpack.c.bf16 %v3430_v39, %v3439_v47 }
  0xec   : > { %v3216_v55 = vpop.f32.mrf.mxu0  ;;  %v1363_v13 = vrot.slane %v1361_v0, 7  ;;  %v1373_v24 = vor.u32 %v1371_v14, %v3468_v8  ;;  %v1627_v0 = vrot.slane %v1625_v44, 7  ;;  %vm3544_vm13 = vcmp.eq.s32.totalorder %v773_v56, 0 }
  0xed   : > { %v3451_v59 = vmax.f32 %v499_v54, 0.0  ;;  %v520_v3 = vadd.f32 %v3216_v55, %v3419_v28  ;;  %v1635_v54 = vshll.u32 %v1344_v1, 16  ;;  %vm3536_vm12 = vcmp.eq.s32.totalorder %v738_v50, 15 }
  0xee   : > { %v511_v60 = vpop.f32.mrf.mxu0  ;;  %v3495_v32 = vsel %vm1359_vm7, %v1363_v13, %v1373_v24  ;;  %v1366_v51 = vor.u32 %v1364_v62, %v1363_v13  ;;  %v1628_v39 = vshll.u32 %v3482_v21, 16  ;;  %vm3553_vm14 = vcmp.eq.s32.totalorder %v759_v61, 0 }
  0xef   : > { %v3459_v2 = vpack.c.bf16 %v3451_v59, %v3449_v58  ;;  %v512_v7 = vadd.f32 %v3419_v28, %v511_v60  ;;  %v1345_v9 = vpack.c.bf16 %v3451_v59, %v1315_v6  ;;  %v3478_v17 = vmax.f32 %v520_v3, 0.0  ;;  %4893 = vst [vmem:[#allocation2_spill] sm:$0xff] %v3495_v32  ;;  %2097 = vrot.lane.b32.xlu0 %v3495_v32, %s3311_s9 }
  0xf0   : > { %v3217_v4 = vpop.f32.mrf.mxu0  ;;  %v1637_v63 = vor.u32 %v1635_v54, %v1634_v42  ;;  %v3559_v15 = vsel %vm3529_vm11, 0, %v1366_v51  ;;  %v1494_v24 = vshrl.u32 %v1055_v5, 16  ;;  %v646_v50 = vadd.s32 56, %v3412_v22 }
  0xf1   : > { %v3484_v23 = vmax.f32 %v512_v7, 0.0  ;;  %v523_v25 = vadd.f32 %v3217_v4, %v3419_v28  ;;  %v1640_v26 = vshrl.u32 %v1345_v9, 16  ;;  %v1321_v36 = vsel %vm3471_vm6, 0.0, %v3478_v17 }
  0xf2   : > { %v514_v11 = vpop.f32.mrf.mxu0  ;;  %v1643_v57 = vshll.u32 %v1345_v9, 16  ;;  %v1638_v21 = vsel %vm1359_vm7, %v1627_v0, %v1637_v63  ;;  %v1497_v63 = vshll.u32 %v1055_v5, 16  ;;  %v1056_v51 = vpack.c.bf16 %v3423_v34, %v3434_v43 }
  0xf3   : > { %v515_v29 = vadd.f32 %v3419_v28, %v514_v11  ;;  %v3497_v33 = vmax.f32 %v523_v25, 0.0  ;;  %v1319_v45 = vsel %vm3488_vm8, 0.0, %v3484_v23  ;;  %v3513_v49 = vrot.slane %v1640_v26, 7  ;;  %1991 = vrot.lane.b32.xlu0 %v3495_v32, %s3312_s10 }
  0xf4   : > { %v3220_v19 = vpop.f32.mrf.mxu0  ;;  %v1630_v26 = vor.u32 %v1628_v39, %v1627_v0  ;;  %v507_v13 = vadd.f32 %v3437_v46, %v3419_v28  ;;  %v3637_v46 = vadd.s32 128, %v3412_v22  ;;  %vm1755_vm6 = vsmask.f32 7424 }
  0xf5   : > { %v3505_v40 = vmax.f32 %v515_v29, 0.0  ;;  %v1348_v48 = vpack.c.bf16 %v3497_v33, %v1321_v36  ;;  %v1645_v6 = vor.u32 %v1643_v57, %v3513_v49  ;;  %v536_v11 = vadd.f32 %v3220_v19, %v3419_v28 }
  0xf6   : > { %v527_v31 = vpop.f32.mrf.mxu0  ;;  %v1178_v47 = vsel %vm3518_vm10, 0.0, %v3497_v33  ;;  %v652_v19 = vadd.s32 104, %v3412_v22  ;;  %v1926_v36 = vrot.slane %v1638_v21, 1  ;;  %v1753_v41 = vsel %vm3529_vm11, 0, %v1630_v26 }
  0xf7   : > { %v3516_v52 = vpack.c.bf16 %v3505_v40, %v1319_v45  ;;  %v1664_v55 = vshrl.u32 %v1348_v48, 16  ;;  %v1667_v4 = vshll.u32 %v1348_v48, 16  ;;  %v528_v14 = vadd.f32 %v3419_v28, %v527_v31  ;;  %1989 = vrot.lane.b32.xlu0 %v3559_v15, %s3312_s10 }
  0xf8   : > { %v3221_v53 = vpop.f32.mrf.mxu0  ;;  %v3568_v25 = vsel %vm1359_vm7, %v1634_v42, %v1645_v6  ;;  %v1204_v27 = vpack.c.bf16 %v1178_v47, %v3478_v17  ;;  %v1176_v29 = vsel %vm3536_vm12, 0.0, %v3505_v40  ;;  %v3574_v30 = vmax.f32 %v536_v11, 0.0 }
  0xf9   : > { %v3525_v3 = vrot.slane %v1664_v55, 7  ;;  %v539_v16 = vadd.f32 %v3221_v53, %v3419_v28  ;;  %v3576_v31 = vmax.f32 %v528_v14, 0.0  ;;  %v4861_v38 = vrot.slane %v3568_v25, 1 }
  0xfa   : > { %v530_v9 = vpop.f32.mrf.mxu0  ;;  %v766_v44 = vand.u32 15, %v652_v19  ;;  %v3584_v45 = vrot.slane %v4862_v20, 1  ;;  %v3586_v48 = vrot.slane %v1494_v24, 7  ;;  %v644_v53 = vadd.s32 40, %v3412_v22 }
  0xfb   : > { %v3541_v10 = vor.u32 %v1667_v4, %v3525_v3  ;;  %v531_v18 = vadd.f32 %v3419_v28, %v530_v9  ;;  %v3581_v42 = vmax.f32 %v539_v16, 0.0  ;;  %v3593_v54 = vsel %vm1922_vm1, %v1926_v36, %v4861_v38 }
  0xfc   : > { %4904 = vst [vmem:[#allocation3_spill] sm:$0xff] %v3584_v45  ;;  %v1400_v55 = vshrl.u32 %v1204_v27, 16  ;;  %v3596_v56 = vpack.c.bf16 %v1176_v29, %v3484_v23  ;;  %v1323_v57 = vsel %vm3553_vm14, 0.0, %v3576_v31  ;;  %2999 = vmatprep.mubr.msk.bf16.mxu0 %vm2166_vm15, %v3593_v54  ;;  %v1924_v60 = vrot.slane %v1753_v41, 1  ;;  %v3224_v7 = vpop.f32.mrf.mxu0 }
  0xfd   : > { %v619_v35 = vmax.f32 %v531_v18, 0.0  ;;  %v1325_v61 = vsel %vm3544_vm13, 0.0, %v3574_v30  ;;  %vm3607_vm2 = vcmp.eq.s32.totalorder %v766_v44, 15  ;;  %v724_v9 = vand.u32 15, %v646_v50 }
  0xfe   : > { %v1350_v0 = vpack.c.bf16 %v3581_v42, %v1325_v61  ;;  %v1925_v6 = vsel %vm1922_vm1, %v3584_v45, %v1924_v60  ;;  %v710_v11 = vand.u32 15, %v644_v53  ;;  %v1499_v5 = vor.u32 %v1497_v63, %v3586_v48  ;;  %v543_v19 = vpop.f32.mrf.mxu0 }
  0xff   : > { %v1349_v62 = vpack.c.bf16 %v619_v35, %v1323_v57  ;;  %1956 = vrot.lane.b32.xlu0 %v1925_v6, %s3313_s11  ;;  %v1392_v14 = vshrl.u32 %v3596_v56, 16  ;;  %v3621_v39 = vrot.slane %v1400_v55, 7  ;;  %v1403_v47 = vshll.u32 %v1204_v27, 16 }
 0x100   : > { %v1180_v34 = vsel %vm3607_vm2, 0.0, %v619_v35  ;;  %v657_v16 = vadd.s32 144, %v3412_v22  ;;  %v1680_v18 = vshrl.u32 %v1350_v0, 16  ;;  %v1927_v26 = vsel %vm1922_vm1, %v1924_v60, %v1926_v36  ;;  %v3225_v6 = vpop.f32.mrf.mxu0 }
 0x101   : > { %v1672_v43 = vshrl.u32 %v1349_v62, 16  ;;  %v3628_v21 = vrot.slane %v1392_v14, 7  ;;  %v1405_v24 = vor.u32 %v1403_v47, %v3621_v39  ;;  %vm3632_vm3 = vcmp.eq.s32.totalorder %v724_v9, 15 }
 0x102   : > { %v1501_v27 = vshrl.u32 %v1056_v51, 16  ;;  %v1205_v41 = vpack.c.bf16 %v1180_v34, %v3576_v31  ;;  %v3647_v36 = vsel %vm3529_vm11, 0, %v1499_v5  ;;  %vm3649_vm4 = vcmp.eq.s32.totalorder %v710_v11, 15 }
 0x103   : > { %2064 = vrot.lane.b32.xlu0 %v1927_v26, %s3314_s12  ;;  %v3643_v44 = vsel %vm1359_vm7, %v3628_v21, %v1405_v24  ;;  %v1674_v53 = vrot.slane %v1672_v43, 7  ;;  %v801_v55 = vand.u32 15, %v657_v16  ;;  %v656_v57 = vadd.s32 136, %v3412_v22  ;;  %v3293_v16 = vld [vmem:[%s4856_s3 + $0x30] sm:$0xff]  }
 0x104   : > { %4909 = vst [vmem:[#allocation4_spill] sm:$0xff] %v3643_v44  ;;  %1999 = vrot.lane.b32.xlu1 %v3643_v44, %s3312_s10  ;;  %v504_v60 = vadd.f32 %v3427_v37, %v3419_v28  ;;  %v3658_v61 = vmax.f32 %v507_v13, 0.0  ;;  %v780_v63 = vand.u32 15, %v3616_v12  ;;  %v3661_v4 = vrot.slane %v1680_v18, 7 }
 0x105   : > { %v1060_v9 = vpack.c.bf16 %v3497_v33, %v3478_v17  ;;  %v1061_v11 = vpack.c.bf16 %v619_v35, %v3576_v31  ;;  %v1675_v5 = vshll.u32 %v1349_v62, 16  ;;  %v1764_v14 = vshll.u32 %v3647_v36, 16  ;;  %v546_v62 = vpop.f32.mrf.mxu0 }
 0x106   : > { %v3668_v47 = vrot.slane %v1501_v27, 7  ;;  %v1683_v37 = vshll.u32 %v1350_v0, 16  ;;  %v1408_v13 = vshrl.u32 %v1205_v41, 16  ;;  %v787_v34 = vand.u32 15, %v3637_v46 }
 0x107   : > { %1958 = vrot.lane.b32.xlu0 %v1927_v26, %s3313_s11  ;;  %v1677_v43 = vor.u32 %v1675_v5, %v1674_v53  ;;  %vm3671_vm5 = vcmp.eq.s32.totalorder %v801_v55, 0  ;;  %v794_v18 = vand.u32 15, %v656_v57  ;;  %v1504_v17 = vshll.u32 %v1056_v51, 16 }
 0x108   : > { %v3675_v33 = vmax.f32 %v504_v60, 0.0  ;;  %v3679_v31 = vpack.c.bf16 %v3505_v40, %v3484_v23  ;;  %v1685_v35 = vor.u32 %v1683_v37, %v3661_v4  ;;  %v1174_v0 = vsel %vm3632_vm3, 0.0, %v3658_v61 }
 0x109   : > { %v1533_v24 = vshrl.u32 %v1060_v9, 16  ;;  %v1541_v26 = vshrl.u32 %v1061_v11, 16  ;;  %v1766_v46 = vrot.slane %v1764_v14, 1  ;;  %v1506_v27 = vor.u32 %v1504_v17, %v3668_v47 }
 0x10a   : > { %v552_v51 = vadd.f32 %v3224_v7, %v3419_v28  ;;  %v3687_v55 = vrot.slane %v1408_v13, 7  ;;  %v1411_v57 = vshll.u32 %v1205_v41, 16  ;;  %v544_v23 = vadd.f32 %v3419_v28, %v543_v19 }
 0x10b   : > { %v547_v40 = vadd.f32 %v3419_v28, %v546_v62  ;;  %v1767_v60 = vsel %vm1755_vm6, %v3584_v45, %v1766_v46  ;;  %v3695_v29 = vsel %vm1359_vm7, %v3525_v3, %v1677_v43  ;;  %v3698_v5 = vpack.c.bf16 %v1174_v0, %v3675_v33 }
 0x10c   : > { %v1525_v14 = vshrl.u32 %v3679_v31, 16  ;;  %1888 = vrot.lane.b32.xlu0 %v1767_v60, %s3315_s13  ;;  %v1413_v7 = vor.u32 %v1411_v57, %v3687_v55  ;;  %v3704_v19 = vsel %vm1359_vm7, %v1674_v53, %v1685_v35  ;;  %v1172_v41 = vsel %vm3649_vm4, 0.0, %v3451_v59 }
 0x10d   : > { %v1535_v37 = vrot.slane %v1533_v24, 7  ;;  %v3709_v3 = vrot.slane %v1541_v26, 7  ;;  %v4860_v13 = vrot.slane %v3695_v29, 1  ;;  %v1536_v43 = vshll.u32 %v1060_v9, 16 }
 0x10e   : > { %v3712_v17 = vmax.f32 %v552_v51, 0.0  ;;  %v555_v62 = vadd.f32 %v3225_v6, %v3419_v28  ;;  %v3717_v0 = vsel %vm1359_vm7, %v3621_v39, %v1413_v7  ;;  %v1544_v53 = vshll.u32 %v1061_v11, 16  ;;  %v3292_v11 = vld [vmem:[%s4856_s3 + $0x38] sm:$0xff]  }
 0x10f   : > { %4914 = vst [vmem:[#allocation5_spill] sm:$0xff] %v3717_v0  ;;  %v622_v35 = vmax.f32 %v544_v23, 0.0  ;;  %v623_v57 = vmax.f32 %v547_v40, 0.0  ;;  %2107 = vrot.lane.b32.xlu1 %v3717_v0, %s3311_s9  ;;  %v4859_v59 = vrot.slane %v3704_v19, 1  ;;  %v3722_v50 = vrot.slane %v1525_v14, 7  ;;  %2536 = vmatpush1.bf16.msra.mxu0 %v3292_v11 }
 0x110   : > { %vm3724_vm8 = vcmp.eq.s32.totalorder %v787_v34, 0  ;;  %vm3728_vm9 = vcmp.eq.s32.totalorder %v794_v18, 15  ;;  %v3734_v39 = vsel %vm1359_vm7, %v3586_v48, %v1506_v27  ;;  %v1538_v24 = vor.u32 %v1536_v43, %v1535_v37  ;;  %2537 = vmatprep.subr.bf16.mxu0 %v4862_v20  ;;  %3247 = vmatpush1.bf16.msra.mxu1 %v3292_v11 }
 0x111   : > { %v1546_v26 = vor.u32 %v1544_v53, %v3709_v3  ;;  %v1939_v34 = vsel %vm1922_vm1, %v4860_v13, %v4859_v59  ;;  %v1768_v18 = vshrl.u32 %v3647_v36, 16  ;;  %v1384_v51 = vshrl.u32 %v3698_v5, 16  ;;  %3239 = vmatprep.subr.bf16.mxu1 %v4862_v20 }
 0x112   : > { %v3748_v48 = vpack.c.bf16 %v1172_v41, %v3449_v58  ;;  %v1329_v27 = vsel %vm3671_vm5, 0.0, %v3712_v17  ;;  %v3753_v23 = vmax.f32 %v555_v62, 0.0  ;;  %3004 = vmatprep.mubr.msk.bf16.mxu1 %vm2166_vm15, %v1939_v34  ;;  %v1327_v40 = vsel %vm3724_vm8, 0.0, %v622_v35 }
 0x113   : > { %v1184_v36 = vsel %vm3728_vm9, 0.0, %v623_v57  ;;  %v1770_v60 = vor.u32 %v1768_v18, %v1766_v46  ;;  %v1772_v14 = vshll.u32 %v3734_v39, 16  ;;  %2001 = vrot.lane.b32.xlu1 %v3717_v0, %s3312_s10  ;;  %v645_v58 = vadd.s32 48, %v3412_v22  ;;  %2538 = vmatpush1.bf16.msra.mxu0 %v3293_v16  ;;  %v3294_v18 = vld [vmem:[%s4856_s3 + $0x28] sm:$0xff]  }
 0x114   : > { %vm3770_vm10 = vcmp.eq.s32.totalorder %v780_v63, 15  ;;  %v1539_v41 = vsel %vm1359_vm7, %v3722_v50, %v1538_v24  ;;  %v3779_v43 = vsel %vm1359_vm7, %v1535_v37, %v1546_v26  ;;  %v3783_v62 = vpack.c.bf16 %v3753_v23, %v1329_v27  ;;  %2539 = vmatprep.subr.bf16.mxu0 %v4862_v20  ;;  %3248 = vmatpush1.bf16.msra.mxu1 %v3293_v16 }
 0x115   : > { %v3774_v46 = vrot.slane %v1772_v14, 1  ;;  %v3785_v53 = vpack.c.bf16 %v1184_v36, %v622_v35  ;;  %v3787_v12 = vpack.c.bf16 %v623_v57, %v1327_v40  ;;  %v1804_v63 = vshll.u32 %v1539_v41, 16  ;;  %3240 = vmatprep.subr.bf16.mxu1 %v4862_v20  ;;  %v3815_v14 = vpop.f32.mrf.mxu0 }
 0x116   : > { %v1376_v6 = vshrl.u32 %v3748_v48, 16  ;;  %v3793_v37 = vrot.slane %v1384_v51, 7  ;;  %v1812_v11 = vshll.u32 %v3779_v43, 16  ;;  %v717_v24 = vand.u32 15, %v645_v58 }
 0x117   : > { %v1775_v9 = vsel %vm1755_vm6, %v1770_v60, %v3774_v46  ;;  %2076 = vrot.lane.b32.xlu1 %v1939_v34, %s3314_s12  ;;  %v3798_v26 = vrot.slane %v1804_v63, 1  ;;  %v3805_v27 = vpack.c.bf16 %v3581_v42, %v3574_v30  ;;  %v1182_v51 = vsel %vm3770_vm10, 0.0, %v3581_v42  ;;  %2540 = vmatpush1.bf16.msra.mxu0 %v3294_v18 }
 0x118   : > { %4921 = vst [vmem:[#allocation6_spill] sm:$0xff] %v3793_v37  ;;  %2029 = vrot.lane.b32.xlu0 %v1775_v9, %s3316_s20  ;;  %v1387_v40 = vshll.u32 %v3698_v5, 16  ;;  %v3812_v36 = vpack.c.bf16 %v623_v57, %v622_v35  ;;  %v1424_v60 = vshrl.u32 %v3785_v53, 16  ;;  %v1808_v58 = vshrl.u32 %v1539_v41, 16  ;;  %2541 = vmatprep.subr.bf16.mxu0 %v4862_v20  ;;  %v3295_v41 = vld [vmem:[%s4856_s3 + $0x20] sm:$0xff]  }
 0x119   : > { %v3817_v16 = vrot.slane %v1812_v11, 1  ;;  %v1696_v63 = vshrl.u32 %v3783_v62, 16  ;;  %v1688_v59 = vshrl.u32 %v3787_v12, 16  ;;  %v1378_v7 = vrot.slane %v1376_v6, 7  ;;  %3249 = vmatpush1.bf16.msra.mxu1 %v3294_v18 }
 0x11a   : > { %v1389_v42 = vor.u32 %v1387_v40, %v3793_v37  ;;  %vm3823_vm12 = vcmp.eq.s32.totalorder %v717_v24, 0  ;;  %v3828_v35 = vpack.c.bf16 %v1182_v51, %v3574_v30  ;;  %v1810_v57 = vor.u32 %v1808_v58, %v3798_v26  ;;  %3241 = vmatprep.subr.bf16.mxu1 %v4862_v20 }
 0x11b   : > { %1970 = vrot.lane.b32.xlu1 %v1939_v34, %s3313_s11  ;;  %v1549_v6 = vshrl.u32 %v3805_v27, 16  ;;  %v1699_v34 = vshll.u32 %v3783_v62, 16  ;;  %v659_v11 = vadd.s32 160, %v3412_v22  ;;  %v662_v24 = vadd.s32 184, %v3412_v22  ;;  %2542 = vmatpush1.bf16.msra.mxu0 %v3295_v41 }
 0x11c   : > { %1890 = vrot.lane.b32.xlu0 %v1775_v9, %s3315_s13  ;;  %v1557_v30 = vshrl.u32 %v3812_v36, 16  ;;  %v559_v9 = vpop.f32.mrf.mxu0  ;;  %v3843_v51 = vsel %vm1755_vm6, %v1810_v57, %v3817_v16  ;;  %v3845_v40 = vrot.slane %v1424_v60, 7  ;;  %v1427_v58 = vshll.u32 %v3785_v53, 16  ;;  %2543 = vmatprep.subr.bf16.mxu0 %v4862_v20 }
 0x11d   : > { %4924 = vst [vmem:[#allocation7_spill] sm:$0xff] %v3843_v51  ;;  %v3849_v62 = vrot.slane %v1696_v63, 7  ;;  %v1690_v13 = vrot.slane %v1688_v59, 7  ;;  %v1691_v38 = vshll.u32 %v3787_v12, 16  ;;  %v3853_v18 = vsel %vm1359_vm7, %v1378_v7, %v1389_v42  ;;  %v3296_v63 = vld [vmem:[%s4856_s3 + $0x18] sm:$0xff]   ;;  %3250 = vmatpush1.bf16.msra.mxu1 %v3295_v41 }
 0x11e   : > { %4925 = vst [vmem:[#allocation8_spill] sm:$0xff] %v3853_v18  ;;  %v1317_v53 = vsel %vm3823_vm12, 0.0, %v3675_v33  ;;  %v3863_v60 = vpack.c.bf16 %v3658_v61, %v3675_v33  ;;  %v3866_v59 = vadd.s32 176, %v3412_v22  ;;  %v1416_v12 = vshrl.u32 %v3828_v35, 16  ;;  %v3229_v45 = vpop.f32.mrf.mxu0 }
 0x11f   : > { %2039 = vrot.lane.b32.xlu1 %v3843_v51, %s3316_s20  ;;  %v3875_v42 = vpack.c.bf16 %v3658_v61, %v1317_v53  ;;  %v3877_v5 = vrot.slane %v1549_v6, 7  ;;  %v815_v57 = vand.u32 15, %v659_v11  ;;  %v1379_v33 = vshll.u32 %v3748_v48, 16  ;;  %2544 = vmatpush1.bf16.msra.mxu0 %v3296_v63 }
 0x120   : > { %2101 = vrot.lane.b32.xlu0 %v3853_v18, %s3311_s9  ;;  %v3880_v20 = vrot.slane %v1557_v30, 7  ;;  %v1560_v0 = vshll.u32 %v3812_v36, 16  ;;  %v836_v44 = vand.u32 15, %v662_v24  ;;  %v1429_v32 = vor.u32 %v1427_v58, %v3845_v40 }
 0x121   : > { %v4926_v37 = vmov 0   ;;  %v1552_v61 = vshll.u32 %v3805_v27, 16  ;;  %v1701_v6 = vor.u32 %v1699_v34, %v3849_v62  ;;  %v1693_v53 = vor.u32 %v1691_v38, %v1690_v13  ;;  %v3297_v38 = vld [vmem:[%s4856_s3 + $0x10] sm:$0xff]  }
 0x122   : > { %3242 = vmatprep.subr.bf16.mxu1 %v4926_v37  ;;  %v1381_v11 = vor.u32 %v1379_v33, %v1378_v7  ;;  %2545 = vmatprep.subr.bf16.mxu0 %v4926_v37  ;;  %v1517_v48 = vshrl.u32 %v3863_v60, 16  ;;  %v3892_v36 = vadd.s32 152, %v3412_v22  ;;  %v3895_v41 = vadd.s32 168, %v3412_v22 }
 0x123   : > { %1900 = vrot.lane.b32.xlu1 %v3843_v51, %s3315_s13  ;;  %v3899_v27 = vrot.slane %v1416_v12, 7  ;;  %v1648_v7 = vshrl.u32 %v3875_v42, 16  ;;  %v1656_v34 = vshrl.u32 %v3516_v52, 16  ;;  %v1554_v24 = vor.u32 %v1552_v61, %v3877_v5  ;;  %3251 = vmatpush1.bf16.msra.mxu1 %v3296_v63 }
 0x124   : > { %1995 = vrot.lane.b32.xlu0 %v3853_v18, %s3312_s10  ;;  %v829_v30 = vand.u32 15, %v3866_v59  ;;  %v1562_v58 = vor.u32 %v1560_v0, %v3880_v20  ;;  %v560_v33 = vadd.f32 %v3419_v28, %v559_v9  ;;  %vm3910_vm13 = vcmp.eq.s32.totalorder %v815_v57, 0  ;;  %v562_v18 = vpop.f32.mrf.mxu0  ;;  %2546 = vmatpush1.bf16.msra.mxu0 %v3297_v38 }
 0x125   : > { %v3916_v51 = vsel %vm1359_vm7, %v3899_v27, %v1429_v32  ;;  %3243 = vmatprep.subr.bf16.mxu1 %v4926_v37  ;;  %vm3919_vm14 = vcmp.eq.s32.totalorder %v836_v44, 15  ;;  %v3925_v0 = vsel %vm1359_vm7, %v3468_v8, %v1381_v11  ;;  %v3931_v9 = vsel %vm1359_vm7, %v3661_v4, %v1693_v53  ;;  %2547 = vmatprep.subr.bf16.mxu0 %v4926_v37  ;;  %v3298_v4 = vld [vmem:[%s4856_s3 + $0x8] sm:$0xff]  }
 0x126   : > { %4929 = vst [vmem:[#allocation9_spill] sm:$0xff] %v3916_v51  ;;  %v3934_v32 = vsel %vm1359_vm7, %v1690_v13, %v1701_v6  ;;  %v3937_v44 = vrot.slane %v1517_v48, 7  ;;  %v1509_v59 = vshrl.u32 %v3459_v2, 16  ;;  %v571_v63 = vadd.f32 %v3229_v45, %v3419_v28 }
 0x127   : > { %2111 = vrot.lane.b32.xlu1 %v3916_v51, %s3311_s9  ;;  %v822_v8 = vand.u32 15, %v3895_v41  ;;  %v1650_v57 = vrot.slane %v1648_v7, 7  ;;  %v1658_v13 = vrot.slane %v1656_v34, 7  ;;  %v563_v6 = vadd.f32 %v3419_v28, %v562_v18  ;;  %3252 = vmatpush1.bf16.msra.mxu1 %v3297_v38 }
 0x128   : > { %2099 = vrot.lane.b32.xlu0 %v3925_v0, %s3311_s9  ;;  %v1555_v53 = vsel %vm1359_vm7, %v3709_v3, %v1554_v24  ;;  %v1520_v11 = vshll.u32 %v3863_v60, 16  ;;  %v3951_v45 = vmax.f32 %v560_v33, 0.0  ;;  %v4876_v48 = vrot.slane %v3931_v9, 1  ;;  %2548 = vmatpush1.bf16.msra.mxu0 %v3298_v4 }
 0x129   : > { %v4873_v41 = vrot.slane %v3934_v32, 1  ;;  %3244 = vmatprep.subr.bf16.mxu1 %v4926_v37  ;;  %v1651_v7 = vshll.u32 %v3875_v42, 16  ;;  %v1659_v34 = vshll.u32 %v3516_v52, 16  ;;  %v568_v18 = vadd.f32 %v3815_v14, %v3419_v28  ;;  %2549 = vmatprep.subr.bf16.mxu0 %v4926_v37  ;;  %v3299_v28 = vld [vmem:[%s4856_s3] sm:$0xff]  }
 0x12a   : > { %v3964_v3 = vsel %vm1359_vm7, %v3877_v5, %v1562_v58  ;;  %v1522_v60 = vor.u32 %v1520_v11, %v3937_v44  ;;  %v1511_v38 = vrot.slane %v1509_v59, 7  ;;  %v3968_v24 = vmax.f32 %v571_v63, 0.0 }
 0x12b   : > { %2005 = vrot.lane.b32.xlu1 %v3916_v51, %s3312_s10  ;;  %v1820_v52 = vshll.u32 %v1555_v53, 16  ;;  %v1653_v14 = vor.u32 %v1651_v7, %v1650_v57  ;;  %v1512_v42 = vshll.u32 %v3459_v2, 16  ;;  %v1661_v5 = vor.u32 %v1659_v34, %v1658_v13  ;;  %3253 = vmatpush1.bf16.msra.mxu1 %v3298_v4 }
 0x12c   : > { %1993 = vrot.lane.b32.xlu0 %v3925_v0, %s3312_s10  ;;  %v3976_v58 = vmax.f32 %v563_v6, 0.0  ;;  %v1331_v33 = vsel %vm3910_vm13, 0.0, %v3951_v45  ;;  %v1190_v59 = vsel %vm3919_vm14, 0.0, %v3968_v24  ;;  %v3989_v63 = vsel %vm1922_vm1, %v4876_v48, %v4873_v41  ;;  %2550 = vmatpush1.bf16.msra.mxu0 %v3299_v28 }
 0x12d   : > { %v1828_v2 = vshll.u32 %v3964_v3, 16  ;;  %3245 = vmatprep.subr.bf16.mxu1 %v4926_v37  ;;  %v808_v4 = vand.u32 15, %v3892_v36  ;;  %v3994_v12 = vmax.f32 %v568_v18, 0.0  ;;  %vm3996_vm2 = vcmp.eq.s32.totalorder %v829_v30, 0  ;;  %2565 = vmatprep.subr.bf16.mxu0 %v4926_v37 }
 0x12e   : > { %vm4000_vm3 = vcmp.eq.s32.totalorder %v822_v8, 15  ;;  %v1514_v11 = vor.u32 %v1512_v42, %v1511_v38  ;;  %v1528_v7 = vshll.u32 %v3679_v31, 16  ;;  %v4010_v36 = vrot.slane %v1820_v52, 1  ;;  %v3300_v8 = vld [vmem:[%s4856_s3 + $0x40] sm:$0xff]  }
 0x12f   : > { %2080 = vrot.lane.b32.xlu1 %v3989_v63, %s3314_s12  ;;  %v1523_v30 = vsel %vm1359_vm7, %v1511_v38, %v1522_v60  ;;  %v1210_v34 = vpack.c.bf16 %v1190_v59, %v3994_v12  ;;  %v1353_v18 = vpack.c.bf16 %v3976_v58, %v1331_v33  ;;  %v4019_v41 = vsel %vm1359_vm7, %v1650_v57, %v1661_v5 }
 0x130   : > { %2066 = vrot.lane.b32.xlu0 %v3593_v54, %s3314_s12  ;;  %v1670_v31 = vsel %vm1359_vm7, %v1658_v13, %v3541_v10  ;;  %3254 = vmatpush1.bf16.msra.mxu1 %v3299_v28  ;;  %v1188_v52 = vsel %vm4000_vm3, 0.0, %v3976_v58  ;;  %v4028_v60 = vsel %vm1359_vm7, %v3513_v49, %v1653_v14  ;;  %v1824_v38 = vshrl.u32 %v1555_v53, 16 }
 0x131   : > { %v4030_v42 = vrot.slane %v1828_v2, 1  ;;  %2566 = vmatpush2.bf16.msra.mxu0 %v3300_v8  ;;  %3246 = vmatprep.subr.bf16.mxu1 %v4926_v37  ;;  %v1333_v57 = vsel %vm3996_vm2, 0.0, %v3994_v12  ;;  %v1788_v10 = vshll.u32 %v1523_v30, 16  ;;  %v4875_v13 = vrot.slane %v4019_v41, 1 }
 0x132   : > { %v1530_v28 = vor.u32 %v1528_v7, %v3722_v50  ;;  %v1826_v49 = vor.u32 %v1824_v38, %v4010_v36  ;;  %v4045_v37 = vsel %vm1359_vm7, %v3668_v47, %v1514_v11  ;;  %v1934_v53 = vrot.slane %v1670_v31, 1 }
 0x133   : > { %1974 = vrot.lane.b32.xlu1 %v3989_v63, %s3313_s11  ;;  %vm4047_vm4 = vcmp.eq.s32.totalorder %v808_v4, 15  ;;  %v1209_v5 = vpack.c.bf16 %v1188_v52, %v3951_v45  ;;  %v1704_v33 = vshrl.u32 %v1353_v18, 16  ;;  %v4874_v59 = vrot.slane %v4028_v60, 1 }
 0x134   : > { %1960 = vrot.lane.b32.xlu0 %v3593_v54, %s3313_s11  ;;  %3255 = vmatpush2.bf16.msra.mxu1 %v3300_v8  ;;  %v1354_v50 = vpack.c.bf16 %v3968_v24, %v1333_v57  ;;  %v1448_v54 = vshrl.u32 %v1210_v34, 16  ;;  %v1831_v2 = vsel %vm1755_vm6, %v1826_v49, %v4030_v42  ;;  %v4059_v47 = vsel %vm1922_vm1, %v4875_v13, %v1934_v53 }
 0x135   : > { %v4938_v4 = vrot.slane %v3568_v25, 1  ;;  %v1780_v61 = vshll.u32 %v4045_v37, 16  ;;  %v4070_v11 = vrot.slane %v1788_v10, 1  ;;  %v1064_v7 = vpack.c.bf16 %v3753_v23, %v3712_v17 }
 0x136   : > { %v1186_v8 = vsel %vm4047_vm4, 0.0, %v3753_v23  ;;  %v1707_v31 = vshll.u32 %v1353_v18, 16  ;;  %v1531_v25 = vsel %vm1359_vm7, %v3937_v44, %v1530_v28  ;;  %v1706_v52 = vrot.slane %v1704_v33, 7 }
 0x137   : > { %v4066_v6 = vsel %vm1922_vm1, %v4938_v4, %v4874_v59  ;;  %2145 = vrot.lane.b32.xlu1 %v1831_v2, %s3317_s16  ;;  %v1440_v38 = vshrl.u32 %v1209_v5, 16  ;;  %v1792_v57 = vshrl.u32 %v1523_v30, 16  ;;  %v1796_v49 = vshll.u32 %v1531_v25, 16 }
 0x138   : > { %2068 = vrot.lane.b32.xlu0 %v4066_v6, %s3314_s12  ;;  %v1712_v10 = vshrl.u32 %v1354_v50, 16  ;;  %v1065_v4 = vpack.c.bf16 %v3976_v58, %v3951_v45  ;;  %v4083_v59 = vrot.slane %v1448_v54, 7  ;;  %v1451_v13 = vshll.u32 %v1210_v34, 16 }
 0x139   : > { %v1776_v23 = vshrl.u32 %v3734_v39, 16  ;;  %v1782_v18 = vrot.slane %v1780_v61, 1  ;;  %v1794_v14 = vor.u32 %v1792_v57, %v4070_v11  ;;  %v1798_v48 = vrot.slane %v1796_v49, 1 }
 0x13a   : > { %v4089_v44 = vpack.c.bf16 %v1186_v8, %v3712_v17  ;;  %v1565_v30 = vshrl.u32 %v1064_v7, 16  ;;  %v1800_v28 = vshrl.u32 %v1531_v25, 16  ;;  %v1709_v45 = vor.u32 %v1707_v31, %v1706_v52 }
 0x13b   : > { %2043 = vrot.lane.b32.xlu1 %v1831_v2, %s3316_s20  ;;  %v1778_v58 = vor.u32 %v1776_v23, %v3774_v46  ;;  %v1442_v34 = vrot.slane %v1440_v38, 7  ;;  %v4095_v39 = vsel %vm1755_vm6, %v1794_v14, %v1798_v48  ;;  %v1453_v33 = vor.u32 %v1451_v13, %v4083_v59 }
 0x13c   : > { %1962 = vrot.lane.b32.xlu0 %v4066_v6, %s3313_s11  ;;  %v1443_v54 = vshll.u32 %v1209_v5, 16  ;;  %v1802_v61 = vor.u32 %v1800_v28, %v1798_v48  ;;  %v4939_v57 = vrot.slane %v3695_v29, 1  ;;  %v4103_v8 = vrot.slane %v1712_v10, 7 }
 0x13d   : > { %v1715_v49 = vshll.u32 %v1354_v50, 16  ;;  %v1573_v25 = vshrl.u32 %v1065_v4, 16  ;;  %v1783_v31 = vsel %vm1755_vm6, %v1778_v58, %v1782_v18  ;;  %v1432_v46 = vshrl.u32 %v4089_v44, 16  ;;  %v3232_v50 = vpop.f32.mrf.mxu0 }
 0x13e   : > { %v4101_v17 = vsel %vm1922_vm1, %v1934_v53, %v4939_v57  ;;  %v4111_v48 = vsel %vm1755_vm6, %v1802_v61, %v3798_v26  ;;  %v1567_v29 = vrot.slane %v1565_v30, 7  ;;  %v1568_v13 = vshll.u32 %v1064_v7, 16 }
 0x13f   : > { %4940 = vst [vmem:[#allocation10_spill] sm:$0xff] %v4101_v17  ;;  %1904 = vrot.lane.b32.xlu1 %v1831_v2, %s3315_s13  ;;  %v1710_v53 = vsel %vm1359_vm7, %v3849_v62, %v1709_v45  ;;  %v1816_v5 = vshrl.u32 %v3779_v43, 16  ;;  %v4117_v38 = vsel %vm1359_vm7, %v1442_v34, %v1453_v33  ;;  %v1445_v2 = vor.u32 %v1443_v54, %v1442_v34  ;;  %v575_v34 = vpop.f32.mrf.mxu0 }
 0x140   : > { %2133 = vrot.lane.b32.xlu0 %v1783_v31, %s3317_s16  ;;  %4941 = vst [vmem:[#allocation11_spill] sm:$0xff] %v4117_v38  ;;  %v1717_v10 = vor.u32 %v1715_v49, %v4103_v8  ;;  %v4120_v23 = vrot.slane %v1573_v25, 7  ;;  %v1576_v14 = vshll.u32 %v1065_v4, 16  ;;  %v4126_v62 = vrot.slane %v1432_v46, 7 }
 0x141   : > { %v1818_v26 = vor.u32 %v1816_v5, %v3817_v16  ;;  %v1944_v43 = vrot.slane %v1710_v53, 1  ;;  %v4942_v7 = vrot.slane %v3931_v9, 1  ;;  %v4943_v30 = vrot.slane %v3704_v19, 1  ;;  %v3233_v57 = vpop.f32.mrf.mxu0 }
 0x142   : > { %v1570_v45 = vor.u32 %v1568_v13, %v1567_v29  ;;  %v1784_v4 = vshrl.u32 %v4045_v37, 16  ;;  %v1066_v16 = vpack.c.bf16 %v3968_v24, %v3994_v12  ;;  %v4144_v33 = vsel %vm1359_vm7, %v4126_v62, %v1445_v2 }
 0x143   : > { %2011 = vrot.lane.b32.xlu1 %v4117_v38, %s3312_s10  ;;  %v4133_v28 = vsel %vm1922_vm1, %v4943_v30, %v4942_v7  ;;  %v4138_v58 = vsel %vm1755_vm6, %v1818_v26, %v4010_v36  ;;  %v1578_v19 = vor.u32 %v1576_v14, %v4120_v23  ;;  %v4150_v37 = vsel %vm1359_vm7, %v1706_v52, %v1717_v10  ;;  %v578_v53 = vpop.f32.mrf.mxu0 }
 0x144   : > { %2031 = vrot.lane.b32.xlu0 %v1783_v31, %s3316_s20  ;;  %v1786_v9 = vor.u32 %v1784_v4, %v1782_v18  ;;  %v1832_v36 = vshrl.u32 %v3964_v3, 16  ;;  %v666_v54 = vadd.s32 216, %v3412_v22  ;;  %v4944_v24 = vrot.slane %v3934_v32, 1 }
 0x145   : > { %v1571_v18 = vsel %vm1359_vm7, %v3880_v20, %v1570_v45  ;;  %v1946_v52 = vrot.slane %v4150_v37, 1  ;;  %v1581_v49 = vshrl.u32 %v1066_v16, 16  ;;  %v1579_v32 = vsel %vm1359_vm7, %v1567_v29, %v1578_v19 }
 0x146   : > { %v4158_v12 = vsel %vm1922_vm1, %v4944_v24, %v1944_v43  ;;  %v4163_v61 = vor.u32 %v1832_v36, %v4030_v42  ;;  %v1791_v3 = vsel %vm1755_vm6, %v1786_v9, %v4070_v11  ;;  %v864_v25 = vand.u32 15, %v666_v54  ;;  %v4182_v11 = vld [vmem:[%s4855_s2] ss:$0 sm:$0xff] }
 0x147   : > { %2115 = vrot.lane.b32.xlu1 %v4144_v33, %s3311_s9  ;;  %v4945_v20 = vrot.slane %v4019_v41, 1  ;;  %v4946_v42 = vrot.slane %v4028_v60, 1  ;;  %v587_v13 = vadd.f32 %v4182_v11, %v3233_v57  ;;  %v664_v29 = vadd.s32 200, %v3412_v22 }
 0x148   : > { %1892 = vrot.lane.b32.xlu0 %v1783_v31, %s3315_s13  ;;  %v1836_v31 = vshll.u32 %v1571_v18, 16  ;;  %v4189_v5 = vsel %vm1922_vm1, %v1944_v43, %v1946_v52  ;;  %v1840_v41 = vshrl.u32 %v1571_v18, 16  ;;  %v1844_v60 = vshll.u32 %v1579_v32, 16 }
 0x149   : > { %v4177_v46 = vsel %vm1922_vm1, %v4946_v42, %v4945_v20  ;;  %4947 = vst [vmem:[#allocation12_spill] sm:$0xff] %v4189_v5  ;;  %v4191_v2 = vrot.slane %v1581_v49, 7  ;;  %v1584_v10 = vshll.u32 %v1066_v16, 16  ;;  %v584_v14 = vadd.f32 %v4182_v11, %v3232_v50 }
 0x14a   : > { %vm4196_vm5 = vcmp.eq.s32.totalorder %v864_v25, 15  ;;  %v4201_v7 = vrot.slane %v1836_v31, 1  ;;  %v663_v43 = vadd.s32 192, %v3412_v22  ;;  %v4204_v30 = vmax.f32 %v587_v13, 0.0 }
 0x14b   : > { %2009 = vrot.lane.b32.xlu1 %v4144_v33, %s3312_s10  ;;  %v579_v45 = vadd.f32 %v4182_v11, %v578_v53  ;;  %v850_v4 = vand.u32 15, %v664_v29  ;;  %v1846_v19 = vrot.slane %v1844_v60, 1  ;;  %v1586_v50 = vor.u32 %v1584_v10, %v4191_v2 }
 0x14c   : > { %2135 = vrot.lane.b32.xlu0 %v1791_v3, %s3317_s16  ;;  %v1842_v16 = vor.u32 %v1840_v41, %v4201_v7  ;;  %v1194_v9 = vsel %vm4196_vm5, 0.0, %v4204_v30  ;;  %v4214_v36 = vmax.f32 %v584_v14, 0.0  ;;  %v576_v54 = vadd.f32 %v4182_v11, %v575_v34 }
 0x14d   : > { %v843_v24 = vand.u32 15, %v663_v43  ;;  %v631_v18 = vmax.f32 %v579_v45, 0.0  ;;  %vm1096_vm8 = vcmp.eq.s32.totalorder %v850_v4, 15  ;;  %v4223_v25 = vsel %vm1359_vm7, %v4120_v23, %v1586_v50 }
 0x14e   : > { %v1212_v57 = vpack.c.bf16 %v1194_v9, %v4214_v36  ;;  %v1847_v49 = vsel %vm1755_vm6, %v1842_v16, %v1846_v19  ;;  %v630_v31 = vmax.f32 %v576_v54, 0.0  ;;  %v665_v34 = vadd.s32 208, %v3412_v22 }
 0x14f   : > { %2084 = vrot.lane.b32.xlu1 %v4189_v5, %s3314_s12  ;;  %vm1239_vm9 = vcmp.eq.s32.totalorder %v843_v24, 0  ;;  %v1852_v42 = vshll.u32 %v4223_v25, 16  ;;  %v1848_v23 = vshrl.u32 %v1579_v32, 16  ;;  %v1419_v41 = vshll.u32 %v3828_v35, 16 }
 0x150   : > { %2033 = vrot.lane.b32.xlu0 %v1791_v3, %s3316_s20  ;;  %v1464_v20 = vshrl.u32 %v1212_v57, 16  ;;  %v1335_v13 = vsel %vm1239_vm9, 0.0, %v630_v31  ;;  %v857_v29 = vand.u32 15, %v665_v34  ;;  %v1467_v26 = vshll.u32 %v1212_v57, 16 }
 0x151   : > { %v1850_v60 = vor.u32 %v1848_v23, %v1846_v19  ;;  %v4233_v10 = vrot.slane %v1852_v42, 1  ;;  %v1355_v43 = vpack.c.bf16 %v631_v18, %v1335_v13  ;;  %v1421_v45 = vor.u32 %v1419_v41, %v3899_v27 }
 0x152   : > { %v4235_v14 = vrot.slane %v1464_v20, 7  ;;  %vm1241_vm10 = vcmp.eq.s32.totalorder %v857_v29, 0  ;;  %vm2214_vm3 = vcmask 261120   ;;  %vm2247_vm4 = vcmask 392192  }
 0x153   : > { %1978 = vrot.lane.b32.xlu1 %v4189_v5, %s3313_s11  ;;  %v4245_v35 = vsel %vm1755_vm6, %v1850_v60, %v4233_v10  ;;  %v1720_v19 = vshrl.u32 %v1355_v43, 16  ;;  %v4250_v50 = vsel %vm1359_vm7, %v3687_v55, %v1421_v45  ;;  %v1337_v27 = vsel %vm1241_vm10, 0.0, %v4214_v36 }
 0x154   : > { %1894 = vrot.lane.b32.xlu0 %v1791_v3, %s3315_s13  ;;  %v1192_v3 = vsel %vm1096_vm8, 0.0, %v631_v18  ;;  %v1469_v32 = vor.u32 %v1467_v26, %v4235_v14  ;;  %v1723_v55 = vshll.u32 %v1355_v43, 16  ;;  %vm2312_vm5 = vcmask 654336  }
 0x155   : > { %v1211_v53 = vpack.c.bf16 %v1192_v3, %v630_v31  ;;  %v1722_v34 = vrot.slane %v1720_v19, 7  ;;  %vm2345_vm8 = vcmask 785408   ;;  %vm2378_vm9 = vcmask 916480  }
 0x157   : > { %2149 = vrot.lane.b32.xlu1 %v1847_v49, %s3317_s16  ;;  %v1456_v4 = vshrl.u32 %v1211_v53, 16  ;;  %v1459_v57 = vshll.u32 %v1211_v53, 16  ;;  %v1725_v42 = vor.u32 %v1723_v55, %v1722_v34  ;;  %v1067_v53 = vpack.c.bf16 %v631_v18, %v630_v31 }
 0x158   : > { %1966 = vrot.lane.b32.xlu0 %v4059_v47, %s3313_s11 }
 0x159   : > { %v1458_v9 = vrot.slane %v1456_v4, 7  ;;  %v1726_v60 = vsel %vm1359_vm7, %v4103_v8, %v1725_v42  ;;  %v1589_v26 = vshrl.u32 %v1067_v53, 16  ;;  %v1592_v45 = vshll.u32 %v1067_v53, 16 }
 0x15a   : > { %v1948_v18 = vrot.slane %v1726_v60, 1  ;;  %v1068_v4 = vpack.c.bf16 %v4204_v30, %v4214_v36 }
 0x15b   : > { %2047 = vrot.lane.b32.xlu1 %v1847_v49, %s3316_s20  ;;  %v4258_v54 = vsel %vm1359_vm7, %v1458_v9, %v1469_v32  ;;  %v1461_v3 = vor.u32 %v1459_v57, %v1458_v9  ;;  %v1435_v32 = vshll.u32 %v4089_v44, 16  ;;  %v3236_v9 = vpop.f32.mrf.mxu0 }
 0x15c   : > { %2137 = vrot.lane.b32.xlu0 %v4095_v39, %s3317_s16  ;;  %4950 = vst [vmem:[#allocation13_spill] sm:$0xff] %v4258_v54  ;;  %v4295_v8 = vsel %vm1922_vm1, %v1946_v52, %v1948_v18  ;;  %v1597_v57 = vshrl.u32 %v1068_v4, 16 }
 0x15d   : > { %v4275_v23 = vsel %vm1359_vm7, %v4083_v59, %v1461_v3  ;;  %v1591_v59 = vrot.slane %v1589_v26, 7  ;;  %4952 = vst [vmem:[#allocation15_spill] sm:$0xff] %v4295_v8 }
 0x15e   : > { %4951 = vst [vmem:[#allocation14_spill] sm:$0xff] %v4275_v23  ;;  %v4327_v3 = vrot.slane %v1597_v57, 7  ;;  %v600_v57 = vadd.f32 %v4182_v11, %v3236_v9  ;;  %v669_v9 = vadd.s32 240, %v3412_v22 }
 0x15f   : > { %1908 = vrot.lane.b32.xlu1 %v1847_v49, %s3315_s13  ;;  %v1356_v49 = vpack.c.bf16 %v4204_v30, %v1337_v27  ;;  %v1594_v37 = vor.u32 %v1592_v45, %v1591_v59  ;;  %v1437_v30 = vor.u32 %v1435_v32, %v4126_v62  ;;  %v1856_v62 = vshrl.u32 %v4223_v25, 16 }
 0x160   : > { %1898 = vrot.lane.b32.xlu0 %v4111_v48, %s3315_s13  ;;  %v668_v45 = vadd.s32 232, %v3412_v22 }
 0x161   : > { %v4241_v16 = vpop.permute.xlu0 %2097  ;;  %v1728_v20 = vshrl.u32 %v1356_v49, 16  ;;  %v1731_v41 = vshll.u32 %v1356_v49, 16  ;;  %v1595_v36 = vsel %vm1359_vm7, %v4191_v2, %v1594_v37  ;;  %v591_v49 = vpop.f32.mrf.mxu0  ;;  %v670_v2 = vadd.s32 248, %v3412_v22 }
 0x162   : > { %v1860_v42 = vshll.u32 %v1595_v36, 16  ;;  %v1858_v25 = vor.u32 %v1856_v62, %v4233_v10 }
 0x163   : > { %1910 = vrot.lane.b32.xlu1 %v4245_v35, %s3315_s13  ;;  %v4277_v29 = vrot.slane %v1728_v20, 7  ;;  %v1600_v20 = vshll.u32 %v1068_v4, 16 }
 0x164   : > { %2109 = vrot.lane.b32.xlu0 %v4250_v50, %s3311_s9 }
 0x165   : > { %v4260_v24 = vpop.permute.xlu0 %1991  ;;  %v1733_v31 = vor.u32 %v1731_v41, %v4277_v29  ;;  %v3237_v41 = vpop.f32.mrf.mxu0  ;;  %v1602_v60 = vor.u32 %v1600_v20, %v4327_v3 }
 0x167   : > { %2121 = vrot.lane.b32.xlu1 %v4258_v54, %s3311_s9  ;;  %v4303_v19 = vsel %vm1359_vm7, %v1722_v34, %v1733_v31  ;;  %v603_v31 = vadd.f32 %v4182_v11, %v3237_v41  ;;  %v594_v32 = vpop.f32.mrf.mxu0  ;;  %v4355_v37 = vsel %vm1359_vm7, %v1591_v59, %v1602_v60  ;;  %v1864_v59 = vshrl.u32 %v1595_v36, 16 }
 0x168   : > { %2003 = vrot.lane.b32.xlu0 %v4250_v50, %s3312_s10  ;;  %v4877_v52 = vrot.slane %v4303_v19, 1  ;;  %v595_v20 = vadd.f32 %v4182_v11, %v594_v32 }
 0x169   : > { %v4271_v13 = vpop.permute.xlu0 %1989  ;;  %v4364_v62 = vmax.f32 %v603_v31, 0.0  ;;  %v667_v31 = vadd.s32 224, %v3412_v22  ;;  %v1839_v22 = vsel %vm1755_vm6, %v4163_v61, %v4201_v7 }
 0x16a   : > { %v4324_v55 = vsel %vm1922_vm1, %v1948_v18, %v4877_v52  ;;  %v1862_v18 = vrot.slane %v1860_v42, 1 }
 0x16b   : > { %2015 = vrot.lane.b32.xlu1 %v4258_v54, %s3312_s10  ;;  %4953 = vst [vmem:[#allocation16_spill] sm:$0xff] %v4324_v55 }
 0x16c   : > { %2074 = vrot.lane.b32.xlu0 %v4101_v17, %s3314_s12  ;;  %v1863_v10 = vsel %vm1755_vm6, %v1858_v25, %v1862_v18  ;;  %v1868_v25 = vshll.u32 %v4355_v37, 16 }
 0x16f   : > { %2119 = vrot.lane.b32.xlu1 %v4275_v23, %s3311_s9 }
 0x170   : > { %1968 = vrot.lane.b32.xlu0 %v4101_v17, %s3313_s11  ;;  %v4394_v17 = vrot.slane %v1868_v25, 1 }
 0x171   : > { %v4285_v43 = vpop.permute.xlu0 %1956 }
 0x173   : > { %2013 = vrot.lane.b32.xlu1 %v4275_v23, %s3312_s10 }
 0x174   : > { %2143 = vrot.lane.b32.xlu0 %v4138_v58, %s3317_s16 }
 0x175   : > { %v4307_v27 = vpop.permute.xlu0 %2064 }
 0x176   : > { %v4315_v44 = vpop.permute.xlu1 %1999 }
 0x177   : > { %2086 = vrot.lane.b32.xlu1 %v4295_v8, %s3314_s12 }
 0x178   : > { %2041 = vrot.lane.b32.xlu0 %v4138_v58, %s3316_s20 }
 0x179   : > { %v4319_v34 = vpop.permute.xlu0 %1958 }
 0x17b   : > { %1980 = vrot.lane.b32.xlu1 %v4295_v8, %s3313_s11 }
 0x17c   : > { %1902 = vrot.lane.b32.xlu0 %v4138_v58, %s3315_s13  ;;  %v4331_v58 = vsel %vm1359_vm7, %v3845_v40, %v1437_v30  ;;  %v892_v40 = vand.u32 15, %v670_v2  ;;  %v878_v2 = vand.u32 15, %v668_v45  ;;  %v4382_v45 = vmax.f32 %v595_v20, 0.0 }
 0x17d   : > { %4954 = vst [vmem:[#allocation17_spill] sm:$0xff] %v4331_v58  ;;  %v592_v30 = vadd.f32 %v4182_v11, %v591_v49  ;;  %v871_v20 = vand.u32 15, %v667_v31 }
 0x17e   : > { %v4346_v26 = vpop.permute.xlu0 %1888  ;;  %vm4358_vm12 = vcmp.eq.s32.totalorder %v892_v40, 15  ;;  %v4377_v40 = vmax.f32 %v600_v57, 0.0  ;;  %vm4384_vm13 = vcmp.eq.s32.totalorder %v878_v2, 15  ;;  %v1866_v57 = vor.u32 %v1864_v59, %v1862_v18 }
 0x17f   : > { %2088 = vrot.lane.b32.xlu1 %v4324_v55, %s3314_s12  ;;  %v1198_v60 = vsel %vm4358_vm12, 0.0, %v4364_v62  ;;  %v1196_v11 = vsel %vm4384_vm13, 0.0, %v4382_v45  ;;  %v634_v2 = vmax.f32 %v592_v30, 0.0  ;;  %vm1243_vm2 = vcmp.eq.s32.totalorder %v871_v20, 0 }
 0x180   : > { %2113 = vrot.lane.b32.xlu0 %v4331_v58, %s3311_s9  ;;  %v1214_v52 = vpack.c.bf16 %v1198_v60, %v4377_v40  ;;  %v1871_v25 = vsel %vm1755_vm6, %v1866_v57, %v4394_v17 }
 0x181   : > { %v4338_v53 = vpop.permute.xlu1 %2107  ;;  %v1213_v61 = vpack.c.bf16 %v1196_v11, %v634_v2  ;;  %v1339_v36 = vsel %vm1243_vm2, 0.0, %v634_v2 }
 0x182   : > { %v1480_v18 = vshrl.u32 %v1214_v52, 16  ;;  %v1483_v31 = vshll.u32 %v1214_v52, 16  ;;  %v1357_v8 = vpack.c.bf16 %v4382_v45, %v1339_v36 }
 0x183   : > { %1982 = vrot.lane.b32.xlu1 %v4324_v55, %s3313_s11  ;;  %v885_v55 = vand.u32 15, %v669_v9  ;;  %v1475_v23 = vshll.u32 %v1213_v61, 16 }
 0x184   : > { %2007 = vrot.lane.b32.xlu0 %v4331_v58, %s3312_s10  ;;  %v4417_v60 = vrot.slane %v1480_v18, 7  ;;  %v1736_v5 = vshrl.u32 %v1357_v8, 16 }
 0x185   : > { %v4350_v4 = vpop.permute.xlu1 %2001  ;;  %vm1245_vm14 = vcmp.eq.s32.totalorder %v885_v55, 0  ;;  %v1472_v55 = vshrl.u32 %v1213_v61, 16 }
 0x186   : > { %v1485_v11 = vor.u32 %v1483_v31, %v4417_v60 }
 0x187   : > { %2153 = vrot.lane.b32.xlu1 %v1863_v10, %s3317_s16  ;;  %v1474_v52 = vrot.slane %v1472_v55, 7 }
 0x188   : > { %2078 = vrot.lane.b32.xlu0 %v4133_v28, %s3314_s12 }
 0x189   : > { %v4367_v42 = vpop.permute.xlu1 %2076  ;;  %v1477_v55 = vor.u32 %v1475_v23, %v1474_v52 }
 0x18a   : > { %v4369_v41 = vpop.permute.xlu0 %2029 }
 0x18b   : > { %2051 = vrot.lane.b32.xlu1 %v1863_v10, %s3316_s20 }
 0x18c   : > { %1972 = vrot.lane.b32.xlu0 %v4133_v28, %s3313_s11 }
 0x18d   : > { %v4388_v32 = vpop.permute.xlu1 %1970 }
 0x18e   : > { %v4392_v54 = vpop.permute.xlu0 %1890 }
 0x18f   : > { %1912 = vrot.lane.b32.xlu1 %v1863_v10, %s3315_s13  ;;  %v1341_v10 = vsel %vm1245_vm14, 0.0, %v4377_v40 }
 0x190   : > { %2147 = vrot.lane.b32.xlu0 %v1839_v22, %s3317_s16  ;;  %v1358_v30 = vpack.c.bf16 %v4364_v62, %v1341_v10  ;;  %v1486_v10 = vsel %vm1359_vm7, %v1474_v52, %v1485_v11  ;;  %v2168_v11 = vsel %vm2166_vm15, 0, %v4346_v26  ;;  %v1069_v26 = vpack.c.bf16 %v4382_v45, %v634_v2 }
 0x191   : > { %v4404_v49 = vpop.permute.xlu1 %2039 }
 0x192   : > { %v4406_v59 = vpop.permute.xlu0 %2101  ;;  %v1744_v18 = vshrl.u32 %v1358_v30, 16  ;;  %v1605_v2 = vshrl.u32 %v1069_v26, 16 }
 0x193   : > { %2155 = vrot.lane.b32.xlu1 %v1871_v25, %s3317_s16 }
 0x194   : > { %2045 = vrot.lane.b32.xlu0 %v1839_v22, %s3316_s20  ;;  %v1746_v31 = vrot.slane %v1744_v18, 7 }
 0x195   : > { %v4412_v7 = vpop.permute.xlu1 %1900 }
 0x196   : > { %v4415_v9 = vpop.permute.xlu0 %1995 }
 0x197   : > { %2053 = vrot.lane.b32.xlu1 %v1871_v25, %s3316_s20 }
 0x198   : > { %1906 = vrot.lane.b32.xlu0 %v1839_v22, %s3315_s13 }
 0x199   : > { %v4422_v57 = vpop.permute.xlu1 %2111 }
 0x19a   : > { %4959 = vst [vmem:[#allocation18_spill] sm:$0xff] %v4422_v57  ;;  %v4424_v20 = vpop.permute.xlu0 %2099 }
 0x19b   : > { %1914 = vrot.lane.b32.xlu1 %v1871_v25, %s3315_s13  ;;  %v1747_v25 = vshll.u32 %v1358_v30, 16  ;;  %v2216_v30 = vsel %vm2214_vm3, %v2168_v11, %v4285_v43 }
 0x19c   : > { %2117 = vrot.lane.b32.xlu0 %v4117_v38, %s3311_s9  ;;  %v1738_v38 = vrot.slane %v1736_v5, 7  ;;  %v4456_v5 = vsel %vm1359_vm7, %v4235_v14, %v1477_v55  ;;  %v2249_v43 = vsel %vm2247_vm4, %v2216_v30, %v4271_v13  ;;  %v2171_v30 = vsel %vm2166_vm15, %v3559_v15, %v4392_v54 }
 0x19d   : > { %v4431_v58 = vpop.permute.xlu1 %2005  ;;  %v1749_v61 = vor.u32 %v1747_v25, %v1746_v31  ;;  %v2281_v45 = vsel %vm396_vm0, %v2249_v43, %v4369_v41  ;;  %v1607_v41 = vrot.slane %v1605_v2, 7  ;;  %v2218_v15 = vsel %vm2214_vm3, %v2171_v30, %v4319_v34 }
 0x19e   : > { %4960 = vst [vmem:[#allocation19_spill] sm:$0xff] %v4431_v58  ;;  %v4433_v22 = vpop.permute.xlu0 %1993  ;;  %v1739_v58 = vshll.u32 %v1357_v8, 16  ;;  %v1754_v8 = vsel %vm3529_vm11, %v1746_v31, 0 }
 0x19f   : > { %2125 = vrot.lane.b32.xlu1 %v1486_v10, %s3311_s9  ;;  %v1750_v14 = vsel %vm1359_vm7, %v1738_v38, %v1749_v61  ;;  %v1608_v61 = vshll.u32 %v1069_v26, 16 }
 0x1a0   : > { %2082 = vrot.lane.b32.xlu0 %v4158_v12, %s3314_s12  ;;  %v1741_v23 = vor.u32 %v1739_v58, %v1738_v38  ;;  %v4472_v58 = vrot.slane %v1754_v8, 1  ;;  %v1954_v13 = vrot.slane %v1750_v14, 1 }
 0x1a1   : > { %v4439_v36 = vpop.permute.xlu1 %2080 }
 0x1a2   : > { %v4441_v51 = vpop.permute.xlu0 %2066  ;;  %v1742_v31 = vsel %vm1359_vm7, %v4277_v29, %v1741_v23  ;;  %v4488_v55 = vsel %vm1922_vm1, %v1954_v13, %v4472_v58  ;;  %v2314_v29 = vsel %vm2312_vm5, %v2281_v45, %v4307_v27  ;;  %v1395_v27 = vshll.u32 %v3596_v56, 16 }
 0x1a3   : > { %2019 = vrot.lane.b32.xlu1 %v1486_v10, %s3312_s10  ;;  %v1952_v11 = vrot.slane %v1742_v31, 1  ;;  %v2347_v8 = vsel %vm2345_vm8, %v2314_v29, %v4241_v16  ;;  %v1610_v16 = vor.u32 %v1608_v61, %v1607_v41  ;;  %v4962_v31 = vld [vmem:[#allocation6_spill] sm:$0xff] }
 0x1a4   : > { %1976 = vrot.lane.b32.xlu0 %v4158_v12, %s3313_s11  ;;  %v1397_v26 = vor.u32 %v1395_v27, %v3628_v21  ;;  %v2251_v21 = vsel %vm2247_vm4, %v2218_v15, %v4260_v24  ;;  %v1872_v27 = vshrl.u32 %v4355_v37, 16 }
 0x1a5   : > { %v4448_v57 = vpop.permute.xlu1 %1974  ;;  %v1611_v61 = vsel %vm1359_vm7, %v4327_v3, %v1610_v16  ;;  %v4539_v30 = vsel %vm1922_vm1, %v1952_v11, %v1954_v13 }
 0x1a6   : > { %v4452_v18 = vpop.permute.xlu0 %1960  ;;  %v4527_v45 = vsel %vm1359_vm7, %v4962_v31, %v1397_v26 }
 0x1a7   : > { %2123 = vrot.lane.b32.xlu1 %v4456_v5, %s3311_s9 }
 0x1a8   : > { %2151 = vrot.lane.b32.xlu0 %v4245_v35, %s3317_s16 }
 0x1a9   : > { %v4467_v52 = vpop.permute.xlu1 %2145 }
 0x1aa   : > { %v4470_v10 = vpop.permute.xlu0 %2068 }
 0x1ab   : > { %2017 = vrot.lane.b32.xlu1 %v4456_v5, %s3312_s10 }
 0x1ac   : > { %2049 = vrot.lane.b32.xlu0 %v4245_v35, %s3316_s20  ;;  %v1070_v35 = vpack.c.bf16 %v4364_v62, %v4377_v40  ;;  %v4961_v62 = vrot.slane %v4303_v19, 1 }
 0x1ad   : > { %v4482_v38 = vpop.permute.xlu1 %2043 }
 0x1ae   : > { %v4484_v25 = vpop.permute.xlu0 %1962  ;;  %v4509_v40 = vsel %vm1922_vm1, %v4961_v62, %v1952_v11  ;;  %v1613_v56 = vshrl.u32 %v1070_v35, 16  ;;  %v1874_v11 = vor.u32 %v1872_v27, %v4394_v17 }
 0x1af   : > { %2094 = vrot.lane.b32.xlu1 %v4488_v55, %s3314_s12 }
 0x1b0   : > { %2035 = vrot.lane.b32.xlu0 %v4095_v39, %s3316_s20  ;;  %v1615_v2 = vrot.slane %v1613_v56, 7 }
 0x1b1   : > { %v4501_v23 = vpop.permute.xlu1 %1904 }
 0x1b2   : > { %v2134_v43 = vpop.permute.xlu0 %2133 }
 0x1b3   : > { %v2380_v14 = vsel %vm2378_vm9, %v2347_v8, %v2134_v43  ;;  %2090 = vrot.lane.b32.xlu1 %v4509_v40, %s3314_s12 }
 0x1b4   : > { %2070 = vrot.lane.b32.xlu0 %v4177_v46, %s3314_s12  ;;  %2568 = vmatmul.mubr.bf16.vlgmr.msra.gmra.mxu0 %v2380_v14  ;;  %v4963_v14 = vld [vmem:[#allocation2_spill] sm:$0xff] }
 0x1b5   : > { %3000 = vmatprep.mubr.msk.bf16.mxu0 %vm2166_vm15, %v4066_v6  ;;  %v4521_v54 = vpop.permute.xlu1 %2011  ;;  %v1616_v6 = vshll.u32 %v1070_v35, 16  ;;  %v1876_v35 = vshll.u32 %v1611_v61, 16 }
 0x1b6   : > { %v2032_v19 = vpop.permute.xlu0 %2031 }
 0x1b7   : > { %1984 = vrot.lane.b32.xlu1 %v4509_v40, %s3313_s11  ;;  %v2283_v34 = vsel %vm396_vm0, %v2251_v21, %v2032_v19  ;;  %v1618_v43 = vor.u32 %v1616_v6, %v1615_v2  ;;  %v1623_v21 = vsel %vm3529_vm11, %v1615_v2, 0 }
 0x1b8   : > { %2103 = vrot.lane.b32.xlu0 %v4527_v45, %s3311_s9  ;;  %v2316_v8 = vsel %vm2312_vm5, %v2283_v34, %v4441_v51  ;;  %v1878_v51 = vrot.slane %v1876_v35, 1  ;;  %v2025_v2 = vshll.u32 %v1623_v21, 16 }
 0x1b9   : > { %v4534_v29 = vpop.permute.xlu1 %2115  ;;  %v2349_v13 = vsel %vm2345_vm8, %v2316_v8, %v4424_v20  ;;  %v1619_v17 = vsel %vm1359_vm7, %v1607_v41, %v1618_v43 }
 0x1ba   : > { %v1893_v24 = vpop.permute.xlu0 %1892  ;;  %v1879_v56 = vsel %vm1755_vm6, %v1874_v11, %v1878_v51  ;;  %v1884_v16 = vshll.u32 %v1619_v17, 16  ;;  %v2021_v34 = vshrl.u32 %v1619_v17, 16 }
 0x1bb   : > { %2092 = vrot.lane.b32.xlu1 %v4539_v30, %s3314_s12  ;;  %v2174_v26 = vsel %vm2166_vm15, %v4963_v14, %v1893_v24 }
 0x1bc   : > { %2139 = vrot.lane.b32.xlu0 %v4111_v48, %s3317_s16  ;;  %v1886_v24 = vrot.slane %v1884_v16, 1 }
 0x1bd   : > { %v4548_v62 = vpop.permute.xlu1 %2009 }
 0x1be   : > { %v2136_v3 = vpop.permute.xlu0 %2135 }
 0x1bf   : > { %v2383_v37 = vsel %vm2378_vm9, %v2349_v13, %v2136_v3  ;;  %1986 = vrot.lane.b32.xlu1 %v4539_v30, %s3313_s11  ;;  %v1880_v3 = vshrl.u32 %v1611_v61, 16 }
 0x1c0   : > { %1896 = vrot.lane.b32.xlu0 %v4095_v39, %s3315_s13  ;;  %2576 = vmatmul.mubr.bf16.gmra.mxu0 %v2383_v37  ;;  %v2220_v39 = vsel %vm2214_vm3, %v2174_v26, %v4452_v18 }
 0x1c1   : > { %3001 = vmatprep.mubr.msk.bf16.mxu0 %vm2166_vm15, %v4177_v46  ;;  %v4562_v15 = vpop.permute.xlu1 %2084  ;;  %v2253_v41 = vsel %vm2247_vm4, %v2220_v39, %v4433_v22  ;;  %v1882_v61 = vor.u32 %v1880_v3, %v1878_v51 }
 0x1c2   : > { %v2034_v20 = vpop.permute.xlu0 %2033 }
 0x1c3   : > { %2157 = vrot.lane.b32.xlu1 %v1879_v56, %s3317_s16  ;;  %v2285_v18 = vsel %vm396_vm0, %v2253_v41, %v2034_v20  ;;  %v1887_v20 = vsel %vm1755_vm6, %v1882_v61, %v1886_v24  ;;  %v2129_v41 = vshrl.u32 %v1623_v21, 16 }
 0x1c4   : > { %1964 = vrot.lane.b32.xlu0 %v4177_v46, %s3313_s11  ;;  %v2318_v35 = vsel %vm2312_vm5, %v2285_v18, %v4470_v10 }
 0x1c5   : > { %v1979_v19 = vpop.permute.xlu1 %1978  ;;  %v2351_v11 = vsel %vm2345_vm8, %v2318_v35, %v4406_v59  ;;  %v4964_v59 = vld [vmem:[#allocation4_spill] sm:$0xff] }
 0x1c6   : > { %v1895_v31 = vpop.permute.xlu0 %1894 }
 0x1c7   : > { %v2177_v6 = vsel %vm2166_vm15, %v3925_v0, %v1895_v31  ;;  %2055 = vrot.lane.b32.xlu1 %v1879_v56, %s3316_s20  ;;  %v2023_v0 = vor.u32 %v2021_v34, %v1886_v24 }
 0x1c8   : > { %v2222_v46 = vsel %vm2214_vm3, %v2177_v6, %v4484_v25  ;;  %1997 = vrot.lane.b32.xlu0 %v4527_v45, %s3312_s10  ;;  %v2027_v25 = vrot.slane %v2025_v2, 1 }
 0x1c9   : > { %v4583_v27 = vpop.permute.xlu1 %2149  ;;  %v4587_v22 = vsel %vm2247_vm4, %v2222_v46, %v4415_v9  ;;  %v1492_v46 = vsel %vm3529_vm11, %v4417_v60, 0 }
 0x1ca   : > { %v1967_v8 = vpop.permute.xlu0 %1966  ;;  %v2028_v9 = vsel %vm1755_vm6, %v2023_v0, %v2027_v25  ;;  %v2131_v24 = vor.u32 %v2129_v41, %v2027_v25 }
 0x1cb   : > { %1916 = vrot.lane.b32.xlu1 %v1879_v56, %s3315_s13 }
 0x1cc   : > { %2037 = vrot.lane.b32.xlu0 %v4111_v48, %s3316_s20 }
 0x1cd   : > { %v4594_v43 = vpop.permute.xlu1 %2047 }
 0x1ce   : > { %v2138_v13 = vpop.permute.xlu0 %2137 }
 0x1cf   : > { %v2386_v37 = vsel %vm2378_vm9, %v2351_v11, %v2138_v13  ;;  %2161 = vrot.lane.b32.xlu1 %v2028_v9, %s3317_s16 }
 0x1d0   : > { %2072 = vrot.lane.b32.xlu0 %v4059_v47, %s3314_s12  ;;  %2584 = vmatmul.mubr.bf16.gmra.mxu0 %v2386_v37 }
 0x1d1   : > { %3002 = vmatprep.mubr.msk.bf16.mxu0 %vm2166_vm15, %v4059_v47  ;;  %v4605_v48 = vpop.permute.xlu1 %1908  ;;  %v4965_v47 = vld [vmem:[#allocation7_spill] sm:$0xff] }
 0x1d2   : > { %v1899_v10 = vpop.permute.xlu0 %1898 }
 0x1d3   : > { %2059 = vrot.lane.b32.xlu1 %v2028_v9, %s3316_s20  ;;  %v2183_v39 = vsel %vm2166_vm15, %v4527_v45, %v1899_v10 }
 0x1d4   : > { %2105 = vrot.lane.b32.xlu0 %v4964_v59, %s3311_s9 }
 0x1d5   : > { %v1911_v14 = vpop.permute.xlu1 %1910 }
 0x1d6   : > { %v2110_v26 = vpop.permute.xlu0 %2109  ;;  %v2201_v17 = vsel %vm2166_vm15, %v4144_v33, %v1911_v14  ;;  %v2226_v33 = vsel %vm2214_vm3, %v2183_v39, %v1967_v8 }
 0x1d7   : > { %v2238_v56 = vsel %vm2214_vm3, %v2201_v17, %v1979_v19  ;;  %2159 = vrot.lane.b32.xlu1 %v1887_v20, %s3317_s16  ;;  %v2259_v6 = vsel %vm2247_vm4, %v2226_v33, %v4315_v44  ;;  %v2186_v44 = vsel %vm2166_vm15, %v4964_v59, %v4412_v7 }
 0x1d8   : > { %2141 = vrot.lane.b32.xlu0 %v4965_v47, %s3317_s16  ;;  %v2271_v51 = vsel %vm2247_vm4, %v2238_v56, %v4521_v54  ;;  %v2291_v45 = vsel %vm396_vm0, %v2259_v6, %v4404_v49  ;;  %v4966_v49 = vld [vmem:[#allocation3_spill] sm:$0xff]  ;;  %v2192_v6 = vsel %vm2166_vm15, %v4250_v50, %v4501_v23 }
 0x1d9   : > { %v4621_v16 = vpop.permute.xlu1 %2121  ;;  %v2132_v35 = vsel %vm1755_vm6, %v2131_v24, %v4966_v49  ;;  %v4970_v23 = vld [vmem:[#allocation19_spill] sm:$0xff] }
 0x1da   : > { %v2004_v31 = vpop.permute.xlu0 %2003 }
 0x1db   : > { %2057 = vrot.lane.b32.xlu1 %v1887_v20, %s3316_s20 }
 0x1dd   : > { %v4625_v34 = vpop.permute.xlu1 %2015 }
 0x1de   : > { %v2075_v19 = vpop.permute.xlu0 %2074 }
 0x1df   : > { %1918 = vrot.lane.b32.xlu1 %v1887_v20, %s3315_s13  ;;  %v2324_v2 = vsel %vm2312_vm5, %v2291_v45, %v2075_v19  ;;  %v4968_v45 = vld [vmem:[#allocation18_spill] sm:$0xff]  ;;  %s4802_s13 = scalar_lea.vmem %s4858_s5, %s3049_s26 }
 0x1e0   : > { %v2357_v0 = vsel %vm2345_vm8, %v2324_v2, %v4338_v53 }
 0x1e1   : > { %v2120_v54 = vpop.permute.xlu1 %2119 }
 0x1e2   : > { %v1969_v18 = vpop.permute.xlu0 %1968 }
 0x1e3   : > { %2127 = vrot.lane.b32.xlu1 %v1492_v46, %s3311_s9  ;;  %v2228_v1 = vsel %vm2214_vm3, %v2186_v44, %v1969_v18 }
 0x1e4   : > { %v2261_v7 = vsel %vm2247_vm4, %v2228_v1, %v4350_v4  ;;  %v4967_v4 = vld [vmem:[#allocation5_spill] sm:$0xff] }
 0x1e5   : > { %v2014_v21 = vpop.permute.xlu1 %2013 }
 0x1e6   : > { %v2144_v8 = vpop.permute.xlu0 %2143 }
 0x1e7   : > { %v2395_v60 = vsel %vm2378_vm9, %v2357_v0, %v2144_v8  ;;  %2163 = vrot.lane.b32.xlu1 %v2132_v35, %s3317_s16 }
 0x1e8   : > { %2608 = vmatmul.mubr.bf16.vlgmr.msra.gmra.mxu1 %v2395_v60 }
 0x1e9   : > { %3005 = vmatprep.mubr.msk.bf16.mxu1 %vm2166_vm15, %v4133_v28  ;;  %v2087_v25 = vpop.permute.xlu1 %2086 }
 0x1ea   : > { %v2042_v3 = vpop.permute.xlu0 %2041 }
 0x1eb   : > { %v2293_v53 = vsel %vm396_vm0, %v2261_v7, %v2042_v3 }
 0x1ec   : > { %v2326_v13 = vsel %vm2312_vm5, %v2293_v53, %v4367_v42  ;;  %v4971_v53 = vld [vmem:[#allocation9_spill] sm:$0xff] }
 0x1ed   : > { %v2359_v11 = vsel %vm2345_vm8, %v2326_v13, %v2110_v26  ;;  %v1981_v9 = vpop.permute.xlu1 %1980 }
 0x1ee   : > { %v1903_v37 = vpop.permute.xlu0 %1902  ;;  %v2398_v10 = vsel %vm2378_vm9, %v2359_v11, %v4467_v52  ;;  %v4972_v11 = vld [vmem:[#allocation12_spill] sm:$0xff] }
 0x1ef   : > { %v2189_v59 = vsel %vm2166_vm15, %v4967_v4, %v1903_v37  ;;  %v4973_v37 = vld [vmem:[#allocation14_spill] sm:$0xff] }
 0x1f0   : > { %2616 = vmatmul.mubr.bf16.gmra.mxu1 %v2398_v10  ;;  %v2230_v42 = vsel %vm2214_vm3, %v2189_v59, %v4388_v32 }
 0x1f1   : > { %3006 = vmatprep.mubr.msk.bf16.mxu1 %vm2166_vm15, %v3989_v63  ;;  %v2089_v28 = vpop.permute.xlu1 %2088  ;;  %v2263_v56 = vsel %vm2247_vm4, %v2230_v42, %v2004_v31 }
 0x1f2   : > { %v2114_v61 = vpop.permute.xlu0 %2113  ;;  %v2295_v47 = vsel %vm396_vm0, %v2263_v56, %v4482_v38  ;;  %v4969_v38 = vld [vmem:[#allocation11_spill] sm:$0xff] }
 0x1f5   : > { %v1983_v14 = vpop.permute.xlu1 %1982 }
 0x1f6   : > { %v2008_v17 = vpop.permute.xlu0 %2007 }
 0x1f9   : > { %v4663_v26 = vpop.permute.xlu1 %2153 }
 0x1fa   : > { %v2079_v20 = vpop.permute.xlu0 %2078 }
 0x1fb   : > { %v2328_v33 = vsel %vm2312_vm5, %v2295_v47, %v2079_v20  ;;  %v4974_v47 = vld [vmem:[#allocation17_spill] sm:$0xff] }
 0x1fc   : > { %v2361_v18 = vsel %vm2345_vm8, %v2328_v33, %v4968_v45  ;;  %v4975_v33 = vld [vmem:[#allocation15_spill] sm:$0xff] }
 0x1fd   : > { %v2052_v52 = vpop.permute.xlu1 %2051 }
 0x1fe   : > { %v1973_v63 = vpop.permute.xlu0 %1972  ;;  %v2303_v39 = vsel %vm396_vm0, %v2271_v51, %v2052_v52 }
 0x1ff   : > { %v2336_v19 = vsel %vm2312_vm5, %v2303_v39, %v2087_v25  ;;  %v2232_v51 = vsel %vm2214_vm3, %v2192_v6, %v1973_v63 }
 0x200   : > { %v4672_v41 = vsel %vm2345_vm8, %v2336_v19, %v2120_v54  ;;  %v2265_v44 = vsel %vm2247_vm4, %v2232_v51, %v4970_v23 }
 0x201   : > { %v1913_v32 = vpop.permute.xlu1 %1912 }
 0x202   : > { %v2148_v31 = vpop.permute.xlu0 %2147  ;;  %v2204_v46 = vsel %vm2166_vm15, %v4969_v38, %v1913_v32  ;;  %v4976_v38 = vld [vmem:[#allocation16_spill] sm:$0xff] }
 0x203   : > { %v2401_v24 = vsel %vm2378_vm9, %v2361_v18, %v2148_v31  ;;  %v2240_v2 = vsel %vm2214_vm3, %v2204_v46, %v1981_v9 }
 0x204   : > { %2624 = vmatmul.mubr.bf16.gmra.mxu1 %v2401_v24  ;;  %v2273_v54 = vsel %vm2247_vm4, %v2240_v2, %v2014_v21 }
 0x205   : > { %3007 = vmatprep.mubr.msk.bf16.mxu1 %vm2166_vm15, %v4158_v12  ;;  %v2156_v50 = vpop.permute.xlu1 %2155 }
 0x206   : > { %v2046_v8 = vpop.permute.xlu0 %2045  ;;  %v2413_v2 = vsel %vm2378_vm9, %v4672_v41, %v2156_v50 }
 0x207   : > { %v2297_v0 = vsel %vm396_vm0, %v2265_v44, %v2046_v8 }
 0x208   : > { %v2330_v35 = vsel %vm2312_vm5, %v2297_v0, %v4439_v36  ;;  %v4977_v0 = vld [vmem:[#allocation10_spill] sm:$0xff] }
 0x209   : > { %v2363_v1 = vsel %vm2345_vm8, %v2330_v35, %v2114_v61  ;;  %v2054_v60 = vpop.permute.xlu1 %2053 }
 0x20a   : > { %v1907_v25 = vpop.permute.xlu0 %1906  ;;  %v2404_v21 = vsel %vm2378_vm9, %v2363_v1, %v4583_v27  ;;  %v2305_v7 = vsel %vm396_vm0, %v2273_v54, %v2054_v60 }
 0x20b   : > { %v2338_v12 = vsel %vm2312_vm5, %v2305_v7, %v2089_v28  ;;  %v2195_v13 = vsel %vm2166_vm15, %v4971_v53, %v1907_v25 }
 0x20c   : > { %2632 = vmatmul.mubr.bf16.gmra.mxu1 %v2404_v21  ;;  %v2371_v3 = vsel %vm2345_vm8, %v2338_v12, %v4621_v16  ;;  %v2234_v28 = vsel %vm2214_vm3, %v2195_v13, %v4448_v57  ;;  %v2198_v57 = vsel %vm2166_vm15, %v4974_v47, %v4605_v48  ;;  %v4978_v13 = vld [vmem:[#allocation8_spill] sm:$0xff] }
 0x20d   : > { %3008 = vmatprep.mubr.msk.bf16.mxu1 %vm2166_vm15, %v4972_v11  ;;  %v1915_v36 = vpop.permute.xlu1 %1914  ;;  %v2267_v59 = vsel %vm2247_vm4, %v2234_v28, %v2008_v17 }
 0x20e   : > { %v2118_v9 = vpop.permute.xlu0 %2117  ;;  %v2207_v10 = vsel %vm2166_vm15, %v4973_v37, %v1915_v36  ;;  %v2299_v20 = vsel %vm396_vm0, %v2267_v59, %v4594_v43 }
 0x20f   : > { %v2242_v27 = vsel %vm2214_vm3, %v2207_v10, %v1983_v14 }
 0x210   : > { %v2275_v61 = vsel %vm2247_vm4, %v2242_v27, %v4625_v34 }
 0x211   : > { %v4710_v16 = vpop.permute.xlu1 %2125 }
 0x212   : > { %v2083_v4 = vpop.permute.xlu0 %2082 }
 0x213   : > { %v2332_v52 = vsel %vm2312_vm5, %v2299_v20, %v2083_v4 }
 0x214   : > { %v2365_v34 = vsel %vm2345_vm8, %v2332_v52, %v4534_v29 }
 0x215   : > { %v4713_v42 = vpop.permute.xlu1 %2019 }
 0x216   : > { %v1977_v56 = vpop.permute.xlu0 %1976 }
 0x217   : > { %v2236_v39 = vsel %vm2214_vm3, %v2198_v57, %v1977_v56 }
 0x218   : > { %v2269_v19 = vsel %vm2247_vm4, %v2236_v39, %v4548_v62 }
 0x219   : > { %v2124_v14 = vpop.permute.xlu1 %2123 }
 0x21a   : > { %v2152_v63 = vpop.permute.xlu0 %2151 }
 0x21b   : > { %v2407_v17 = vsel %vm2378_vm9, %v2365_v34, %v2152_v63 }
 0x21c   : > { %2640 = vmatmul.mubr.bf16.gmra.mxu1 %v2407_v17 }
 0x21d   : > { %3009 = vmatprep.mubr.msk.bf16.mxu1 %vm2166_vm15, %v4975_v33  ;;  %v2018_v43 = vpop.permute.xlu1 %2017 }
 0x21e   : > { %v2050_v32 = vpop.permute.xlu0 %2049 }
 0x21f   : > { %v2301_v6 = vsel %vm396_vm0, %v2269_v19, %v2050_v32 }
 0x220   : > { %v2334_v48 = vsel %vm2312_vm5, %v2301_v6, %v4562_v15 }
 0x221   : > { %v2367_v29 = vsel %vm2345_vm8, %v2334_v48, %v2118_v9  ;;  %v4733_v31 = vpop.permute.xlu1 %2094 }
 0x222   : > { %v2036_v45 = vpop.permute.xlu0 %2035  ;;  %v2410_v18 = vsel %vm2378_vm9, %v2367_v29, %v4663_v26 }
 0x223   : > { %v2287_v15 = vsel %vm396_vm0, %v4587_v22, %v2036_v45 }
 0x224   : > { %2648 = vmatmul.mubr.bf16.gmra.mxu1 %v2410_v18 }
 0x225   : > { %3010 = vmatprep.mubr.msk.bf16.mxu1 %vm2166_vm15, %v4976_v38  ;;  %v2091_v46 = vpop.permute.xlu1 %2090 }
 0x226   : > { %v2071_v62 = vpop.permute.xlu0 %2070 }
 0x227   : > { %v2320_v54 = vsel %vm2312_vm5, %v2287_v15, %v2071_v62 }
 0x229   : > { %v1985_v51 = vpop.permute.xlu1 %1984 }
 0x22a   : > { %v2104_v24 = vpop.permute.xlu0 %2103 }
 0x22b   : > { %v2353_v23 = vsel %vm2345_vm8, %v2320_v54, %v2104_v24 }
 0x22c   : > { %2656 = vmatmul.mubr.bf16.gmra.mxu1 %v2413_v2 }
 0x22d   : > { %3011 = vmatprep.mubr.msk.bf16.mxu1 %vm2166_vm15, %v4509_v40  ;;  %v2093_v26 = vpop.permute.xlu1 %2092 }
 0x22e   : > { %v2140_v44 = vpop.permute.xlu0 %2139 }
 0x22f   : > { %v2389_v8 = vsel %vm2378_vm9, %v2353_v23, %v2140_v44 }
 0x230   : > { %2592 = vmatmul.mubr.bf16.gmra.mxu0 %v2389_v8 }
 0x231   : > { %3003 = vmatprep.mubr.msk.bf16.mxu0 %vm2166_vm15, %v4977_v0  ;;  %v1987_v41 = vpop.permute.xlu1 %1986 }
 0x232   : > { %v1897_v50 = vpop.permute.xlu0 %1896 }
 0x233   : > { %v2180_v11 = vsel %vm2166_vm15, %v4978_v13, %v1897_v50 }
 0x235   : > { %v2158_v35 = vpop.permute.xlu1 %2157 }
 0x236   : > { %v1965_v22 = vpop.permute.xlu0 %1964  ;;  %v2416_v1 = vsel %vm2378_vm9, %v2371_v3, %v2158_v35 }
 0x237   : > { %2664 = vmatmul.mubr.bf16.gmra.mxu1 %v2416_v1  ;;  %v2224_v9 = vsel %vm2214_vm3, %v2180_v11, %v1965_v22 }
 0x238   : > { %3012 = vmatprep.mubr.msk.bf16.mxu1 %vm2166_vm15, %v4539_v30  ;;  %v4979_v30 = vld [vmem:[#allocation13_spill] sm:$0xff] }
 0x239   : > { %v2056_v40 = vpop.permute.xlu1 %2055 }
 0x23a   : > { %v1998_v60 = vpop.permute.xlu0 %1997  ;;  %v2307_v53 = vsel %vm396_vm0, %v2275_v61, %v2056_v40 }
 0x23b   : > { %v2340_v3 = vsel %vm2312_vm5, %v2307_v53, %v2091_v46  ;;  %v2257_v10 = vsel %vm2247_vm4, %v2224_v9, %v1998_v60 }
 0x23c   : > { %v2373_v61 = vsel %vm2345_vm8, %v2340_v3, %v2124_v14 }
 0x23d   : > { %v1917_v25 = vpop.permute.xlu1 %1916 }
 0x23e   : > { %v2038_v21 = vpop.permute.xlu0 %2037  ;;  %v2210_v27 = vsel %vm2166_vm15, %v4979_v30, %v1917_v25 }
 0x23f   : > { %v2289_v28 = vsel %vm396_vm0, %v2257_v10, %v2038_v21  ;;  %v2244_v20 = vsel %vm2214_vm3, %v2210_v27, %v1985_v51 }
 0x240   : > { %v2277_v63 = vsel %vm2247_vm4, %v2244_v20, %v2018_v43 }
 0x241   : > { %v2162_v7 = vpop.permute.xlu1 %2161 }
 0x242   : > { %v2073_v12 = vpop.permute.xlu0 %2072 }
 0x243   : > { %v2322_v4 = vsel %vm2312_vm5, %v2289_v28, %v2073_v12 }
 0x245   : > { %v2060_v36 = vpop.permute.xlu1 %2059 }
 0x246   : > { %v2106_v37 = vpop.permute.xlu0 %2105 }
 0x247   : > { %v2355_v56 = vsel %vm2345_vm8, %v2322_v4, %v2106_v37 }
 0x249   : > { %v2160_v59 = vpop.permute.xlu1 %2159 }
 0x24a   : > { %v2142_v52 = vpop.permute.xlu0 %2141  ;;  %v2419_v47 = vsel %vm2378_vm9, %v2373_v61, %v2160_v59 }
 0x24b   : > { %v2392_v57 = vsel %vm2378_vm9, %v2355_v56, %v2142_v52  ;;  %2672 = vmatmul.mubr.bf16.gmra.mxu1 %v2419_v47 }
 0x24c   : > { %2600 = vmatmul.mubr.bf16.gmra.mxu0 %v2392_v57  ;;  %3013 = vmatprep.mubr.msk.bf16.mxu1 %vm2166_vm15, %v4488_v55  ;;  %v2165_v55 = vsel %vm1922_vm1, %v4472_v58, %v4966_v49  ;;  %v4793_v58 = vld [vmem:[%s4857_s4] ss:$0 sm:$0xff] }
 0x24d   : > { %v2058_v34 = vpop.permute.xlu1 %2057 }
 0x24e   : > { %v2309_v39 = vsel %vm396_vm0, %v2277_v63, %v2058_v34 }
 0x24f   : > { %v2342_v14 = vsel %vm2312_vm5, %v2309_v39, %v2093_v26 }
 0x250   : > { %v2375_v17 = vsel %vm2345_vm8, %v2342_v14, %v4710_v16 }
 0x251   : > { %v1919_v33 = vpop.permute.xlu1 %1918  ;;  %v2422_v19 = vsel %vm2378_vm9, %v2375_v17, %v2162_v7 }
 0x252   : > { %v2213_v32 = vsel %vm2166_vm15, %v4456_v5, %v1919_v33 }
 0x253   : > { %v2246_v6 = vsel %vm2214_vm3, %v2213_v32, %v1987_v41  ;;  %2680 = vmatmul.mubr.bf16.gmra.mxu1 %v2422_v19 }
 0x254   : > { %v2279_v43 = vsel %vm2247_vm4, %v2246_v6, %v4713_v42  ;;  %3014 = vmatprep.mubr.msk.bf16.mxu1 %vm2166_vm15, %v2165_v55 }
 0x255   : > { %v2311_v16 = vsel %vm396_vm0, %v2279_v43, %v2060_v36  ;;  %v2128_v48 = vpop.permute.xlu1 %2127 }
 0x256   : > { %v2344_v29 = vsel %vm2312_vm5, %v2311_v16, %v4733_v31 }
 0x257   : > { %v2377_v5 = vsel %vm2345_vm8, %v2344_v29, %v2128_v48 }
 0x259   : > { %v2164_v45 = vpop.permute.xlu1 %2163 }
 0x25a   : > { %v2425_v18 = vsel %vm2378_vm9, %v2377_v5, %v2164_v45 }
 0x25b   : > { %2688 = vmatmul.mubr.bf16.gmra.mxu1 %v2425_v18 }
 0x274   : > { %v2569_v49 = vpop.f32.mrf.mxu0 }
 0x275   : > { %v2570_v38 = vadd.f32 %v4793_v58, %v2569_v49 }
 0x276   : > { %v2571_v42 = vpop.f32.mrf.mxu0 }
 0x277   : > { %v2696_v31 = vmax.f32 %v2570_v38, 0.0 }
 0x278   : > { %v2572_v46 = vpop.f32.mrf.mxu0 }
 0x279   : > { %v2573_v62 = vadd.f32 %v4793_v58, %v2572_v46 }
 0x27a   : > { %v2574_v51 = vpop.f32.mrf.mxu0 }
 0x27b   : > { %v2697_v24 = vmax.f32 %v2573_v62, 0.0 }
 0x27d   : > { %v3086_v2 = vpack.c.bf16 %v2697_v24, %v2696_v31 }
 0x27f   : > { %3087 = vst [vmem:[%s4802_s13] sm:$0xff] %v3086_v2  }
 0x280   : > { %v2577_v15 = vpop.f32.mrf.mxu0 }
 0x281   : > { %v2578_v26 = vadd.f32 %v4793_v58, %v2577_v15 }
 0x282   : > { %v2579_v54 = vpop.f32.mrf.mxu0 }
 0x283   : > { %v2698_v0 = vmax.f32 %v2578_v26, 0.0 }
 0x284   : > { %v2580_v23 = vpop.f32.mrf.mxu0 }
 0x285   : > { %v2581_v44 = vadd.f32 %v4793_v58, %v2580_v23 }
 0x286   : > { %v2582_v8 = vpop.f32.mrf.mxu0 }
 0x287   : > { %v2699_v41 = vmax.f32 %v2581_v44, 0.0 }
 0x289   : > { %v3091_v50 = vpack.c.bf16 %v2699_v41, %v2698_v0 }
 0x28b   : > { %3163 = vst [vmem:[%s4802_s13 + $0x8] sm:$0xff] %v3091_v50  }
 0x290   : > { %v2585_v35 = vpop.f32.mrf.mxu0 }
 0x291   : > { %v2586_v1 = vadd.f32 %v4793_v58, %v2585_v35 }
 0x292   : > { %v2587_v22 = vpop.f32.mrf.mxu0 }
 0x293   : > { %v2700_v21 = vmax.f32 %v2586_v1, 0.0 }
 0x294   : > { %v2588_v40 = vpop.f32.mrf.mxu0 }
 0x295   : > { %v2589_v60 = vadd.f32 %v4793_v58, %v2588_v40 }
 0x296   : > { %v2590_v25 = vpop.f32.mrf.mxu0 }
 0x297   : > { %v2701_v7 = vmax.f32 %v2589_v60, 0.0 }
 0x299   : > { %v3096_v12 = vpack.c.bf16 %v2701_v7, %v2700_v21 }
 0x29b   : > { %3164 = vst [vmem:[%s4802_s13 + $0x10] sm:$0xff] %v3096_v12  }
 0x2a8   : > { %v2609_v53 = vpop.f32.mrf.mxu1 }
 0x2a9   : > { %v2610_v11 = vadd.f32 %v4793_v58, %v2609_v53 }
 0x2aa   : > { %v2611_v13 = vpop.f32.mrf.mxu1 }
 0x2ab   : > { %v2706_v37 = vmax.f32 %v2610_v11, 0.0 }
 0x2ac   : > { %v2612_v36 = vpop.f32.mrf.mxu1 }
 0x2ad   : > { %v2613_v9 = vadd.f32 %v4793_v58, %v2612_v36 }
 0x2ae   : > { %v2614_v3 = vpop.f32.mrf.mxu1 }
 0x2af   : > { %v2707_v10 = vmax.f32 %v2613_v9, 0.0 }
 0x2b0   : > { %v2617_v30 = vpop.f32.mrf.mxu1 }
 0x2b1   : > { %v3111_v27 = vpack.c.bf16 %v2707_v10, %v2706_v37  ;;  %v2618_v4 = vadd.f32 %v4793_v58, %v2617_v30 }
 0x2b2   : > { %v2619_v28 = vpop.f32.mrf.mxu1 }
 0x2b3   : > { %3167 = vst [vmem:[%s4802_s13 + $0x28] sm:$0xff] %v3111_v27   ;;  %v2708_v56 = vmax.f32 %v2618_v4, 0.0 }
 0x2b4   : > { %v2620_v59 = vpop.f32.mrf.mxu1 }
 0x2b5   : > { %v2621_v61 = vadd.f32 %v4793_v58, %v2620_v59 }
 0x2b6   : > { %v2622_v20 = vpop.f32.mrf.mxu1 }
 0x2b7   : > { %v2709_v52 = vmax.f32 %v2621_v61, 0.0 }
 0x2b9   : > { %v3116_v47 = vpack.c.bf16 %v2709_v52, %v2708_v56 }
 0x2bb   : > { %3168 = vst [vmem:[%s4802_s13 + $0x30] sm:$0xff] %v3116_v47  }
 0x2c4   : > { %v2625_v57 = vpop.f32.mrf.mxu1 }
 0x2c5   : > { %v2626_v34 = vadd.f32 %v4793_v58, %v2625_v57 }
 0x2c6   : > { %v2627_v63 = vpop.f32.mrf.mxu1 }
 0x2c7   : > { %v2710_v33 = vmax.f32 %v2626_v34, 0.0 }
 0x2c8   : > { %v2628_v39 = vpop.f32.mrf.mxu1 }
 0x2c9   : > { %v2629_v14 = vadd.f32 %v4793_v58, %v2628_v39 }
 0x2ca   : > { %v2630_v17 = vpop.f32.mrf.mxu1 }
 0x2cb   : > { %v2711_v19 = vmax.f32 %v2629_v14, 0.0 }
 0x2cc   : > { %v2633_v32 = vpop.f32.mrf.mxu1 }
 0x2cd   : > { %v3121_v6 = vpack.c.bf16 %v2711_v19, %v2710_v33  ;;  %v2634_v43 = vadd.f32 %v4793_v58, %v2633_v32 }
 0x2ce   : > { %v2635_v55 = vpop.f32.mrf.mxu1 }
 0x2cf   : > { %3169 = vst [vmem:[%s4802_s13 + $0x38] sm:$0xff] %v3121_v6   ;;  %v2712_v5 = vmax.f32 %v2634_v43, 0.0 }
 0x2d0   : > { %v2636_v16 = vpop.f32.mrf.mxu1 }
 0x2d1   : > { %v2637_v48 = vadd.f32 %v4793_v58, %v2636_v16 }
 0x2d2   : > { %v2638_v29 = vpop.f32.mrf.mxu1 }
 0x2d3   : > { %v2713_v45 = vmax.f32 %v2637_v48, 0.0 }
 0x2d5   : > { %v3126_v18 = vpack.c.bf16 %v2713_v45, %v2712_v5 }
 0x2d7   : > { %3170 = vst [vmem:[%s4802_s13 + $0x40] sm:$0xff] %v3126_v18  }
 0x2dc   : > { %v2641_v49 = vpop.f32.mrf.mxu1 }
 0x2dd   : > { %v2642_v38 = vadd.f32 %v4793_v58, %v2641_v49 }
 0x2de   : > { %v2643_v42 = vpop.f32.mrf.mxu1 }
 0x2df   : > { %v2714_v31 = vmax.f32 %v2642_v38, 0.0 }
 0x2e0   : > { %v2644_v46 = vpop.f32.mrf.mxu1 }
 0x2e1   : > { %v2645_v62 = vadd.f32 %v4793_v58, %v2644_v46 }
 0x2e2   : > { %v2646_v51 = vpop.f32.mrf.mxu1 }
 0x2e3   : > { %v2715_v24 = vmax.f32 %v2645_v62, 0.0 }
 0x2e4   : > { %v2649_v2 = vpop.f32.mrf.mxu1 }
 0x2e5   : > { %v3131_v15 = vpack.c.bf16 %v2715_v24, %v2714_v31  ;;  %v2650_v26 = vadd.f32 %v4793_v58, %v2649_v2 }
 0x2e6   : > { %v2651_v54 = vpop.f32.mrf.mxu1 }
 0x2e7   : > { %3171 = vst [vmem:[%s4802_s13 + $0x48] sm:$0xff] %v3131_v15   ;;  %v2716_v0 = vmax.f32 %v2650_v26, 0.0 }
 0x2e8   : > { %v2652_v23 = vpop.f32.mrf.mxu1 }
 0x2e9   : > { %v2653_v44 = vadd.f32 %v4793_v58, %v2652_v23 }
 0x2ea   : > { %v2654_v8 = vpop.f32.mrf.mxu1 }
 0x2eb   : > { %v2717_v41 = vmax.f32 %v2653_v44, 0.0 }
 0x2ec   : > { %v2657_v50 = vpop.f32.mrf.mxu1 }
 0x2ed   : > { %v3136_v35 = vpack.c.bf16 %v2717_v41, %v2716_v0  ;;  %v2658_v1 = vadd.f32 %v4793_v58, %v2657_v50 }
 0x2ee   : > { %v2659_v22 = vpop.f32.mrf.mxu1 }
 0x2ef   : > { %3172 = vst [vmem:[%s4802_s13 + $0x50] sm:$0xff] %v3136_v35   ;;  %v2718_v12 = vmax.f32 %v2658_v1, 0.0 }
 0x2f0   : > { %v2593_v40 = vpop.f32.mrf.mxu0  ;;  %v2660_v60 = vpop.f32.mrf.mxu1 }
 0x2f1   : > { %v2661_v25 = vadd.f32 %v4793_v58, %v2660_v60  ;;  %v2594_v53 = vadd.f32 %v4793_v58, %v2593_v40 }
 0x2f2   : > { %v2595_v21 = vpop.f32.mrf.mxu0  ;;  %v2662_v7 = vpop.f32.mrf.mxu1 }
 0x2f3   : > { %v2719_v13 = vmax.f32 %v2661_v25, 0.0  ;;  %v2702_v37 = vmax.f32 %v2594_v53, 0.0 }
 0x2f4   : > { %v2596_v11 = vpop.f32.mrf.mxu0 }
 0x2f5   : > { %v3141_v36 = vpack.c.bf16 %v2719_v13, %v2718_v12  ;;  %v2597_v9 = vadd.f32 %v4793_v58, %v2596_v11 }
 0x2f6   : > { %v2598_v3 = vpop.f32.mrf.mxu0 }
 0x2f7   : > { %3173 = vst [vmem:[%s4802_s13 + $0x58] sm:$0xff] %v3141_v36   ;;  %v2703_v10 = vmax.f32 %v2597_v9, 0.0  ;;  %v2665_v30 = vpop.f32.mrf.mxu1 }
 0x2f8   : > { %v2666_v4 = vadd.f32 %v4793_v58, %v2665_v30 }
 0x2f9   : > { %v3101_v27 = vpack.c.bf16 %v2703_v10, %v2702_v37  ;;  %v2667_v28 = vpop.f32.mrf.mxu1 }
 0x2fa   : > { %v2720_v56 = vmax.f32 %v2666_v4, 0.0 }
 0x2fb   : > { %3165 = vst [vmem:[%s4802_s13 + $0x18] sm:$0xff] %v3101_v27   ;;  %v2668_v59 = vpop.f32.mrf.mxu1 }
 0x2fc   : > { %v2669_v61 = vadd.f32 %v4793_v58, %v2668_v59 }
 0x2fd   : > { %v2670_v20 = vpop.f32.mrf.mxu1 }
 0x2fe   : > { %v2721_v52 = vmax.f32 %v2669_v61, 0.0 }
 0x300   : > { %v3146_v47 = vpack.c.bf16 %v2721_v52, %v2720_v56 }
 0x302   : > { %3174 = vst [vmem:[%s4802_s13 + $0x60] sm:$0xff] %v3146_v47  }
 0x30b   : > { %v2673_v57 = vpop.f32.mrf.mxu1 }
 0x30c   : > { %v2601_v63 = vpop.f32.mrf.mxu0  ;;  %v2674_v14 = vadd.f32 %v4793_v58, %v2673_v57 }
 0x30d   : > { %v2675_v34 = vpop.f32.mrf.mxu1  ;;  %v2602_v17 = vadd.f32 %v4793_v58, %v2601_v63 }
 0x30e   : > { %v2603_v39 = vpop.f32.mrf.mxu0  ;;  %v2722_v16 = vmax.f32 %v2674_v14, 0.0 }
 0x30f   : > { %v2676_v33 = vpop.f32.mrf.mxu1  ;;  %v2704_v29 = vmax.f32 %v2602_v17, 0.0 }
 0x310   : > { %v2604_v19 = vpop.f32.mrf.mxu0  ;;  %v2677_v32 = vadd.f32 %v4793_v58, %v2676_v33 }
 0x311   : > { %v2605_v6 = vadd.f32 %v4793_v58, %v2604_v19  ;;  %v2678_v55 = vpop.f32.mrf.mxu1 }
 0x312   : > { %v2606_v43 = vpop.f32.mrf.mxu0  ;;  %v2723_v48 = vmax.f32 %v2677_v32, 0.0 }
 0x313   : > { %v2705_v5 = vmax.f32 %v2605_v6, 0.0  ;;  %v2681_v45 = vpop.f32.mrf.mxu1 }
 0x314   : > { %v3151_v18 = vpack.c.bf16 %v2723_v48, %v2722_v16  ;;  %v2682_v38 = vadd.f32 %v4793_v58, %v2681_v45 }
 0x315   : > { %v3106_v49 = vpack.c.bf16 %v2705_v5, %v2704_v29  ;;  %v2683_v42 = vpop.f32.mrf.mxu1 }
 0x316   : > { %3175 = vst [vmem:[%s4802_s13 + $0x68] sm:$0xff] %v3151_v18   ;;  %v2724_v31 = vmax.f32 %v2682_v38, 0.0 }
 0x317   : > { %3166 = vst [vmem:[%s4802_s13 + $0x20] sm:$0xff] %v3106_v49   ;;  %v2684_v46 = vpop.f32.mrf.mxu1 }
 0x318   : > { %v2685_v62 = vadd.f32 %v4793_v58, %v2684_v46 }
 0x319   : > { %v2686_v51 = vpop.f32.mrf.mxu1 }
 0x31a   : > { %v2725_v24 = vmax.f32 %v2685_v62, 0.0 }
 0x31b   : > { %v2689_v2 = vpop.f32.mrf.mxu1 }
 0x31c   : > { %v3156_v15 = vpack.c.bf16 %v2725_v24, %v2724_v31  ;;  %v2690_v26 = vadd.f32 %v4793_v58, %v2689_v2 }
 0x31d   : > { %v2691_v54 = vpop.f32.mrf.mxu1 }
 0x31e   : > { %3176 = vst [vmem:[%s4802_s13 + $0x70] sm:$0xff] %v3156_v15   ;;  %v2726_v0 = vmax.f32 %v2690_v26, 0.0 }
 0x31f   : > { %v2692_v23 = vpop.f32.mrf.mxu1 }
 0x320   : > { %v2693_v44 = vadd.f32 %v4793_v58, %v2692_v23 }
 0x321   : > { %v2694_v8 = vpop.f32.mrf.mxu1 }
 0x322   : > { %v2727_v41 = vmax.f32 %v2693_v44, 0.0 }
 0x324   : > { %v3161_v50 = vpack.c.bf16 %v2727_v41, %v2726_v0 }
 0x326   : > { %3177 = vst [vmem:[%s4802_s13 + $0x78] sm:$0xff] %v3161_v50  }
 0x327 PF: > { %s15_s18 = sadd.s32 1, %s3308_s18  }
 0x328   : > { %p12_p4 = scmp.ge.s32.totalorder %s15_s18, 4  }
 0x32a   :  { %14 = sbr.rel (!%p12_p4) target bundleno = 1 (0x1), region = 70 }

// kernel: squeezenet_backend_forward.8
= control target key start
LH: loop header
LB: loop body
LE: loop exit
PB: predicated region body
PF: predicated region fallthrough
CT: control target
= control target key end

     0   :  { %s3352_s18 = smov 0   ;;  %s4871_s0 = inlined_call_operand.vmem [shape: bf16[2,256,128], index: 0, kind: input, shape index: {}]   ;;  %s4872_s1 = inlined_call_operand.vmem [shape: bf16[128,16], index: 1, kind: input, shape index: {}]   ;;  %s4873_s2 = inlined_call_operand.vmem [shape: f32[1,16], index: 2, kind: input, shape index: {}]   ;;  %s4874_s3 = inlined_call_operand.vmem [shape: bf16[144,128], index: 3, kind: input, shape index: {}]   ;;  %s4875_s4 = inlined_call_operand.vmem [shape: f32[1,128], index: 4, kind: input, shape index: {}]   ;;  %s4876_s5 = inlined_call_operand.vmem [shape: bf16[2,256,128], index: 5, kind: output, shape index: {}]  }
   0x1 LB: > { %s2943_s19 = sadd.s32 4294967295, %s3312_s18   ;;  %p2947_p0 = scmp.ge.s32.totalorder %s3312_s18, 1  ;;  %s3312_s18 = sphi %s3352_s18, %s15_s18  }
   0x2   : > { %p187_p1 = scmp.lt.s32.totalorder %s3312_s18, 3 }
   0x4   : > { %p188_p2 = pnand %p2947_p0, %p187_p1 }
   0x6   : > { %191 = sbr.rel (%p188_p2) target bundleno = 818 (0x332), region = 40 }
   0xb   : > { %v3272_v0 = vld [vmem:[%s4872_s1 + $0x38] sm:$0xff]   ;;  %p215_p3 = scmp.lt.s32.totalorder %s2943_s19, 1  ;;  %v3273_v1 = vld [vmem:[%s4872_s1 + $0x30] sm:$0xff]   ;;  %v3274_v2 = vld [vmem:[%s4872_s1 + $0x28] sm:$0xff]   ;;  %v3314_v24 = vmov 0   ;;  %v637_v25 = vlaneseq  ;;  %s3315_s17 = smov 96  }
   0xc   : > { %3190 = vmatprep.subr.bf16.mxu0 %v3272_v0  ;;  %v3275_v3 = vld [vmem:[%s4872_s1 + $0x20] sm:$0xff]   ;;  %v3276_v5 = vld [vmem:[%s4872_s1 + $0x18] sm:$0xff]   ;;  %v3277_v6 = vld [vmem:[%s4872_s1 + $0x10] sm:$0xff]   ;;  %3238 = vmatprep.subr.bf16.mxu1 %v3314_v24  ;;  %vm1358_vm5 = vsmask.f32 256  ;;  %vm1488_vm8 = vcmask 1040384  }
   0xd   : > { %s4998_s19 = smov (!%p215_p3, %s2943_s19), 1  ;;  %3191 = vmatpush3.bf16.msra.mxu0 %v3272_v0  ;;  %v3278_v7 = vld [vmem:[%s4872_s1 + $0x8] sm:$0xff]   ;;  %v3279_v8 = vld [vmem:[%s4872_s1] sm:$0xff]   ;;  %v3412_v26 = vshrl.u32 %v637_v25, 7  ;;  %s3316_s20 = smov 48   ;;  %vm1921_vm11 = vcmask 1046528   ;;  %vm3542_vm14 = vmand %vm1488_vm8, %vm1358_vm5 }
   0xe   : > { %3192 = vmatprep.subr.bf16.mxu0 %v3273_v1  ;;  %s3037_s26 = sshll.u32 %s4998_s19, 7  ;;  %v3419_v32 = vld [vmem:[%s4873_s2] ss:$0 sm:$0xff]  ;;  %vm2165_vm15 = vcmask 130048   ;;  %s3317_s23 = smov 32  }
   0xf   : > { %s3377_s29 = scalar_lea.vmem %s4871_s0, %s3037_s26  ;;  %v641_v27 = vadd.s32 24, %v3412_v26  ;;  %v639_v29 = vadd.s32 8, %v3412_v26  ;;  %v640_v40 = vadd.s32 16, %v3412_v26  ;;  %v642_v44 = vadd.s32 32, %v3412_v26  ;;  %s3318_s27 = smov 80  }
  0x10   : > { %v3280_v4 = vld [vmem:[%s3377_s29] sm:$0xff]   ;;  %v3281_v9 = vld [vmem:[%s3377_s29 + $0x8] sm:$0xff]   ;;  %v3282_v10 = vld [vmem:[%s3377_s29 + $0x10] sm:$0xff]   ;;  %v674_v57 = vand.u32 15, %v3412_v26  ;;  %s3319_s7 = smov 16   ;;  %s3320_s10 = smov 64  }
  0x11   : > { %3193 = vmatpush3.bf16.msra.mxu0 %v3273_v1  ;;  %3206 = vmatprep.mubr.bf16.mxu0 %v3280_v4  ;;  %v3283_v11 = vld [vmem:[%s3377_s29 + $0x18] sm:$0xff]   ;;  %v3284_v12 = vld [vmem:[%s3377_s29 + $0x20] sm:$0xff]   ;;  %v3285_v13 = vld [vmem:[%s3377_s29 + $0x28] sm:$0xff]   ;;  %v695_v31 = vand.u32 15, %v641_v27  ;;  %v681_v35 = vand.u32 15, %v639_v29  ;;  %v688_v50 = vand.u32 15, %v640_v40 }
  0x12   : > { %3194 = vmatprep.subr.bf16.mxu0 %v3274_v2  ;;  %v3286_v14 = vld [vmem:[%s3377_s29 + $0x30] sm:$0xff]   ;;  %v3287_v15 = vld [vmem:[%s3377_s29 + $0x38] sm:$0xff]   ;;  %v3288_v16 = vld [vmem:[%s3377_s29 + $0x40] sm:$0xff]   ;;  %v702_v53 = vand.u32 15, %v642_v44  ;;  %vm3456_vm4 = vcmp.eq.s32.totalorder %v674_v57, 0  ;;  %s3321_s24 = smov 112  }
  0x13   : > { %v3289_v17 = vld [vmem:[%s3377_s29 + $0x48] sm:$0xff]   ;;  %v3290_v18 = vld [vmem:[%s3377_s29 + $0x50] sm:$0xff]   ;;  %v3291_v19 = vld [vmem:[%s3377_s29 + $0x58] sm:$0xff]   ;;  %vm1073_vm0 = vcmp.eq.s32.totalorder %v695_v31, 15  ;;  %vm1071_vm1 = vcmp.eq.s32.totalorder %v681_v35, 15  ;;  %vm1216_vm2 = vcmp.eq.s32.totalorder %v688_v50, 0 }
  0x14   : > { %v3292_v20 = vld [vmem:[%s3377_s29 + $0x60] sm:$0xff]   ;;  %v3293_v21 = vld [vmem:[%s3377_s29 + $0x68] sm:$0xff]   ;;  %v3294_v22 = vld [vmem:[%s3377_s29 + $0x70] sm:$0xff]   ;;  %vm1218_vm3 = vcmp.eq.s32.totalorder %v702_v53, 0 }
  0x15   : > { %3195 = vmatpush3.bf16.msra.mxu0 %v3274_v2  ;;  %v3295_v23 = vld [vmem:[%s3377_s29 + $0x78] sm:$0xff]   ;;  %s4820_s29 = scalar_lea.vmem %s4876_s5, %s3037_s26 }
  0x16   : > { %3196 = vmatprep.subr.bf16.mxu0 %v3275_v3 }
  0x19   : > { %3197 = vmatpush3.bf16.msra.mxu0 %v3275_v3 }
  0x1a   : > { %3198 = vmatprep.subr.bf16.mxu0 %v3276_v5 }
  0x1d   : > { %3199 = vmatpush3.bf16.msra.mxu0 %v3276_v5 }
  0x1e   : > { %3200 = vmatprep.subr.bf16.mxu0 %v3277_v6 }
  0x21   : > { %3201 = vmatpush3.bf16.msra.mxu0 %v3277_v6 }
  0x22   : > { %3202 = vmatprep.subr.bf16.mxu0 %v3278_v7 }
  0x25   : > { %3203 = vmatpush3.bf16.msra.mxu0 %v3278_v7  ;;  %v648_v7 = vadd.s32 80, %v3412_v26 }
  0x26   : > { %3204 = vmatprep.subr.bf16.mxu0 %v3279_v8 }
  0x29   : > { %3205 = vmatpush3.bf16.msra.mxu0 %v3279_v8 }
  0x2a   : > { %2535 = vmatprep.subr.bf16.mxu0 %v3314_v24 }
  0x2c   : > { %3207 = vmatmul.mubr.bf16.vlgmr.msra.gmra.mxu0 %v3281_v9  ;;  %v3467_v9 = vadd.s32 48, %v3412_v26 }
  0x2d   : > { %3210 = vmatprep.mubr.bf16.mxu0 %v3282_v10  ;;  %v645_v10 = vadd.s32 56, %v3412_v26 }
  0x2e   : > { %v716_v27 = vand.u32 15, %v3467_v9 }
  0x34   : > { %3211 = vmatmul.mubr.bf16.gmra.mxu0 %v3283_v11  ;;  %v3471_v11 = vadd.s32 40, %v3412_v26 }
  0x35   : > { %3214 = vmatprep.mubr.bf16.mxu0 %v3284_v12 }
  0x36   : > { %v709_v31 = vand.u32 15, %v3471_v11 }
  0x3c   : > { %3215 = vmatmul.mubr.bf16.gmra.mxu0 %v3285_v13  ;;  %v646_v13 = vadd.s32 64, %v3412_v26 }
  0x3d   : > { %3218 = vmatprep.mubr.bf16.mxu0 %v3286_v14 }
  0x44   : > { %3219 = vmatmul.mubr.bf16.gmra.mxu0 %v3287_v15 }
  0x45   : > { %3222 = vmatprep.mubr.bf16.mxu0 %v3288_v16 }
  0x4c   : > { %3223 = vmatmul.mubr.bf16.gmra.mxu0 %v3289_v17 }
  0x4d   : > { %3226 = vmatprep.mubr.bf16.mxu0 %v3290_v18  ;;  %v649_v18 = vadd.s32 88, %v3412_v26 }
  0x54   : > { %3227 = vmatmul.mubr.bf16.gmra.mxu0 %v3291_v19  ;;  %v647_v19 = vadd.s32 72, %v3412_v26 }
  0x55   : > { %3230 = vmatprep.mubr.bf16.mxu0 %v3292_v20 }
  0x56   : > { %v737_v40 = vand.u32 15, %v647_v19 }
  0x58   : > { %vm3523_vm10 = vcmp.eq.s32.totalorder %v737_v40, 15 }
  0x5c   : > { %3231 = vmatmul.mubr.bf16.gmra.mxu0 %v3293_v21 }
  0x5d   : > { %3234 = vmatprep.mubr.bf16.mxu0 %v3294_v22 }
  0x64   : > { %3235 = vmatmul.mubr.bf16.gmra.mxu0 %v3295_v23  ;;  %v744_v23 = vand.u32 15, %v648_v7  ;;  %v3296_v7 = vld [vmem:[%s4874_s3 + $0x38] sm:$0xff]  }
  0x65   : > { %2536 = vmatpush1.bf16.msra.mxu0 %v3296_v7  ;;  %3247 = vmatpush1.bf16.msra.mxu1 %v3296_v7 }
  0x66   : > { %vm3498_vm6 = vcmp.eq.s32.totalorder %v744_v23, 0  ;;  %2537 = vmatprep.subr.bf16.mxu0 %v3314_v24  ;;  %3239 = vmatprep.subr.bf16.mxu1 %v3314_v24 }
  0xec   : > { %v3208_v28 = vpop.f32.mrf.mxu0 }
  0xed   : > { %v487_v37 = vadd.f32 %v3208_v28, %v3419_v32  ;;  %v723_v28 = vand.u32 15, %v645_v10 }
  0xee   : > { %v478_v30 = vpop.f32.mrf.mxu0 }
  0xef   : > { %v479_v42 = vadd.f32 %v3419_v32, %v478_v30  ;;  %v3434_v47 = vmax.f32 %v487_v37, 0.0  ;;  %v650_v30 = vadd.s32 96, %v3412_v26  ;;  %vm3532_vm12 = vcmp.eq.s32.totalorder %v723_v28, 15 }
  0xf0   : > { %v3209_v33 = vpop.f32.mrf.mxu0 }
  0xf1   : > { %v490_v34 = vadd.f32 %v3209_v33, %v3419_v32  ;;  %v3439_v51 = vmax.f32 %v479_v42, 0.0  ;;  %v1312_v1 = vsel %vm1216_vm2, 0.0, %v3434_v47  ;;  %v730_v33 = vand.u32 15, %v646_v13 }
  0xf2   : > { %v481_v36 = vpop.f32.mrf.mxu0 }
  0xf3   : > { %v3423_v38 = vmax.f32 %v490_v34, 0.0  ;;  %v482_v39 = vadd.f32 %v3419_v32, %v481_v36  ;;  %v1310_v16 = vsel %vm3456_vm4, 0.0, %v3439_v51  ;;  %vm3511_vm7 = vcmp.eq.s32.totalorder %v730_v33, 0 }
  0xf4   : > { %v3427_v41 = vpop.f32.mrf.mxu0  ;;  %vm3803_vm4 = vcmp.eq.s32.totalorder %v716_v27, 0 }
  0xf5   : > { %v3430_v43 = vmax.f32 %v482_v39, 0.0  ;;  %v1169_v45 = vsel %vm1073_vm0, 0.0, %v3423_v38  ;;  %v1343_v5 = vpack.c.bf16 %v3423_v38, %v1312_v1  ;;  %v751_v39 = vand.u32 15, %v649_v18 }
  0xf6   : > { %v494_v46 = vpop.f32.mrf.mxu0  ;;  %v1199_v52 = vpack.c.bf16 %v1169_v45, %v3434_v47  ;;  %v3582_v33 = vpack.c.bf16 %v3423_v38, %v3434_v47  ;;  %vm3586_vm0 = vcmp.eq.s32.totalorder %v709_v31, 15  ;;  %v3597_v38 = vrot.slane %v3314_v24, 1 }
  0xf7   : > { %v1167_v48 = vsel %vm1071_vm1, 0.0, %v3430_v43  ;;  %v495_v56 = vadd.f32 %v3419_v32, %v494_v46  ;;  %v1631_v21 = vshrl.u32 %v1343_v5, 16  ;;  %v3482_v22 = vpack.c.bf16 %v3430_v43, %v1310_v16 }
  0xf8   : > { %v3437_v49 = vpop.f32.mrf.mxu0  ;;  %v3443_v55 = vpack.c.bf16 %v1167_v48, %v3439_v51  ;;  %v1367_v60 = vshrl.u32 %v1199_v52, 16  ;;  %v1370_v15 = vshll.u32 %v1199_v52, 16  ;;  %v3503_v46 = vadd.s32 120, %v3412_v26  ;;  %4920 = vst [vmem:[#allocation2_spill] sm:$0xff] %v3597_v38 }
  0xf9   : > { %v3448_v61 = vmax.f32 %v495_v56, 0.0  ;;  %v1633_v42 = vrot.slane %v1631_v21, 7  ;;  %v1624_v44 = vshrl.u32 %v3482_v22, 16  ;;  %v758_v52 = vand.u32 15, %v650_v30 }
  0xfa   : > { %v497_v54 = vpop.f32.mrf.mxu0  ;;  %v1360_v0 = vshrl.u32 %v3443_v55, 16  ;;  %v3464_v8 = vrot.slane %v1367_v60, 7  ;;  %v1634_v56 = vshll.u32 %v1343_v5, 16  ;;  %vm3519_vm9 = vcmp.eq.s32.totalorder %v751_v39, 15 }
  0xfb   : > { %v498_v58 = vadd.f32 %v3419_v32, %v497_v54  ;;  %v1314_v3 = vsel %vm1218_vm3, 0.0, %v3448_v61  ;;  %v3509_v54 = vadd.s32 104, %v3412_v26  ;;  %vm3536_vm13 = vcmp.eq.s32.totalorder %v758_v52, 0 }
  0xfc   : > { %v3216_v59 = vpop.f32.mrf.mxu0  ;;  %v1362_v14 = vrot.slane %v1360_v0, 7  ;;  %v1372_v25 = vor.u32 %v1370_v15, %v3464_v8  ;;  %v3555_v18 = vpack.c.bf16 %v3430_v43, %v3439_v51  ;;  %v506_v19 = vadd.f32 %v3437_v49, %v3419_v32 }
  0xfd   : > { %v3450_v62 = vmax.f32 %v498_v58, 0.0  ;;  %v519_v37 = vadd.f32 %v3216_v59, %v3419_v32  ;;  %vm1754_vm3 = vsmask.f32 7424 }
  0xfe   : > { %v3452_v63 = vpop.f32.mrf.mxu0  ;;  %v3489_v34 = vsel %vm1358_vm5, %v1362_v14, %v1372_v25  ;;  %v3599_v47 = vmax.f32 %v506_v19, 0.0 }
  0xff   : > { %v1344_v6 = vpack.c.bf16 %v3450_v62, %v1314_v3  ;;  %2096 = vrot.lane.b32.xlu0 %v3489_v34, %s3315_s17  ;;  %v615_v0 = vmax.f32 %v519_v37, 0.0  ;;  %v1636_v3 = vor.u32 %v1634_v56, %v1633_v42  ;;  %v511_v5 = vadd.f32 %v3419_v32, %v3452_v63 }
 0x100   : > { %v3217_v4 = vpop.f32.mrf.mxu0  ;;  %v779_v63 = vand.u32 15, %v3503_v46  ;;  %v1500_v56 = vshrl.u32 %v3582_v33, 16  ;;  %v1173_v11 = vsel %vm3532_vm12, 0.0, %v3599_v47 }
 0x101   : > { %v1639_v17 = vshrl.u32 %v1344_v6, 16  ;;  %v522_v35 = vadd.f32 %v3217_v4, %v3419_v32  ;;  %v1642_v48 = vshll.u32 %v1344_v6, 16  ;;  %v1626_v4 = vrot.slane %v1624_v44, 7 }
 0x102   : > { %v513_v12 = vpop.f32.mrf.mxu0  ;;  %v1363_v6 = vshll.u32 %v3443_v55, 16  ;;  %v765_v55 = vand.u32 15, %v3509_v54  ;;  %v1320_v21 = vsel %vm3498_vm6, 0.0, %v615_v0  ;;  %v613_v25 = vmax.f32 %v511_v5, 0.0 }
 0x103   : > { %v3492_v36 = vrot.slane %v1639_v17, 7  ;;  %v514_v50 = vadd.f32 %v3419_v32, %v513_v12  ;;  %v3515_v58 = vmax.f32 %v522_v35, 0.0  ;;  %1990 = vrot.lane.b32.xlu0 %v3489_v34, %s3316_s20  ;;  %v503_v35 = vadd.f32 %v3427_v41, %v3419_v32 }
 0x104   : > { %v3479_v20 = vpop.f32.mrf.mxu0  ;;  %v1365_v17 = vor.u32 %v1363_v6, %v1362_v14  ;;  %v1627_v44 = vshll.u32 %v3482_v22, 16  ;;  %vm3620_vm1 = vcmp.eq.s32.totalorder %v779_v63, 15  ;;  %v3681_v37 = vrot.slane %v1500_v56, 7 }
 0x105   : > { %v1644_v60 = vor.u32 %v1642_v48, %v3492_v36  ;;  %v614_v10 = vmax.f32 %v514_v50, 0.0  ;;  %v1177_v15 = vsel %vm3519_vm9, 0.0, %v3515_v58  ;;  %v1347_v51 = vpack.c.bf16 %v3515_v58, %v1320_v21 }
 0x106   : > { %v526_v29 = vpop.f32.mrf.mxu0  ;;  %v3566_v28 = vsel %vm3542_vm14, 0, %v1365_v17  ;;  %v1203_v43 = vpack.c.bf16 %v1177_v15, %v615_v0  ;;  %v1318_v48 = vsel %vm3511_vm7, 0.0, %v613_v25  ;;  %v3630_v5 = vpack.c.bf16 %v3515_v58, %v615_v0 }
 0x107   : > { %v527_v59 = vadd.f32 %v3419_v32, %v526_v29  ;;  %v3562_v23 = vsel %vm1358_vm5, %v1633_v42, %v1644_v60  ;;  %v3570_v29 = vsel %vm1358_vm5, %v1626_v4, %v1636_v3  ;;  %v1175_v49 = vsel %vm3523_vm10, 0.0, %v614_v10  ;;  %1988 = vrot.lane.b32.xlu0 %v3566_v28, %s3316_s20 }
 0x108   : > { %v3506_v53 = vpop.f32.mrf.mxu0  ;;  %v4879_v40 = vrot.slane %v3562_v23, 1  ;;  %v1493_v42 = vshrl.u32 %v3555_v18, 16  ;;  %v1925_v45 = vrot.slane %v3570_v29, 1  ;;  %v3601_v41 = vpack.c.bf16 %v614_v10, %v613_v25 }
 0x109   : > { %v3551_v16 = vmax.f32 %v527_v59, 0.0  ;;  %v3603_v31 = vpack.c.bf16 %v1175_v49, %v613_v25  ;;  %v1399_v50 = vshrl.u32 %v1203_v43, 16  ;;  %v1663_v52 = vshrl.u32 %v1347_v51, 16 }
 0x10a   : > { %v529_v13 = vpop.f32.mrf.mxu0  ;;  %v3613_v22 = vsel %vm1921_vm11, %v1925_v45, %v4879_v40  ;;  %v3616_v59 = vmax.f32 %v503_v35, 0.0  ;;  %v3618_v60 = vpack.c.bf16 %v614_v10, %v1318_v48  ;;  %v3626_v2 = vrot.slane %v1493_v42, 7 }
 0x10b   : > { %v530_v14 = vadd.f32 %v3419_v32, %v529_v13  ;;  %v1322_v30 = vsel %vm3536_vm13, 0.0, %v3551_v16  ;;  %2987 = vmatprep.mubr.msk.bf16.mxu0 %vm2165_vm15, %v3613_v22  ;;  %v1496_v3 = vshll.u32 %v3555_v18, 16  ;;  %v1629_v6 = vor.u32 %v1627_v44, %v1626_v4 }
 0x10c   : > { %v3634_v10 = vpack.c.bf16 %v3599_v47, %v3616_v59  ;;  %v1524_v63 = vshrl.u32 %v3601_v41, 16  ;;  %v1391_v13 = vshrl.u32 %v3603_v31, 16  ;;  %v1665_v15 = vrot.slane %v1663_v52, 7 }
 0x10d   : > { %v3590_v39 = vmax.f32 %v530_v14, 0.0  ;;  %v1752_v17 = vsel %vm3542_vm14, 0, %v1629_v6  ;;  %v3643_v18 = vrot.slane %v1399_v50, 7  ;;  %v1402_v58 = vshll.u32 %v1203_v43, 16 }
 0x10e   : > { %v1655_v0 = vshrl.u32 %v3618_v60, 16  ;;  %v1923_v21 = vrot.slane %v1752_v17, 1  ;;  %v1532_v25 = vshrl.u32 %v3630_v5, 16  ;;  %v538_v14 = vadd.f32 %v3506_v53, %v3419_v32 }
 0x10f   : > { %v1348_v46 = vpack.c.bf16 %v3590_v39, %v1322_v30  ;;  %v1393_v49 = vrot.slane %v1391_v13, 7  ;;  %v1404_v30 = vor.u32 %v1402_v58, %v3643_v18  ;;  %v1503_v43 = vshll.u32 %v3582_v33, 16 }
 0x110   : > { %v3657_v35 = vpack.c.bf16 %v1173_v11, %v3616_v59  ;;  %v1666_v42 = vshll.u32 %v1347_v51, 16  ;;  %v1924_v44 = vsel %vm1921_vm11, %v3597_v38, %v1923_v21  ;;  %v1171_v53 = vsel %vm3586_vm0, 0.0, %v3450_v62 }
 0x111   : > { %v1671_v57 = vshrl.u32 %v1348_v46, 16  ;;  %v1674_v19 = vshll.u32 %v1348_v46, 16  ;;  %v1498_v46 = vor.u32 %v1496_v3, %v3626_v2  ;;  %v535_v48 = vadd.f32 %v3479_v20, %v3419_v32  ;;  %1955 = vrot.lane.b32.xlu0 %v1924_v44, %s3317_s23  ;;  %v3297_v20 = vld [vmem:[%s4874_s3 + $0x30] sm:$0xff]  }
 0x112   : > { %v3669_v33 = vsel %vm1358_vm5, %v1393_v49, %v1404_v30  ;;  %v1668_v51 = vor.u32 %v1666_v42, %v1665_v15  ;;  %v1526_v50 = vrot.slane %v1524_v63, 7  ;;  %v3672_v52 = vrot.slane %v1655_v0, 7  ;;  %2538 = vmatpush1.bf16.msra.mxu0 %v3297_v20  ;;  %3248 = vmatpush1.bf16.msra.mxu1 %v3297_v20 }
 0x113   : > { %v3646_v4 = vrot.slane %v1671_v57, 7  ;;  %2104 = vrot.lane.b32.xlu1 %v3669_v33, %s3315_s17  ;;  %v1516_v3 = vshrl.u32 %v3634_v10, 16  ;;  %v3684_v6 = vrot.slane %v1532_v25, 7  ;;  %v3686_v11 = vmax.f32 %v538_v14, 0.0  ;;  %2539 = vmatprep.subr.bf16.mxu0 %v3314_v24 }
 0x114   : > { %v3689_v63 = vpack.c.bf16 %v1171_v53, %v3448_v61  ;;  %v1527_v13 = vshll.u32 %v3601_v41, 16  ;;  %v1926_v17 = vsel %vm1921_vm11, %v1923_v21, %v1925_v45  ;;  %v1383_v58 = vshrl.u32 %v3657_v35, 16  ;;  %v3298_v21 = vld [vmem:[%s4874_s3 + $0x28] sm:$0xff]   ;;  %3240 = vmatprep.subr.bf16.mxu1 %v3314_v24 }
 0x115   : > { %v1676_v57 = vor.u32 %v1674_v19, %v3646_v4  ;;  %v1535_v56 = vshll.u32 %v3630_v5, 16  ;;  %v3697_v0 = vmax.f32 %v535_v48, 0.0  ;;  %v1181_v19 = vsel %vm3620_vm1, 0.0, %v3686_v11  ;;  %2063 = vrot.lane.b32.xlu0 %v1926_v17, %s3318_s27 }
 0x116   : > { %v1621_v29 = vsel %vm3542_vm14, 0, %v1498_v46  ;;  %v1529_v45 = vor.u32 %v1527_v13, %v1526_v50  ;;  %v1394_v41 = vshll.u32 %v3603_v31, 16  ;;  %v3711_v5 = vsel %vm1358_vm5, %v3672_v52, %v1668_v51  ;;  %2540 = vmatpush1.bf16.msra.mxu0 %v3298_v21  ;;  %3249 = vmatpush1.bf16.msra.mxu1 %v3298_v21  ;;  %v3299_v51 = vld [vmem:[%s4874_s3 + $0x20] sm:$0xff]   ;;  %v3793_v31 = vpop.f32.mrf.mxu0 }
 0x117   : > { %1998 = vrot.lane.b32.xlu1 %v3669_v33, %s3316_s20  ;;  %v3714_v1 = vsel %vm1358_vm5, %v1665_v15, %v1676_v57  ;;  %v1505_v7 = vor.u32 %v1503_v43, %v3681_v37  ;;  %v3721_v25 = vrot.slane %v1516_v3, 7  ;;  %v1537_v14 = vor.u32 %v1535_v56, %v3684_v6  ;;  %2541 = vmatprep.subr.bf16.mxu0 %v3314_v24 }
 0x118   : > { %vm3726_vm2 = vcmp.eq.s32.totalorder %v765_v55, 15  ;;  %v3731_v15 = vpack.c.bf16 %v1181_v19, %v3697_v0  ;;  %v3733_v30 = vrot.slane %v1383_v58, 7  ;;  %v1396_v42 = vor.u32 %v1394_v41, %v1393_v49  ;;  %3241 = vmatprep.subr.bf16.mxu1 %v3314_v24 }
 0x119   : > { %v1763_v44 = vshll.u32 %v1621_v29, 16  ;;  %v1375_v43 = vshrl.u32 %v3689_v63, 16  ;;  %1957 = vrot.lane.b32.xlu0 %v1926_v17, %s3317_s23  ;;  %v4878_v54 = vrot.slane %v3711_v5, 1  ;;  %v4877_v55 = vrot.slane %v3714_v1, 1 }
 0x11a   : > { %v3742_v46 = vpack.c.bf16 %v3590_v39, %v3551_v16  ;;  %v3746_v49 = vsel %vm1358_vm5, %v3733_v30, %v1396_v42  ;;  %v1530_v48 = vsel %vm1358_vm5, %v3721_v25, %v1529_v45  ;;  %v1179_v57 = vsel %vm3726_vm2, 0.0, %v3590_v39  ;;  %2542 = vmatpush1.bf16.msra.mxu0 %v3299_v51  ;;  %3250 = vmatpush1.bf16.msra.mxu1 %v3299_v51 }
 0x11b   : > { %v1765_v53 = vrot.slane %v1763_v44, 1  ;;  %1996 = vrot.lane.b32.xlu1 %v3746_v49, %s3316_s20  ;;  %v3764_v20 = vsel %vm1921_vm11, %v4878_v54, %v4877_v55  ;;  %v3767_v3 = vsel %vm1358_vm5, %v1526_v50, %v1537_v14  ;;  %v1795_v13 = vshll.u32 %v1530_v48, 16  ;;  %2543 = vmatprep.subr.bf16.mxu0 %v3314_v24 }
 0x11c   : > { %v1415_v17 = vshrl.u32 %v3731_v15, 16  ;;  %2991 = vmatprep.mubr.msk.bf16.mxu1 %vm2165_vm15, %v3764_v20  ;;  %v1803_v39 = vshll.u32 %v3767_v3, 16  ;;  %v3777_v56 = vsel %vm1358_vm5, %v3626_v2, %v1505_v7  ;;  %v1799_v19 = vshrl.u32 %v1530_v48, 16  ;;  %v3300_v7 = vld [vmem:[%s4874_s3 + $0x18] sm:$0xff]   ;;  %3242 = vmatprep.subr.bf16.mxu1 %v3314_v24 }
 0x11d   : > { %v1766_v58 = vsel %vm1754_vm3, %v3597_v38, %v1765_v53  ;;  %v3780_v50 = vrot.slane %v1795_v13, 1  ;;  %v1767_v45 = vshrl.u32 %v1621_v29, 16  ;;  %v1771_v41 = vshll.u32 %v3777_v56, 16 }
 0x11e   : > { %1887 = vrot.lane.b32.xlu0 %v1766_v58, %s3319_s7  ;;  %v1061_v21 = vpack.c.bf16 %v3686_v11, %v3697_v0  ;;  %v3787_v14 = vpack.c.bf16 %v1179_v57, %v3551_v16  ;;  %v1540_v2 = vshrl.u32 %v3742_v46, 16  ;;  %v3796_v42 = vrot.slane %v1803_v39, 1  ;;  %2544 = vmatpush1.bf16.msra.mxu0 %v3300_v7 }
 0x11f   : > { %v1801_v29 = vor.u32 %v1799_v19, %v3780_v50  ;;  %v1769_v44 = vor.u32 %v1767_v45, %v1765_v53  ;;  %v3798_v48 = vrot.slane %v1771_v41, 1  ;;  %v3809_v51 = vpack.c.bf16 %v3450_v62, %v3448_v61  ;;  %2545 = vmatprep.subr.bf16.mxu0 %v3314_v24  ;;  %v3301_v62 = vld [vmem:[%s4874_s3 + $0x10] sm:$0xff]   ;;  %3251 = vmatpush1.bf16.msra.mxu1 %v3300_v7 }
 0x120   : > { %v3811_v57 = vrot.slane %v1415_v17, 7  ;;  %v1418_v9 = vshll.u32 %v3731_v15, 16  ;;  %v3820_v27 = vrot.slane %v1375_v43, 7  ;;  %v1548_v58 = vshrl.u32 %v1061_v21, 16  ;;  %v542_v43 = vpop.f32.mrf.mxu0  ;;  %3243 = vmatprep.subr.bf16.mxu1 %v3314_v24 }
 0x121   : > { %v3815_v53 = vsel %vm1754_vm3, %v1801_v29, %v3796_v42  ;;  %v1774_v13 = vsel %vm1754_vm3, %v1769_v44, %v3798_v48  ;;  %v3823_v39 = vrot.slane %v1540_v2, 7  ;;  %v1543_v61 = vshll.u32 %v3742_v46, 16 }
 0x122   : > { %2036 = vrot.lane.b32.xlu1 %v3815_v53, %s3320_s10  ;;  %2028 = vrot.lane.b32.xlu0 %v1774_v13, %s3320_s10  ;;  %v1316_v15 = vsel %vm3803_vm4, 0.0, %v3616_v59  ;;  %v1407_v17 = vshrl.u32 %v3787_v14, 16  ;;  %v1378_v19 = vshll.u32 %v3689_v63, 16  ;;  %v1508_v45 = vshrl.u32 %v3809_v51, 16  ;;  %v3225_v7 = vpop.f32.mrf.mxu0 }
 0x123   : > { %v1345_v46 = vpack.c.bf16 %v3599_v47, %v1316_v15  ;;  %2546 = vmatpush1.bf16.msra.mxu0 %v3301_v62  ;;  %v657_v41 = vadd.s32 152, %v3412_v26  ;;  %v1420_v2 = vor.u32 %v1418_v9, %v3811_v57  ;;  %v3844_v59 = vrot.slane %v1548_v58, 7  ;;  %v3302_v47 = vld [vmem:[%s4874_s3 + $0x8] sm:$0xff]   ;;  %3252 = vmatpush1.bf16.msra.mxu1 %v3301_v62 }
 0x124   : > { %v1380_v29 = vor.u32 %v1378_v19, %v3820_v27  ;;  %2547 = vmatprep.subr.bf16.mxu0 %v3314_v24  ;;  %v1551_v44 = vshll.u32 %v1061_v21, 16  ;;  %v1545_v63 = vor.u32 %v1543_v61, %v3823_v39  ;;  %v3853_v16 = vrot.slane %v1407_v17, 7  ;;  %3244 = vmatprep.subr.bf16.mxu1 %v3314_v24 }
 0x125   : > { %v1647_v9 = vshrl.u32 %v1345_v46, 16  ;;  %v652_v58 = vadd.s32 112, %v3412_v26  ;;  %v654_v21 = vadd.s32 128, %v3412_v26  ;;  %v3858_v61 = vrot.slane %v1508_v45, 7  ;;  %v3303_v45 = vld [vmem:[%s4874_s3] sm:$0xff]  }
 0x126   : > { %1897 = vrot.lane.b32.xlu1 %v3815_v53, %s3319_s7  ;;  %1889 = vrot.lane.b32.xlu0 %v1774_v13, %s3319_s7  ;;  %v807_v15 = vand.u32 15, %v657_v41  ;;  %v3862_v13 = vsel %vm1358_vm5, %v3853_v16, %v1420_v2  ;;  %v3866_v17 = vsel %vm1358_vm5, %v3464_v8, %v1380_v29  ;;  %v1553_v62 = vor.u32 %v1551_v44, %v3844_v59  ;;  %v545_v29 = vpop.f32.mrf.mxu0 }
 0x127   : > { %2548 = vmatpush1.bf16.msra.mxu0 %v3302_v47  ;;  %4927 = vst [vmem:[#allocation3_spill] sm:$0xff] %v3862_v13  ;;  %4928 = vst [vmem:[#allocation4_spill] sm:$0xff] %v3866_v17  ;;  %v1546_v19 = vsel %vm1358_vm5, %v3684_v6, %v1545_v63  ;;  %v1511_v8 = vshll.u32 %v3809_v51, 16  ;;  %v543_v41 = vadd.f32 %v3419_v32, %v542_v43  ;;  %3253 = vmatpush1.bf16.msra.mxu1 %v3302_v47 }
 0x128   : > { %2549 = vmatprep.subr.bf16.mxu0 %v3314_v24  ;;  %v554_v2 = vadd.f32 %v3225_v7, %v3419_v32  ;;  %v3882_v44 = vrot.slane %v1647_v9, 7  ;;  %v786_v55 = vand.u32 15, %v654_v21  ;;  %v655_v54 = vadd.s32 136, %v3412_v26  ;;  %3245 = vmatprep.subr.bf16.mxu1 %v3314_v24 }
 0x129   : > { %v1513_v6 = vor.u32 %v1511_v8, %v3858_v61  ;;  %v772_v63 = vand.u32 15, %v652_v58  ;;  %vm3887_vm6 = vcmp.eq.s32.totalorder %v807_v15, 15  ;;  %v1811_v51 = vshll.u32 %v1546_v19, 16  ;;  %v3304_v58 = vld [vmem:[%s4874_s3 + $0x40] sm:$0xff]  }
 0x12a   : > { %2108 = vrot.lane.b32.xlu1 %v3862_v13, %s3315_s17  ;;  %2098 = vrot.lane.b32.xlu0 %v3866_v17, %s3315_s17  ;;  %v1650_v43 = vshll.u32 %v1345_v46, 16  ;;  %v551_v47 = vadd.f32 %v3793_v31, %v3419_v32  ;;  %v546_v7 = vadd.f32 %v3419_v32, %v545_v29  ;;  %v3901_v9 = vsel %vm1358_vm5, %v3823_v39, %v1553_v62 }
 0x12b   : > { %2550 = vmatpush1.bf16.msra.mxu0 %v3303_v45  ;;  %v621_v46 = vmax.f32 %v543_v41, 0.0  ;;  %v3906_v21 = vmax.f32 %v554_v2, 0.0  ;;  %3254 = vmatpush1.bf16.msra.mxu1 %v3303_v45  ;;  %vm3909_vm7 = vcmp.eq.s32.totalorder %v786_v55, 0  ;;  %v793_v8 = vand.u32 15, %v655_v54 }
 0x12c   : > { %2565 = vmatprep.subr.bf16.mxu0 %v3314_v24  ;;  %v1652_v31 = vor.u32 %v1650_v43, %v3882_v44  ;;  %3246 = vmatprep.subr.bf16.mxu1 %v3314_v24  ;;  %v3917_v62 = vrot.slane %v1811_v51, 1  ;;  %v1819_v41 = vshll.u32 %v3901_v9, 16  ;;  %vm3920_vm8 = vcmp.eq.s32.totalorder %v772_v63, 0 }
 0x12d   : > { %v1185_v39 = vsel %vm3887_vm6, 0.0, %v3906_v21  ;;  %v3924_v55 = vmax.f32 %v551_v47, 0.0  ;;  %v622_v2 = vmax.f32 %v546_v7, 0.0  ;;  %v3932_v24 = vsel %vm1358_vm5, %v3681_v37, %v1513_v6 }
 0x12e   : > { %2002 = vrot.lane.b32.xlu1 %v3862_v13, %s3316_s20  ;;  %1992 = vrot.lane.b32.xlu0 %v3866_v17, %s3316_s20  ;;  %v1326_v40 = vsel %vm3909_vm7, 0.0, %v621_v46  ;;  %v1815_v54 = vshrl.u32 %v1546_v19, 16  ;;  %vm3937_vm9 = vcmp.eq.s32.totalorder %v793_v8, 15  ;;  %v3943_v51 = vsel %vm1358_vm5, %v3492_v36, %v1652_v31 }
 0x12f   : > { %2566 = vmatpush2.bf16.msra.mxu0 %v3304_v58  ;;  %3255 = vmatpush2.bf16.msra.mxu1 %v3304_v58  ;;  %v1207_v29 = vpack.c.bf16 %v1185_v39, %v3924_v55  ;;  %v1324_v37 = vsel %vm3920_vm8, 0.0, %v3697_v0  ;;  %v3949_v43 = vrot.slane %v1819_v41, 1  ;;  %v1779_v19 = vshll.u32 %v3932_v24, 16 }
 0x130   : > { %v1817_v6 = vor.u32 %v1815_v54, %v3917_v62  ;;  %v1062_v47 = vpack.c.bf16 %v622_v2, %v621_v46  ;;  %v1350_v7 = vpack.c.bf16 %v622_v2, %v1326_v40  ;;  %v4880_v36 = vrot.slane %v3943_v51, 1  ;;  %v3978_v54 = vpop.f32.mrf.mxu0 }
 0x131   : > { %v1349_v58 = vpack.c.bf16 %v3686_v11, %v1324_v37  ;;  %v1063_v0 = vpack.c.bf16 %v3906_v21, %v3924_v55  ;;  %v1431_v31 = vshrl.u32 %v1207_v29, 16  ;;  %v1183_v15 = vsel %vm3937_vm9, 0.0, %v622_v2 }
 0x132   : > { %2073 = vrot.lane.b32.xlu1 %v3764_v20, %s3318_s27  ;;  %2065 = vrot.lane.b32.xlu0 %v3613_v22, %s3318_s27  ;;  %v1822_v8 = vsel %vm1754_vm3, %v1817_v6, %v3949_v43  ;;  %v1775_v39 = vshrl.u32 %v3777_v56, 16  ;;  %v1781_v11 = vrot.slane %v1779_v19, 1  ;;  %v1519_v41 = vshll.u32 %v3634_v10, 16 }
 0x133   : > { %v1556_v45 = vshrl.u32 %v1062_v47, 16  ;;  %v1687_v40 = vshrl.u32 %v1350_v7, 16  ;;  %v3976_v2 = vpack.c.bf16 %v1183_v15, %v621_v46  ;;  %v1679_v56 = vshrl.u32 %v1349_v58, 16 }
 0x134   : > { %v1521_v63 = vor.u32 %v1519_v41, %v3721_v25  ;;  %v658_v37 = vadd.s32 160, %v3412_v26  ;;  %v1564_v10 = vshrl.u32 %v1063_v0, 16  ;;  %v3984_v19 = vrot.slane %v1431_v31, 7 }
 0x135   : > { %v1559_v17 = vshll.u32 %v1062_v47, 16  ;;  %v3986_v13 = vrot.slane %v1687_v40, 7  ;;  %v1690_v46 = vshll.u32 %v1350_v7, 16  ;;  %v1423_v25 = vshrl.u32 %v3976_v2, 16 }
 0x136   : > { %1967 = vrot.lane.b32.xlu1 %v3764_v20, %s3317_s23  ;;  %1959 = vrot.lane.b32.xlu0 %v3613_v22, %s3317_s23  ;;  %v4937_v20 = vrot.slane %v3562_v23, 1  ;;  %v1777_v23 = vor.u32 %v1775_v39, %v3798_v48  ;;  %v558_v48 = vpop.f32.mrf.mxu0  ;;  %v1681_v15 = vrot.slane %v1679_v56, 7  ;;  %v1682_v39 = vshll.u32 %v1349_v58, 16 }
 0x137   : > { %v3993_v41 = vsel %vm1358_vm5, %v3858_v61, %v1521_v63  ;;  %v814_v31 = vand.u32 15, %v658_v37  ;;  %v661_v47 = vadd.s32 184, %v3412_v26  ;;  %v1567_v40 = vshll.u32 %v1063_v0, 16 }
 0x138   : > { %v3969_v22 = vsel %vm1921_vm11, %v4937_v20, %v4880_v36  ;;  %v1782_v6 = vsel %vm1754_vm3, %v1777_v23, %v1781_v11  ;;  %v1434_v20 = vshll.u32 %v1207_v29, 16  ;;  %v1558_v36 = vrot.slane %v1556_v45, 7  ;;  %v3229_v58 = vpop.f32.mrf.mxu0 }
 0x139   : > { %v656_v29 = vadd.s32 144, %v3412_v26  ;;  %v3998_v45 = vrot.slane %v1564_v10, 7  ;;  %v1692_v38 = vor.u32 %v1690_v46, %v3986_v13  ;;  %v1658_v61 = vshll.u32 %v3618_v60, 16 }
 0x13a   : > { %2142 = vrot.lane.b32.xlu1 %v1822_v8, %s3321_s24  ;;  %2067 = vrot.lane.b32.xlu0 %v3969_v22, %s3318_s27  ;;  %v1436_v7 = vor.u32 %v1434_v20, %v3984_v19  ;;  %v1561_v23 = vor.u32 %v1559_v17, %v1558_v36  ;;  %v4004_v63 = vrot.slane %v1423_v25, 7  ;;  %v1783_v56 = vshrl.u32 %v3932_v24, 16 }
 0x13b   : > { %v1787_v37 = vshll.u32 %v3993_v41, 16  ;;  %v1684_v20 = vor.u32 %v1682_v39, %v1681_v15  ;;  %v559_v10 = vadd.f32 %v3419_v32, %v558_v48  ;;  %v1660_v17 = vor.u32 %v1658_v61, %v3672_v52 }
 0x13c   : > { %v4012_v0 = vsel %vm1358_vm5, %v4004_v63, %v1436_v7  ;;  %v1569_v46 = vor.u32 %v1567_v40, %v3998_v45  ;;  %v4019_v60 = vsel %vm1358_vm5, %v1681_v15, %v1692_v38  ;;  %v1562_v24 = vsel %vm1358_vm5, %v3844_v59, %v1561_v23 }
 0x13d   : > { %4938 = vst [vmem:[#allocation5_spill] sm:$0xff] %v4012_v0  ;;  %v800_v48 = vand.u32 15, %v656_v29  ;;  %vm4023_vm10 = vcmp.eq.s32.totalorder %v814_v31, 0  ;;  %v835_v25 = vand.u32 15, %v661_v47  ;;  %v4027_v39 = vrot.slane %v1787_v37, 1 }
 0x13e   : > { %2040 = vrot.lane.b32.xlu1 %v1822_v8, %s3320_s10  ;;  %2132 = vrot.lane.b32.xlu0 %v1782_v6, %s3321_s24  ;;  %v625_v7 = vmax.f32 %v559_v10, 0.0  ;;  %v570_v40 = vadd.f32 %v3229_v58, %v3419_v32  ;;  %v4033_v38 = vsel %vm1358_vm5, %v3646_v4, %v1684_v20  ;;  %v4885_v15 = vrot.slane %v4019_v60, 1 }
 0x13f   : > { %v1661_v29 = vsel %vm1358_vm5, %v3882_v44, %v1660_v17  ;;  %v1827_v31 = vshll.u32 %v1562_v24, 16  ;;  %v1570_v4 = vsel %vm1358_vm5, %v1558_v36, %v1569_v46  ;;  %vm4048_vm12 = vcmp.eq.s32.totalorder %v800_v48, 0 }
 0x140   : > { %v567_v61 = vadd.f32 %v3978_v54, %v3419_v32  ;;  %vm4054_vm13 = vcmp.eq.s32.totalorder %v835_v25, 15  ;;  %v1937_v58 = vrot.slane %v4033_v38, 1  ;;  %v4061_v37 = vmax.f32 %v570_v40, 0.0 }
 0x141   : > { %v1931_v36 = vrot.slane %v1661_v29, 1  ;;  %v1835_v54 = vshll.u32 %v1570_v4, 16  ;;  %v1807_v17 = vshrl.u32 %v3767_v3, 16  ;;  %v1831_v52 = vshrl.u32 %v1562_v24, 16 }
 0x142   : > { %1901 = vrot.lane.b32.xlu1 %v1822_v8, %s3319_s7  ;;  %2030 = vrot.lane.b32.xlu0 %v1782_v6, %s3320_s10  ;;  %v1785_v8 = vor.u32 %v1783_v56, %v1781_v11  ;;  %v561_v11 = vpop.f32.mrf.mxu0  ;;  %v1330_v56 = vsel %vm4023_vm10, 0.0, %v625_v7  ;;  %v4068_v10 = vsel %vm1921_vm11, %v1937_v58, %v4885_v15  ;;  %v4080_v48 = vmax.f32 %v567_v61, 0.0 }
 0x143   : > { %v562_v47 = vadd.f32 %v3419_v32, %v561_v11  ;;  %v4070_v32 = vrot.slane %v1827_v31, 1  ;;  %v4083_v25 = vor.u32 %v1807_v17, %v3796_v42  ;;  %v1328_v3 = vsel %vm4048_vm12, 0.0, %v3924_v55 }
 0x144   : > { %v4037_v59 = vsel %vm1754_vm3, %v1785_v8, %v4027_v39  ;;  %v1189_v8 = vsel %vm4054_vm13, 0.0, %v4061_v37  ;;  %v4947_v29 = vrot.slane %v3943_v51, 1  ;;  %v1837_v42 = vrot.slane %v1835_v54, 1 }
 0x145   : > { %v626_v46 = vmax.f32 %v562_v47, 0.0  ;;  %v1833_v24 = vor.u32 %v1831_v52, %v4070_v32  ;;  %v1351_v55 = vpack.c.bf16 %v3906_v21, %v1328_v3  ;;  %v1823_v23 = vshrl.u32 %v3901_v9, 16 }
 0x146   : > { %2112 = vrot.lane.b32.xlu1 %v4012_v0, %s3315_s17  ;;  %1891 = vrot.lane.b32.xlu0 %v1782_v6, %s3319_s7  ;;  %v659_v6 = vadd.s32 168, %v3412_v26  ;;  %v4096_v31 = vsel %vm1921_vm11, %v4947_v29, %v1931_v36  ;;  %v1065_v21 = vpack.c.bf16 %v4061_v37, %v4080_v48  ;;  %v1791_v3 = vshrl.u32 %v3993_v41, 16 }
 0x147   : > { %v1352_v40 = vpack.c.bf16 %v626_v46, %v1330_v56  ;;  %v1064_v47 = vpack.c.bf16 %v626_v46, %v625_v7  ;;  %v1838_v56 = vsel %vm1754_vm3, %v1833_v24, %v1837_v42  ;;  %v4114_v17 = vor.u32 %v1823_v23, %v3949_v43 }
 0x148   : > { %v821_v20 = vand.u32 15, %v659_v6  ;;  %v1209_v6 = vpack.c.bf16 %v1189_v8, %v4080_v48  ;;  %v1695_v9 = vshrl.u32 %v1351_v55, 16  ;;  %v1410_v29 = vshll.u32 %v3787_v14, 16 }
 0x149   : > { %v1703_v61 = vshrl.u32 %v1352_v40, 16  ;;  %v1572_v8 = vshrl.u32 %v1064_v47, 16  ;;  %v1580_v24 = vshrl.u32 %v1065_v21, 16  ;;  %vm2213_vm13 = vcmask 261120  }
 0x14a   : > { %2006 = vrot.lane.b32.xlu1 %v4012_v0, %s3316_s20  ;;  %2134 = vrot.lane.b32.xlu0 %v4037_v59, %s3321_s24  ;;  %vm4088_vm0 = vcmp.eq.s32.totalorder %v821_v20, 15  ;;  %v1447_v44 = vshrl.u32 %v1209_v6, 16  ;;  %v4948_v20 = vrot.slane %v3711_v5, 1  ;;  %v1706_v5 = vshll.u32 %v1352_v40, 16 }
 0x14b   : > { %v1187_v51 = vsel %vm4088_vm0, 0.0, %v626_v46  ;;  %v4123_v52 = vrot.slane %v1703_v61, 7  ;;  %v1450_v11 = vshll.u32 %v1209_v6, 16  ;;  %v1574_v23 = vrot.slane %v1572_v8, 7 }
 0x14c   : > { %v4111_v54 = vsel %vm1921_vm11, %v1931_v36, %v4948_v20  ;;  %v4121_v46 = vpack.c.bf16 %v1187_v51, %v625_v7  ;;  %v3232_v36 = vpop.f32.mrf.mxu0  ;;  %v4126_v43 = vrot.slane %v1447_v44, 7  ;;  %v1575_v20 = vshll.u32 %v1064_v47, 16 }
 0x14d   : > { %4949 = vst [vmem:[#allocation6_spill] sm:$0xff] %v4111_v54  ;;  %v1839_v7 = vshrl.u32 %v1570_v4, 16  ;;  %v1697_v51 = vrot.slane %v1695_v9, 7  ;;  %v1698_v61 = vshll.u32 %v1351_v55, 16  ;;  %v1793_v40 = vor.u32 %v1791_v3, %v4027_v39 }
 0x14e   : > { %2077 = vrot.lane.b32.xlu1 %v4068_v10, %s3318_s27  ;;  %2032 = vrot.lane.b32.xlu0 %v4037_v59, %s3320_s10  ;;  %v1439_v41 = vshrl.u32 %v4121_v46, 16  ;;  %v1708_v6 = vor.u32 %v1706_v5, %v4123_v52  ;;  %v574_v14 = vpop.f32.mrf.mxu0  ;;  %v1452_v8 = vor.u32 %v1450_v11, %v4126_v43  ;;  %v1412_v15 = vor.u32 %v1410_v29, %v3853_v16 }
 0x14f   : > { %v4134_v44 = vor.u32 %v1839_v7, %v1837_v42  ;;  %v4139_v47 = vsel %vm1754_vm3, %v1793_v40, %v3780_v50  ;;  %v4143_v4 = vrot.slane %v1580_v24, 7  ;;  %v1583_v55 = vshll.u32 %v1065_v21, 16 }
 0x150   : > { %v1577_v9 = vor.u32 %v1575_v20, %v1574_v23  ;;  %v1700_v39 = vor.u32 %v1698_v61, %v1697_v51  ;;  %v665_v42 = vadd.s32 216, %v3412_v26  ;;  %v4149_v5 = vrot.slane %v1439_v41, 7  ;;  %v3233_v50 = vpop.f32.mrf.mxu0 }
 0x151   : > { %v4157_v16 = vsel %vm1358_vm5, %v3643_v18, %v1412_v15  ;;  %v4160_v21 = vsel %vm1358_vm5, %v1697_v51, %v1708_v6  ;;  %v662_v29 = vadd.s32 192, %v3412_v26  ;;  %v4177_v15 = vld [vmem:[%s4873_s2] ss:$0 sm:$0xff]  ;;  %v663_v7 = vadd.s32 200, %v3412_v26 }
 0x152   : > { %1971 = vrot.lane.b32.xlu1 %v4068_v10, %s3317_s23  ;;  %1963 = vrot.lane.b32.xlu0 %v4096_v31, %s3317_s23  ;;  %v4153_v3 = vsel %vm1358_vm5, %v4149_v5, %v1452_v8  ;;  %4951 = vst [vmem:[#allocation8_spill] sm:$0xff] %v4157_v16  ;;  %v1578_v11 = vsel %vm1358_vm5, %v3998_v45, %v1577_v9  ;;  %v863_v24 = vand.u32 15, %v665_v42  ;;  %v4886_v51 = vrot.slane %v4160_v21, 1  ;;  %v577_v61 = vpop.f32.mrf.mxu0 }
 0x153   : > { %4950 = vst [vmem:[#allocation7_spill] sm:$0xff] %v4153_v3  ;;  %v4172_v18 = vsel %vm1358_vm5, %v3986_v13, %v1700_v39  ;;  %v586_v20 = vadd.f32 %v4177_v15, %v3233_v50  ;;  %v1843_v45 = vshll.u32 %v1578_v11, 16  ;;  %v660_v40 = vadd.s32 176, %v3412_v26 }
 0x154   : > { %v4887_v13 = vrot.slane %v4172_v18, 1  ;;  %v583_v6 = vadd.f32 %v4177_v15, %v3232_v36  ;;  %v575_v8 = vadd.f32 %v4177_v15, %v574_v14  ;;  %vm4193_vm1 = vcmp.eq.s32.totalorder %v863_v24, 15 }
 0x155   : > { %v4197_v39 = vmax.f32 %v586_v20, 0.0  ;;  %v578_v42 = vadd.f32 %v4177_v15, %v577_v61  ;;  %v849_v50 = vand.u32 15, %v663_v7  ;;  %v4955_v36 = vrot.slane %v3714_v1, 1 }
 0x156   : > { %2146 = vrot.lane.b32.xlu1 %v1838_v56, %s3321_s24  ;;  %2071 = vrot.lane.b32.xlu0 %v4111_v54, %s3318_s27  ;;  %v828_v20 = vand.u32 15, %v660_v40  ;;  %v631_v1 = vmax.f32 %v583_v6, 0.0  ;;  %v629_v38 = vmax.f32 %v575_v8, 0.0  ;;  %vm2246_vm0 = vcmask 392192  }
 0x157   : > { %v4212_v14 = vsel %vm1921_vm11, %v4955_v36, %v1937_v58  ;;  %v1193_v7 = vsel %vm4193_vm1, 0.0, %v4197_v39  ;;  %v664_v58 = vadd.s32 208, %v3412_v26  ;;  %vm4229_vm4 = vcmp.eq.s32.totalorder %v849_v50, 15 }
 0x158   : > { %vm1236_vm6 = vcmp.eq.s32.totalorder %v828_v20, 0  ;;  %vm2279_vm1 = vcmask 523264  }
 0x159   : > { %v856_v8 = vand.u32 15, %v664_v58 }
 0x15a   : > { %2044 = vrot.lane.b32.xlu1 %v1838_v56, %s3320_s10  ;;  %1965 = vrot.lane.b32.xlu0 %v4111_v54, %s3317_s23 }
 0x15b   : > { %vm1240_vm7 = vcmp.eq.s32.totalorder %v856_v8, 0 }
 0x15e   : > { %1905 = vrot.lane.b32.xlu1 %v1838_v56, %s3319_s7  ;;  %1895 = vrot.lane.b32.xlu0 %v4139_v47, %s3319_s7  ;;  %v1585_v56 = vor.u32 %v1583_v55, %v4143_v4  ;;  %v842_v55 = vand.u32 15, %v662_v29  ;;  %v1847_v29 = vshrl.u32 %v1578_v11, 16  ;;  %v630_v11 = vmax.f32 %v578_v42, 0.0 }
 0x15f   : > { %v1332_v42 = vsel %vm1236_vm6, 0.0, %v4080_v48  ;;  %vm2378_vm6 = vcmask 916480  }
 0x160   : > { %v4189_v41 = vsel %vm1358_vm5, %v1574_v23, %v1585_v56  ;;  %v4205_v23 = vsel %vm1921_vm11, %v4887_v13, %v4886_v51  ;;  %v4214_v56 = vrot.slane %v1843_v45, 1  ;;  %vm4225_vm2 = vcmp.eq.s32.totalorder %v842_v55, 0 }
 0x161   : > { %4954 = vst [vmem:[#allocation9_spill] sm:$0xff] %v4205_v23  ;;  %v1851_v24 = vshll.u32 %v4189_v41, 16  ;;  %v1211_v45 = vpack.c.bf16 %v1193_v7, %v631_v1  ;;  %v1334_v6 = vsel %vm4225_vm2, 0.0, %v629_v38  ;;  %v1191_v55 = vsel %vm4229_vm4, 0.0, %v630_v11 }
 0x162   : > { %2116 = vrot.lane.b32.xlu1 %v4153_v3, %s3315_s17  ;;  %2106 = vrot.lane.b32.xlu0 %v4157_v16, %s3315_s17  ;;  %v1849_v9 = vor.u32 %v1847_v29, %v4214_v56  ;;  %v1354_v7 = vpack.c.bf16 %v630_v11, %v1334_v6  ;;  %v1210_v58 = vpack.c.bf16 %v1191_v55, %v629_v38  ;;  %vm2312_vm2 = vcmask 654336  }
 0x163   : > { %v4234_v36 = vrot.slane %v1851_v24, 1  ;;  %v1463_v50 = vshrl.u32 %v1211_v45, 16  ;;  %v1814_v24 = vsel %vm1754_vm3, %v4083_v25, %v3917_v62  ;;  %v1353_v61 = vpack.c.bf16 %v4061_v37, %v1332_v42 }
 0x164   : > { %v1466_v40 = vshll.u32 %v1211_v45, 16  ;;  %v1719_v51 = vshrl.u32 %v1354_v7, 16  ;;  %v1336_v62 = vsel %vm1240_vm7, 0.0, %v631_v1  ;;  %v1455_v6 = vshrl.u32 %v1210_v58, 16 }
 0x165   : > { %v1854_v29 = vsel %vm1754_vm3, %v1849_v9, %v4234_v36  ;;  %v4255_v48 = vrot.slane %v1463_v50, 7  ;;  %v1426_v9 = vshll.u32 %v3976_v2, 16  ;;  %v1711_v13 = vshrl.u32 %v1353_v61, 16 }
 0x166   : > { %2010 = vrot.lane.b32.xlu1 %v4153_v3, %s3316_s20  ;;  %2000 = vrot.lane.b32.xlu0 %v4157_v16, %s3316_s20  ;;  %v1355_v8 = vpack.c.bf16 %v4197_v39, %v1336_v62  ;;  %v1721_v42 = vrot.slane %v1719_v51, 7  ;;  %v1722_v45 = vshll.u32 %v1354_v7, 16  ;;  %v1457_v2 = vrot.slane %v1455_v6, 7 }
 0x167   : > { %v1468_v55 = vor.u32 %v1466_v40, %v4255_v48  ;;  %v1428_v37 = vor.u32 %v1426_v9, %v4004_v63  ;;  %v1713_v50 = vrot.slane %v1711_v13, 7  ;;  %v1714_v54 = vshll.u32 %v1353_v61, 16 }
 0x168   : > { %v1458_v63 = vshll.u32 %v1210_v58, 16  ;;  %v1727_v9 = vshrl.u32 %v1355_v8, 16  ;;  %v1066_v51 = vpack.c.bf16 %v630_v11, %v629_v38  ;;  %v1724_v7 = vor.u32 %v1722_v45, %v1721_v42 }
 0x169   : > { %v4268_v0 = vsel %vm1358_vm5, %v1457_v2, %v1468_v55  ;;  %v4272_v3 = vsel %vm1358_vm5, %v3811_v57, %v1428_v37  ;;  %v1716_v13 = vor.u32 %v1714_v54, %v1713_v50  ;;  %v1730_v57 = vshll.u32 %v1355_v8, 16 }
 0x16a   : > { %2081 = vrot.lane.b32.xlu1 %v4205_v23, %s3318_s27  ;;  %2075 = vrot.lane.b32.xlu0 %v4212_v14, %s3318_s27  ;;  %4960 = vst [vmem:[#allocation10_spill] sm:$0xff] %v4268_v0  ;;  %4961 = vst [vmem:[#allocation11_spill] sm:$0xff] %v4272_v3  ;;  %v4281_v61 = vrot.slane %v1727_v9, 7  ;;  %v1588_v62 = vshrl.u32 %v1066_v51, 16  ;;  %v1725_v38 = vsel %vm1358_vm5, %v1713_v50, %v1724_v7  ;;  %v4962_v6 = vrot.slane %v4172_v18, 1 }
 0x16b   : > { %v4294_v54 = vsel %vm1358_vm5, %v4123_v52, %v1716_v13  ;;  %v4963_v55 = vrot.slane %v4019_v60, 1  ;;  %v1947_v8 = vrot.slane %v1725_v38, 1  ;;  %v669_v9 = vadd.s32 248, %v3412_v26 }
 0x16c   : > { %v1590_v50 = vrot.slane %v1588_v62, 7  ;;  %vm2345_vm4 = vcmask 785408  }
 0x16d   : > { %v4305_v37 = vsel %vm1921_vm11, %v4963_v55, %v4962_v6  ;;  %v891_v6 = vand.u32 15, %v669_v9  ;;  %v1830_v55 = vsel %vm1754_vm3, %v4114_v17, %v4070_v32  ;;  %v1855_v32 = vshrl.u32 %v4189_v41, 16 }
 0x16e   : > { %1975 = vrot.lane.b32.xlu1 %v4205_v23, %s3317_s23  ;;  %1969 = vrot.lane.b32.xlu0 %v4212_v14, %s3317_s23  ;;  %4964 = vst [vmem:[#allocation12_spill] sm:$0xff] %v4305_v37  ;;  %v666_v17 = vadd.s32 224, %v3412_v26 }
 0x16f   : > { %vm4349_vm8 = vcmp.eq.s32.totalorder %v891_v6, 15  ;;  %v668_v6 = vadd.s32 240, %v3412_v26  ;;  %v1857_v23 = vor.u32 %v1855_v32, %v4234_v36 }
 0x171   : > { %v4250_v20 = vpop.permute.xlu0 %2096 }
 0x172   : > { %2150 = vrot.lane.b32.xlu1 %v1854_v29, %s3321_s24  ;;  %2140 = vrot.lane.b32.xlu0 %v1814_v24, %s3321_s24 }
 0x175   : > { %v4260_v25 = vpop.permute.xlu0 %1990 }
 0x176   : > { %2048 = vrot.lane.b32.xlu1 %v1854_v29, %s3320_s10  ;;  %2038 = vrot.lane.b32.xlu0 %v1814_v24, %s3320_s10 }
 0x179   : > { %v4274_v40 = vpop.permute.xlu0 %1988 }
 0x17a   : > { %1909 = vrot.lane.b32.xlu1 %v1854_v29, %s3319_s7  ;;  %1899 = vrot.lane.b32.xlu0 %v1814_v24, %s3319_s7  ;;  %v1067_v29 = vpack.c.bf16 %v4197_v39, %v631_v1  ;;  %v1460_v24 = vor.u32 %v1458_v63, %v1457_v2  ;;  %v3236_v39 = vpop.f32.mrf.mxu0  ;;  %v1732_v2 = vor.u32 %v1730_v57, %v4281_v61  ;;  %v1591_v63 = vshll.u32 %v1066_v51, 16 }
 0x17c   : > { %v4298_v1 = vsel %vm1358_vm5, %v4126_v43, %v1460_v24  ;;  %v1596_v45 = vshrl.u32 %v1067_v29, 16  ;;  %v4891_v43 = vrot.slane %v4294_v54, 1  ;;  %v590_v18 = vpop.f32.mrf.mxu0  ;;  %v1599_v13 = vshll.u32 %v1067_v29, 16 }
 0x17d   : > { %v1593_v24 = vor.u32 %v1591_v63, %v1590_v50  ;;  %v4330_v57 = vsel %vm1358_vm5, %v1721_v42, %v1732_v2 }
 0x17e   : > { %2120 = vrot.lane.b32.xlu1 %v4268_v0, %s3315_s17  ;;  %2110 = vrot.lane.b32.xlu0 %v4272_v3, %s3315_s17  ;;  %v4321_v7 = vsel %vm1921_vm11, %v4891_v43, %v1947_v8  ;;  %v4323_v51 = vrot.slane %v1596_v45, 7  ;;  %v3237_v38 = vpop.f32.mrf.mxu0  ;;  %v4894_v29 = vrot.slane %v4330_v57, 1  ;;  %v667_v43 = vadd.s32 232, %v3412_v26 }
 0x17f   : > { %4965 = vst [vmem:[#allocation13_spill] sm:$0xff] %v4321_v7  ;;  %v602_v63 = vadd.f32 %v4177_v15, %v3237_v38  ;;  %v1594_v2 = vsel %vm1358_vm5, %v4143_v4, %v1593_v24  ;;  %v599_v4 = vadd.f32 %v4177_v15, %v3236_v39 }
 0x180   : > { %v1601_v45 = vor.u32 %v1599_v13, %v4323_v51  ;;  %v593_v13 = vpop.f32.mrf.mxu0  ;;  %v4356_v38 = vsel %vm1921_vm11, %v1947_v8, %v4894_v29  ;;  %v877_v29 = vand.u32 15, %v667_v43  ;;  %v884_v43 = vand.u32 15, %v668_v6 }
 0x181   : > { %4968 = vst [vmem:[#allocation14_spill] sm:$0xff] %v4356_v38  ;;  %v4360_v24 = vmax.f32 %v602_v63, 0.0 }
 0x182   : > { %2014 = vrot.lane.b32.xlu1 %v4268_v0, %s3316_s20  ;;  %2004 = vrot.lane.b32.xlu0 %v4272_v3, %s3316_s20  ;;  %v1859_v0 = vshll.u32 %v1594_v2, 16  ;;  %v4366_v41 = vsel %vm1358_vm5, %v1590_v50, %v1601_v45  ;;  %v1863_v50 = vshrl.u32 %v1594_v2, 16  ;;  %v4380_v3 = vmax.f32 %v599_v4, 0.0 }
 0x183   : > { %v4288_v11 = vpop.permute.xlu0 %1955  ;;  %v1197_v8 = vsel %vm4349_vm8, 0.0, %v4360_v24  ;;  %v1867_v45 = vshll.u32 %v4366_v41, 16  ;;  %vm4390_vm9 = vcmp.eq.s32.totalorder %v877_v29, 15  ;;  %vm4418_vm10 = vcmp.eq.s32.totalorder %v884_v43, 0 }
 0x184   : > { %v1213_v36 = vpack.c.bf16 %v1197_v8, %v4380_v3 }
 0x185   : > { %v4290_v58 = vpop.permute.xlu1 %2104 }
 0x186   : > { %2012 = vrot.lane.b32.xlu1 %v4298_v1, %s3316_s20  ;;  %2079 = vrot.lane.b32.xlu0 %v4305_v37, %s3318_s27 }
 0x187   : > { %v4312_v52 = vpop.permute.xlu0 %2063 }
 0x189   : > { %v4315_v60 = vpop.permute.xlu1 %1998 }
 0x18a   : > { %2085 = vrot.lane.b32.xlu1 %v4321_v7, %s3318_s27  ;;  %1973 = vrot.lane.b32.xlu0 %v4305_v37, %s3317_s23  ;;  %v1861_v37 = vrot.slane %v1859_v0, 1 }
 0x18b   : > { %v4332_v62 = vpop.permute.xlu0 %1957 }
 0x18c   : > { %v4399_v32 = vsel %vm1754_vm3, %v1857_v23, %v1861_v37 }
 0x18d   : > { %v4343_v42 = vpop.permute.xlu1 %1996 }
 0x18e   : > { %1979 = vrot.lane.b32.xlu1 %v4321_v7, %s3317_s23  ;;  %2144 = vrot.lane.b32.xlu0 %v1830_v55, %s3321_s24  ;;  %v1442_v7 = vshll.u32 %v4121_v46, 16  ;;  %v594_v46 = vadd.f32 %v4177_v15, %v593_v13  ;;  %v591_v13 = vadd.f32 %v4177_v15, %v590_v18  ;;  %v1865_v15 = vor.u32 %v1863_v50, %v1861_v37 }
 0x18f   : > { %v4405_v18 = vrot.slane %v1867_v45, 1  ;;  %v1479_v37 = vshrl.u32 %v1213_v36, 16 }
 0x190   : > { %v1888_v9 = vpop.permute.xlu0 %1887  ;;  %v1444_v16 = vor.u32 %v1442_v7, %v4149_v5  ;;  %v4388_v0 = vmax.f32 %v594_v46, 0.0  ;;  %v1340_v46 = vsel %vm4418_vm10, 0.0, %v4380_v3  ;;  %v4978_v5 = vrot.slane %v4160_v21, 1 }
 0x191   : > { %v1870_v6 = vsel %vm1754_vm3, %v1865_v15, %v4405_v18 }
 0x192   : > { %2087 = vrot.lane.b32.xlu1 %v4356_v38, %s3318_s27  ;;  %2042 = vrot.lane.b32.xlu0 %v1830_v55, %s3320_s10  ;;  %v4403_v26 = vsel %vm1358_vm5, %v3984_v19, %v1444_v16  ;;  %v1195_v29 = vsel %vm4390_vm9, 0.0, %v4388_v0  ;;  %v4422_v16 = vmax.f32 %v591_v13, 0.0  ;;  %v4977_v13 = vrot.slane %v4294_v54, 1 }
 0x193   : > { %4971 = vst [vmem:[#allocation15_spill] sm:$0xff] %v4403_v26  ;;  %v1357_v54 = vpack.c.bf16 %v4360_v24, %v1340_v46 }
 0x194   : > { %v4373_v39 = vpop.permute.xlu1 %2036  ;;  %v4375_v63 = vpop.permute.xlu0 %2028  ;;  %v1212_v8 = vpack.c.bf16 %v1195_v29, %v4422_v16  ;;  %v4447_v15 = vsel %vm1921_vm11, %v4978_v5, %v4977_v13  ;;  %v4449_v29 = vrot.slane %v1479_v37, 7 }
 0x195   : > { %4979 = vst [vmem:[#allocation17_spill] sm:$0xff] %v4447_v15 }
 0x196   : > { %1981 = vrot.lane.b32.xlu1 %v4356_v38, %s3317_s23  ;;  %1903 = vrot.lane.b32.xlu0 %v1830_v55, %s3319_s7  ;;  %v870_v55 = vand.u32 15, %v666_v17  ;;  %v2167_v17 = vsel %vm2165_vm15, 0, %v1888_v9  ;;  %v1471_v9 = vshrl.u32 %v1212_v8, 16  ;;  %v1743_v38 = vshrl.u32 %v1357_v54, 16 }
 0x197   : > { %v2215_v21 = vsel %vm2213_vm13, %v2167_v17, %v4288_v11 }
 0x198   : > { %v4394_v7 = vpop.permute.xlu1 %1897  ;;  %v4396_v2 = vpop.permute.xlu0 %1889  ;;  %vm4433_vm12 = vcmp.eq.s32.totalorder %v870_v55, 0  ;;  %v1482_v55 = vshll.u32 %v1213_v36, 16  ;;  %v2248_v50 = vsel %vm2246_vm0, %v2215_v21, %v4274_v40  ;;  %v1473_v46 = vrot.slane %v1471_v9, 7 }
 0x199   : > { %v1338_v19 = vsel %vm4433_vm12, 0.0, %v4422_v16  ;;  %v1745_v40 = vrot.slane %v1743_v38, 7  ;;  %v1746_v9 = vshll.u32 %v1357_v54, 16  ;;  %v2170_v38 = vsel %vm2165_vm15, %v3566_v28, %v4396_v2 }
 0x19a   : > { %1911 = vrot.lane.b32.xlu1 %v4399_v32, %s3319_s7  ;;  %2114 = vrot.lane.b32.xlu0 %v4403_v26, %s3315_s17  ;;  %v1484_v36 = vor.u32 %v1482_v55, %v4449_v29  ;;  %v1356_v5 = vpack.c.bf16 %v4388_v0, %v1338_v19  ;;  %v1846_v55 = vsel %vm1754_vm3, %v4134_v44, %v4214_v56  ;;  %v1474_v19 = vshll.u32 %v1212_v8, 16 }
 0x19b   : > { %v1753_v28 = vsel %vm3542_vm14, %v1745_v40, 0 }
 0x19c   : > { %v4414_v23 = vpop.permute.xlu1 %2108  ;;  %v4416_v4 = vpop.permute.xlu0 %2098  ;;  %v1476_v44 = vor.u32 %v1474_v19, %v1473_v46  ;;  %v1738_v8 = vshll.u32 %v1356_v5, 16 }
 0x19e   : > { %2154 = vrot.lane.b32.xlu1 %v1870_v6, %s3321_s24  ;;  %2008 = vrot.lane.b32.xlu0 %v4403_v26, %s3316_s20  ;;  %v1485_v26 = vsel %vm1358_vm5, %v1473_v46, %v1484_v36  ;;  %v2217_v46 = vsel %vm2213_vm13, %v2170_v38, %v4332_v62 }
 0x19f   : > { %v2250_v19 = vsel %vm2246_vm0, %v2217_v46, %v4260_v25 }
 0x1a0   : > { %v4437_v45 = vpop.permute.xlu1 %2002  ;;  %v4439_v43 = vpop.permute.xlu0 %1992 }
 0x1a1   : > { %4976 = vst [vmem:[#allocation16_spill] sm:$0xff] %v4437_v45 }
 0x1a2   : > { %2052 = vrot.lane.b32.xlu1 %v1870_v6, %s3320_s10  ;;  %2083 = vrot.lane.b32.xlu0 %v4447_v15, %s3318_s27 }
 0x1a4   : > { %v4460_v13 = vpop.permute.xlu1 %2073  ;;  %v2066_v37 = vpop.permute.xlu0 %2065 }
 0x1a6   : > { %1913 = vrot.lane.b32.xlu1 %v1870_v6, %s3319_s7  ;;  %1977 = vrot.lane.b32.xlu0 %v4447_v15, %s3317_s23  ;;  %v1735_v6 = vshrl.u32 %v1356_v5, 16  ;;  %v2281_v15 = vsel %vm2279_vm1, %v2248_v50, %v4375_v63  ;;  %v1748_v63 = vor.u32 %v1746_v9, %v1745_v40  ;;  %v4497_v5 = vsel %vm1358_vm5, %v4255_v48, %v1476_v44 }
 0x1a7   : > { %v2314_v36 = vsel %vm2312_vm2, %v2281_v15, %v4312_v52 }
 0x1a8   : > { %v4469_v11 = vpop.permute.xlu1 %1967  ;;  %v1960_v17 = vpop.permute.xlu0 %1959  ;;  %v1737_v56 = vrot.slane %v1735_v6, 7  ;;  %v2347_v50 = vsel %vm2345_vm4, %v2314_v36, %v4250_v20  ;;  %v1068_v20 = vpack.c.bf16 %v4388_v0, %v4422_v16  ;;  %v4515_v6 = vrot.slane %v1753_v28, 1 }
 0x1aa   : > { %2124 = vrot.lane.b32.xlu1 %v1485_v26, %s3315_s17  ;;  %2148 = vrot.lane.b32.xlu0 %v1846_v55, %s3321_s24  ;;  %v1749_v62 = vsel %vm1358_vm5, %v1737_v56, %v1748_v63  ;;  %v1604_v40 = vshrl.u32 %v1068_v20, 16 }
 0x1ab   : > { %v1953_v16 = vrot.slane %v1749_v62, 1 }
 0x1ac   : > { %v4479_v21 = vpop.permute.xlu1 %2142  ;;  %v4481_v45 = vpop.permute.xlu0 %2067  ;;  %v1606_v63 = vrot.slane %v1604_v40, 7 }
 0x1ae   : > { %2018 = vrot.lane.b32.xlu1 %v1485_v26, %s3316_s20  ;;  %2046 = vrot.lane.b32.xlu0 %v1846_v55, %s3320_s10  ;;  %v1740_v26 = vor.u32 %v1738_v8, %v1737_v56  ;;  %v4531_v56 = vsel %vm1921_vm11, %v1953_v16, %v4515_v6 }
 0x1b0   : > { %v4490_v54 = vpop.permute.xlu1 %2040  ;;  %v2133_v52 = vpop.permute.xlu0 %2132  ;;  %v1741_v0 = vsel %vm1358_vm5, %v4281_v61, %v1740_v26  ;;  %v4980_v26 = vrot.slane %v4330_v57, 1 }
 0x1b1   : > { %v2380_v15 = vsel %vm2378_vm6, %v2347_v50, %v2133_v52  ;;  %v1951_v8 = vrot.slane %v1741_v0, 1  ;;  %v1607_v50 = vshll.u32 %v1068_v20, 16 }
 0x1b2   : > { %2122 = vrot.lane.b32.xlu1 %v4497_v5, %s3315_s17  ;;  %1907 = vrot.lane.b32.xlu0 %v1846_v55, %s3319_s7 }
 0x1b3   : > { %2568 = vmatmul.mubr.bf16.vlgmr.msra.gmra.mxu0 %v2380_v15  ;;  %v4550_v46 = vsel %vm1921_vm11, %v4980_v26, %v1951_v8  ;;  %v4577_v0 = vsel %vm1921_vm11, %v1951_v8, %v1953_v16 }
 0x1b4   : > { %2988 = vmatprep.mubr.msk.bf16.mxu0 %vm2165_vm15, %v3969_v22  ;;  %v4510_v48 = vpop.permute.xlu1 %1901  ;;  %v2031_v2 = vpop.permute.xlu0 %2030 }
 0x1b5   : > { %v2283_v55 = vsel %vm2279_vm1, %v2250_v19, %v2031_v2 }
 0x1b6   : > { %2016 = vrot.lane.b32.xlu1 %v4497_v5, %s3316_s20  ;;  %2118 = vrot.lane.b32.xlu0 %v4298_v1, %s3315_s17  ;;  %v2316_v25 = vsel %vm2312_vm2, %v2283_v55, %v2066_v37  ;;  %v1386_v37 = vshll.u32 %v3657_v35, 16 }
 0x1b8   : > { %v4524_v9 = vpop.permute.xlu1 %2112  ;;  %v1892_v36 = vpop.permute.xlu0 %1891  ;;  %v1388_v35 = vor.u32 %v1386_v37, %v3733_v30 }
 0x1b9   : > { %v2173_v44 = vsel %vm2165_vm15, %v3489_v34, %v1892_v36  ;;  %v1069_v34 = vpack.c.bf16 %v4360_v24, %v4380_v3  ;;  %v1609_v24 = vor.u32 %v1607_v50, %v1606_v63 }
 0x1ba   : > { %v2219_v38 = vsel %vm2213_vm13, %v2173_v44, %v1960_v17  ;;  %2093 = vrot.lane.b32.xlu1 %v4531_v56, %s3318_s27  ;;  %2152 = vrot.lane.b32.xlu0 %v4399_v32, %s3321_s24  ;;  %v2349_v17 = vsel %vm2345_vm4, %v2316_v25, %v4416_v4  ;;  %v1389_v30 = vsel %vm1358_vm5, %v3820_v27, %v1388_v35  ;;  %v1871_v27 = vshrl.u32 %v4366_v41, 16 }
 0x1bb   : > { %v2252_v61 = vsel %vm2246_vm0, %v2219_v38, %v4439_v43  ;;  %v1612_v3 = vshrl.u32 %v1069_v34, 16  ;;  %v1615_v2 = vshll.u32 %v1069_v34, 16  ;;  %v1610_v55 = vsel %vm1358_vm5, %v4323_v51, %v1609_v24 }
 0x1bc   : > { %v4543_v52 = vpop.permute.xlu1 %2006  ;;  %v2135_v15 = vpop.permute.xlu0 %2134  ;;  %v1873_v44 = vor.u32 %v1871_v27, %v4405_v18 }
 0x1bd   : > { %v2383_v43 = vsel %vm2378_vm6, %v2349_v17, %v2135_v15  ;;  %v1614_v20 = vrot.slane %v1612_v3, 7 }
 0x1be   : > { %2089 = vrot.lane.b32.xlu1 %v4550_v46, %s3318_s27  ;;  %2050 = vrot.lane.b32.xlu0 %v4399_v32, %s3320_s10 }
 0x1bf   : > { %2576 = vmatmul.mubr.bf16.gmra.mxu0 %v2383_v43  ;;  %v1617_v40 = vor.u32 %v1615_v2, %v1614_v20 }
 0x1c0   : > { %2989 = vmatprep.mubr.msk.bf16.mxu0 %vm2165_vm15, %v4096_v31  ;;  %v4560_v57 = vpop.permute.xlu1 %2077  ;;  %v2033_v4 = vpop.permute.xlu0 %2032 }
 0x1c1   : > { %v2285_v28 = vsel %vm2279_vm1, %v2252_v61, %v2033_v4  ;;  %v1618_v8 = vsel %vm1358_vm5, %v1606_v63, %v1617_v40  ;;  %v1879_v4 = vshrl.u32 %v1610_v55, 16 }
 0x1c2   : > { %1983 = vrot.lane.b32.xlu1 %v4550_v46, %s3317_s23  ;;  %2100 = vrot.lane.b32.xlu0 %v1389_v30, %s3315_s17  ;;  %v4570_v32 = vsel %vm2312_vm2, %v2285_v28, %v4481_v45  ;;  %v1875_v45 = vshll.u32 %v1610_v55, 16  ;;  %v1883_v18 = vshll.u32 %v1618_v8, 16  ;;  %v2020_v34 = vshrl.u32 %v1618_v8, 16 }
 0x1c4   : > { %v4572_v62 = vpop.permute.xlu1 %1971  ;;  %v1964_v19 = vpop.permute.xlu0 %1963  ;;  %v1877_v51 = vrot.slane %v1875_v45, 1  ;;  %v1885_v63 = vrot.slane %v1883_v18, 1 }
 0x1c6   : > { %2091 = vrot.lane.b32.xlu1 %v4577_v0, %s3318_s27  ;;  %2136 = vrot.lane.b32.xlu0 %v4139_v47, %s3321_s24  ;;  %v1878_v38 = vsel %vm1754_vm3, %v1873_v44, %v1877_v51  ;;  %v1881_v2 = vor.u32 %v1879_v4, %v1877_v51 }
 0x1c8   : > { %v4584_v36 = vpop.permute.xlu1 %2146  ;;  %v2072_v25 = vpop.permute.xlu0 %2071 }
 0x1ca   : > { %1985 = vrot.lane.b32.xlu1 %v4577_v0, %s3317_s23  ;;  %1893 = vrot.lane.b32.xlu0 %v4037_v59, %s3319_s7  ;;  %v1622_v59 = vsel %vm3542_vm14, %v1614_v20, 0 }
 0x1cb   : > { %v2024_v50 = vshll.u32 %v1622_v59, 16 }
 0x1cc   : > { %v4591_v41 = vpop.permute.xlu1 %2044  ;;  %v1966_v16 = vpop.permute.xlu0 %1965 }
 0x1cd   : > { %v2026_v43 = vrot.slane %v2024_v50, 1  ;;  %v4981_v50 = vld [vmem:[#allocation2_spill] sm:$0xff] }
 0x1ce   : > { %2156 = vrot.lane.b32.xlu1 %v1878_v38, %s3321_s24  ;;  %1961 = vrot.lane.b32.xlu0 %v3969_v22, %s3317_s23  ;;  %v2022_v22 = vor.u32 %v2020_v34, %v1885_v63 }
 0x1d0   : > { %v4598_v61 = vpop.permute.xlu1 %1905  ;;  %v1896_v37 = vpop.permute.xlu0 %1895  ;;  %v2027_v28 = vsel %vm1754_vm3, %v2022_v22, %v2026_v43 }
 0x1d1   : > { %v2179_v26 = vsel %vm2165_vm15, %v1389_v30, %v1896_v37 }
 0x1d2   : > { %2054 = vrot.lane.b32.xlu1 %v1878_v38, %s3320_s10  ;;  %1994 = vrot.lane.b32.xlu0 %v1389_v30, %s3316_s20  ;;  %v2223_v35 = vsel %vm2213_vm13, %v2179_v26, %v1964_v19 }
 0x1d3   : > { %v2256_v30 = vsel %vm2246_vm0, %v2223_v35, %v4343_v42  ;;  %v2182_v42 = vsel %vm2165_vm15, %v3746_v49, %v4394_v7  ;;  %v4982_v35 = vld [vmem:[#allocation11_spill] sm:$0xff] }
 0x1d4   : > { %v4604_v15 = vpop.permute.xlu1 %2116  ;;  %v2107_v17 = vpop.permute.xlu0 %2106  ;;  %v2289_v19 = vsel %vm2279_vm1, %v2256_v30, %v4373_v39  ;;  %v2225_v51 = vsel %vm2213_vm13, %v2182_v42, %v1966_v16 }
 0x1d5   : > { %v2322_v45 = vsel %vm2312_vm2, %v2289_v19, %v2072_v25 }
 0x1d6   : > { %1915 = vrot.lane.b32.xlu1 %v1878_v38, %s3319_s7  ;;  %2034 = vrot.lane.b32.xlu0 %v4139_v47, %s3320_s10  ;;  %v2355_v39 = vsel %vm2345_vm4, %v2322_v45, %v4290_v58  ;;  %v2128_v38 = vshrl.u32 %v1622_v59, 16 }
 0x1d8   : > { %v4611_v3 = vpop.permute.xlu1 %2010  ;;  %v2001_v24 = vpop.permute.xlu0 %2000  ;;  %v2130_v34 = vor.u32 %v2128_v38, %v2026_v43 }
 0x1da   : > { %2160 = vrot.lane.b32.xlu1 %v2027_v28, %s3321_s24  ;;  %2069 = vrot.lane.b32.xlu0 %v4096_v31, %s3318_s27  ;;  %v1886_v31 = vsel %vm1754_vm3, %v1881_v2, %v1885_v63 }
 0x1dc   : > { %v4619_v20 = vpop.permute.xlu1 %2081  ;;  %v2076_v47 = vpop.permute.xlu0 %2075 }
 0x1de   : > { %2058 = vrot.lane.b32.xlu1 %v2027_v28, %s3320_s10  ;;  %2102 = vrot.lane.b32.xlu0 %v3746_v49, %s3315_s17  ;;  %v2258_v49 = vsel %vm2246_vm0, %v2225_v51, %v4315_v60  ;;  %v1491_v60 = vsel %vm3542_vm14, %v4449_v29, 0 }
 0x1e0   : > { %v4626_v55 = vpop.permute.xlu1 %1975  ;;  %v1970_v27 = vpop.permute.xlu0 %1969 }
 0x1e2   : > { %2158 = vrot.lane.b32.xlu1 %v1886_v31, %s3321_s24  ;;  %2138 = vrot.lane.b32.xlu0 %v3815_v53, %s3321_s24 }
 0x1e4   : > { %v4636_v40 = vpop.permute.xlu1 %2150  ;;  %v2141_v44 = vpop.permute.xlu0 %2140 }
 0x1e5   : > { %v2392_v8 = vsel %vm2378_vm6, %v2355_v39, %v2141_v44  ;;  %v4984_v44 = vld [vmem:[#allocation12_spill] sm:$0xff] }
 0x1e6   : > { %2056 = vrot.lane.b32.xlu1 %v1886_v31, %s3320_s10  ;;  %2600 = vmatmul.mubr.bf16.vlgmr.msra.gmra.mxu1 %v2392_v8  ;;  %v4985_v39 = vld [vmem:[#allocation16_spill] sm:$0xff] }
 0x1e7   : > { %2992 = vmatprep.mubr.msk.bf16.mxu1 %vm2165_vm15, %v4212_v14 }
 0x1e8   : > { %v4645_v53 = vpop.permute.xlu1 %2048  ;;  %v2039_v7 = vpop.permute.xlu0 %2038 }
 0x1e9   : > { %v2291_v25 = vsel %vm2279_vm1, %v2258_v49, %v2039_v7 }
 0x1ea   : > { %v2324_v58 = vsel %vm2312_vm2, %v2291_v25, %v4460_v13  ;;  %1917 = vrot.lane.b32.xlu1 %v1886_v31, %s3319_s7  ;;  %v4986_v25 = vld [vmem:[#allocation9_spill] sm:$0xff] }
 0x1eb   : > { %v2357_v16 = vsel %vm2345_vm4, %v2324_v58, %v2107_v17  ;;  %v2131_v17 = vsel %vm1754_vm3, %v2130_v34, %v4981_v50 }
 0x1ec   : > { %v1910_v18 = vpop.permute.xlu1 %1909  ;;  %v1900_v37 = vpop.permute.xlu0 %1899  ;;  %v2395_v14 = vsel %vm2378_vm6, %v2357_v16, %v4479_v21  ;;  %v4987_v16 = vld [vmem:[#allocation3_spill] sm:$0xff] }
 0x1ed   : > { %v2185_v63 = vsel %vm2165_vm15, %v3669_v33, %v1900_v37  ;;  %v2194_v33 = vsel %vm2165_vm15, %v4982_v35, %v4598_v61 }
 0x1ee   : > { %2126 = vrot.lane.b32.xlu1 %v1491_v60, %s3315_s17  ;;  %2608 = vmatmul.mubr.bf16.gmra.mxu1 %v2395_v14  ;;  %v2227_v12 = vsel %vm2213_vm13, %v2185_v63, %v4469_v11  ;;  %v4988_v14 = vld [vmem:[#allocation7_spill] sm:$0xff] }
 0x1ef   : > { %2993 = vmatprep.mubr.msk.bf16.mxu1 %vm2165_vm15, %v4068_v10  ;;  %v2260_v26 = vsel %vm2246_vm0, %v2227_v12, %v2001_v24  ;;  %v4983_v24 = vld [vmem:[#allocation8_spill] sm:$0xff] }
 0x1f0   : > { %v2121_v13 = vpop.permute.xlu1 %2120  ;;  %v2111_v59 = vpop.permute.xlu0 %2110  ;;  %v2293_v10 = vsel %vm2279_vm1, %v2260_v26, %v4490_v54  ;;  %v2188_v19 = vsel %vm2165_vm15, %v4983_v24, %v4510_v48 }
 0x1f1   : > { %v2326_v11 = vsel %vm2312_vm2, %v2293_v10, %v2076_v47  ;;  %v2229_v61 = vsel %vm2213_vm13, %v2188_v19, %v1970_v27 }
 0x1f2   : > { %2162 = vrot.lane.b32.xlu1 %v2131_v17, %s3321_s24  ;;  %v2359_v45 = vsel %vm2345_vm4, %v2326_v11, %v4414_v23 }
 0x1f4   : > { %v2015_v29 = vpop.permute.xlu1 %2014  ;;  %v2005_v21 = vpop.permute.xlu0 %2004 }
 0x1f8   : > { %v2013_v22 = vpop.permute.xlu1 %2012  ;;  %v2080_v43 = vpop.permute.xlu0 %2079 }
 0x1fc   : > { %v4675_v4 = vpop.permute.xlu1 %2085  ;;  %v1974_v28 = vpop.permute.xlu0 %1973 }
 0x1fd   : > { %v2233_v30 = vsel %vm2213_vm13, %v2194_v33, %v1974_v28 }
 0x1fe   : > { %v2266_v2 = vsel %vm2246_vm0, %v2233_v30, %v4543_v52  ;;  %v2262_v52 = vsel %vm2246_vm0, %v2229_v61, %v4985_v39 }
 0x200   : > { %v1980_v31 = vpop.permute.xlu1 %1979  ;;  %v2145_v54 = vpop.permute.xlu0 %2144 }
 0x201   : > { %v2398_v42 = vsel %vm2378_vm6, %v2359_v45, %v2145_v54 }
 0x202   : > { %2616 = vmatmul.mubr.bf16.gmra.mxu1 %v2398_v42 }
 0x203   : > { %2994 = vmatprep.mubr.msk.bf16.mxu1 %vm2165_vm15, %v4984_v44 }
 0x204   : > { %v2088_v47 = vpop.permute.xlu1 %2087  ;;  %v2043_v51 = vpop.permute.xlu0 %2042 }
 0x205   : > { %v2295_v48 = vsel %vm2279_vm1, %v2262_v52, %v2043_v51  ;;  %v4991_v52 = vld [vmem:[#allocation5_spill] sm:$0xff] }
 0x206   : > { %v2328_v8 = vsel %vm2312_vm2, %v2295_v48, %v4560_v57 }
 0x207   : > { %v2361_v23 = vsel %vm2345_vm4, %v2328_v8, %v2111_v59 }
 0x208   : > { %v1982_v49 = vpop.permute.xlu1 %1981  ;;  %v1904_v27 = vpop.permute.xlu0 %1903  ;;  %v2401_v7 = vsel %vm2378_vm6, %v2361_v23, %v4584_v36 }
 0x209   : > { %v2191_v37 = vsel %vm2165_vm15, %v4987_v16, %v1904_v27 }
 0x20a   : > { %2624 = vmatmul.mubr.bf16.gmra.mxu1 %v2401_v7  ;;  %v2231_v57 = vsel %vm2213_vm13, %v2191_v37, %v4572_v62  ;;  %v4989_v62 = vld [vmem:[#allocation15_spill] sm:$0xff] }
 0x20b   : > { %2995 = vmatprep.mubr.msk.bf16.mxu1 %vm2165_vm15, %v4986_v25  ;;  %v2264_v36 = vsel %vm2246_vm0, %v2231_v57, %v2005_v21  ;;  %v2200_v30 = vsel %vm2165_vm15, %v4989_v62, %v1910_v18 }
 0x20c   : > { %v1912_v38 = vpop.permute.xlu1 %1911  ;;  %v2115_v58 = vpop.permute.xlu0 %2114  ;;  %v2297_v33 = vsel %vm2279_vm1, %v2264_v36, %v4591_v41 }
 0x20d   : > { %v2203_v60 = vsel %vm2165_vm15, %v4988_v14, %v1912_v38  ;;  %v2330_v19 = vsel %vm2312_vm2, %v2297_v33, %v2080_v43  ;;  %v4993_v38 = vld [vmem:[#allocation14_spill] sm:$0xff] }
 0x20e   : > { %v2239_v63 = vsel %vm2213_vm13, %v2203_v60, %v1980_v31  ;;  %v2363_v18 = vsel %vm2345_vm4, %v2330_v19, %v4524_v9 }
 0x20f   : > { %v2272_v17 = vsel %vm2246_vm0, %v2239_v63, %v2013_v22 }
 0x210   : > { %v2155_v34 = vpop.permute.xlu1 %2154  ;;  %v2009_v59 = vpop.permute.xlu0 %2008 }
 0x214   : > { %v2053_v12 = vpop.permute.xlu1 %2052  ;;  %v2084_v26 = vpop.permute.xlu0 %2083 }
 0x215   : > { %v2305_v10 = vsel %vm2279_vm1, %v2272_v17, %v2053_v12  ;;  %v4994_v12 = vld [vmem:[#allocation6_spill] sm:$0xff] }
 0x216   : > { %v2338_v35 = vsel %vm2312_vm2, %v2305_v10, %v2088_v47 }
 0x217   : > { %v2371_v28 = vsel %vm2345_vm4, %v2338_v35, %v2121_v13 }
 0x218   : > { %v1914_v11 = vpop.permute.xlu1 %1913  ;;  %v1978_v24 = vpop.permute.xlu0 %1977 }
 0x219   : > { %v2206_v21 = vsel %vm2165_vm15, %v4298_v1, %v1914_v11  ;;  %v2237_v22 = vsel %vm2213_vm13, %v2200_v30, %v1978_v24  ;;  %v4990_v1 = vld [vmem:[#allocation17_spill] sm:$0xff] }
 0x21a   : > { %v2241_v31 = vsel %vm2213_vm13, %v2206_v21, %v1982_v49  ;;  %v2270_v54 = vsel %vm2246_vm0, %v2237_v22, %v4611_v3  ;;  %v4995_v21 = vld [vmem:[#allocation4_spill] sm:$0xff] }
 0x21b   : > { %v2274_v41 = vsel %vm2246_vm0, %v2241_v31, %v2015_v29 }
 0x21c   : > { %v4724_v13 = vpop.permute.xlu1 %2124  ;;  %v2149_v45 = vpop.permute.xlu0 %2148 }
 0x21d   : > { %v2404_v61 = vsel %vm2378_vm6, %v2363_v18, %v2149_v45 }
 0x21e   : > { %2632 = vmatmul.mubr.bf16.gmra.mxu1 %v2404_v61 }
 0x21f   : > { %2996 = vmatprep.mubr.msk.bf16.mxu1 %vm2165_vm15, %v4990_v1 }
 0x220   : > { %v4731_v43 = vpop.permute.xlu1 %2018  ;;  %v2047_v42 = vpop.permute.xlu0 %2046 }
 0x221   : > { %v2299_v44 = vsel %vm2279_vm1, %v2266_v2, %v2047_v42  ;;  %v4992_v2 = vld [vmem:[#allocation13_spill] sm:$0xff] }
 0x222   : > { %v2332_v3 = vsel %vm2312_vm2, %v2299_v44, %v4619_v20 }
 0x223   : > { %v2365_v29 = vsel %vm2345_vm4, %v2332_v3, %v2115_v58 }
 0x224   : > { %v2123_v47 = vpop.permute.xlu1 %2122  ;;  %v1908_v39 = vpop.permute.xlu0 %1907  ;;  %v2407_v9 = vsel %vm2378_vm6, %v2365_v29, %v4636_v40 }
 0x225   : > { %v2197_v51 = vsel %vm2165_vm15, %v4991_v52, %v1908_v39 }
 0x226   : > { %v2235_v48 = vsel %vm2213_vm13, %v2197_v51, %v4626_v55  ;;  %2640 = vmatmul.mubr.bf16.gmra.mxu1 %v2407_v9 }
 0x227   : > { %v2268_v8 = vsel %vm2246_vm0, %v2235_v48, %v2009_v59  ;;  %2997 = vmatprep.mubr.msk.bf16.mxu1 %vm2165_vm15, %v4992_v2 }
 0x228   : > { %v2017_v20 = vpop.permute.xlu1 %2016  ;;  %v2119_v23 = vpop.permute.xlu0 %2118  ;;  %v2301_v49 = vsel %vm2279_vm1, %v2268_v8, %v4645_v53 }
 0x229   : > { %v2334_v27 = vsel %vm2312_vm2, %v2301_v49, %v2084_v26 }
 0x22a   : > { %v2367_v25 = vsel %vm2345_vm4, %v2334_v27, %v4604_v15 }
 0x22c   : > { %v4749_v40 = vpop.permute.xlu1 %2093  ;;  %v2153_v7 = vpop.permute.xlu0 %2152 }
 0x22d   : > { %v2410_v55 = vsel %vm2378_vm6, %v2367_v25, %v2153_v7 }
 0x22e   : > { %2648 = vmatmul.mubr.bf16.gmra.mxu1 %v2410_v55 }
 0x22f   : > { %2998 = vmatprep.mubr.msk.bf16.mxu1 %vm2165_vm15, %v4993_v38 }
 0x230   : > { %v2090_v58 = vpop.permute.xlu1 %2089  ;;  %v2051_v16 = vpop.permute.xlu0 %2050 }
 0x231   : > { %v2303_v37 = vsel %vm2279_vm1, %v2270_v54, %v2051_v16 }
 0x232   : > { %v2336_v53 = vsel %vm2312_vm2, %v2303_v37, %v4675_v4 }
 0x233   : > { %v2369_v14 = vsel %vm2345_vm4, %v2336_v53, %v2119_v23 }
 0x234   : > { %v1984_v60 = vpop.permute.xlu1 %1983  ;;  %v2101_v57 = vpop.permute.xlu0 %2100  ;;  %v2413_v59 = vsel %vm2378_vm6, %v2369_v14, %v2155_v34 }
 0x235   : > { %v2351_v15 = vsel %vm2345_vm4, %v4570_v32, %v2101_v57 }
 0x236   : > { %2656 = vmatmul.mubr.bf16.gmra.mxu1 %v2413_v59 }
 0x237   : > { %2999 = vmatprep.mubr.msk.bf16.mxu1 %vm2165_vm15, %v4550_v46 }
 0x238   : > { %v2092_v63 = vpop.permute.xlu1 %2091  ;;  %v2137_v36 = vpop.permute.xlu0 %2136 }
 0x239   : > { %v2386_v17 = vsel %vm2378_vm6, %v2351_v15, %v2137_v36 }
 0x23a   : > { %2584 = vmatmul.mubr.bf16.gmra.mxu0 %v2386_v17 }
 0x23b   : > { %2990 = vmatprep.mubr.msk.bf16.mxu0 %vm2165_vm15, %v4994_v12 }
 0x23c   : > { %v1986_v4 = vpop.permute.xlu1 %1985  ;;  %v1894_v26 = vpop.permute.xlu0 %1893 }
 0x23d   : > { %v2176_v22 = vsel %vm2165_vm15, %v4995_v21, %v1894_v26 }
 0x240   : > { %v2157_v10 = vpop.permute.xlu1 %2156  ;;  %v1962_v35 = vpop.permute.xlu0 %1961 }
 0x241   : > { %v2416_v34 = vsel %vm2378_vm6, %v2371_v28, %v2157_v10  ;;  %v2221_v19 = vsel %vm2213_vm13, %v2176_v22, %v1962_v35 }
 0x242   : > { %2664 = vmatmul.mubr.bf16.gmra.mxu1 %v2416_v34 }
 0x243   : > { %3000 = vmatprep.mubr.msk.bf16.mxu1 %vm2165_vm15, %v4577_v0  ;;  %v4996_v0 = vld [vmem:[#allocation10_spill] sm:$0xff] }
 0x244   : > { %v2055_v46 = vpop.permute.xlu1 %2054  ;;  %v1995_v32 = vpop.permute.xlu0 %1994 }
 0x245   : > { %v2307_v24 = vsel %vm2279_vm1, %v2274_v41, %v2055_v46  ;;  %v2254_v45 = vsel %vm2246_vm0, %v2221_v19, %v1995_v32 }
 0x246   : > { %v2340_v28 = vsel %vm2312_vm2, %v2307_v24, %v2090_v58 }
 0x247   : > { %v2373_v3 = vsel %vm2345_vm4, %v2340_v28, %v2123_v47 }
 0x248   : > { %v1916_v33 = vpop.permute.xlu1 %1915  ;;  %v2035_v62 = vpop.permute.xlu0 %2034 }
 0x249   : > { %v2209_v18 = vsel %vm2165_vm15, %v4996_v0, %v1916_v33  ;;  %v2287_v61 = vsel %vm2279_vm1, %v2254_v45, %v2035_v62 }
 0x24a   : > { %v2243_v29 = vsel %vm2213_vm13, %v2209_v18, %v1984_v60 }
 0x24b   : > { %v2276_v52 = vsel %vm2246_vm0, %v2243_v29, %v2017_v20 }
 0x24c   : > { %v2161_v30 = vpop.permute.xlu1 %2160  ;;  %v2070_v11 = vpop.permute.xlu0 %2069 }
 0x24d   : > { %v2320_v1 = vsel %vm2312_vm2, %v2287_v61, %v2070_v11 }
 0x250   : > { %v2059_v31 = vpop.permute.xlu1 %2058  ;;  %v2103_v54 = vpop.permute.xlu0 %2102 }
 0x251   : > { %v2353_v41 = vsel %vm2345_vm4, %v2320_v1, %v2103_v54 }
 0x254   : > { %v2159_v42 = vpop.permute.xlu1 %2158  ;;  %v2139_v44 = vpop.permute.xlu0 %2138 }
 0x255   : > { %v2389_v39 = vsel %vm2378_vm6, %v2353_v41, %v2139_v44  ;;  %v2419_v9 = vsel %vm2378_vm6, %v2373_v3, %v2159_v42 }
 0x256   : > { %2592 = vmatmul.mubr.bf16.gmra.mxu0 %v2389_v39  ;;  %2672 = vmatmul.mubr.bf16.gmra.mxu1 %v2419_v9 }
 0x257   : > { %3001 = vmatprep.mubr.msk.bf16.mxu1 %vm2165_vm15, %v4531_v56  ;;  %v2164_v56 = vsel %vm1921_vm11, %v4515_v6, %v4981_v50  ;;  %v4811_v6 = vld [vmem:[%s4875_s4] ss:$0 sm:$0xff] }
 0x258   : > { %v2057_v51 = vpop.permute.xlu1 %2056 }
 0x259   : > { %v2309_v48 = vsel %vm2279_vm1, %v2276_v52, %v2057_v51 }
 0x25a   : > { %v2342_v8 = vsel %vm2312_vm2, %v2309_v48, %v2092_v63 }
 0x25b   : > { %v2375_v47 = vsel %vm2345_vm4, %v2342_v8, %v4724_v13 }
 0x25c   : > { %v1918_v2 = vpop.permute.xlu1 %1917  ;;  %v2422_v23 = vsel %vm2378_vm6, %v2375_v47, %v2161_v30 }
 0x25d   : > { %v2212_v49 = vsel %vm2165_vm15, %v4497_v5, %v1918_v2 }
 0x25e   : > { %v2245_v27 = vsel %vm2213_vm13, %v2212_v49, %v1986_v4  ;;  %2680 = vmatmul.mubr.bf16.gmra.mxu1 %v2422_v23 }
 0x25f   : > { %v2278_v20 = vsel %vm2246_vm0, %v2245_v27, %v4731_v43  ;;  %3002 = vmatprep.mubr.msk.bf16.mxu1 %vm2165_vm15, %v2164_v56 }
 0x260   : > { %v2311_v13 = vsel %vm2279_vm1, %v2278_v20, %v2059_v31  ;;  %v2127_v7 = vpop.permute.xlu1 %2126 }
 0x261   : > { %v2344_v25 = vsel %vm2312_vm2, %v2311_v13, %v4749_v40 }
 0x262   : > { %v2377_v5 = vsel %vm2345_vm4, %v2344_v25, %v2127_v7 }
 0x264   : > { %v2163_v55 = vpop.permute.xlu1 %2162 }
 0x265   : > { %v2425_v38 = vsel %vm2378_vm6, %v2377_v5, %v2163_v55 }
 0x266   : > { %2688 = vmatmul.mubr.bf16.gmra.mxu1 %v2425_v38 }
 0x273   : > { %v2569_v50 = vpop.f32.mrf.mxu0 }
 0x274   : > { %v2570_v58 = vadd.f32 %v4811_v6, %v2569_v50 }
 0x275   : > { %v2571_v43 = vpop.f32.mrf.mxu0 }
 0x276   : > { %v2696_v40 = vmax.f32 %v2570_v58, 0.0 }
 0x277   : > { %v2572_v16 = vpop.f32.mrf.mxu0 }
 0x278   : > { %v2573_v37 = vadd.f32 %v4811_v6, %v2572_v16 }
 0x279   : > { %v2574_v53 = vpop.f32.mrf.mxu0 }
 0x27a   : > { %v2697_v14 = vmax.f32 %v2573_v37, 0.0 }
 0x27c   : > { %v3074_v60 = vpack.c.bf16 %v2697_v14, %v2696_v40 }
 0x27e   : > { %3075 = vst [vmem:[%s4820_s29] sm:$0xff] %v3074_v60  }
 0x27f   : > { %v2577_v57 = vpop.f32.mrf.mxu0 }
 0x280   : > { %v2578_v15 = vadd.f32 %v4811_v6, %v2577_v57 }
 0x281   : > { %v2579_v59 = vpop.f32.mrf.mxu0 }
 0x282   : > { %v2698_v12 = vmax.f32 %v2578_v15, 0.0 }
 0x283   : > { %v2580_v63 = vpop.f32.mrf.mxu0 }
 0x284   : > { %v2581_v36 = vadd.f32 %v4811_v6, %v2580_v63 }
 0x285   : > { %v2582_v17 = vpop.f32.mrf.mxu0 }
 0x286   : > { %v2699_v4 = vmax.f32 %v2581_v36, 0.0 }
 0x288   : > { %v3079_v26 = vpack.c.bf16 %v2699_v4, %v2698_v12 }
 0x28a   : > { %3151 = vst [vmem:[%s4820_s29 + $0x8] sm:$0xff] %v3079_v26  }
 0x2a6   : > { %v2601_v10 = vpop.f32.mrf.mxu1 }
 0x2a7   : > { %v2602_v34 = vadd.f32 %v4811_v6, %v2601_v10 }
 0x2a8   : > { %v2603_v35 = vpop.f32.mrf.mxu1 }
 0x2a9   : > { %v2704_v62 = vmax.f32 %v2602_v34, 0.0 }
 0x2aa   : > { %v2604_v46 = vpop.f32.mrf.mxu1 }
 0x2ab   : > { %v2605_v32 = vadd.f32 %v4811_v6, %v2604_v46 }
 0x2ac   : > { %v2606_v33 = vpop.f32.mrf.mxu1 }
 0x2ad   : > { %v2705_v30 = vmax.f32 %v2605_v32, 0.0 }
 0x2ae   : > { %v2609_v11 = vpop.f32.mrf.mxu1 }
 0x2af   : > { %v3094_v24 = vpack.c.bf16 %v2705_v30, %v2704_v62  ;;  %v2610_v22 = vadd.f32 %v4811_v6, %v2609_v11 }
 0x2b0   : > { %v2611_v21 = vpop.f32.mrf.mxu1 }
 0x2b1   : > { %3154 = vst [vmem:[%s4820_s29 + $0x20] sm:$0xff] %v3094_v24   ;;  %v2706_v28 = vmax.f32 %v2610_v22, 0.0 }
 0x2b2   : > { %v2612_v19 = vpop.f32.mrf.mxu1 }
 0x2b3   : > { %v2613_v31 = vadd.f32 %v4811_v6, %v2612_v19 }
 0x2b4   : > { %v2614_v54 = vpop.f32.mrf.mxu1 }
 0x2b5   : > { %v2707_v45 = vmax.f32 %v2613_v31, 0.0 }
 0x2b7   : > { %v3099_v0 = vpack.c.bf16 %v2707_v45, %v2706_v28 }
 0x2b9   : > { %3155 = vst [vmem:[%s4820_s29 + $0x28] sm:$0xff] %v3099_v0  }
 0x2c2   : > { %v2617_v18 = vpop.f32.mrf.mxu1 }
 0x2c3   : > { %v2618_v1 = vadd.f32 %v4811_v6, %v2617_v18 }
 0x2c4   : > { %v2619_v61 = vpop.f32.mrf.mxu1 }
 0x2c5   : > { %v2708_v3 = vmax.f32 %v2618_v1, 0.0 }
 0x2c6   : > { %v2620_v41 = vpop.f32.mrf.mxu1 }
 0x2c7   : > { %v2621_v42 = vadd.f32 %v4811_v6, %v2620_v41 }
 0x2c8   : > { %v2622_v44 = vpop.f32.mrf.mxu1 }
 0x2c9   : > { %v2709_v29 = vmax.f32 %v2621_v42, 0.0 }
 0x2ca   : > { %v2625_v39 = vpop.f32.mrf.mxu1 }
 0x2cb   : > { %v3104_v9 = vpack.c.bf16 %v2709_v29, %v2708_v3  ;;  %v2626_v51 = vadd.f32 %v4811_v6, %v2625_v39 }
 0x2cc   : > { %v2627_v52 = vpop.f32.mrf.mxu1 }
 0x2cd   : > { %3156 = vst [vmem:[%s4820_s29 + $0x30] sm:$0xff] %v3104_v9   ;;  %v2710_v2 = vmax.f32 %v2626_v51, 0.0 }
 0x2ce   : > { %v2628_v48 = vpop.f32.mrf.mxu1 }
 0x2cf   : > { %v2629_v8 = vadd.f32 %v4811_v6, %v2628_v48 }
 0x2d0   : > { %v2630_v47 = vpop.f32.mrf.mxu1 }
 0x2d1   : > { %v2711_v23 = vmax.f32 %v2629_v8, 0.0 }
 0x2d3   : > { %v3109_v49 = vpack.c.bf16 %v2711_v23, %v2710_v2 }
 0x2d5   : > { %3157 = vst [vmem:[%s4820_s29 + $0x38] sm:$0xff] %v3109_v49  }
 0x2de   : > { %v2633_v27 = vpop.f32.mrf.mxu1 }
 0x2df   : > { %v2634_v20 = vadd.f32 %v4811_v6, %v2633_v27 }
 0x2e0   : > { %v2635_v56 = vpop.f32.mrf.mxu1 }
 0x2e1   : > { %v2712_v5 = vmax.f32 %v2634_v20, 0.0 }
 0x2e2   : > { %v2636_v13 = vpop.f32.mrf.mxu1 }
 0x2e3   : > { %v2637_v7 = vadd.f32 %v4811_v6, %v2636_v13 }
 0x2e4   : > { %v2638_v25 = vpop.f32.mrf.mxu1 }
 0x2e5   : > { %v2713_v55 = vmax.f32 %v2637_v7, 0.0 }
 0x2e6   : > { %v2641_v38 = vpop.f32.mrf.mxu1 }
 0x2e7   : > { %v3114_v50 = vpack.c.bf16 %v2713_v55, %v2712_v5  ;;  %v2642_v58 = vadd.f32 %v4811_v6, %v2641_v38 }
 0x2e8   : > { %v2643_v43 = vpop.f32.mrf.mxu1 }
 0x2e9   : > { %3158 = vst [vmem:[%s4820_s29 + $0x40] sm:$0xff] %v3114_v50   ;;  %v2714_v40 = vmax.f32 %v2642_v58, 0.0 }
 0x2ea   : > { %v2644_v16 = vpop.f32.mrf.mxu1 }
 0x2eb   : > { %v2645_v37 = vadd.f32 %v4811_v6, %v2644_v16 }
 0x2ec   : > { %v2646_v53 = vpop.f32.mrf.mxu1 }
 0x2ed   : > { %v2715_v14 = vmax.f32 %v2645_v37, 0.0 }
 0x2ee   : > { %v2649_v60 = vpop.f32.mrf.mxu1 }
 0x2ef   : > { %v3119_v57 = vpack.c.bf16 %v2715_v14, %v2714_v40  ;;  %v2650_v15 = vadd.f32 %v4811_v6, %v2649_v60 }
 0x2f0   : > { %v2651_v59 = vpop.f32.mrf.mxu1 }
 0x2f1   : > { %3159 = vst [vmem:[%s4820_s29 + $0x48] sm:$0xff] %v3119_v57   ;;  %v2716_v12 = vmax.f32 %v2650_v15, 0.0 }
 0x2f2   : > { %v2652_v63 = vpop.f32.mrf.mxu1 }
 0x2f3   : > { %v2653_v36 = vadd.f32 %v4811_v6, %v2652_v63 }
 0x2f4   : > { %v2654_v17 = vpop.f32.mrf.mxu1 }
 0x2f5   : > { %v2717_v4 = vmax.f32 %v2653_v36, 0.0 }
 0x2f6   : > { %v2657_v26 = vpop.f32.mrf.mxu1 }
 0x2f7   : > { %v3124_v10 = vpack.c.bf16 %v2717_v4, %v2716_v12  ;;  %v2658_v34 = vadd.f32 %v4811_v6, %v2657_v26 }
 0x2f8   : > { %v2659_v35 = vpop.f32.mrf.mxu1 }
 0x2f9   : > { %3160 = vst [vmem:[%s4820_s29 + $0x50] sm:$0xff] %v3124_v10   ;;  %v2718_v11 = vmax.f32 %v2658_v34, 0.0 }
 0x2fa   : > { %v2585_v46 = vpop.f32.mrf.mxu0  ;;  %v2660_v32 = vpop.f32.mrf.mxu1 }
 0x2fb   : > { %v2661_v33 = vadd.f32 %v4811_v6, %v2660_v32  ;;  %v2586_v24 = vadd.f32 %v4811_v6, %v2585_v46 }
 0x2fc   : > { %v2587_v62 = vpop.f32.mrf.mxu0  ;;  %v2662_v30 = vpop.f32.mrf.mxu1 }
 0x2fd   : > { %v2719_v21 = vmax.f32 %v2661_v33, 0.0  ;;  %v2700_v28 = vmax.f32 %v2586_v24, 0.0 }
 0x2fe   : > { %v2588_v22 = vpop.f32.mrf.mxu0 }
 0x2ff   : > { %v3129_v19 = vpack.c.bf16 %v2719_v21, %v2718_v11  ;;  %v2589_v31 = vadd.f32 %v4811_v6, %v2588_v22 }
 0x300   : > { %v2590_v54 = vpop.f32.mrf.mxu0 }
 0x301   : > { %3161 = vst [vmem:[%s4820_s29 + $0x58] sm:$0xff] %v3129_v19   ;;  %v2701_v45 = vmax.f32 %v2589_v31, 0.0 }
 0x302   : > { %v2665_v0 = vpop.f32.mrf.mxu1 }
 0x303   : > { %v3084_v18 = vpack.c.bf16 %v2701_v45, %v2700_v28  ;;  %v2666_v1 = vadd.f32 %v4811_v6, %v2665_v0 }
 0x304   : > { %v2667_v61 = vpop.f32.mrf.mxu1 }
 0x305   : > { %3152 = vst [vmem:[%s4820_s29 + $0x10] sm:$0xff] %v3084_v18   ;;  %v2720_v3 = vmax.f32 %v2666_v1, 0.0 }
 0x306   : > { %v2668_v41 = vpop.f32.mrf.mxu1 }
 0x307   : > { %v2669_v42 = vadd.f32 %v4811_v6, %v2668_v41 }
 0x308   : > { %v2670_v44 = vpop.f32.mrf.mxu1 }
 0x309   : > { %v2721_v29 = vmax.f32 %v2669_v42, 0.0 }
 0x30b   : > { %v3134_v39 = vpack.c.bf16 %v2721_v29, %v2720_v3 }
 0x30d   : > { %3162 = vst [vmem:[%s4820_s29 + $0x60] sm:$0xff] %v3134_v39  }
 0x316   : > { %v2593_v9 = vpop.f32.mrf.mxu0  ;;  %v2673_v52 = vpop.f32.mrf.mxu1 }
 0x317   : > { %v2594_v8 = vadd.f32 %v4811_v6, %v2593_v9  ;;  %v2674_v47 = vadd.f32 %v4811_v6, %v2673_v52 }
 0x318   : > { %v2595_v51 = vpop.f32.mrf.mxu0  ;;  %v2675_v48 = vpop.f32.mrf.mxu1 }
 0x319   : > { %v2702_v13 = vmax.f32 %v2594_v8, 0.0  ;;  %v2722_v7 = vmax.f32 %v2674_v47, 0.0 }
 0x31a   : > { %v2596_v2 = vpop.f32.mrf.mxu0  ;;  %v2676_v23 = vpop.f32.mrf.mxu1 }
 0x31b   : > { %v2597_v49 = vadd.f32 %v4811_v6, %v2596_v2  ;;  %v2677_v27 = vadd.f32 %v4811_v6, %v2676_v23 }
 0x31c   : > { %v2598_v56 = vpop.f32.mrf.mxu0  ;;  %v2678_v20 = vpop.f32.mrf.mxu1 }
 0x31d   : > { %v2703_v25 = vmax.f32 %v2597_v49, 0.0  ;;  %v2723_v5 = vmax.f32 %v2677_v27, 0.0 }
 0x31e   : > { %v2681_v55 = vpop.f32.mrf.mxu1 }
 0x31f   : > { %v3089_v38 = vpack.c.bf16 %v2703_v25, %v2702_v13  ;;  %v3139_v50 = vpack.c.bf16 %v2723_v5, %v2722_v7  ;;  %v2682_v58 = vadd.f32 %v4811_v6, %v2681_v55 }
 0x320   : > { %v2683_v43 = vpop.f32.mrf.mxu1 }
 0x321   : > { %3153 = vst [vmem:[%s4820_s29 + $0x18] sm:$0xff] %v3089_v38   ;;  %3163 = vst [vmem:[%s4820_s29 + $0x68] sm:$0xff] %v3139_v50   ;;  %v2724_v40 = vmax.f32 %v2682_v58, 0.0 }
 0x322   : > { %v2684_v16 = vpop.f32.mrf.mxu1 }
 0x323   : > { %v2685_v37 = vadd.f32 %v4811_v6, %v2684_v16 }
 0x324   : > { %v2686_v53 = vpop.f32.mrf.mxu1 }
 0x325   : > { %v2725_v14 = vmax.f32 %v2685_v37, 0.0 }
 0x326   : > { %v2689_v60 = vpop.f32.mrf.mxu1 }
 0x327   : > { %v3144_v57 = vpack.c.bf16 %v2725_v14, %v2724_v40  ;;  %v2690_v15 = vadd.f32 %v4811_v6, %v2689_v60 }
 0x328   : > { %v2691_v59 = vpop.f32.mrf.mxu1 }
 0x329   : > { %3164 = vst [vmem:[%s4820_s29 + $0x70] sm:$0xff] %v3144_v57   ;;  %v2726_v12 = vmax.f32 %v2690_v15, 0.0 }
 0x32a   : > { %v2692_v63 = vpop.f32.mrf.mxu1 }
 0x32b   : > { %v2693_v36 = vadd.f32 %v4811_v6, %v2692_v63 }
 0x32c   : > { %v2694_v17 = vpop.f32.mrf.mxu1 }
 0x32d   : > { %v2727_v4 = vmax.f32 %v2693_v36, 0.0 }
 0x32f   : > { %v3149_v26 = vpack.c.bf16 %v2727_v4, %v2726_v12 }
 0x331   : > { %3165 = vst [vmem:[%s4820_s29 + $0x78] sm:$0xff] %v3149_v26  }
 0x332 PF: > { %s15_s18 = sadd.s32 1, %s3312_s18  }
 0x333   : > { %p12_p4 = scmp.ge.s32.totalorder %s15_s18, 4  }
 0x335   :  { %14 = sbr.rel (!%p12_p4) target bundleno = 1 (0x1), region = 70 }

// kernel: squeezenet_backend_forward.11
= control target key start
LH: loop header
LB: loop body
LE: loop exit
PB: predicated region body
PF: predicated region fallthrough
CT: control target
= control target key end

     0   :  { %s1783_s18 = smov 0   ;;  %s2340_s0 = inlined_call_operand.vmem [shape: bf16[2,64,256], index: 0, kind: input, shape index: {}]   ;;  %s2341_s1 = inlined_call_operand.vmem [shape: bf16[256,32], index: 1, kind: input, shape index: {}]   ;;  %s2342_s2 = inlined_call_operand.vmem [shape: f32[1,32], index: 2, kind: input, shape index: {}]   ;;  %s2343_s3 = inlined_call_operand.vmem [shape: bf16[288,256], index: 3, kind: input, shape index: {}]   ;;  %s2344_s4 = inlined_call_operand.vmem [shape: f32[1,256], index: 4, kind: input, shape index: {}]   ;;  %s2345_s5 = inlined_call_operand.vmem [shape: bf16[2,64,256], index: 5, kind: output, shape index: {}]  }
   0x1 LB: > { %s1513_s19 = sadd.s32 4294967295, %s1747_s18   ;;  %p1517_p0 = scmp.ge.s32.totalorder %s1747_s18, 1  ;;  %s1747_s18 = sphi %s1783_s18, %s15_s18  }
   0x2   : > { %p187_p1 = scmp.lt.s32.totalorder %s1747_s18, 3 }
   0x4   : > { %p188_p2 = pnand %p1517_p0, %p187_p1 }
   0x5   : > { %p215_p3 = scmp.lt.s32.totalorder (!%p188_p2), %s1513_s19, 1  ;;  %s1750_s8 = smov (!%p188_p2), 64  }
   0x6   : > { %191 = sbr.rel (%p188_p2) target bundleno = 647 (0x287), region = 40  ;;  %s1751_s14 = smov (!%p188_p2), 32  }
   0x7   : > { %s1752_s21 = smov (!%p188_p2), 96  }
   0xb   : > { %v1659_v0 = vld [vmem:[%s2341_s1 + $0x78] sm:$0xff]   ;;  %v1661_v2 = vld [vmem:[%s2341_s1 + $0x70] sm:$0xff]   ;;  %v1663_v4 = vld [vmem:[%s2341_s1 + $0x68] sm:$0xff]   ;;  %s2381_s19 = smov (!%p215_p3, %s1513_s19), 1  ;;  %v1749_v28 = vmov 0   ;;  %v519_v49 = vlaneseq  ;;  %vm738_vm9 = vcmask 1044480  }
   0xc   : > { %v1660_v1 = vld [vmem:[%s2341_s1 + $0x38] sm:$0xff]   ;;  %1607 = vmatprep.subr.bf16.mxu0 %v1659_v0  ;;  %v1662_v3 = vld [vmem:[%s2341_s1 + $0x30] sm:$0xff]   ;;  %v1664_v5 = vld [vmem:[%s2341_s1 + $0x28] sm:$0xff]   ;;  %s1597_s11 = sshll.u32 %s2381_s19, 6  ;;  %vm700_vm7 = vsmask.f32 4352 }
   0xd   : > { %1608 = vmatpush3.bf16.msra.mxu0 %v1660_v1  ;;  %v1665_v6 = vld [vmem:[%s2341_s1 + $0x60] sm:$0xff]   ;;  %v1667_v8 = vld [vmem:[%s2341_s1 + $0x58] sm:$0xff]   ;;  %s1826_s16 = scalar_lea.vmem %s2340_s0, %s1597_s11  ;;  %v1669_v10 = vld [vmem:[%s2341_s1 + $0x50] sm:$0xff]   ;;  %v1936_v52 = vshrl.u32 %v519_v49, 7  ;;  %s2315_s26 = scalar_lea.vmem %s2345_s5, %s1597_s11 }
   0xe   : > { %1609 = vmatprep.subr.bf16.mxu0 %v1661_v2  ;;  %v1666_v7 = vld [vmem:[%s2341_s1 + $0x20] sm:$0xff]   ;;  %v1668_v9 = vld [vmem:[%s2341_s1 + $0x18] sm:$0xff]   ;;  %v1670_v12 = vld [vmem:[%s2341_s1 + $0x10] sm:$0xff]  }
   0xf   : > { %v1677_v11 = vld [vmem:[%s1826_s16 + $0x4] ss:$8 sps:$4 sm:$0xff]   ;;  %v1675_v17 = vld [vmem:[%s1826_s16] ss:$8 sps:$4 sm:$0xff]   ;;  %v1678_v18 = vld [vmem:[%s1826_s16 + $0x14] ss:$8 sps:$4 sm:$0xff]  }
  0x10   : > { %478 = vmatprep.mubr.bf16.mxu0 %v1677_v11  ;;  %v1671_v13 = vld [vmem:[%s2341_s1 + $0x48] sm:$0xff]   ;;  %v1673_v15 = vld [vmem:[%s2341_s1 + $0x40] sm:$0xff]   ;;  %v1680_v19 = vld [vmem:[%s1826_s16 + $0x10] ss:$8 sps:$4 sm:$0xff]   ;;  %v521_v54 = vadd.s32 8, %v1936_v52  ;;  %v522_v57 = vadd.s32 16, %v1936_v52 }
  0x11   : > { %1610 = vmatpush3.bf16.msra.mxu0 %v1662_v3  ;;  %v1672_v14 = vld [vmem:[%s2341_s1 + $0x8] sm:$0xff]   ;;  %v1674_v16 = vld [vmem:[%s2341_s1] sm:$0xff]   ;;  %v1684_v22 = vld [vmem:[%s1826_s16 + $0x34] ss:$8 sps:$4 sm:$0xff]   ;;  %v523_v59 = vadd.s32 24, %v1936_v52  ;;  %v532_v62 = vand.u32 7, %v1936_v52 }
  0x12   : > { %1611 = vmatprep.subr.bf16.mxu0 %v1663_v4  ;;  %v1681_v20 = vld [vmem:[%s1826_s16 + $0x24] ss:$8 sps:$4 sm:$0xff]   ;;  %v1683_v21 = vld [vmem:[%s1826_s16 + $0x20] ss:$8 sps:$4 sm:$0xff]   ;;  %v1686_v23 = vld [vmem:[%s1826_s16 + $0x30] ss:$8 sps:$4 sm:$0xff]  }
  0x13   : > { %v1689_v24 = vld [vmem:[%s2343_s3 + $0x114] ss:$8 sps:$4 sm:$0xff]   ;;  %v1687_v25 = vld [vmem:[%s2343_s3 + $0x110] ss:$8 sps:$4 sm:$0xff]   ;;  %v1692_v26 = vld [vmem:[%s2343_s3 + $0x104] ss:$8 sps:$4 sm:$0xff]  }
  0x14   : > { %v1690_v27 = vld [vmem:[%s2343_s3 + $0x100] ss:$8 sps:$4 sm:$0xff]   ;;  %v1693_v29 = vld [vmem:[%s2343_s3 + $0x74] ss:$8 sps:$4 sm:$0xff]   ;;  %v1695_v30 = vld [vmem:[%s2343_s3 + $0x70] ss:$8 sps:$4 sm:$0xff]  }
  0x15   : > { %1612 = vmatpush3.bf16.msra.mxu0 %v1664_v5  ;;  %v1696_v31 = vld [vmem:[%s2343_s3 + $0x64] ss:$8 sps:$4 sm:$0xff]   ;;  %1240 = vmatprep.subr.bf16.mxu1 %v1693_v29  ;;  %v1698_v32 = vld [vmem:[%s2343_s3 + $0x60] ss:$8 sps:$4 sm:$0xff]   ;;  %v1699_v33 = vld [vmem:[%s2343_s3 + $0x54] ss:$8 sps:$4 sm:$0xff]  }
  0x16   : > { %1613 = vmatprep.subr.bf16.mxu0 %v1665_v6  ;;  %1241 = vmatpush1.bf16.msra.mxu1 %v1695_v30  ;;  %v1701_v34 = vld [vmem:[%s2343_s3 + $0x50] ss:$8 sps:$4 sm:$0xff]   ;;  %v1702_v35 = vld [vmem:[%s2343_s3 + $0x44] ss:$8 sps:$4 sm:$0xff]   ;;  %v1704_v36 = vld [vmem:[%s2343_s3 + $0x40] ss:$8 sps:$4 sm:$0xff]  }
  0x17   : > { %1242 = vmatprep.subr.bf16.mxu1 %v1696_v31  ;;  %v1705_v37 = vld [vmem:[%s2343_s3 + $0x34] ss:$8 sps:$4 sm:$0xff]   ;;  %v1707_v38 = vld [vmem:[%s2343_s3 + $0x30] ss:$8 sps:$4 sm:$0xff]   ;;  %v1708_v39 = vld [vmem:[%s2343_s3 + $0x24] ss:$8 sps:$4 sm:$0xff]  }
  0x18   : > { %v1710_v40 = vld [vmem:[%s2343_s3 + $0x20] ss:$8 sps:$4 sm:$0xff]   ;;  %v1711_v41 = vld [vmem:[%s2343_s3 + $0x14] ss:$8 sps:$4 sm:$0xff]   ;;  %v1713_v42 = vld [vmem:[%s2343_s3 + $0x10] ss:$8 sps:$4 sm:$0xff]  }
  0x19   : > { %1614 = vmatpush3.bf16.msra.mxu0 %v1666_v7  ;;  %v1714_v43 = vld [vmem:[%s2343_s3 + $0x4] ss:$8 sps:$4 sm:$0xff]   ;;  %v1716_v44 = vld [vmem:[%s2343_s3] ss:$8 sps:$4 sm:$0xff]   ;;  %v1717_v45 = vld [vmem:[%s2343_s3 + $0xf4] ss:$8 sps:$4 sm:$0xff]  }
  0x1a   : > { %1615 = vmatprep.subr.bf16.mxu0 %v1667_v8  ;;  %1243 = vmatpush1.bf16.msra.mxu1 %v1698_v32  ;;  %v1719_v46 = vld [vmem:[%s2343_s3 + $0xf0] ss:$8 sps:$4 sm:$0xff]   ;;  %v1720_v47 = vld [vmem:[%s2343_s3 + $0xe4] ss:$8 sps:$4 sm:$0xff]   ;;  %v1722_v48 = vld [vmem:[%s2343_s3 + $0xe0] ss:$8 sps:$4 sm:$0xff]  }
  0x1b   : > { %1244 = vmatprep.subr.bf16.mxu1 %v1699_v33  ;;  %v1723_v50 = vld [vmem:[%s2343_s3 + $0xd4] ss:$8 sps:$4 sm:$0xff]   ;;  %v1725_v51 = vld [vmem:[%s2343_s3 + $0xd0] ss:$8 sps:$4 sm:$0xff]   ;;  %v1942_v55 = vld [vmem:[%s2342_s2] ss:$0 sm:$0xff] }
  0x1c   : > { %v539_v63 = vand.u32 7, %v521_v54  ;;  %v546_v1 = vand.u32 7, %v522_v57  ;;  %v553_v3 = vand.u32 7, %v523_v59  ;;  %v524_v6 = vadd.s32 32, %v1936_v52  ;;  %vm2007_vm12 = vmand %vm738_vm9, %vm700_vm7 }
  0x1d   : > { %1616 = vmatpush3.bf16.msra.mxu0 %v1668_v9  ;;  %vm1949_vm0 = vcmp.eq.s32.totalorder %v532_v62, 7  ;;  %vm1953_vm1 = vcmp.eq.s32.totalorder %v532_v62, 0  ;;  %vm905_vm9 = vsmask.f32 3328 }
  0x1e   : > { %1617 = vmatprep.subr.bf16.mxu0 %v1669_v10  ;;  %1245 = vmatpush1.bf16.msra.mxu1 %v1701_v34  ;;  %vm1958_vm2 = vcmp.eq.s32.totalorder %v539_v63, 7  ;;  %vm1962_vm3 = vcmp.eq.s32.totalorder %v539_v63, 0  ;;  %vm1966_vm4 = vcmp.eq.s32.totalorder %v546_v1, 7  ;;  %vm1970_vm5 = vcmp.eq.s32.totalorder %v546_v1, 0 }
  0x1f   : > { %1246 = vmatprep.subr.bf16.mxu1 %v1702_v35  ;;  %vm1975_vm6 = vcmp.eq.s32.totalorder %v553_v3, 7  ;;  %vm1983_vm8 = vcmp.eq.s32.totalorder %v553_v3, 0 }
  0x21   : > { %1618 = vmatpush3.bf16.msra.mxu0 %v1670_v12 }
  0x22   : > { %1619 = vmatprep.subr.bf16.mxu0 %v1671_v13  ;;  %1247 = vmatpush1.bf16.msra.mxu1 %v1704_v36  ;;  %v526_v36 = vadd.s32 48, %v1936_v52 }
  0x23   : > { %1248 = vmatprep.subr.bf16.mxu1 %v1705_v37 }
  0x24   : > { %v574_v57 = vand.u32 7, %v526_v36 }
  0x25   : > { %1620 = vmatpush3.bf16.msra.mxu0 %v1672_v14 }
  0x26   : > { %1621 = vmatprep.subr.bf16.mxu0 %v1673_v15  ;;  %1249 = vmatpush1.bf16.msra.mxu1 %v1707_v38  ;;  %v525_v15 = vadd.s32 40, %v1936_v52  ;;  %vm2044_vm15 = vcmp.eq.s32.totalorder %v574_v57, 7 }
  0x27   : > { %1250 = vmatprep.subr.bf16.mxu1 %v1708_v39  ;;  %v1994_v39 = vadd.s32 56, %v1936_v52 }
  0x28   : > { %v567_v32 = vand.u32 7, %v525_v15 }
  0x29   : > { %1622 = vmatpush3.bf16.msra.mxu0 %v1674_v16 }
  0x2a   : > { %1325 = vmatprep.subr.bf16.mxu0 %v1689_v24  ;;  %1251 = vmatpush1.bf16.msra.mxu1 %v1710_v40  ;;  %vm2011_vm13 = vcmp.eq.s32.totalorder %v567_v32, 7  ;;  %vm2015_vm14 = vcmp.eq.s32.totalorder %v567_v32, 0 }
  0x2b   : > { %1252 = vmatprep.subr.bf16.mxu1 %v1711_v41 }
  0x2c   : > { %479 = vmatmul.mubr.bf16.vlgmr.msra.gmra.mxu0 %v1675_v17 }
  0x2d   : > { %486 = vmatprep.mubr.bf16.mxu0 %v1678_v18  ;;  %1326 = vmatpush1.bf16.msra.mxu0 %v1687_v25 }
  0x2e   : > { %1327 = vmatprep.subr.bf16.mxu0 %v1692_v26  ;;  %1253 = vmatpush1.bf16.msra.mxu1 %v1713_v42 }
  0x2f   : > { %1254 = vmatprep.subr.bf16.mxu1 %v1714_v43 }
  0x31   : > { %1328 = vmatpush1.bf16.msra.mxu0 %v1690_v27 }
  0x32   : > { %1255 = vmatpush1.bf16.msra.mxu1 %v1716_v44 }
  0x33   : > { %1256 = vmatprep.subr.bf16.mxu1 %v1717_v45 }
  0x34   : > { %487 = vmatmul.mubr.bf16.gmra.mxu0 %v1680_v19 }
  0x35   : > { %494 = vmatprep.mubr.bf16.mxu0 %v1681_v20 }
  0x36   : > { %1257 = vmatpush2.bf16.msra.mxu1 %v1719_v46 }
  0x37   : > { %1258 = vmatprep.subr.bf16.mxu1 %v1720_v47 }
  0x3a   : > { %1259 = vmatpush2.bf16.msra.mxu1 %v1722_v48 }
  0x3b   : > { %1260 = vmatprep.subr.bf16.mxu1 %v1723_v50 }
  0x3c   : > { %495 = vmatmul.mubr.bf16.gmra.mxu0 %v1683_v21 }
  0x3d   : > { %502 = vmatprep.mubr.bf16.mxu0 %v1684_v22 }
  0x3e   : > { %1261 = vmatpush2.bf16.msra.mxu1 %v1725_v51 }
  0x44   : > { %503 = vmatmul.mubr.bf16.gmra.mxu0 %v1686_v23  ;;  %v560_v23 = vand.u32 7, %v524_v6  ;;  %v1728_v6 = vld [vmem:[%s2343_s3 + $0xc0] ss:$8 sps:$4 sm:$0xff]  }
  0x45   : > { %1345 = vmatprep.mubr.bf16.mxu0 %v1749_v28 }
  0x46   : > { %vm1996_vm10 = vcmp.eq.s32.totalorder %v560_v23, 7  ;;  %vm2001_vm11 = vcmp.eq.s32.totalorder %v560_v23, 0 }
  0xec   : > { %v1623_v53 = vpop.f32.mrf.mxu0 }
  0xee   : > { %v1624_v56 = vpop.f32.mrf.mxu0 }
  0xef   : > { %v1625_v58 = vadd.f32 %v1624_v56, %v1623_v53 }
  0xf0   : > { %v1626_v60 = vpop.f32.mrf.mxu0 }
  0xf1   : > { %v481_v61 = vadd.f32 %v1625_v58, %v1942_v55 }
  0xf2   : > { %v1627_v0 = vpop.f32.mrf.mxu0 }
  0xf3   : > { %v1628_v2 = vadd.f32 %v1627_v0, %v1626_v60  ;;  %v511_v4 = vmax.f32 %v481_v61, 0.0  ;;  %v581_v0 = vand.u32 7, %v1994_v39 }
  0xf4   : > { %v1629_v5 = vpop.f32.mrf.mxu0 }
  0xf5   : > { %v484_v9 = vadd.f32 %v1628_v2, %v1942_v55  ;;  %v652_v19 = vsel %vm1949_vm0, 0.0, %v511_v4  ;;  %v688_v20 = vsel %vm1953_vm1, 0.0, %v511_v4  ;;  %vm2056_vm0 = vcmp.eq.s32.totalorder %v574_v57, 0 }
  0xf6   : > { %v1630_v12 = vpop.f32.mrf.mxu0  ;;  %vm927_vm1 = vcmask 1042432  }
  0xf7   : > { %v512_v16 = vmax.f32 %v484_v9, 0.0  ;;  %v1631_v17 = vadd.f32 %v1630_v12, %v1629_v5  ;;  %v1726_v5 = vld [vmem:[%s2343_s3 + $0xc4] ss:$8 sps:$4 sm:$0xff]  }
  0xf8   : > { %v1632_v21 = vpop.f32.mrf.mxu0  ;;  %1262 = vmatprep.subr.bf16.mxu1 %v1726_v5 }
  0xf9   : > { %v624_v24 = vpack.c.bf16 %v512_v16, %v511_v4  ;;  %v653_v25 = vsel %vm1958_vm2, 0.0, %v512_v16  ;;  %v689_v26 = vsel %vm1962_vm3, 0.0, %v512_v16  ;;  %v489_v27 = vadd.f32 %v1631_v17, %v1942_v55  ;;  %1263 = vmatpush2.bf16.msra.mxu1 %v1728_v6 }
  0xfa   : > { %v660_v29 = vpack.c.bf16 %v653_v25, %v652_v19  ;;  %v696_v30 = vpack.c.bf16 %v689_v26, %v688_v20  ;;  %v1633_v31 = vpop.f32.mrf.mxu0  ;;  %vm2068_vm2 = vcmp.eq.s32.totalorder %v581_v0, 7  ;;  %vm2072_vm3 = vcmp.eq.s32.totalorder %v581_v0, 0  ;;  %v1735_v25 = vld [vmem:[%s2343_s3 + $0x94] ss:$8 sps:$4 sm:$0xff]  }
  0xfb   : > { %v743_v33 = vshrl.u32 %v624_v24, 16  ;;  %v746_v34 = vshll.u32 %v624_v24, 16  ;;  %v1634_v35 = vadd.f32 %v1633_v31, %v1632_v21  ;;  %v513_v37 = vmax.f32 %v489_v27, 0.0  ;;  %v1729_v27 = vld [vmem:[%s2343_s3 + $0xb4] ss:$8 sps:$4 sm:$0xff]  }
  0xfc   : > { %v1635_v38 = vpop.f32.mrf.mxu0  ;;  %v782_v40 = vshrl.u32 %v696_v30, 16  ;;  %v785_v41 = vshll.u32 %v696_v30, 16  ;;  %v702_v45 = vshrl.u32 %v660_v29, 16  ;;  %v705_v49 = vshll.u32 %v660_v29, 16  ;;  %1264 = vmatprep.subr.bf16.mxu1 %v1729_v27  ;;  %v1737_v27 = vld [vmem:[%s2343_s3 + $0x90] ss:$8 sps:$4 sm:$0xff]  }
  0xfd   : > { %v745_v42 = vrot.slane %v743_v33, 3  ;;  %v748_v43 = vrot.slane %v746_v34, 4  ;;  %v492_v46 = vadd.f32 %v1634_v35, %v1942_v55  ;;  %v654_v60 = vsel %vm1966_vm4, 0.0, %v513_v37  ;;  %v1731_v34 = vld [vmem:[%s2343_s3 + $0xb0] ss:$8 sps:$4 sm:$0xff]  }
  0xfe   : > { %v1636_v47 = vpop.f32.mrf.mxu0  ;;  %v784_v51 = vrot.slane %v782_v40, 3  ;;  %v787_v58 = vrot.slane %v785_v41, 4  ;;  %v690_v61 = vsel %vm1970_vm5, 0.0, %v513_v37  ;;  %v704_v2 = vrot.slane %v702_v45, 3  ;;  %1265 = vmatpush2.bf16.msra.mxu1 %v1731_v34 }
  0xff   : > { %v1637_v53 = vadd.f32 %v1636_v47, %v1635_v38  ;;  %v2019_v59 = vor.u32 %v748_v43, %v745_v42  ;;  %v514_v62 = vmax.f32 %v492_v46, 0.0  ;;  %v707_v11 = vrot.slane %v705_v49, 4 }
 0x100   : > { %v1638_v63 = vpop.f32.mrf.mxu0  ;;  %v2027_v3 = vor.u32 %v787_v58, %v784_v51  ;;  %vm867_vm4 = vcmask 1046528   ;;  %vm820_vm5 = vsmask.f32 7424 }
 0x101   : > { %v497_v1 = vadd.f32 %v1637_v53, %v1942_v55  ;;  %v2032_v4 = vsel %vm2007_vm12, 0, %v2019_v59  ;;  %v625_v7 = vpack.c.bf16 %v514_v62, %v513_v37  ;;  %v655_v8 = vsel %vm1975_vm6, 0.0, %v514_v62 }
 0x102   : > { %v691_v9 = vsel %vm1983_vm8, 0.0, %v514_v62  ;;  %v1639_v10 = vpop.f32.mrf.mxu0  ;;  %v661_v12 = vpack.c.bf16 %v655_v8, %v654_v60  ;;  %v2051_v18 = vsel %vm2007_vm12, 0, %v2027_v3  ;;  %v822_v21 = vshrl.u32 %v2032_v4, 16  ;;  %v1734_v62 = vld [vmem:[%s2343_s3 + $0xa0] ss:$8 sps:$4 sm:$0xff]  }
 0x103   : > { %v697_v13 = vpack.c.bf16 %v691_v9, %v690_v61  ;;  %v515_v14 = vmax.f32 %v497_v1, 0.0  ;;  %v1640_v15 = vadd.f32 %v1639_v10, %v1638_v63  ;;  %v751_v17 = vshrl.u32 %v625_v7, 16  ;;  %v1732_v61 = vld [vmem:[%s2343_s3 + $0xa4] ss:$8 sps:$4 sm:$0xff]  }
 0x104   : > { %v754_v19 = vshll.u32 %v625_v7, 16  ;;  %v1641_v20 = vpop.f32.mrf.mxu0  ;;  %v824_v26 = vshll.u32 %v2032_v4, 16  ;;  %v710_v33 = vshrl.u32 %v661_v12, 16  ;;  %v713_v40 = vshll.u32 %v661_v12, 16  ;;  %1266 = vmatprep.subr.bf16.mxu1 %v1732_v61 }
 0x105   : > { %v790_v22 = vshrl.u32 %v697_v13, 16  ;;  %v793_v23 = vshll.u32 %v697_v13, 16  ;;  %v656_v24 = vsel %vm1996_vm10, 0.0, %v515_v14  ;;  %v753_v29 = vrot.slane %v751_v17, 3  ;;  %1267 = vmatpush2.bf16.msra.mxu1 %v1734_v62  ;;  %v1740_v62 = vld [vmem:[%s2343_s3 + $0x80] ss:$8 sps:$4 sm:$0xff]  }
 0x106   : > { %v756_v30 = vrot.slane %v754_v19, 4  ;;  %v500_v31 = vadd.f32 %v1640_v15, %v1942_v55  ;;  %v1642_v32 = vpop.f32.mrf.mxu0  ;;  %v692_v42 = vsel %vm2001_vm11, 0.0, %v515_v14  ;;  %v712_v45 = vrot.slane %v710_v33, 3  ;;  %1268 = vmatprep.subr.bf16.mxu1 %v1735_v25 }
 0x107   : > { %v792_v35 = vrot.slane %v790_v22, 3  ;;  %v795_v36 = vrot.slane %v793_v23, 4  ;;  %v1643_v37 = vadd.f32 %v1642_v32, %v1641_v20  ;;  %v715_v47 = vrot.slane %v713_v40, 4 }
 0x108   : > { %v2076_v41 = vor.u32 %v756_v30, %v753_v29  ;;  %v516_v43 = vmax.f32 %v500_v31, 0.0  ;;  %v1644_v44 = vpop.f32.mrf.mxu0  ;;  %v928_v51 = vrot.slane %v2051_v18, 5  ;;  %v708_v60 = vor.u32 %v707_v11, %v704_v2 }
 0x109   : > { %v505_v46 = vadd.f32 %v1643_v37, %v1942_v55  ;;  %v2081_v49 = vor.u32 %v795_v36, %v792_v35  ;;  %v868_v54 = vrot.slane %v2051_v18, 1  ;;  %v2095_v56 = vor.u32 %v715_v47, %v712_v45  ;;  %1269 = vmatpush2.bf16.msra.mxu1 %v1737_v27 }
 0x10a   : > { %v626_v53 = vpack.c.bf16 %v516_v43, %v515_v14  ;;  %v657_v57 = vsel %vm2011_vm13, 0.0, %v516_v43  ;;  %v693_v58 = vsel %vm2015_vm14, 0.0, %v516_v43  ;;  %v1645_v48 = vpop.f32.mrf.mxu0  ;;  %vm887_vm6 = vcmask 1043456  }
 0x10b   : > { %v698_v63 = vpack.c.bf16 %v693_v58, %v692_v42  ;;  %v517_v0 = vmax.f32 %v505_v46, 0.0  ;;  %v1646_v1 = vadd.f32 %v1645_v48, %v1644_v44  ;;  %v2100_v2 = vsel %vm700_vm7, %v2027_v3, %v2081_v49 }
 0x10c   : > { %v760_v5 = vshrl.u32 %v626_v53, 16  ;;  %v763_v6 = vshll.u32 %v626_v53, 16  ;;  %v2102_v7 = vpack.c.bf16 %v657_v57, %v656_v24  ;;  %v2107_v10 = vsel %vm700_vm7, %v2019_v59, %v2076_v41  ;;  %v1738_v57 = vld [vmem:[%s2343_s3 + $0x84] ss:$8 sps:$4 sm:$0xff]  }
 0x10d   : > { %v799_v8 = vshrl.u32 %v698_v63, 16  ;;  %v802_v9 = vshll.u32 %v698_v63, 16  ;;  %v658_v12 = vsel %vm2044_vm15, 0.0, %v517_v0  ;;  %v508_v13 = vadd.f32 %v1646_v1, %v1942_v55  ;;  %1270 = vmatprep.subr.bf16.mxu1 %v1738_v57 }
 0x10e   : > { %v762_v11 = vrot.slane %v760_v5, 3  ;;  %v2114_v3 = vsel %vm700_vm7, %v708_v60, %v2095_v56  ;;  %v765_v14 = vrot.slane %v763_v6, 4  ;;  %v929_v59 = vrot.slane %v2100_v2, 5  ;;  %1271 = vmatpush2.bf16.msra.mxu1 %v1740_v62 }
 0x10f   : > { %v801_v15 = vrot.slane %v799_v8, 3  ;;  %v804_v17 = vrot.slane %v802_v9, 4  ;;  %945 = vrot.lane.b32.xlu1 %v2114_v3, %s1750_s8  ;;  %vm970_vm8 = vcmask 261120   ;;  %v694_v16 = vsel %vm2056_vm0, 0.0, %v517_v0 }
 0x110   : > { %v518_v19 = vmax.f32 %v508_v13, 0.0  ;;  %v869_v55 = vrot.slane %v2100_v2, 1  ;;  %v826_v20 = vrot.slane %v824_v26, 1  ;;  %v889_v22 = vrot.slane %v2114_v3, 4 }
 0x111   : > { %v805_v18 = vor.u32 %v804_v17, %v801_v15  ;;  %v930_v23 = vsel %vm927_vm1, %v928_v51, %v929_v59  ;;  %v829_v24 = vshll.u32 %v2107_v10, 16  ;;  %v766_v33 = vor.u32 %v765_v14, %v762_v11 }
 0x112   : > { %v627_v29 = vpack.c.bf16 %v518_v19, %v517_v0  ;;  %v659_v30 = vsel %vm2068_vm2, 0.0, %v518_v19  ;;  %v695_v31 = vsel %vm2072_vm3, 0.0, %v518_v19  ;;  %937 = vrot.lane.b32.xlu0 %v930_v23, %s1751_s14  ;;  %v870_v32 = vsel %vm867_vm4, %v868_v54, %v869_v55 }
 0x113   : > { %v699_v34 = vpack.c.bf16 %v695_v31, %v694_v16  ;;  %877 = vrot.lane.b32.xlu1 %v870_v32, %s1750_s8  ;;  %v827_v35 = vor.u32 %v826_v20, %v822_v21  ;;  %v831_v36 = vrot.slane %v829_v24, 1  ;;  %v663_v37 = vpack.c.bf16 %v659_v30, %v658_v12 }
 0x114   : > { %v769_v38 = vshrl.u32 %v627_v29, 16  ;;  %v772_v39 = vshll.u32 %v627_v29, 16  ;;  %v2148_v40 = vsel %vm2007_vm12, 0, %v708_v60  ;;  %v2155_v51 = vsel %vm700_vm7, %v2081_v49, %v805_v18 }
 0x115   : > { %v808_v42 = vshrl.u32 %v699_v34, 16  ;;  %v811_v43 = vshll.u32 %v699_v34, 16  ;;  %v832_v44 = vsel %vm820_vm5, %v827_v35, %v831_v36  ;;  %v888_v45 = vrot.slane %v2148_v40, 4 }
 0x116   : > { %v771_v46 = vrot.slane %v769_v38, 3  ;;  %v774_v47 = vrot.slane %v772_v39, 4  ;;  %857 = vrot.lane.b32.xlu0 %v832_v44, %s1751_s14  ;;  %v719_v53 = vshrl.u32 %v2102_v7, 16  ;;  %v871_v61 = vrot.slane %v2155_v51, 1 }
 0x117   : > { %v810_v58 = vrot.slane %v808_v42, 3  ;;  %v813_v48 = vrot.slane %v811_v43, 4  ;;  %v890_v60 = vsel %vm887_vm6, %v888_v45, %v889_v22  ;;  %v722_v63 = vshll.u32 %v2102_v7, 16 }
 0x118   : > { %897 = vrot.lane.b32.xlu1 %v890_v60, %s1752_s21  ;;  %v721_v49 = vrot.slane %v719_v53, 3  ;;  %v872_v1 = vsel %vm867_vm4, %v869_v55, %v871_v61  ;;  %v2174_v5 = vsel %vm700_vm7, %v2076_v41, %v766_v33  ;;  %v728_v6 = vshrl.u32 %v663_v37, 16 }
 0x119   : > { %v814_v0 = vor.u32 %v813_v48, %v810_v58  ;;  %1583 = vmatmul.mubr.msk.bf16.vlgmr.msra.gmra.mxu0 %vm970_vm8, %v872_v1  ;;  %v724_v54 = vrot.slane %v722_v63, 4  ;;  %v775_v8 = vor.u32 %v774_v47, %v771_v46  ;;  %v731_v7 = vshll.u32 %v663_v37, 16 }
 0x11a   : > { %1355 = vmatprep.mubr.bf16.mxu0 %v1749_v28  ;;  %v931_v13 = vrot.slane %v2155_v51, 5  ;;  %v837_v14 = vshll.u32 %v2174_v5, 16  ;;  %v833_v15 = vshrl.u32 %v2107_v10, 16  ;;  %v730_v17 = vrot.slane %v728_v6, 3 }
 0x11b   : > { %v2178_v9 = vsel %vm700_vm7, %v805_v18, %v814_v0  ;;  %v725_v11 = vor.u32 %v724_v54, %v721_v49  ;;  %v733_v16 = vrot.slane %v731_v7, 4  ;;  %v2194_v20 = vsel %vm700_vm7, %v766_v33, %v775_v8 }
 0x11c   : > { %879 = vrot.lane.b32.xlu1 %v872_v1, %s1750_s8  ;;  %v873_v12 = vrot.slane %v2178_v9, 1  ;;  %v910_v18 = vrot.slane %v829_v24, 5  ;;  %v845_v23 = vshll.u32 %v2194_v20, 16  ;;  %v932_v25 = vsel %vm927_vm1, %v929_v59, %v931_v13 }
 0x11d   : > { %v2186_v41 = vsel %vm700_vm7, %v2095_v56, %v725_v11  ;;  %v841_v56 = vshrl.u32 %v2174_v5, 16  ;;  %v839_v29 = vrot.slane %v837_v14, 1  ;;  %v2208_v30 = vsel %vm2007_vm12, %v775_v8, 0 }
 0x11e   : > { %v891_v19 = vrot.slane %v2186_v41, 4  ;;  %947 = vrot.lane.b32.xlu0 %v2186_v41, %s1750_s8  ;;  %v874_v55 = vsel %vm867_vm4, %v871_v61, %v873_v12  ;;  %v835_v10 = vor.u32 %v833_v15, %v831_v36  ;;  %v909_v24 = vrot.slane %v833_v15, 4 }
 0x11f   : > { %v734_v31 = vor.u32 %v733_v16, %v730_v17  ;;  %v819_v2 = vsel %vm2007_vm12, %v814_v0, 0  ;;  %v914_v59 = vrot.slane %v837_v14, 5  ;;  %v849_v32 = vshrl.u32 %v2194_v20, 16 }
 0x120   : > { %v892_v27 = vsel %vm887_vm6, %v889_v22, %v891_v19  ;;  %v913_v22 = vrot.slane %v841_v56, 4  ;;  %v853_v33 = vshll.u32 %v2208_v30, 16  ;;  %v906_v34 = vrot.slane %v822_v21, 4 }
 0x121   : > { %899 = vrot.lane.b32.xlu1 %v892_v27, %s1752_s21  ;;  %1584 = vmatmul.mubr.msk.bf16.gmra.mxu0 %vm970_vm8, %v874_v55  ;;  %v918_v35 = vrot.slane %v845_v23, 5  ;;  %v921_v36 = vshrl.u32 %v2208_v30, 16  ;;  %v840_v37 = vsel %vm820_vm5, %v835_v10, %v839_v29  ;;  %v875_v38 = vrot.slane %v819_v2, 1 }
 0x122   : > { %939 = vrot.lane.b32.xlu0 %v932_v25, %s1751_s14  ;;  %1365 = vmatprep.mubr.bf16.mxu0 %v1749_v28  ;;  %v917_v39 = vrot.slane %v849_v32, 4  ;;  %v924_v42 = vrot.slane %v853_v33, 5  ;;  %v2224_v43 = vsel %vm700_vm7, %v725_v11, %v734_v31  ;;  %v907_v45 = vrot.slane %v824_v26, 5 }
 0x123   : > { %v923_v44 = vrot.slane %v921_v36, 4  ;;  %v911_v46 = vor.u32 %v910_v18, %v909_v24  ;;  %v915_v21 = vor.u32 %v914_v59, %v913_v22  ;;  %v893_v53 = vrot.slane %v2224_v43, 4 }
 0x124   : > { %v908_v47 = vor.u32 %v907_v45, %v906_v34  ;;  %v919_v51 = vor.u32 %v918_v35, %v917_v39  ;;  %v876_v57 = vsel %vm867_vm4, %v873_v12, %v875_v38  ;;  %v933_v4 = vrot.slane %v2178_v9, 5 }
 0x125   : > { %859 = vrot.lane.b32.xlu1 %v840_v37, %s1751_s14  ;;  %v2231_v58 = vsel %vm905_vm9, %v911_v46, %v915_v21  ;;  %v925_v48 = vor.u32 %v924_v42, %v923_v44  ;;  %v894_v62 = vsel %vm887_vm6, %v891_v19, %v893_v53  ;;  %v847_v49 = vrot.slane %v845_v23, 1 }
 0x126   : > { %959 = vrot.lane.b32.xlu0 %v840_v37, %s1752_s21  ;;  %v912_v26 = vsel %vm905_vm9, %v908_v47, %v911_v46  ;;  %v2236_v60 = vsel %vm905_vm9, %v915_v21, %v919_v51  ;;  %v957_v63 = vrot.slane %v1749_v28, 1  ;;  %v934_v0 = vsel %vm927_vm1, %v931_v13, %v933_v4 }
 0x127   : > { %v2241_v61 = vsel %vm905_vm9, %v919_v51, %v925_v48  ;;  %v843_v1 = vor.u32 %v841_v56, %v839_v29  ;;  %v935_v6 = vrot.slane %v819_v2, 5  ;;  %v851_v8 = vor.u32 %v849_v32, %v847_v49 }
 0x128   : > { %v969_v5 = vsel %vm867_vm4, %v875_v38, %v957_v63  ;;  %v741_v9 = vsel %vm2007_vm12, %v734_v31, 0  ;;  %v855_v7 = vrot.slane %v853_v33, 1  ;;  %vm983_vm7 = vcmask 523264  }
 0x129   : > { %881 = vrot.lane.b32.xlu1 %v874_v55, %s1750_s8  ;;  %1585 = vmatmul.mubr.msk.bf16.gmra.mxu0 %vm970_vm8, %v876_v57  ;;  %v848_v54 = vsel %vm820_vm5, %v843_v1, %v847_v49  ;;  %v895_v12 = vrot.slane %v741_v9, 4  ;;  %vm992_vm10 = vcmask 785408  }
 0x12a   : > { %949 = vrot.lane.b32.xlu0 %v2224_v43, %s1750_s8  ;;  %1375 = vmatprep.mubr.bf16.mxu0 %v1749_v28  ;;  %v936_v28 = vsel %vm927_vm1, %v933_v4, %v935_v6  ;;  %v856_v11 = vsel %vm820_vm5, %v851_v8, %v855_v7  ;;  %v953_v14 = vor.u32 %v921_v36, %v855_v7  ;;  %v1040_v8 = vsub.s32 0, %v1936_v52 }
 0x12b   : > { %v896_v13 = vsel %vm887_vm6, %v893_v53, %v895_v12 }
 0x12c   : > { %v958_v50 = vsel %vm820_vm5, %v953_v14, %v957_v63 }
 0x12d   : > { %901 = vrot.lane.b32.xlu1 %v894_v62, %s1752_s21 }
 0x12e   : > { %941 = vrot.lane.b32.xlu0 %v934_v0, %s1751_s14 }
 0x131   : > { %861 = vrot.lane.b32.xlu1 %v848_v54, %s1751_s14  ;;  %1586 = vmatmul.mubr.msk.bf16.gmra.mxu0 %vm970_vm8, %v969_v5 }
 0x132   : > { %961 = vrot.lane.b32.xlu0 %v848_v54, %s1752_s21 }
 0x135   : > { %883 = vrot.lane.b32.xlu1 %v876_v57, %s1750_s8 }
 0x136   : > { %943 = vrot.lane.b32.xlu0 %v936_v28, %s1751_s14  ;;  %v1044_v28 = vsub.s32 1, %v1936_v52 }
 0x139   : > { %863 = vrot.lane.b32.xlu1 %v856_v11, %s1751_s14 }
 0x13a   : > { %963 = vrot.lane.b32.xlu0 %v856_v11, %s1752_s21 }
 0x13d   : > { %903 = vrot.lane.b32.xlu1 %v896_v13, %s1752_s21 }
 0x13e   : > { %951 = vrot.lane.b32.xlu0 %v741_v9, %s1750_s8 }
 0x142   : > { %965 = vrot.lane.b32.xlu0 %v958_v50, %s1752_s21 }
 0x181   : > { %v946_v15 = vpop.permute.xlu1 %945 }
 0x184   : > { %v938_v17 = vpop.permute.xlu0 %937 }
 0x185   : > { %v878_v16 = vpop.permute.xlu1 %877  ;;  %v1007_v27 = vsel %vm970_vm8, %v912_v26, %v938_v17 }
 0x186   : > { %v1018_v24 = vsel %vm983_vm7, %v1007_v27, %v946_v15 }
 0x188   : > { %v858_v55 = vpop.permute.xlu0 %857 }
 0x189   : > { %v973_v23 = vsel %vm970_vm8, %v2148_v40, %v858_v55 }
 0x18a   : > { %v898_v19 = vpop.permute.xlu1 %897  ;;  %v985_v30 = vsel %vm983_vm7, %v973_v23, %v878_v16 }
 0x18b   : > { %v994_v2 = vsel %vm992_vm10, %v985_v30, %v898_v19 }
 0x18e   : > { %v880_v20 = vpop.permute.xlu1 %879 }
 0x190   : > { %v948_v18 = vpop.permute.xlu0 %947 }
 0x193   : > { %v900_v56 = vpop.permute.xlu1 %899 }
 0x194   : > { %v940_v25 = vpop.permute.xlu0 %939 }
 0x195   : > { %v1010_v34 = vsel %vm970_vm8, %v2231_v58, %v940_v25 }
 0x196   : > { %v1020_v38 = vsel %vm983_vm7, %v1010_v34, %v948_v18 }
 0x197   : > { %v860_v29 = vpop.permute.xlu1 %859 }
 0x198   : > { %v960_v10 = vpop.permute.xlu0 %959  ;;  %v976_v32 = vsel %vm970_vm8, %v2114_v3, %v860_v29 }
 0x199   : > { %v1026_v31 = vsel %vm992_vm10, %v1018_v24, %v960_v10  ;;  %v987_v36 = vsel %vm983_vm7, %v976_v32, %v880_v20 }
 0x19a   : > { %1272 = vmatprep.mubr.bf16.mxu1 %v1026_v31  ;;  %v997_v42 = vsel %vm992_vm10, %v987_v36, %v900_v56 }
 0x19b   : > { %1273 = vmatmul.mubr.bf16.vlgmr.msra.gmra.mxu1 %v994_v2  ;;  %v882_v59 = vpop.permute.xlu1 %881 }
 0x19c   : > { %v950_v22 = vpop.permute.xlu0 %949 }
 0x19f   : > { %v902_v40 = vpop.permute.xlu1 %901 }
 0x1a0   : > { %v942_v33 = vpop.permute.xlu0 %941 }
 0x1a1   : > { %v1013_v46 = vsel %vm970_vm8, %v2236_v60, %v942_v33 }
 0x1a2   : > { %v1022_v51 = vsel %vm983_vm7, %v1013_v46, %v950_v22 }
 0x1a3   : > { %v862_v35 = vpop.permute.xlu1 %861 }
 0x1a4   : > { %v962_v37 = vpop.permute.xlu0 %961  ;;  %v979_v3 = vsel %vm970_vm8, %v2186_v41, %v862_v35 }
 0x1a5   : > { %v1029_v39 = vsel %vm992_vm10, %v1020_v38, %v962_v37  ;;  %v989_v21 = vsel %vm983_vm7, %v979_v3, %v882_v59 }
 0x1a6   : > { %1282 = vmatprep.mubr.bf16.mxu1 %v1029_v39  ;;  %v1000_v58 = vsel %vm992_vm10, %v989_v21, %v902_v40 }
 0x1a7   : > { %1283 = vmatmul.mubr.bf16.gmra.mxu1 %v997_v42  ;;  %v884_v44 = vpop.permute.xlu1 %883 }
 0x1a8   : > { %v944_v45 = vpop.permute.xlu0 %943 }
 0x1a9   : > { %v1016_v4 = vsel %vm970_vm8, %v2241_v61, %v944_v45  ;;  %v303_v61 = vld [vmem:[%s2344_s4] sm:$0x3] }
 0x1aa   : > { %v2302_v7 = vrot.slane %v303_v61, %v1040_v8  ;;  %v2304_v11 = vrot.slane %v303_v61, %v1044_v28 }
 0x1ab   : > { %v864_v53 = vpop.permute.xlu1 %863 }
 0x1ac   : > { %v964_v47 = vpop.permute.xlu0 %963  ;;  %v982_v41 = vsel %vm970_vm8, %v2224_v43, %v864_v53 }
 0x1ad   : > { %v1032_v57 = vsel %vm992_vm10, %v1022_v51, %v964_v47  ;;  %v991_v63 = vsel %vm983_vm7, %v982_v41, %v884_v44 }
 0x1ae   : > { %1292 = vmatprep.mubr.bf16.mxu1 %v1032_v57 }
 0x1af   : > { %1293 = vmatmul.mubr.bf16.gmra.mxu1 %v1000_v58  ;;  %v904_v26 = vpop.permute.xlu1 %903 }
 0x1b0   : > { %v952_v48 = vpop.permute.xlu0 %951  ;;  %v1003_v0 = vsel %vm992_vm10, %v991_v63, %v904_v26 }
 0x1b1   : > { %v1024_v60 = vsel %vm983_vm7, %v1016_v4, %v952_v48 }
 0x1b4   : > { %v966_v62 = vpop.permute.xlu0 %965 }
 0x1b5   : > { %v1035_v49 = vsel %vm992_vm10, %v1024_v60, %v966_v62 }
 0x1b6   : > { %1302 = vmatprep.mubr.bf16.mxu1 %v1035_v49 }
 0x1b7   : > { %1303 = vmatmul.mubr.bf16.gmra.mxu1 %v1003_v0 }
 0x1d9   : > { %v1347_v1 = vpop.f32.mrf.mxu0 }
 0x1db   : > { %v1349_v54 = vpop.f32.mrf.mxu0 }
 0x1dd   : > { %v1351_v5 = vpop.f32.mrf.mxu0 }
 0x1df   : > { %v1353_v6 = vpop.f32.mrf.mxu0 }
 0x1e1   : > { %v1357_v43 = vpop.f32.mrf.mxu0 }
 0x1e3   : > { %v1359_v9 = vpop.f32.mrf.mxu0 }
 0x1e5   : > { %v1361_v12 = vpop.f32.mrf.mxu0 }
 0x1e7   : > { %v1363_v16 = vpop.f32.mrf.mxu0 }
 0x1e9   : > { %v1367_v27 = vpop.f32.mrf.mxu0 }
 0x1eb   : > { %v1369_v31 = vpop.f32.mrf.mxu0 }
 0x1ed   : > { %v1371_v34 = vpop.f32.mrf.mxu0 }
 0x1ef   : > { %v1373_v45 = vpop.f32.mrf.mxu0 }
 0x1f1   : > { %v1377_v4 = vpop.f32.mrf.mxu0 }
 0x25b   : > { %v1274_v13 = vpop.f32.mrf.mxu1 }
 0x25c   : > { %v1275_v14 = vadd.f32 %v1274_v13, %v2302_v7 }
 0x25d   : > { %v1276_v50 = vpop.f32.mrf.mxu1 }
 0x25e   : > { %v1348_v15 = vadd.f32 %v1347_v1, %v1275_v14  ;;  %v1277_v17 = vadd.f32 %v1276_v50, %v2304_v11 }
 0x25f   : > { %v1278_v19 = vpop.f32.mrf.mxu1 }
 0x260   : > { %v1350_v55 = vadd.f32 %v1349_v54, %v1277_v17  ;;  %v1279_v20 = vadd.f32 %v1278_v19, %v2302_v7  ;;  %v1386_v18 = vmax.f32 %v1348_v15, 0.0 }
 0x261   : > { %v1280_v52 = vpop.f32.mrf.mxu1 }
 0x262   : > { %v1387_v56 = vmax.f32 %v1350_v55, 0.0  ;;  %v1352_v23 = vadd.f32 %v1351_v5, %v1279_v20  ;;  %v1281_v25 = vadd.f32 %v1280_v52, %v2304_v11 }
 0x264   : > { %v1599_v29 = vpack.c.bf16 %v1387_v56, %v1386_v18  ;;  %v1354_v30 = vadd.f32 %v1353_v6, %v1281_v25  ;;  %v1388_v10 = vmax.f32 %v1352_v23, 0.0  ;;  %v1379_v6 = vpop.f32.mrf.mxu0 }
 0x266   : > { %1450 = vst [vmem:[%s2315_s26] sm:$0xff] %v1599_v29  ;;  %v1389_v24 = vmax.f32 %v1354_v30, 0.0  ;;  %v1381_v15 = vpop.f32.mrf.mxu0 }
 0x267   : > { %v1284_v2 = vpop.f32.mrf.mxu1 }
 0x268   : > { %v1600_v59 = vpack.c.bf16 %v1389_v24, %v1388_v10  ;;  %v1285_v22 = vadd.f32 %v1284_v2, %v2302_v7  ;;  %v1383_v25 = vpop.f32.mrf.mxu0 }
 0x269   : > { %v1286_v40 = vpop.f32.mrf.mxu1 }
 0x26a   : > { %1451 = vst [vmem:[%s2315_s26 + $0x8] sm:$0xff] %v1600_v59  ;;  %v1358_v32 = vadd.f32 %v1357_v43, %v1285_v22  ;;  %v1287_v33 = vadd.f32 %v1286_v40, %v2304_v11 }
 0x26b   : > { %v1288_v35 = vpop.f32.mrf.mxu1 }
 0x26c   : > { %v1360_v36 = vadd.f32 %v1359_v9, %v1287_v33  ;;  %v1289_v37 = vadd.f32 %v1288_v35, %v2302_v7  ;;  %v1390_v39 = vmax.f32 %v1358_v32, 0.0 }
 0x26d   : > { %v1290_v38 = vpop.f32.mrf.mxu1 }
 0x26e   : > { %v1391_v42 = vmax.f32 %v1360_v36, 0.0  ;;  %v1362_v44 = vadd.f32 %v1361_v12, %v1289_v37  ;;  %v1291_v3 = vadd.f32 %v1290_v38, %v2304_v11 }
 0x26f   : > { %v1294_v46 = vpop.f32.mrf.mxu1 }
 0x270   : > { %v1601_v21 = vpack.c.bf16 %v1391_v42, %v1390_v39  ;;  %v1364_v47 = vadd.f32 %v1363_v16, %v1291_v3  ;;  %v1295_v51 = vadd.f32 %v1294_v46, %v2302_v7  ;;  %v1392_v57 = vmax.f32 %v1362_v44, 0.0 }
 0x271   : > { %v1296_v53 = vpop.f32.mrf.mxu1 }
 0x272   : > { %1452 = vst [vmem:[%s2315_s26 + $0x10] sm:$0xff] %v1601_v21  ;;  %v1393_v58 = vmax.f32 %v1364_v47, 0.0  ;;  %v1368_v48 = vadd.f32 %v1367_v27, %v1295_v51  ;;  %v1297_v41 = vadd.f32 %v1296_v53, %v2304_v11 }
 0x273   : > { %v1298_v26 = vpop.f32.mrf.mxu1 }
 0x274   : > { %v1602_v60 = vpack.c.bf16 %v1393_v58, %v1392_v57  ;;  %v1370_v62 = vadd.f32 %v1369_v31, %v1297_v41  ;;  %v1299_v49 = vadd.f32 %v1298_v26, %v2302_v7  ;;  %v1394_v0 = vmax.f32 %v1368_v48, 0.0 }
 0x275   : > { %v1300_v63 = vpop.f32.mrf.mxu1 }
 0x276   : > { %1453 = vst [vmem:[%s2315_s26 + $0x18] sm:$0xff] %v1602_v60  ;;  %v1395_v1 = vmax.f32 %v1370_v62, 0.0  ;;  %v1372_v54 = vadd.f32 %v1371_v34, %v1299_v49  ;;  %v1301_v5 = vadd.f32 %v1300_v63, %v2304_v11 }
 0x277   : > { %v1304_v43 = vpop.f32.mrf.mxu1 }
 0x278   : > { %v1603_v8 = vpack.c.bf16 %v1395_v1, %v1394_v0  ;;  %v1374_v61 = vadd.f32 %v1373_v45, %v1301_v5  ;;  %v1305_v28 = vadd.f32 %v1304_v43, %v2302_v7  ;;  %v1396_v12 = vmax.f32 %v1372_v54, 0.0 }
 0x279   : > { %v1306_v9 = vpop.f32.mrf.mxu1 }
 0x27a   : > { %1454 = vst [vmem:[%s2315_s26 + $0x20] sm:$0xff] %v1603_v8  ;;  %v1397_v13 = vmax.f32 %v1374_v61, 0.0  ;;  %v1378_v14 = vadd.f32 %v1377_v4, %v1305_v28  ;;  %v1307_v50 = vadd.f32 %v1306_v9, %v2304_v11 }
 0x27b   : > { %v1308_v17 = vpop.f32.mrf.mxu1 }
 0x27c   : > { %v1604_v16 = vpack.c.bf16 %v1397_v13, %v1396_v12  ;;  %v1380_v19 = vadd.f32 %v1379_v6, %v1307_v50  ;;  %v1309_v55 = vadd.f32 %v1308_v17, %v2302_v7  ;;  %v1398_v52 = vmax.f32 %v1378_v14, 0.0 }
 0x27d   : > { %v1310_v20 = vpop.f32.mrf.mxu1 }
 0x27e   : > { %1455 = vst [vmem:[%s2315_s26 + $0x28] sm:$0xff] %v1604_v16  ;;  %v1399_v18 = vmax.f32 %v1380_v19, 0.0  ;;  %v1382_v56 = vadd.f32 %v1381_v15, %v1309_v55  ;;  %v1311_v23 = vadd.f32 %v1310_v20, %v2304_v11 }
 0x280   : > { %v1605_v27 = vpack.c.bf16 %v1399_v18, %v1398_v52  ;;  %v1384_v29 = vadd.f32 %v1383_v25, %v1311_v23  ;;  %v1400_v30 = vmax.f32 %v1382_v56, 0.0 }
 0x282   : > { %1456 = vst [vmem:[%s2315_s26 + $0x30] sm:$0xff] %v1605_v27  ;;  %v1401_v10 = vmax.f32 %v1384_v29, 0.0 }
 0x284   : > { %v1606_v24 = vpack.c.bf16 %v1401_v10, %v1400_v30 }
 0x286   : > { %1457 = vst [vmem:[%s2315_s26 + $0x38] sm:$0xff] %v1606_v24 }
 0x287 PF: > { %s15_s18 = sadd.s32 1, %s1747_s18  }
 0x288   : > { %p12_p4 = scmp.ge.s32.totalorder %s15_s18, 4  }
 0x28a   :  { %14 = sbr.rel (!%p12_p4) target bundleno = 1 (0x1), region = 70 }

// kernel: squeezenet_backend_forward.12
= control target key start
LH: loop header
LB: loop body
LE: loop exit
PB: predicated region body
PF: predicated region fallthrough
CT: control target
= control target key end

     0   :  { %s602_s6 = smov 0   ;;  %s694_s0 = inlined_call_operand.vmem [shape: bf16[2,8,4,512], index: 0, kind: input, shape index: {}]   ;;  %s695_s1 = inlined_call_operand.vmem [shape: bf16[2,4,4,256], index: 1, kind: output, shape index: {}]  }
   0x1 LB: > { %s557_s7 = sadd.s32 4294967295, %s589_s6   ;;  %p561_p0 = scmp.ge.s32.totalorder %s589_s6, 1  ;;  %s589_s6 = sphi %s602_s6, %s11_s6  }
   0x2   : > { %p87_p1 = scmp.lt.s32.totalorder %s589_s6, 3 }
   0x4   : > { %p88_p2 = pnand %p561_p0, %p87_p1 }
   0x5   : > { %p107_p3 = scmp.lt.s32.totalorder (!%p88_p2), %s557_s7, 1 }
   0x6   : > { %91 = sbr.rel (%p88_p2) target bundleno = 60 (0x3c), region = 24 }
   0xb   : > { %v256_v0 = vlaneseq  ;;  %v591_v1 = vmov 1983009808   ;;  %s699_s7 = smov (!%p107_p3, %s557_s7), 1  ;;  %vm421_vm0 = vcmask 1041408   ;;  %vm422_vm1 = vsmask.f32 1280 }
   0xc   : > { %v254_v2 = vunpack.c.l.s4 %v591_v1  ;;  %s572_s8 = sshll.u32 %s699_s7, 6  ;;  %vm629_vm2 = vmand %vm421_vm0, %vm422_vm1  ;;  %s573_s12 = sshll.u32 %s699_s7, 4 }
   0xd   : > { %v257_v3 = vshrl.u32 %v256_v0, 7  ;;  %s616_s11 = scalar_lea.vmem %s694_s0, %s572_s8  ;;  %s657_s15 = scalar_lea.vmem %s695_s1, %s573_s12 }
   0xe   : > { %v255_v4 = vunpack.c.0.s8 %v254_v2  ;;  %v117_v5 = vld [vmem:[%s616_s11] sm:$0xff]  ;;  %v118_v6 = vld [vmem:[%s616_s11 + $0x8] sm:$0xff]  ;;  %v119_v7 = vld [vmem:[%s616_s11 + $0x10] sm:$0xff] }
   0xf   : > { %v133_v9 = vrot.slane %v117_v5, 4  ;;  %v134_v10 = vrot.slane %v118_v6, 4  ;;  %v135_v11 = vrot.slane %v119_v7, 4  ;;  %v158_v12 = vshrl.u32 %v117_v5, 16  ;;  %v120_v28 = vld [vmem:[%s616_s11 + $0x18] sm:$0xff]  ;;  %v121_v29 = vld [vmem:[%s616_s11 + $0x20] sm:$0xff] }
  0x10   : > { %v621_v8 = vsub.s32 %v255_v4, %v257_v3  ;;  %v161_v13 = vshll.u32 %v117_v5, 16  ;;  %v167_v14 = vshrl.u32 %v118_v6, 16  ;;  %v170_v15 = vshll.u32 %v118_v6, 16 }
  0x11   : > { %v176_v16 = vshrl.u32 %v119_v7, 16  ;;  %v149_v17 = vmax.bf16 %v133_v9, %v117_v5  ;;  %v150_v18 = vmax.bf16 %v134_v10, %v118_v6  ;;  %v160_v19 = vrot.slane %v158_v12, 6  ;;  %v122_v10 = vld [vmem:[%s616_s11 + $0x28] sm:$0xff] }
  0x12   : > { %v151_v20 = vmax.bf16 %v135_v11, %v119_v7  ;;  %v163_v21 = vrot.slane %v161_v13, 7  ;;  %v169_v22 = vrot.slane %v167_v14, 6  ;;  %v172_v23 = vrot.slane %v170_v15, 7  ;;  %v123_v15 = vld [vmem:[%s616_s11 + $0x30] sm:$0xff] }
  0x13   : > { %v178_v24 = vrot.slane %v176_v16, 6  ;;  %v179_v25 = vshll.u32 %v119_v7, 16  ;;  %v347_v26 = vrot.slane %v149_v17, %v621_v8  ;;  %v355_v27 = vrot.slane %v150_v18, %v621_v8 }
  0x14   : > { %v164_v30 = vor.u32 %v163_v21, %v160_v19  ;;  %v173_v31 = vor.u32 %v172_v23, %v169_v22  ;;  %v136_v32 = vrot.slane %v120_v28, 4  ;;  %v137_v33 = vrot.slane %v121_v29, 4 }
  0x15   : > { %v181_v34 = vrot.slane %v179_v25, 7  ;;  %v348_v35 = vcombine.high %v347_v26, %v347_v26  ;;  %v363_v36 = vrot.slane %v151_v20, %v621_v8  ;;  %v356_v39 = vcombine.high %v355_v27, %v355_v27 }
  0x16   : > { %v165_v37 = vrot.slane %v164_v30, 2  ;;  %v174_v38 = vrot.slane %v173_v31, 2  ;;  %v152_v40 = vmax.bf16 %v136_v32, %v120_v28  ;;  %v185_v42 = vshrl.u32 %v120_v28, 16 }
  0x17   : > { %v182_v41 = vor.u32 %v181_v34, %v178_v24  ;;  %v188_v43 = vshll.u32 %v120_v28, 16  ;;  %v194_v44 = vshrl.u32 %v121_v29, 16  ;;  %v153_v47 = vmax.bf16 %v137_v33, %v121_v29 }
  0x18   : > { %v237_v45 = vmax.bf16 %v165_v37, %v149_v17  ;;  %v238_v46 = vmax.bf16 %v174_v38, %v150_v18  ;;  %v197_v48 = vshll.u32 %v121_v29, 16  ;;  %v187_v51 = vrot.slane %v185_v42, 6 }
  0x19   : > { %v183_v49 = vrot.slane %v182_v41, 2  ;;  %v190_v52 = vrot.slane %v188_v43, 7  ;;  %v196_v53 = vrot.slane %v194_v44, 6  ;;  %v371_v57 = vrot.slane %v152_v40, %v621_v8 }
  0x1a   : > { %v259_v54 = vrot.slane %v237_v45, %v621_v8  ;;  %v267_v55 = vrot.slane %v238_v46, %v621_v8  ;;  %v199_v56 = vrot.slane %v197_v48, 7  ;;  %v364_v59 = vcombine.high %v363_v36, %v363_v36 }
  0x1b   : > { %v239_v58 = vmax.bf16 %v183_v49, %v151_v20  ;;  %v191_v60 = vor.u32 %v190_v52, %v187_v51  ;;  %v379_v61 = vrot.slane %v153_v47, %v621_v8  ;;  %v372_v9 = vcombine.high %v371_v57, %v371_v57 }
  0x1c   : > { %v260_v62 = vcombine.high %v259_v54, %v259_v54  ;;  %v268_v63 = vcombine.high %v267_v55, %v267_v55  ;;  %v424_v0 = vsel %vm629_vm2, %v259_v54, %v347_v26  ;;  %v426_v1 = vsel %vm629_vm2, %v267_v55, %v355_v27 }
  0x1d   : > { %v275_v2 = vrot.slane %v239_v58, %v621_v8  ;;  %v440_v3 = vmax.bf16 %v426_v1, %v424_v0  ;;  %v192_v4 = vrot.slane %v191_v60, 2  ;;  %v200_v5 = vor.u32 %v199_v56, %v196_v53 }
  0x1e   : > { %v425_v6 = vsel %vm629_vm2, %v260_v62, %v348_v35  ;;  %v427_v7 = vsel %vm629_vm2, %v268_v63, %v356_v39  ;;  %v380_v18 = vcombine.high %v379_v61, %v379_v61  ;;  %v138_v19 = vrot.slane %v122_v10, 4 }
  0x1f   : > { %v276_v11 = vcombine.high %v275_v2, %v275_v2  ;;  %v428_v12 = vsel %vm629_vm2, %v275_v2, %v363_v36  ;;  %v441_v13 = vmax.bf16 %v427_v7, %v425_v6  ;;  %v201_v14 = vrot.slane %v200_v5, 2 }
  0x20   : > { %v448_v16 = vmax.bf16 %v440_v3, %v428_v12  ;;  %v240_v17 = vmax.bf16 %v192_v4, %v152_v40  ;;  %v203_v22 = vshrl.u32 %v122_v10, 16  ;;  %v206_v23 = vshll.u32 %v122_v10, 16  ;;  %v124_v40 = vld [vmem:[%s616_s11 + $0x38] sm:$0xff] }
  0x21   : > { %v429_v20 = vsel %vm629_vm2, %v276_v11, %v364_v59  ;;  %v241_v21 = vmax.bf16 %v201_v14, %v153_v47  ;;  %v212_v26 = vshrl.u32 %v123_v15, 16  ;;  %v215_v27 = vshll.u32 %v123_v15, 16 }
  0x22   : > { %v449_v24 = vmax.bf16 %v441_v13, %v429_v20  ;;  %v283_v25 = vrot.slane %v240_v17, %v621_v8  ;;  %v139_v29 = vrot.slane %v123_v15, 4  ;;  %v205_v30 = vrot.slane %v203_v22, 6 }
  0x23   : > { %v291_v28 = vrot.slane %v241_v21, %v621_v8  ;;  %v208_v31 = vrot.slane %v206_v23, 7  ;;  %v214_v35 = vrot.slane %v212_v26, 6  ;;  %v154_v38 = vmax.bf16 %v138_v19, %v122_v10 }
  0x24   : > { %v462_v32 = vcombine.low %v448_v16, %v449_v24  ;;  %v284_v33 = vcombine.high %v283_v25, %v283_v25  ;;  %v430_v34 = vsel %vm629_vm2, %v283_v25, %v371_v57  ;;  %v217_v43 = vrot.slane %v215_v27, 7 }
  0x25   : > { %v292_v36 = vcombine.high %v291_v28, %v291_v28  ;;  %v442_v37 = vmax.bf16 %v430_v34, %v428_v12  ;;  %v209_v39 = vor.u32 %v208_v31, %v205_v30  ;;  %v432_v42 = vsel %vm629_vm2, %v291_v28, %v379_v61 }
  0x26   : > { %566 = vst.sshfl [vmem:[%s657_s15] sm:$0x33 pattern:$0x76325410] %v462_v32  ;;  %v431_v41 = vsel %vm629_vm2, %v284_v33, %v372_v9  ;;  %v387_v47 = vrot.slane %v154_v38, %v621_v8  ;;  %v155_v49 = vmax.bf16 %v139_v29, %v123_v15  ;;  %v218_v51 = vor.u32 %v217_v43, %v214_v35 }
  0x27   : > { %v443_v44 = vmax.bf16 %v431_v41, %v429_v20  ;;  %v450_v45 = vmax.bf16 %v442_v37, %v432_v42  ;;  %v210_v46 = vrot.slane %v209_v39, 2  ;;  %v433_v48 = vsel %vm629_vm2, %v292_v36, %v380_v18 }
  0x28   : > { %v221_v52 = vshrl.u32 %v124_v40, 16  ;;  %v140_v55 = vrot.slane %v124_v40, 4  ;;  %v224_v56 = vshll.u32 %v124_v40, 16  ;;  %v219_v57 = vrot.slane %v218_v51, 2 }
  0x29   : > { %v451_v53 = vmax.bf16 %v443_v44, %v433_v48  ;;  %v242_v54 = vmax.bf16 %v210_v46, %v154_v38  ;;  %v395_v58 = vrot.slane %v155_v49, %v621_v8  ;;  %v388_v62 = vcombine.high %v387_v47, %v387_v47 }
  0x2a   : > { %v223_v59 = vrot.slane %v221_v52, 6  ;;  %v226_v63 = vrot.slane %v224_v56, 7  ;;  %v243_v0 = vmax.bf16 %v219_v57, %v155_v49  ;;  %v156_v3 = vmax.bf16 %v140_v55, %v124_v40 }
  0x2b   : > { %v470_v60 = vcombine.low %v450_v45, %v451_v53  ;;  %v299_v61 = vrot.slane %v242_v54, %v621_v8  ;;  %v396_v6 = vcombine.high %v395_v58, %v395_v58 }
  0x2c   : > { %v227_v4 = vor.u32 %v226_v63, %v223_v59  ;;  %v307_v5 = vrot.slane %v243_v0, %v621_v8  ;;  %v403_v11 = vrot.slane %v156_v3, %v621_v8 }
  0x2d   : > { %567 = vst.sshfl [vmem:[%s657_s15 + $0x4] sm:$0x33 pattern:$0x76325410] %v470_v60  ;;  %v300_v1 = vcombine.high %v299_v61, %v299_v61  ;;  %v434_v2 = vsel %vm629_vm2, %v299_v61, %v387_v47 }
  0x2e   : > { %v444_v7 = vmax.bf16 %v434_v2, %v432_v42  ;;  %v228_v10 = vrot.slane %v227_v4, 2  ;;  %v308_v12 = vcombine.high %v307_v5, %v307_v5  ;;  %v436_v13 = vsel %vm629_vm2, %v307_v5, %v395_v58 }
  0x2f   : > { %v435_v9 = vsel %vm629_vm2, %v300_v1, %v388_v62  ;;  %v404_v20 = vcombine.high %v403_v11, %v403_v11 }
  0x30   : > { %v445_v14 = vmax.bf16 %v435_v9, %v433_v48  ;;  %v452_v15 = vmax.bf16 %v444_v7, %v436_v13  ;;  %v244_v16 = vmax.bf16 %v228_v10, %v156_v3  ;;  %v437_v17 = vsel %vm629_vm2, %v308_v12, %v396_v6 }
  0x32   : > { %v453_v18 = vmax.bf16 %v445_v14, %v437_v17  ;;  %v315_v19 = vrot.slane %v244_v16, %v621_v8 }
  0x34   : > { %v478_v21 = vcombine.low %v452_v15, %v453_v18  ;;  %v316_v22 = vcombine.high %v315_v19, %v315_v19  ;;  %v438_v23 = vsel %vm629_vm2, %v315_v19, %v403_v11 }
  0x35   : > { %v446_v24 = vmax.bf16 %v438_v23, %v436_v13 }
  0x36   : > { %568 = vst.sshfl [vmem:[%s657_s15 + $0x8] sm:$0x33 pattern:$0x76325410] %v478_v21  ;;  %v439_v25 = vsel %vm629_vm2, %v316_v22, %v404_v20 }
  0x37   : > { %v447_v26 = vmax.bf16 %v439_v25, %v437_v17 }
  0x39   : > { %v486_v27 = vcombine.low %v446_v24, %v447_v26 }
  0x3b   : > { %569 = vst.sshfl [vmem:[%s657_s15 + $0xc] sm:$0x33 pattern:$0x76325410] %v486_v27 }
  0x3c PF: > { %s11_s6 = sadd.s32 1, %s589_s6  }
  0x3d   : > { %p8_p4 = scmp.ge.s32.totalorder %s11_s6, 4  }
  0x3f   :  { %10 = sbr.rel (!%p8_p4) target bundleno = 1 (0x1), region = 54 }

// kernel: squeezenet_backend_forward.13
= control target key start
LH: loop header
LB: loop body
LE: loop exit
PB: predicated region body
PF: predicated region fallthrough
CT: control target
= control target key end

     0   :  { %s10458_s0 = inlined_call_operand.vmem [shape: bf16[2,16,256], index: 0, kind: input, shape index: {}]   ;;  %s10459_s1 = inlined_call_operand.vmem [shape: bf16[256,48], index: 1, kind: input, shape index: {}]   ;;  %s10460_s2 = inlined_call_operand.vmem [shape: f32[1,48], index: 2, kind: input, shape index: {}]   ;;  %s10461_s3 = inlined_call_operand.vmem [shape: bf16[432,384], index: 3, kind: input, shape index: {}]   ;;  %s10462_s4 = inlined_call_operand.vmem [shape: f32[1,384], index: 4, kind: input, shape index: {}]   ;;  %s10463_s5 = inlined_call_operand.vmem [shape: bf16[384,48], index: 5, kind: input, shape index: {}]   ;;  %s10464_s6 = inlined_call_operand.vmem [shape: f32[1,48], index: 6, kind: input, shape index: {}]   ;;  %s10465_s7 = inlined_call_operand.vmem [shape: bf16[432,384], index: 7, kind: input, shape index: {}]   ;;  %s10466_s8 = inlined_call_operand.vmem [shape: f32[1,384], index: 8, kind: input, shape index: {}]   ;;  %s10467_s9 = inlined_call_operand.vmem [shape: bf16[384,64], index: 9, kind: input, shape index: {}]   ;;  %s10468_s10 = inlined_call_operand.vmem [shape: f32[1,64], index: 10, kind: input, shape index: {}]   ;;  %s10469_s11 = inlined_call_operand.vmem [shape: bf16[576,512], index: 11, kind: input, shape index: {}]   ;;  %s10470_s12 = inlined_call_operand.vmem [shape: f32[1,512], index: 12, kind: input, shape index: {}]   ;;  %s10471_s13 = inlined_call_operand.vmem [shape: bf16[512,64], index: 13, kind: input, shape index: {}]   ;;  %s10472_s14 = inlined_call_operand.vmem [shape: f32[1,64], index: 14, kind: input, shape index: {}]   ;;  %s10473_s15 = inlined_call_operand.vmem [shape: bf16[576,512], index: 15, kind: input, shape index: {}]   ;;  %s10474_s16 = inlined_call_operand.vmem [shape: f32[1,512], index: 16, kind: input, shape index: {}]   ;;  %s10475_s17 = inlined_call_operand.vmem [shape: bf16[512,16], index: 17, kind: input, shape index: {}]   ;;  %s10476_s18 = inlined_call_operand.vmem [shape: f32[1,16], index: 18, kind: input, shape index: {}]   ;;  %s10477_s19 = inlined_call_operand.hbm [shape: f32[2,1,16], index: 19, kind: output, shape index: {}]  }
   0x1   :  { %10504 = sst [smem:[#allocation13_spill]] %s10458_s0 }
   0x2   :  { %10505 = sst [smem:[#allocation14_spill]] %s10459_s1 }
   0x3   :  { %10506 = sst [smem:[#allocation15_spill]] %s10460_s2 }
   0x4   :  { %10507 = sst [smem:[#allocation16_spill]] %s10461_s3 }
   0x5   :  { %10508 = sst [smem:[#allocation17_spill]] %s10462_s4 }
   0x6   :  { %10509 = sst [smem:[#allocation18_spill]] %s10463_s5 }
   0x7   :  { %10510 = sst [smem:[#allocation19_spill]] %s10477_s19 }
   0x8   :  { %24 = vsyncpa [#allocation3], 0 }
   0x9   :  { %26 = vsyncpa [#allocation3 + $0x1], 0  ;;  %s8300_s0 = smov 0   ;;  %s8302_s30 = smov 0  }
   0xa   :  { %s8304_s20 = smov 0   ;;  %s8306_s21 = smov 0  }
   0xb LB: > { %10511 = sst [smem:[#allocation5_spill]] %s8175_s0  ;;  %s8321_s1 = sadd.s32 4294967295, %s8187_s21   ;;  %s8187_s21 = sphi %s8306_s21, %s10564_s21   ;;  %s8183_s20 = sphi %s8304_s20, %s10566_s20   ;;  %s8179_s30 = sphi %s8302_s30, %s10568_s30   ;;  %s8175_s0 = sphi %s8300_s0, %s10567_s0  }
   0xc   : > { %10512 = sst [smem:[#allocation6_spill]] %s8183_s20  ;;  %s6440_s22 = sadd.s32 4294967294, %s8187_s21  }
   0xd   : > { %10513 = sst [smem:[#allocation7_spill]] %s8187_s21  ;;  %s8325_s2 = sadd.s32 1, %s8187_s21  }
   0xe   : > { %10514 = sst [smem:[#allocation8_spill]] %s8321_s1  ;;  %s443_s23 = sadd.s32 1, %s8183_s20 }
   0xf   : > { %10515 = sst [smem:[#allocation9_spill]] %s8325_s2  ;;  %s440_s24 = ssub.s32 %s8187_s21, %s8325_s2 }
  0x10   : > { %p453_p0 = scmp.ne.s32.totalorder %s8183_s20, %s8179_s30  ;;  %p441_p1 = scmp.eq.s32.totalorder %s440_s24, 0 }
  0x11   : > { %p454_p2 = scmp.eq.s32.totalorder %s8321_s1, 1  ;;  %p459_p3 = scmp.ne.s32.totalorder %s8179_s30, %s8175_s0 }
  0x12   : > { %p460_p4 = scmp.eq.s32.totalorder %s6440_s22, 1  ;;  %p6443_p7 = scmp.ge.s32.totalorder %s8187_s21, 1 }
  0x13   : > { %s8336_s25 = scalar_select %p441_p1, %s8183_s20, %s443_s23  }
  0x14   : > { %p8338_p5 = por %p454_p2, %p453_p0  ;;  %p8342_p6 = por %p460_p4, %p459_p3 }
  0x15   : > { %10516 = sst [smem:[#allocation10_spill]] %s8336_s25  ;;  %p540_p8 = scmp.lt.s32.totalorder %s8187_s21, 3 }
  0x16   : > { %s10517_s3 = scalar_select %p8338_p5, 1, 0 }
  0x17   : > { %s10519_s26 = scalar_select %p8342_p6, 1, 0 }
  0x18   : > { %10518 = sst [smem:[#allocation11_spill]] %s10517_s3  ;;  %p541_p9 = pnand %p6443_p7, %p540_p8 }
  0x19   : > { %10520 = sst [smem:[#allocation12_spill]] %s10519_s26  ;;  %p595_p10 = scmp.lt.s32.totalorder (!%p541_p9), %s8321_s1, 1 }
  0x1a   : > { %544 = sbr.rel (%p541_p9) target bundleno = 2725 (0xaa5), region = 96  ;;  %s10521_s29 = sld [smem:[#allocation14_spill]] (!%p541_p9) }
  0x1b   : > { %s10522_s22 = sld [smem:[#allocation13_spill]] (!%p541_p9)  ;;  %s8190_s21 = smov (!%p541_p9), 112  }
  0x1c   : > { %s10523_s24 = sld [smem:[#allocation16_spill]] (!%p541_p9)  ;;  %s8191_s3 = smov (!%p541_p9), 96  }
  0x1d   : > { %s10524_s20 = sld [smem:[#allocation15_spill]] (!%p541_p9)  ;;  %s8192_s28 = smov (!%p541_p9), 32  }
  0x1e   : > { %s10498_s26 = smov (!%p541_p9), 80   ;;  %s10496_s25 = smov (!%p541_p9), 64  }
  0x1f   : > { %s596_s23 = scalar_select %p595_p10, %s8321_s1, 1  ;;  %vm956_vm4 = vsmask.f32 2304  ;;  %vm10501_vm5 = vcmask 1042432   ;;  %vm10503_vm6 = vcmask 1044480   ;;  %vm999_vm7 = vcmask 1046528  }
  0x20   : > { %v7348_v0 = vld [vmem:[%s10521_s29 + $0x78] sm:$0xff]   ;;  %v7350_v2 = vld [vmem:[%s10521_s29 + $0x70] sm:$0xff]   ;;  %v7352_v4 = vld [vmem:[%s10521_s29 + $0x68] sm:$0xff]   ;;  %vm1050_vm8 = vcmask 392192   ;;  %vm10500_vm10 = vcmask 1043456   ;;  %vm10490_vm12 = vcmask 1045504  }
  0x21   : > { %v7349_v1 = vld [vmem:[%s10521_s29 + $0x38] sm:$0xff]   ;;  %7043 = vmatprep.subr.bf16.mxu0 %v7348_v0  ;;  %v7351_v3 = vld [vmem:[%s10521_s29 + $0x30] sm:$0xff]   ;;  %v7353_v5 = vld [vmem:[%s10521_s29 + $0x28] sm:$0xff]   ;;  %s7042_s0 = sshll.u32 %s596_s23, 4  ;;  %v900_v0 = vlaneseq  ;;  %vm1037_vm11 = vsmask.f32 3328 }
  0x22   : > { %7044 = vmatpush3.bf16.msra.mxu0 %v7349_v1  ;;  %v7354_v6 = vld [vmem:[%s10521_s29 + $0x60] sm:$0xff]   ;;  %v7356_v8 = vld [vmem:[%s10521_s29 + $0x58] sm:$0xff]   ;;  %s599_s19 = scalar_lea.vmem %s10522_s22, %s7042_s0  ;;  %v7358_v10 = vld [vmem:[%s10521_s29 + $0x50] sm:$0xff]   ;;  %vm10502_vm13 = vsmask.f32 5376  ;;  %s10495_s22 = smov 16  }
  0x23   : > { %7045 = vmatprep.subr.bf16.mxu0 %v7350_v2  ;;  %v7355_v7 = vld [vmem:[%s10521_s29 + $0x20] sm:$0xff]   ;;  %v7357_v9 = vld [vmem:[%s10521_s29 + $0x18] sm:$0xff]   ;;  %v7359_v11 = vld [vmem:[%s10521_s29 + $0x10] sm:$0xff]   ;;  %vm10491_vm14 = vsmask.f32 7424  ;;  %s10494_s23 = smov 48  }
  0x24   : > { %v7366_v12 = vld [vmem:[%s599_s19 + $0x4] ss:$8 sps:$4 sm:$0xff]   ;;  %v7364_v17 = vld [vmem:[%s599_s19] ss:$8 sps:$4 sm:$0xff]   ;;  %v7372_v23 = vld [vmem:[%s10523_s24 + $0x90] ss:$12 sps:$4 sm:$0xff]  }
  0x25   : > { %v7360_v13 = vld [vmem:[%s10521_s29 + $0x48] sm:$0xff]   ;;  %889 = vmatprep.mubr.bf16.mxu0 %v7366_v12  ;;  %v7362_v15 = vld [vmem:[%s10521_s29 + $0x40] sm:$0xff]   ;;  %v7384_v26 = vld [vmem:[%s10523_s24 + $0x210] ss:$12 sps:$4 sm:$0xff]   ;;  %vm10492_vm15 = vcmask 261120   ;;  %s10535_s5 = sld [smem:[#allocation18_spill]] }
  0x26   : > { %7046 = vmatpush3.bf16.msra.mxu0 %v7351_v3  ;;  %v7361_v14 = vld [vmem:[%s10521_s29 + $0x8] sm:$0xff]   ;;  %v7363_v16 = vld [vmem:[%s10521_s29] sm:$0xff]   ;;  %v7393_v40 = vld [vmem:[%s10523_s24 + $0x30] ss:$12 sps:$4 sm:$0xff]   ;;  %v8542_v3 = vshrl.u32 %v900_v0, 7  ;;  %s10536_s4 = sld [smem:[#allocation17_spill]] }
  0x27   : > { %7047 = vmatprep.subr.bf16.mxu0 %v7352_v4  ;;  %v7367_v18 = vld [vmem:[%s10523_s24 + $0xac] ss:$12 sps:$4 sm:$0xff]   ;;  %v7369_v19 = vld [vmem:[%s10523_s24 + $0xa8] ss:$12 sps:$4 sm:$0xff]   ;;  %v7376_v29 = vld [vmem:[%s10523_s24 + $0x64] ss:$12 sps:$4 sm:$0xff]  }
  0x28   : > { %v7370_v20 = vld [vmem:[%s10523_s24 + $0x94] ss:$12 sps:$4 sm:$0xff]   ;;  %1526 = vmatprep.subr.bf16.mxu1 %v7367_v18  ;;  %v7380_v22 = vld [vmem:[%s10523_s24 + $0x22c] ss:$12 sps:$4 sm:$0xff]   ;;  %v7373_v24 = vld [vmem:[%s10523_s24 + $0x7c] ss:$12 sps:$4 sm:$0xff]  }
  0x29   : > { %v7378_v21 = vld [vmem:[%s10523_s24 + $0x228] ss:$12 sps:$4 sm:$0xff]   ;;  %1527 = vmatpush1.bf16.msra.mxu1 %v7369_v19  ;;  %v7375_v28 = vld [vmem:[%s10523_s24 + $0x78] ss:$12 sps:$4 sm:$0xff]   ;;  %v7381_v32 = vld [vmem:[%s10523_s24 + $0x60] ss:$12 sps:$4 sm:$0xff]  }
  0x2a   : > { %7048 = vmatpush3.bf16.msra.mxu0 %v7353_v5  ;;  %1528 = vmatprep.subr.bf16.mxu1 %v7370_v20  ;;  %v7386_v25 = vld [vmem:[%s10523_s24 + $0x214] ss:$12 sps:$4 sm:$0xff]   ;;  %v7392_v27 = vld [vmem:[%s10523_s24 + $0x1fc] ss:$12 sps:$4 sm:$0xff]   ;;  %v7390_v30 = vld [vmem:[%s10523_s24 + $0x1f8] ss:$12 sps:$4 sm:$0xff]  }
  0x2b   : > { %7049 = vmatprep.subr.bf16.mxu0 %v7354_v6  ;;  %v7398_v31 = vld [vmem:[%s10523_s24 + $0x1e4] ss:$12 sps:$4 sm:$0xff]   ;;  %v7382_v33 = vld [vmem:[%s10523_s24 + $0x4c] ss:$12 sps:$4 sm:$0xff]   ;;  %v7387_v35 = vld [vmem:[%s10523_s24 + $0x48] ss:$12 sps:$4 sm:$0xff]  }
  0x2c   : > { %v7396_v34 = vld [vmem:[%s10523_s24 + $0x1e0] ss:$12 sps:$4 sm:$0xff]   ;;  %v7402_v38 = vld [vmem:[%s10523_s24 + $0x1c8] ss:$12 sps:$4 sm:$0xff]   ;;  %v7408_v42 = vld [vmem:[%s10523_s24 + $0x1b0] ss:$12 sps:$4 sm:$0xff]  }
  0x2d   : > { %1529 = vmatpush1.bf16.msra.mxu1 %v7372_v23  ;;  %v7388_v36 = vld [vmem:[%s10523_s24 + $0x34] ss:$12 sps:$4 sm:$0xff]   ;;  %v7404_v37 = vld [vmem:[%s10523_s24 + $0x1cc] ss:$12 sps:$4 sm:$0xff]   ;;  %v7394_v41 = vld [vmem:[%s10523_s24 + $0x1c] ss:$12 sps:$4 sm:$0xff]  }
  0x2e   : > { %7050 = vmatpush3.bf16.msra.mxu0 %v7355_v7  ;;  %1530 = vmatprep.subr.bf16.mxu1 %v7373_v24  ;;  %v7410_v39 = vld [vmem:[%s10523_s24 + $0x1b4] ss:$12 sps:$4 sm:$0xff]   ;;  %v7416_v43 = vld [vmem:[%s10523_s24 + $0x19c] ss:$12 sps:$4 sm:$0xff]   ;;  %v7399_v44 = vld [vmem:[%s10523_s24 + $0x18] ss:$12 sps:$4 sm:$0xff]  }
  0x2f   : > { %7051 = vmatprep.subr.bf16.mxu0 %v7356_v8  ;;  %v7400_v45 = vld [vmem:[%s10523_s24 + $0x4] ss:$12 sps:$4 sm:$0xff]   ;;  %v7405_v48 = vld [vmem:[%s10523_s24] ss:$12 sps:$4 sm:$0xff]   ;;  %v7411_v52 = vld [vmem:[%s10523_s24 + $0x168] ss:$12 sps:$4 sm:$0xff]  }
  0x30   : > { %v7414_v46 = vld [vmem:[%s10523_s24 + $0x198] ss:$12 sps:$4 sm:$0xff]   ;;  %v7420_v50 = vld [vmem:[%s10523_s24 + $0x180] ss:$12 sps:$4 sm:$0xff]   ;;  %v7426_v54 = vld [vmem:[%s10523_s24 + $0x270] ss:$12 sps:$4 sm:$0xff]  }
  0x31   : > { %1531 = vmatpush1.bf16.msra.mxu1 %v7375_v28  ;;  %v7422_v47 = vld [vmem:[%s10523_s24 + $0x184] ss:$12 sps:$4 sm:$0xff]   ;;  %v7406_v49 = vld [vmem:[%s10523_s24 + $0x16c] ss:$12 sps:$4 sm:$0xff]   ;;  %v7428_v51 = vld [vmem:[%s10523_s24 + $0x274] ss:$12 sps:$4 sm:$0xff]  }
  0x32   : > { %7052 = vmatpush3.bf16.msra.mxu0 %v7357_v9  ;;  %1532 = vmatprep.subr.bf16.mxu1 %v7376_v29  ;;  %v7412_v53 = vld [vmem:[%s10523_s24 + $0x154] ss:$12 sps:$4 sm:$0xff]   ;;  %v7434_v55 = vld [vmem:[%s10523_s24 + $0x25c] ss:$12 sps:$4 sm:$0xff]   ;;  %v7432_v58 = vld [vmem:[%s10523_s24 + $0x258] ss:$12 sps:$4 sm:$0xff]  }
  0x33   : > { %7053 = vmatprep.subr.bf16.mxu0 %v7358_v10  ;;  %v7417_v56 = vld [vmem:[%s10523_s24 + $0x150] ss:$12 sps:$4 sm:$0xff]   ;;  %v7423_v59 = vld [vmem:[%s10523_s24 + $0x138] ss:$12 sps:$4 sm:$0xff]   ;;  %v7429_v61 = vld [vmem:[%s10523_s24 + $0x120] ss:$12 sps:$4 sm:$0xff]  }
  0x34   : > { %v7418_v57 = vld [vmem:[%s10523_s24 + $0x13c] ss:$12 sps:$4 sm:$0xff]   ;;  %v7424_v60 = vld [vmem:[%s10523_s24 + $0x124] ss:$12 sps:$4 sm:$0xff]   ;;  %v7430_v62 = vld [vmem:[%s10523_s24 + $0x10c] ss:$12 sps:$4 sm:$0xff]  }
  0x35   : > { %1533 = vmatpush1.bf16.msra.mxu1 %v7381_v32  ;;  %v7435_v63 = vld [vmem:[%s10523_s24 + $0x108] ss:$12 sps:$4 sm:$0xff]   ;;  %v6446_v2 = vld [vmem:[%s10524_s20] ss:$0 sm:$0xff]  ;;  %v902_v5 = vadd.s32 8, %v8542_v3  ;;  %v907_v9 = vand.u32 3, %v8542_v3  ;;  %vm8584_vm9 = vmand %vm10501_vm5, %vm956_vm4 }
  0x36   : > { %7054 = vmatpush3.bf16.msra.mxu0 %v7359_v11  ;;  %1534 = vmatprep.subr.bf16.mxu1 %v7382_v33  ;;  %v7440_v29 = vld [vmem:[%s10523_s24 + $0x244] ss:$12 sps:$4 sm:$0xff]   ;;  %vm10493_vm4 = vcmask 654336   ;;  %s10540_s27 = smov 16   ;;  %s10560_s1 = sld [smem:[#allocation19_spill]] }
  0x37   : > { %7055 = vmatprep.subr.bf16.mxu0 %v7360_v13  ;;  %v914_v11 = vand.u32 3, %v902_v5  ;;  %vm8546_vm0 = vcmp.eq.s32.totalorder %v907_v9, 3  ;;  %vm8550_vm1 = vcmp.eq.s32.totalorder %v907_v9, 0  ;;  %v7446_v0 = vld [vmem:[%s10523_s24 + $0xc4] ss:$12 sps:$4 sm:$0xff]   ;;  %s8199_s2 = smov [#allocation2]  }
  0x39   : > { %1535 = vmatpush1.bf16.msra.mxu1 %v7387_v35  ;;  %vm8554_vm2 = vcmp.eq.s32.totalorder %v914_v11, 3  ;;  %vm8558_vm3 = vcmp.eq.s32.totalorder %v914_v11, 0 }
  0x3a   : > { %7056 = vmatpush3.bf16.msra.mxu0 %v7361_v14  ;;  %1536 = vmatprep.subr.bf16.mxu1 %v7388_v36  ;;  %v7972_v14 = vld [vmem:[%s10473_s15 + $0x300] ss:$16 sps:$4 sm:$0xff]  }
  0x3b   : > { %7057 = vmatprep.subr.bf16.mxu0 %v7362_v15 }
  0x3d   : > { %1537 = vmatpush1.bf16.msra.mxu1 %v7393_v40 }
  0x3e   : > { %7058 = vmatpush3.bf16.msra.mxu0 %v7363_v16  ;;  %1538 = vmatprep.subr.bf16.mxu1 %v7394_v41 }
  0x3f   : > { %1569 = vmatprep.subr.bf16.mxu0 %v7380_v22 }
  0x41   : > { %890 = vmatmul.mubr.bf16.vlgmr.msra.gmra.mxu0 %v7364_v17  ;;  %1539 = vmatpush1.bf16.msra.mxu1 %v7399_v44  ;;  %v7974_v17 = vld [vmem:[%s10473_s15 + $0x304] ss:$16 sps:$4 sm:$0xff]  }
  0x42   : > { %1570 = vmatpush1.bf16.msra.mxu0 %v7378_v21  ;;  %1540 = vmatprep.subr.bf16.mxu1 %v7400_v45 }
  0x43   : > { %1571 = vmatprep.subr.bf16.mxu0 %v7386_v25  ;;  %v7436_v25 = vld [vmem:[%s10523_s24 + $0xf4] ss:$12 sps:$4 sm:$0xff]  }
  0x45   : > { %1541 = vmatpush1.bf16.msra.mxu1 %v7405_v48  ;;  %v7444_v48 = vld [vmem:[%s10523_s24 + $0xd8] ss:$12 sps:$4 sm:$0xff]  }
  0x46   : > { %1572 = vmatpush1.bf16.msra.mxu0 %v7384_v26  ;;  %1542 = vmatprep.subr.bf16.mxu1 %v7406_v49  ;;  %v7438_v26 = vld [vmem:[%s10523_s24 + $0x240] ss:$12 sps:$4 sm:$0xff]  }
  0x47   : > { %1573 = vmatprep.subr.bf16.mxu0 %v7392_v27 }
  0x49   : > { %1543 = vmatpush2.bf16.msra.mxu1 %v7411_v52 }
  0x4a   : > { %1574 = vmatpush1.bf16.msra.mxu0 %v7390_v30  ;;  %1544 = vmatprep.subr.bf16.mxu1 %v7412_v53  ;;  %v7441_v30 = vld [vmem:[%s10523_s24 + $0xf0] ss:$12 sps:$4 sm:$0xff]  }
  0x4b   : > { %1575 = vmatprep.subr.bf16.mxu0 %v7398_v31 }
  0x4d   : > { %1545 = vmatpush2.bf16.msra.mxu1 %v7417_v56 }
  0x4e   : > { %1576 = vmatpush1.bf16.msra.mxu0 %v7396_v34  ;;  %1546 = vmatprep.subr.bf16.mxu1 %v7418_v57 }
  0x4f   : > { %1577 = vmatprep.subr.bf16.mxu0 %v7404_v37 }
  0x51   : > { %1547 = vmatpush2.bf16.msra.mxu1 %v7423_v59 }
  0x52   : > { %1578 = vmatpush1.bf16.msra.mxu0 %v7402_v38  ;;  %1548 = vmatprep.subr.bf16.mxu1 %v7424_v60 }
  0x53   : > { %1579 = vmatprep.subr.bf16.mxu0 %v7410_v39 }
  0x55   : > { %1549 = vmatpush2.bf16.msra.mxu1 %v7429_v61 }
  0x56   : > { %1580 = vmatpush1.bf16.msra.mxu0 %v7408_v42  ;;  %1550 = vmatprep.subr.bf16.mxu1 %v7430_v62 }
  0x57   : > { %1581 = vmatprep.subr.bf16.mxu0 %v7416_v43 }
  0x59   : > { %1551 = vmatpush2.bf16.msra.mxu1 %v7435_v63 }
  0x5a   : > { %1582 = vmatpush1.bf16.msra.mxu0 %v7414_v46  ;;  %1552 = vmatprep.subr.bf16.mxu1 %v7436_v25 }
  0x5b   : > { %1583 = vmatprep.subr.bf16.mxu0 %v7422_v47  ;;  %v7442_v47 = vld [vmem:[%s10523_s24 + $0xdc] ss:$12 sps:$4 sm:$0xff]  }
  0x5d   : > { %1553 = vmatpush2.bf16.msra.mxu1 %v7441_v30 }
  0x5e   : > { %1584 = vmatpush1.bf16.msra.mxu0 %v7420_v50  ;;  %1554 = vmatprep.subr.bf16.mxu1 %v7442_v47  ;;  %v7449_v47 = vld [vmem:[%s10523_s24 + $0x218] ss:$12 sps:$4 sm:$0xff]  }
  0x5f   : > { %1595 = vmatprep.subr.bf16.mxu0 %v7428_v51  ;;  %v8189_v51 = vmov 0  }
  0x61   : > { %1555 = vmatpush2.bf16.msra.mxu1 %v7444_v48 }
  0x62   : > { %1596 = vmatpush2.bf16.msra.mxu0 %v7426_v54  ;;  %1556 = vmatprep.subr.bf16.mxu1 %v7446_v0  ;;  %v7460_v0 = vld [vmem:[%s10523_s24 + $0x68] ss:$12 sps:$4 sm:$0xff]  }
  0x63   : > { %1597 = vmatprep.subr.bf16.mxu0 %v7434_v55 }
  0x66   : > { %1598 = vmatpush2.bf16.msra.mxu0 %v7432_v58 }
  0x67   : > { %1599 = vmatprep.subr.bf16.mxu0 %v7440_v29 }
  0x6a   : > { %1600 = vmatpush2.bf16.msra.mxu0 %v7438_v26 }
  0x6b   : > { %1653 = vmatprep.subr.bf16.mxu0 %v8189_v51 }
 0x101   : > { %v7059_v1 = vpop.f32.mrf.mxu0 }
 0x103   : > { %v7060_v4 = vpop.f32.mrf.mxu0 }
 0x104   : > { %v7061_v6 = vadd.f32 %v7060_v4, %v7059_v1 }
 0x105   : > { %v7062_v7 = vpop.f32.mrf.mxu0 }
 0x106   : > { %v892_v8 = vadd.f32 %v7061_v6, %v6446_v2  ;;  %v7448_v6 = vld [vmem:[%s10523_s24 + $0xc0] ss:$12 sps:$4 sm:$0xff]  }
 0x107   : > { %v7063_v10 = vpop.f32.mrf.mxu0  ;;  %1557 = vmatpush2.bf16.msra.mxu1 %v7448_v6  ;;  %v7464_v6 = vld [vmem:[%s10523_s24 + $0x1a0] ss:$12 sps:$4 sm:$0xff]  }
 0x108   : > { %v7064_v12 = vadd.f32 %v7063_v10, %v7062_v7  ;;  %v898_v13 = vmax.f32 %v892_v8, 0.0  ;;  %v7450_v10 = vld [vmem:[%s10523_s24 + $0x170] ss:$12 sps:$4 sm:$0xff]  }
 0x109   : > { %7065 = vmatprep.subr.bf16.mxu1 %v7450_v10  ;;  %v7469_v10 = vld [vmem:[%s10523_s24 + $0x20] ss:$12 sps:$4 sm:$0xff]  }
 0x10a   : > { %v895_v16 = vadd.f32 %v7064_v12, %v6446_v2  ;;  %v934_v20 = vsel %vm8546_vm0, 0.0, %v898_v13  ;;  %v943_v21 = vsel %vm8550_vm1, 0.0, %v898_v13 }
 0x10c   : > { %v899_v19 = vmax.f32 %v895_v16, 0.0 }
 0x10e   : > { %v927_v22 = vpack.c.bf16 %v899_v19, %v898_v13  ;;  %v935_v23 = vsel %vm8554_vm2, 0.0, %v899_v19  ;;  %v944_v24 = vsel %vm8558_vm3, 0.0, %v899_v19 }
 0x10f   : > { %v936_v27 = vpack.c.bf16 %v935_v23, %v934_v20  ;;  %v945_v28 = vpack.c.bf16 %v944_v24, %v943_v21 }
 0x110   : > { %v961_v31 = vshrl.u32 %v927_v22, 16  ;;  %v964_v32 = vshll.u32 %v927_v22, 16 }
 0x111   : > { %v947_v33 = vshrl.u32 %v936_v27, 16  ;;  %v950_v34 = vshll.u32 %v936_v27, 16  ;;  %v972_v35 = vshrl.u32 %v945_v28, 16  ;;  %v975_v36 = vshll.u32 %v945_v28, 16 }
 0x112   : > { %v963_v37 = vrot.slane %v961_v31, 5  ;;  %v966_v38 = vrot.slane %v964_v32, 6 }
 0x113   : > { %v949_v39 = vrot.slane %v947_v33, 5  ;;  %v952_v40 = vrot.slane %v950_v34, 6  ;;  %v974_v41 = vrot.slane %v972_v35, 5  ;;  %v977_v42 = vrot.slane %v975_v36, 6 }
 0x114   : > { %v967_v44 = vor.u32 %v966_v38, %v963_v37 }
 0x115   : > { %v978_v45 = vor.u32 %v977_v42, %v974_v41  ;;  %v953_v46 = vor.u32 %v952_v40, %v949_v39  ;;  %v7445_v41 = vld [vmem:[%s10523_s24 + $0x230] ss:$12 sps:$4 sm:$0xff]  }
 0x116   : > { %v969_v49 = vsel %vm8584_vm9, 0, %v967_v44  ;;  %v970_v50 = vsel %vm8584_vm9, %v967_v44, 0 }
 0x117   : > { %v980_v52 = vsel %vm8584_vm9, 0, %v978_v45  ;;  %v981_v53 = vsel %vm8584_vm9, %v978_v45, 0  ;;  %v8605_v54 = vsel %vm8584_vm9, 0, %v953_v46  ;;  %v959_v55 = vsel %vm8584_vm9, %v953_v46, 0 }
 0x118   : > { %v1047_v56 = vrot.slane %v980_v52, 5  ;;  %v1048_v57 = vrot.slane %v981_v53, 5  ;;  %v1026_v58 = vrot.slane %v980_v52, 3  ;;  %v1027_v59 = vrot.slane %v981_v53, 3 }
 0x119   : > { %v1000_v60 = vrot.slane %v980_v52, 1  ;;  %v1001_v61 = vrot.slane %v981_v53, 1  ;;  %v1032_v62 = vrot.slane %v8605_v54, 4  ;;  %v1033_v63 = vrot.slane %v959_v55, 4  ;;  %v7451_v52 = vld [vmem:[%s10523_s24 + $0xb0] ss:$12 sps:$4 sm:$0xff]  }
 0x11a   : > { %v8614_v1 = vsel %vm10501_vm5, %v1047_v56, %v1048_v57  ;;  %v1028_v2 = vsel %vm10503_vm6, %v1026_v58, %v1027_v59  ;;  %v984_v4 = vshrl.u32 %v969_v49, 16  ;;  %v986_v5 = vshll.u32 %v969_v49, 16  ;;  %v7453_v56 = vld [vmem:[%s10523_s24 + $0x158] ss:$12 sps:$4 sm:$0xff]   ;;  %v7452_v58 = vld [vmem:[%s10523_s24 + $0x200] ss:$12 sps:$4 sm:$0xff]  }
 0x11b   : > { %6546 = vmatprep.mubr.msk.bf16.mxu0 %vm1050_vm8, %v8614_v1  ;;  %1029 = vrot.lane.b32.xlu0 %v1028_v2, %s8190_s21  ;;  %v1002_v7 = vsel %vm999_vm7, %v1000_v60, %v1001_v61  ;;  %v991_v8 = vshll.u32 %v970_v50, 16  ;;  %v1017_v9 = vshrl.u32 %v970_v50, 16  ;;  %v1034_v11 = vsel %vm10500_vm10, %v1032_v62, %v1033_v63  ;;  %v7456_v59 = vld [vmem:[%s10523_s24 + $0x140] ss:$12 sps:$4 sm:$0xff]   ;;  %v7455_v60 = vld [vmem:[%s10523_s24 + $0x1e8] ss:$12 sps:$4 sm:$0xff]  }
 0x11c   : > { %1003 = vrot.lane.b32.xlu1 %v1002_v7, %s8191_s3  ;;  %v1038_v12 = vrot.slane %v984_v4, 4  ;;  %v1039_v13 = vrot.slane %v986_v5, 5  ;;  %v1008_v16 = vrot.slane %v8605_v54, 2  ;;  %v1014_v21 = vrot.slane %v984_v4, 2  ;;  %v7457_v61 = vld [vmem:[%s10523_s24 + $0x80] ss:$12 sps:$4 sm:$0xff]  }
 0x11d   : > { %v1041_v19 = vrot.slane %v1017_v9, 4  ;;  %v1042_v20 = vrot.slane %v991_v8, 5  ;;  %v1015_v22 = vrot.slane %v986_v5, 3  ;;  %v1009_v24 = vrot.slane %v959_v55, 2  ;;  %v7459_v62 = vld [vmem:[%s10523_s24 + $0x128] ss:$12 sps:$4 sm:$0xff]  }
 0x11e   : > { %v1040_v23 = vor.u32 %v1039_v13, %v1038_v12  ;;  %v1019_v25 = vrot.slane %v1017_v9, 2  ;;  %v1020_v26 = vrot.slane %v991_v8, 3  ;;  %v988_v28 = vrot.slane %v986_v5, 1  ;;  %v7458_v63 = vld [vmem:[%s10523_s24 + $0x1d0] ss:$12 sps:$4 sm:$0xff]  }
 0x11f   : > { %1035 = vrot.lane.b32.xlu0 %v1034_v11, %s8192_s28  ;;  %v1043_v27 = vor.u32 %v1042_v20, %v1041_v19  ;;  %v1016_v30 = vor.u32 %v1015_v22, %v1014_v21  ;;  %v1010_v32 = vsel %vm10490_vm12, %v1008_v16, %v1009_v24  ;;  %v993_v34 = vrot.slane %v991_v8, 1  ;;  %v7461_v2 = vld [vmem:[%s10523_s24 + $0x1b8] ss:$12 sps:$4 sm:$0xff]   ;;  %v7468_v8 = vld [vmem:[%s10523_s24 + $0xe0] ss:$12 sps:$4 sm:$0xff]   ;;  %v7477_v21 = vld [vmem:[%s10535_s5 + $0x70] sm:$0xff]  }
 0x120   : > { %v1021_v31 = vor.u32 %v1020_v26, %v1019_v25  ;;  %v989_v33 = vor.u32 %v988_v28, %v984_v4  ;;  %vm1058_vm12 = vcmask 130048   ;;  %v7463_v4 = vld [vmem:[%s10523_s24 + $0x50] ss:$12 sps:$4 sm:$0xff]   ;;  %v7465_v5 = vld [vmem:[%s10523_s24 + $0xf8] ss:$12 sps:$4 sm:$0xff]   ;;  %v7479_v24 = vld [vmem:[%s10535_s5 + $0x68] sm:$0xff]  }
 0x121   : > { %v1044_v29 = vsel %vm1037_vm11, %v1040_v23, %v1043_v27  ;;  %v7466_v7 = vld [vmem:[%s10523_s24 + $0x38] ss:$12 sps:$4 sm:$0xff]   ;;  %v7467_v9 = vld [vmem:[%s10523_s24 + $0x188] ss:$12 sps:$4 sm:$0xff]   ;;  %v7473_v19 = vld [vmem:[%s10523_s24 + $0x260] ss:$12 sps:$4 sm:$0xff]  }
 0x122   : > { %1045 = vrot.lane.b32.xlu1 %v1044_v29, %s10498_s26  ;;  %v1022_v35 = vsel %vm10502_vm13, %v1016_v30, %v1021_v31  ;;  %v994_v36 = vsel %vm10491_vm14, %v989_v33, %v993_v34  ;;  %vm1061_vm14 = vcmask 523264   ;;  %v7471_v11 = vld [vmem:[%s10523_s24 + $0xc8] ss:$12 sps:$4 sm:$0xff]   ;;  %v7470_v12 = vld [vmem:[%s10523_s24 + $0x278] ss:$12 sps:$4 sm:$0xff]  }
 0x123   : > { %1011 = vrot.lane.b32.xlu0 %v1010_v32, %s10495_s22  ;;  %v7472_v13 = vld [vmem:[%s10523_s24 + $0x8] ss:$12 sps:$4 sm:$0xff]   ;;  %v7475_v16 = vld [vmem:[%s10535_s5 + $0x78] sm:$0xff]   ;;  %v7481_v26 = vld [vmem:[%s10535_s5 + $0x60] sm:$0xff]   ;;  %s10558_s22 = sld [smem:[#allocation8_spill]] }
 0x124   : > { %v7476_v20 = vld [vmem:[%s10535_s5 + $0x38] sm:$0xff]   ;;  %v7474_v22 = vld [vmem:[%s10523_s24 + $0x248] ss:$12 sps:$4 sm:$0xff]   ;;  %v7482_v27 = vld [vmem:[%s10535_s5 + $0x20] sm:$0xff]  }
 0x125   : > { %v7478_v23 = vld [vmem:[%s10535_s5 + $0x30] sm:$0xff]   ;;  %v7480_v25 = vld [vmem:[%s10535_s5 + $0x28] sm:$0xff]   ;;  %v7483_v28 = vld [vmem:[%s10535_s5 + $0x58] sm:$0xff]  }
 0x126   : > { %1023 = vrot.lane.b32.xlu1 %v1022_v35, %s10496_s25  ;;  %v7484_v29 = vld [vmem:[%s10535_s5 + $0x18] sm:$0xff]   ;;  %v7485_v30 = vld [vmem:[%s10535_s5 + $0x50] sm:$0xff]   ;;  %v7487_v32 = vld [vmem:[%s10535_s5 + $0x48] sm:$0xff]  }
 0x127   : > { %995 = vrot.lane.b32.xlu0 %v994_v36, %s10494_s23  ;;  %v7486_v31 = vld [vmem:[%s10535_s5 + $0x10] sm:$0xff]   ;;  %v7488_v33 = vld [vmem:[%s10535_s5 + $0x8] sm:$0xff]   ;;  %v7489_v34 = vld [vmem:[%s10535_s5 + $0x40] sm:$0xff]  }
 0x128   : > { %v7490_v35 = vld [vmem:[%s10535_s5] sm:$0xff]   ;;  %v7491_v36 = vld [vmem:[%s10535_s5 + $0xb8] sm:$0xff]  }
 0x18d   : > { %v1030_v37 = vpop.permute.xlu0 %1029 }
 0x18e   : > { %v1004_v38 = vpop.permute.xlu1 %1003 }
 0x191   : > { %v1036_v39 = vpop.permute.xlu0 %1035 }
 0x192   : > { %v1070_v40 = vsel %vm10492_vm15, %v1030_v37, %v1036_v39  ;;  %vm1064_vm15 = vcmask 916480   ;;  %v7493_v39 = vld [vmem:[%s10535_s5 + $0xa8] sm:$0xff]  }
 0x194   : > { %v1046_v42 = vpop.permute.xlu1 %1045 }
 0x195   : > { %v8644_v44 = vsel %vm10493_vm4, %v1070_v40, %v1046_v42  ;;  %v1012_v45 = vpop.permute.xlu0 %1011  ;;  %vm10499_vm4 = vcmask 785408   ;;  %v7494_v40 = vld [vmem:[%s10535_s5 + $0xa0] sm:$0xff]   ;;  %v7496_v42 = vld [vmem:[%s10535_s5 + $0x90] sm:$0xff]  }
 0x196   : > { %1602 = vmatmul.mubr.bf16.vlgmr.msra.gmra.mxu0 %v8644_v44  ;;  %v1060_v46 = vsel %vm1058_vm12, %v1004_v38, %v1012_v45  ;;  %v7498_v45 = vld [vmem:[%s10535_s5 + $0x80] sm:$0xff]  }
 0x197   : > { %1654 = vmatpush1.bf16.msra.mxu0 %v7445_v41  ;;  %6547 = vmatprep.mubr.msk.bf16.mxu0 %vm1050_vm8, %v8614_v1  ;;  %v7462_v1 = vld [vmem:[%s10523_s24 + $0x110] ss:$12 sps:$4 sm:$0xff]  }
 0x198   : > { %v1024_v48 = vpop.permute.xlu1 %1023  ;;  %1655 = vmatprep.subr.bf16.mxu0 %v8189_v51  ;;  %v7495_v41 = vld [vmem:[%s10535_s5 + $0x98] sm:$0xff]  }
 0x199   : > { %v1063_v49 = vsel %vm1061_vm14, %v1060_v46, %v1024_v48  ;;  %v996_v50 = vpop.permute.xlu0 %995  ;;  %v8824_v46 = vsub.s32 1, %v8542_v3  ;;  %v8827_v48 = vsub.s32 0, %v8542_v3 }
 0x19a   : > { %v1066_v53 = vsel %vm1064_vm15, %v1063_v49, %v1030_v37  ;;  %v1053_v55 = vsel %vm1050_vm8, %v8605_v54, %v996_v50  ;;  %v7454_v54 = vld [vmem:[%s10523_s24 + $0x98] ss:$12 sps:$4 sm:$0xff]   ;;  %v8197_v37 = vmov 0.0   ;;  %v744_v49 = vld [vmem:[%s10536_s4] sm:$0x7]  ;;  %s8131_s4 = sshll.u32 %s8199_s2, 4  ;;  %s8132_s4 = int_to_ptr.vmem [resolvable:$false] %s8131_s4 }
 0x19b   : > { %1656 = vmatpush1.bf16.msra.mxu0 %v7449_v47  ;;  %1558 = vmatprep.mubr.bf16.mxu1 %v1066_v53  ;;  %v1056_v57 = vsel %vm10499_vm4, %v1053_v55, %v1004_v38  ;;  %v7492_v38 = vld [vmem:[%s10535_s5 + $0xb0] sm:$0xff]   ;;  %vm8198_vm4 = vmmov 0   ;;  %v1083_v50 = vrot.slane %v744_v49, %v8824_v46 }
 0x19c   : > { %1657 = vmatprep.subr.bf16.mxu0 %v8189_v51  ;;  %1559 = vmatmul.mubr.bf16.vlgmr.msra.gmra.mxu1 %v1056_v57 }
 0x19d   : > { %7066 = vmatpush3.bf16.msra.mxu1 %v7451_v52  ;;  %1644 = vmatprep.mubr.bf16.mxu1 %v1066_v53  ;;  %v1079_v53 = vrot.slane %v744_v49, %v8827_v48 }
 0x19e   : > { %7067 = vmatprep.subr.bf16.mxu1 %v7453_v56 }
 0x19f   : > { %1658 = vmatpush1.bf16.msra.mxu0 %v7452_v58 }
 0x1a0   : > { %1659 = vmatprep.subr.bf16.mxu0 %v8189_v51 }
 0x1a1   : > { %7068 = vmatpush3.bf16.msra.mxu1 %v7454_v54 }
 0x1a2   : > { %7069 = vmatprep.subr.bf16.mxu1 %v7456_v59 }
 0x1a3   : > { %1660 = vmatpush1.bf16.msra.mxu0 %v7455_v60 }
 0x1a4   : > { %1661 = vmatprep.subr.bf16.mxu0 %v8189_v51 }
 0x1a5   : > { %7070 = vmatpush3.bf16.msra.mxu1 %v7457_v61 }
 0x1a6   : > { %7071 = vmatprep.subr.bf16.mxu1 %v7459_v62 }
 0x1a7   : > { %1662 = vmatpush1.bf16.msra.mxu0 %v7458_v63 }
 0x1a8   : > { %1663 = vmatprep.subr.bf16.mxu0 %v8189_v51 }
 0x1a9   : > { %7072 = vmatpush3.bf16.msra.mxu1 %v7460_v0 }
 0x1aa   : > { %7073 = vmatprep.subr.bf16.mxu1 %v7462_v1 }
 0x1ab   : > { %1664 = vmatpush1.bf16.msra.mxu0 %v7461_v2 }
 0x1ac   : > { %1665 = vmatprep.subr.bf16.mxu0 %v8189_v51 }
 0x1ad   : > { %7074 = vmatpush3.bf16.msra.mxu1 %v7463_v4 }
 0x1ae   : > { %7075 = vmatprep.subr.bf16.mxu1 %v7465_v5 }
 0x1af   : > { %1666 = vmatpush1.bf16.msra.mxu0 %v7464_v6 }
 0x1b0   : > { %1667 = vmatprep.subr.bf16.mxu0 %v8189_v51 }
 0x1b1   : > { %7076 = vmatpush3.bf16.msra.mxu1 %v7466_v7 }
 0x1b2   : > { %7077 = vmatprep.subr.bf16.mxu1 %v7468_v8 }
 0x1b3   : > { %1668 = vmatpush1.bf16.msra.mxu0 %v7467_v9 }
 0x1b4   : > { %1679 = vmatprep.subr.bf16.mxu0 %v8189_v51 }
 0x1b5   : > { %7078 = vmatpush3.bf16.msra.mxu1 %v7469_v10 }
 0x1b6   : > { %7079 = vmatprep.subr.bf16.mxu1 %v7471_v11  ;;  %v8835_v11 = vsub.s32 2, %v8542_v3 }
 0x1b7   : > { %1680 = vmatpush2.bf16.msra.mxu0 %v7470_v12 }
 0x1b8   : > { %1681 = vmatprep.subr.bf16.mxu0 %v8189_v51 }
 0x1b9   : > { %7080 = vmatpush3.bf16.msra.mxu1 %v7472_v13  ;;  %v1087_v13 = vrot.slane %v744_v49, %v8835_v11  ;;  %v7513_v49 = vld [vmem:[%s10465_s7 + $0x64] ss:$12 sps:$4 sm:$0xff]  }
 0x1ba   : > { %7087 = vmatprep.subr.bf16.mxu1 %v7475_v16 }
 0x1bb   : > { %1682 = vmatpush2.bf16.msra.mxu0 %v7473_v19 }
 0x1bc   : > { %1645 = vmatmul.mubr.bf16.vlgmr.msra.gmra.mxu1 %v1056_v57  ;;  %1683 = vmatprep.subr.bf16.mxu0 %v8189_v51 }
 0x1bd   : > { %7088 = vmatpush3.bf16.msra.mxu1 %v7476_v20 }
 0x1be   : > { %7089 = vmatprep.subr.bf16.mxu1 %v7477_v21 }
 0x1bf   : > { %1684 = vmatpush2.bf16.msra.mxu0 %v7474_v22 }
 0x1c0   : > { %7259 = vmatprep.subr.bf16.mxu0 %v8197_v37 }
 0x1c1   : > { %7090 = vmatpush3.bf16.msra.mxu1 %v7478_v23 }
 0x1c2   : > { %1686 = vmatmul.mubr.bf16.vlgmr.msra.gmra.mxu0 %v8644_v44  ;;  %7091 = vmatprep.subr.bf16.mxu1 %v7479_v24  ;;  %v7497_v44 = vld [vmem:[%s10535_s5 + $0x88] sm:$0xff]  }
 0x1c3   : > { %7260 = vmatpush3.bf16.msra.mxu0 %v7491_v36  ;;  %7275 = vmatprep.mubr.msk.bf16.mxu0 %vm8198_vm4, %v8197_v37  ;;  %v7504_v36 = vld [vmem:[%s10465_s7 + $0x94] ss:$12 sps:$4 sm:$0xff]  }
 0x1c4   : > { %7261 = vmatprep.subr.bf16.mxu0 %v8197_v37 }
 0x1c5   : > { %7092 = vmatpush3.bf16.msra.mxu1 %v7480_v25 }
 0x1c6   : > { %7093 = vmatprep.subr.bf16.mxu1 %v7481_v26 }
 0x1c7   : > { %7262 = vmatpush3.bf16.msra.mxu0 %v7492_v38  ;;  %v7508_v38 = vld [vmem:[%s10465_s7 + $0x228] ss:$12 sps:$4 sm:$0xff]  }
 0x1c8   : > { %7263 = vmatprep.subr.bf16.mxu0 %v8197_v37 }
 0x1c9   : > { %7094 = vmatpush3.bf16.msra.mxu1 %v7482_v27 }
 0x1ca   : > { %7095 = vmatprep.subr.bf16.mxu1 %v7483_v28 }
 0x1cb   : > { %7264 = vmatpush3.bf16.msra.mxu0 %v7493_v39  ;;  %v7510_v39 = vld [vmem:[%s10465_s7 + $0x22c] ss:$12 sps:$4 sm:$0xff]  }
 0x1cc   : > { %7265 = vmatprep.subr.bf16.mxu0 %v8197_v37 }
 0x1cd   : > { %7096 = vmatpush3.bf16.msra.mxu1 %v7484_v29 }
 0x1ce   : > { %7097 = vmatprep.subr.bf16.mxu1 %v7485_v30 }
 0x1cf   : > { %7266 = vmatpush3.bf16.msra.mxu0 %v7494_v40  ;;  %v7502_v40 = vld [vmem:[%s10465_s7 + $0x90] ss:$12 sps:$4 sm:$0xff]  }
 0x1d0   : > { %7267 = vmatprep.subr.bf16.mxu0 %v8197_v37 }
 0x1d1   : > { %7098 = vmatpush3.bf16.msra.mxu1 %v7486_v31 }
 0x1d2   : > { %7099 = vmatprep.subr.bf16.mxu1 %v7487_v32 }
 0x1d3   : > { %7268 = vmatpush3.bf16.msra.mxu0 %v7495_v41  ;;  %v7516_v41 = vld [vmem:[%s10465_s7 + $0x214] ss:$12 sps:$4 sm:$0xff]  }
 0x1d4   : > { %7269 = vmatprep.subr.bf16.mxu0 %v8197_v37 }
 0x1d5   : > { %7100 = vmatpush3.bf16.msra.mxu1 %v7488_v33 }
 0x1d6   : > { %7101 = vmatprep.subr.bf16.mxu1 %v7489_v34  ;;  %v7499_v34 = vld [vmem:[%s10465_s7 + $0xa8] ss:$12 sps:$4 sm:$0xff]  }
 0x1d7   : > { %7270 = vmatpush3.bf16.msra.mxu0 %v7496_v42  ;;  %v7507_v42 = vld [vmem:[%s10465_s7 + $0x7c] ss:$12 sps:$4 sm:$0xff]  }
 0x1d8   : > { %7271 = vmatprep.subr.bf16.mxu0 %v8197_v37 }
 0x1d9   : > { %7102 = vmatpush3.bf16.msra.mxu1 %v7490_v35  ;;  %v7501_v35 = vld [vmem:[%s10465_s7 + $0xac] ss:$12 sps:$4 sm:$0xff]  }
 0x1da   : > { %2665 = vmatprep.subr.bf16.mxu1 %v7501_v35 }
 0x1db   : > { %7272 = vmatpush3.bf16.msra.mxu0 %v7497_v44  ;;  %v7514_v44 = vld [vmem:[%s10465_s7 + $0x210] ss:$12 sps:$4 sm:$0xff]  }
 0x1dc   : > { %7273 = vmatprep.subr.bf16.mxu0 %v8197_v37 }
 0x1df   : > { %7274 = vmatpush3.bf16.msra.mxu0 %v7498_v45  ;;  %v7522_v45 = vld [vmem:[%s10465_s7 + $0x1fc] ss:$12 sps:$4 sm:$0xff]  }
 0x1e0   : > { %2708 = vmatprep.subr.bf16.mxu0 %v7510_v39 }
 0x256   : > { %v1603_v47 = vpop.f32.mrf.mxu0 }
 0x258   : > { %v1605_v52 = vpop.f32.mrf.mxu0 }
 0x25a   : > { %v1607_v58 = vpop.f32.mrf.mxu0 }
 0x25c   : > { %v1560_v55 = vpop.f32.mrf.mxu1  ;;  %v1609_v1 = vpop.f32.mrf.mxu0 }
 0x25d   : > { %v1561_v54 = vadd.f32 %v1560_v55, %v1079_v53  ;;  %v7519_v55 = vld [vmem:[%s10465_s7 + $0x4c] ss:$12 sps:$4 sm:$0xff]  }
 0x25e   : > { %v1562_v56 = vpop.f32.mrf.mxu1 }
 0x25f   : > { %v1563_v57 = vadd.f32 %v1562_v56, %v1083_v50  ;;  %v1604_v2 = vadd.f32 %v1603_v47, %v1561_v54  ;;  %v7505_v47 = vld [vmem:[%s10465_s7 + $0x78] ss:$12 sps:$4 sm:$0xff]   ;;  %v7526_v56 = vld [vmem:[%s10465_s7 + $0x1e0] ss:$12 sps:$4 sm:$0xff]  }
 0x260   : > { %v1564_v59 = vpop.f32.mrf.mxu1  ;;  %v7525_v54 = vld [vmem:[%s10465_s7 + $0x34] ss:$12 sps:$4 sm:$0xff]  }
 0x261   : > { %v1565_v60 = vadd.f32 %v1564_v59, %v1079_v53  ;;  %v1606_v62 = vadd.f32 %v1605_v52, %v1563_v57  ;;  %v1694_v8 = vmax.f32 %v1604_v2, 0.0  ;;  %v7528_v52 = vld [vmem:[%s10465_s7 + $0x1e4] ss:$12 sps:$4 sm:$0xff]   ;;  %v7511_v53 = vld [vmem:[%s10465_s7 + $0x60] ss:$12 sps:$4 sm:$0xff]  }
 0x262   : > { %v1566_v61 = vpop.f32.mrf.mxu1  ;;  %v7534_v57 = vld [vmem:[%s10465_s7 + $0x1cc] ss:$12 sps:$4 sm:$0xff]   ;;  %v7532_v59 = vld [vmem:[%s10465_s7 + $0x1c8] ss:$12 sps:$4 sm:$0xff]   ;;  %v7537_v2 = vld [vmem:[%s10465_s7 + $0x4] ss:$12 sps:$4 sm:$0xff]  }
 0x263   : > { %v1608_v63 = vadd.f32 %v1607_v58, %v1565_v60  ;;  %v1567_v0 = vadd.f32 %v1566_v61, %v1083_v50  ;;  %v1695_v6 = vmax.f32 %v1606_v62, 0.0  ;;  %v7520_v50 = vld [vmem:[%s10465_s7 + $0x1f8] ss:$12 sps:$4 sm:$0xff]   ;;  %v7517_v58 = vld [vmem:[%s10465_s7 + $0x48] ss:$12 sps:$4 sm:$0xff]  }
 0x264   : > { %v7540_v60 = vld [vmem:[%s10465_s7 + $0x1b4] ss:$12 sps:$4 sm:$0xff]   ;;  %v7523_v61 = vld [vmem:[%s10465_s7 + $0x30] ss:$12 sps:$4 sm:$0xff]  }
 0x265   : > { %v1610_v4 = vadd.f32 %v1609_v1, %v1567_v0  ;;  %v1697_v5 = vmax.f32 %v1608_v63, 0.0  ;;  %v7531_v62 = vld [vmem:[%s10465_s7 + $0x1c] ss:$12 sps:$4 sm:$0xff]   ;;  %v7529_v1 = vld [vmem:[%s10465_s7 + $0x18] ss:$12 sps:$4 sm:$0xff]  }
 0x266   : > { %v7538_v63 = vld [vmem:[%s10465_s7 + $0x1b0] ss:$12 sps:$4 sm:$0xff]  }
 0x267   : > { %v1698_v7 = vmax.f32 %v1610_v4, 0.0  ;;  %v1700_v10 = vpack.c.bf16 %v1697_v5, %v1694_v8  ;;  %v7546_v0 = vld [vmem:[%s10465_s7 + $0x19c] ss:$12 sps:$4 sm:$0xff]   ;;  %v7544_v4 = vld [vmem:[%s10465_s7 + $0x198] ss:$12 sps:$4 sm:$0xff]  }
 0x268   : > { %v7552_v5 = vld [vmem:[%s10465_s7 + $0x184] ss:$12 sps:$4 sm:$0xff]   ;;  %v7550_v8 = vld [vmem:[%s10465_s7 + $0x180] ss:$12 sps:$4 sm:$0xff]  }
 0x269   : > { %v1701_v9 = vpack.c.bf16 %v1698_v7, %v1695_v6  ;;  %v7535_v6 = vld [vmem:[%s10465_s7] ss:$12 sps:$4 sm:$0xff]  }
 0x26a   : > { %v7543_v7 = vld [vmem:[%s10465_s7 + $0x16c] ss:$12 sps:$4 sm:$0xff]  }
 0x26b   : > { %2043 = vmatprep.mubr.bf16.mxu1 %v1701_v9  ;;  %v7558_v9 = vld [vmem:[%s10465_s7 + $0x274] ss:$12 sps:$4 sm:$0xff]  }
 0x26c   : > { %2044 = vmatmul.mubr.bf16.vlgmr.msra.gmra.mxu1 %v1700_v10  ;;  %v7541_v10 = vld [vmem:[%s10465_s7 + $0x168] ss:$12 sps:$4 sm:$0xff]  }
 0x26d   : > { %2666 = vmatpush1.bf16.msra.mxu1 %v7499_v34 }
 0x26e   : > { %2667 = vmatprep.subr.bf16.mxu1 %v7504_v36 }
 0x271   : > { %2668 = vmatpush1.bf16.msra.mxu1 %v7502_v40 }
 0x272   : > { %2669 = vmatprep.subr.bf16.mxu1 %v7507_v42 }
 0x275   : > { %2670 = vmatpush1.bf16.msra.mxu1 %v7505_v47 }
 0x276   : > { %2671 = vmatprep.subr.bf16.mxu1 %v7513_v49 }
 0x279   : > { %2672 = vmatpush1.bf16.msra.mxu1 %v7511_v53 }
 0x27a   : > { %2673 = vmatprep.subr.bf16.mxu1 %v7519_v55 }
 0x27c   : > { %v7081_v12 = vpop.f32.mrf.mxu1 }
 0x27d   : > { %2674 = vmatpush1.bf16.msra.mxu1 %v7517_v58  ;;  %v7570_v58 = vld [vmem:[%s10465_s7 + $0x244] ss:$12 sps:$4 sm:$0xff]  }
 0x27e   : > { %v7082_v16 = vpop.f32.mrf.mxu1  ;;  %2675 = vmatprep.subr.bf16.mxu1 %v7525_v54  ;;  %v7571_v54 = vld [vmem:[%s10465_s7 + $0xf0] ss:$12 sps:$4 sm:$0xff]  }
 0x27f   : > { %v7083_v19 = vadd.f32 %v7082_v16, %v7081_v12  ;;  %v7549_v12 = vld [vmem:[%s10465_s7 + $0x154] ss:$12 sps:$4 sm:$0xff]   ;;  %v7564_v16 = vld [vmem:[%s10465_s7 + $0x25c] ss:$12 sps:$4 sm:$0xff]  }
 0x280   : > { %v7084_v20 = vpop.f32.mrf.mxu1 }
 0x281   : > { %v1647_v21 = vadd.f32 %v7083_v19, %v1087_v13  ;;  %2676 = vmatpush1.bf16.msra.mxu1 %v7523_v61  ;;  %v7547_v19 = vld [vmem:[%s10465_s7 + $0x150] ss:$12 sps:$4 sm:$0xff]   ;;  %v7573_v61 = vld [vmem:[%s10465_s7 + $0xf4] ss:$12 sps:$4 sm:$0xff]  }
 0x282   : > { %v1687_v22 = vpop.f32.mrf.mxu0  ;;  %v7085_v23 = vpop.f32.mrf.mxu1  ;;  %2677 = vmatprep.subr.bf16.mxu1 %v7531_v62 }
 0x283   : > { %v7086_v24 = vadd.f32 %v7085_v23, %v7084_v20  ;;  %v1688_v26 = vadd.f32 %v1687_v22, %v1647_v21  ;;  %v7555_v20 = vld [vmem:[%s10465_s7 + $0x13c] ss:$12 sps:$4 sm:$0xff]   ;;  %v7562_v21 = vld [vmem:[%s10465_s7 + $0x258] ss:$12 sps:$4 sm:$0xff]  }
 0x284   : > { %v1689_v25 = vpop.f32.mrf.mxu0  ;;  %v7553_v22 = vld [vmem:[%s10465_s7 + $0x138] ss:$12 sps:$4 sm:$0xff]  }
 0x285   : > { %v1650_v27 = vadd.f32 %v7086_v24, %v1087_v13  ;;  %v1696_v31 = vmax.f32 %v1688_v26, 0.0  ;;  %2678 = vmatpush1.bf16.msra.mxu1 %v7529_v1  ;;  %v7556_v13 = vld [vmem:[%s10465_s7 + $0x270] ss:$12 sps:$4 sm:$0xff]   ;;  %v7559_v24 = vld [vmem:[%s10465_s7 + $0x120] ss:$12 sps:$4 sm:$0xff]  }
 0x286   : > { %v1690_v28 = vpop.f32.mrf.mxu0  ;;  %2679 = vmatprep.subr.bf16.mxu1 %v7537_v2  ;;  %v7561_v23 = vld [vmem:[%s10465_s7 + $0x124] ss:$12 sps:$4 sm:$0xff]   ;;  %v7567_v25 = vld [vmem:[%s10465_s7 + $0x10c] ss:$12 sps:$4 sm:$0xff]   ;;  %v7565_v26 = vld [vmem:[%s10465_s7 + $0x108] ss:$12 sps:$4 sm:$0xff]  }
 0x287   : > { %v1691_v29 = vadd.f32 %v1690_v28, %v1650_v27 }
 0x288   : > { %v1692_v30 = vpop.f32.mrf.mxu0 }
 0x289   : > { %v1699_v32 = vmax.f32 %v1691_v29, 0.0  ;;  %2680 = vmatpush1.bf16.msra.mxu1 %v7535_v6 }
 0x28a   : > { %2681 = vmatprep.subr.bf16.mxu1 %v7543_v7 }
 0x28b   : > { %v1702_v33 = vpack.c.bf16 %v1699_v32, %v1696_v31  ;;  %v6548_v32 = vld [vmem:[%s10464_s6] ss:$0 sm:$0xff] }
 0x28d   : > { %7276 = vmatmul.mubr.bf16.vlgmr.msra.gmra.mxu0 %v1702_v33  ;;  %2682 = vmatpush2.bf16.msra.mxu1 %v7541_v10 }
 0x28e   : > { %2709 = vmatpush1.bf16.msra.mxu0 %v7508_v38  ;;  %2683 = vmatprep.subr.bf16.mxu1 %v7549_v12 }
 0x28f   : > { %2710 = vmatprep.subr.bf16.mxu0 %v7516_v41 }
 0x291   : > { %2684 = vmatpush2.bf16.msra.mxu1 %v7547_v19 }
 0x292   : > { %2711 = vmatpush1.bf16.msra.mxu0 %v7514_v44  ;;  %2685 = vmatprep.subr.bf16.mxu1 %v7555_v20 }
 0x293   : > { %2712 = vmatprep.subr.bf16.mxu0 %v7522_v45 }
 0x295   : > { %2686 = vmatpush2.bf16.msra.mxu1 %v7553_v22 }
 0x296   : > { %2713 = vmatpush1.bf16.msra.mxu0 %v7520_v50  ;;  %2687 = vmatprep.subr.bf16.mxu1 %v7561_v23 }
 0x297   : > { %2714 = vmatprep.subr.bf16.mxu0 %v7528_v52 }
 0x299   : > { %2688 = vmatpush2.bf16.msra.mxu1 %v7559_v24 }
 0x29a   : > { %2715 = vmatpush1.bf16.msra.mxu0 %v7526_v56  ;;  %2689 = vmatprep.subr.bf16.mxu1 %v7567_v25 }
 0x29b   : > { %2716 = vmatprep.subr.bf16.mxu0 %v7534_v57  ;;  %v7568_v57 = vld [vmem:[%s10465_s7 + $0x240] ss:$12 sps:$4 sm:$0xff]  }
 0x29d   : > { %2690 = vmatpush2.bf16.msra.mxu1 %v7565_v26 }
 0x29e   : > { %2717 = vmatpush1.bf16.msra.mxu0 %v7532_v59  ;;  %2691 = vmatprep.subr.bf16.mxu1 %v7573_v61 }
 0x29f   : > { %2718 = vmatprep.subr.bf16.mxu0 %v7540_v60 }
 0x2a1   : > { %2692 = vmatpush2.bf16.msra.mxu1 %v7571_v54 }
 0x2a2   : > { %2719 = vmatpush1.bf16.msra.mxu0 %v7538_v63 }
 0x2a3   : > { %2720 = vmatprep.subr.bf16.mxu0 %v7546_v0 }
 0x2a6   : > { %2721 = vmatpush1.bf16.msra.mxu0 %v7544_v4 }
 0x2a7   : > { %2722 = vmatprep.subr.bf16.mxu0 %v7552_v5 }
 0x2aa   : > { %2723 = vmatpush1.bf16.msra.mxu0 %v7550_v8 }
 0x2ab   : > { %2734 = vmatprep.subr.bf16.mxu0 %v7558_v9 }
 0x2ae   : > { %2735 = vmatpush2.bf16.msra.mxu0 %v7556_v13  ;;  %v7574_v13 = vld [vmem:[%s10465_s7 + $0xd8] ss:$12 sps:$4 sm:$0xff]  }
 0x2af   : > { %2736 = vmatprep.subr.bf16.mxu0 %v7564_v16  ;;  %v7576_v16 = vld [vmem:[%s10465_s7 + $0xdc] ss:$12 sps:$4 sm:$0xff]  }
 0x2b0   : > { %2693 = vmatprep.subr.bf16.mxu1 %v7576_v16 }
 0x2b1   : > { %2694 = vmatpush2.bf16.msra.mxu1 %v7574_v13 }
 0x2b2   : > { %2737 = vmatpush2.bf16.msra.mxu0 %v7562_v21 }
 0x2b3   : > { %2738 = vmatprep.subr.bf16.mxu0 %v7570_v58 }
 0x2b6   : > { %2739 = vmatpush2.bf16.msra.mxu0 %v7568_v57 }
 0x2b7   : > { %2792 = vmatprep.subr.bf16.mxu0 %v8189_v51 }
 0x32c   : > { %v7103_v27 = vpop.f32.mrf.mxu1 }
 0x32e   : > { %v7104_v28 = vpop.f32.mrf.mxu1 }
 0x32f   : > { %v7105_v30 = vadd.f32 %v7104_v28, %v7103_v27 }
 0x330   : > { %v7106_v29 = vpop.f32.mrf.mxu1 }
 0x331   : > { %v2046_v34 = vadd.f32 %v7105_v30, %v6548_v32 }
 0x332   : > { %v7107_v31 = vpop.f32.mrf.mxu1 }
 0x333   : > { %v7108_v33 = vadd.f32 %v7107_v31, %v7106_v29 }
 0x335   : > { %v2049_v39 = vadd.f32 %v7108_v33, %v6548_v32 }
 0x34d   : > { %v2086_v35 = vpop.f32.mrf.mxu0 }
 0x34e   : > { %v2087_v36 = vadd.f32 %v2086_v35, %v2046_v34 }
 0x34f   : > { %v7277_v38 = vpop.f32.mrf.mxu0 }
 0x350   : > { %v2093_v40 = vmax.f32 %v2087_v36, 0.0  ;;  %v7578_v36 = vld [vmem:[%s10465_s7 + $0xc0] ss:$12 sps:$4 sm:$0xff]   ;;  %v7580_v38 = vld [vmem:[%s10465_s7 + $0xc4] ss:$12 sps:$4 sm:$0xff]  }
 0x351   : > { %v2089_v41 = vpop.f32.mrf.mxu0  ;;  %2695 = vmatprep.subr.bf16.mxu1 %v7580_v38  ;;  %v7592_v38 = vld [vmem:[%s10465_s7 + $0x1b8] ss:$12 sps:$4 sm:$0xff]  }
 0x352   : > { %v2090_v42 = vadd.f32 %v2089_v41, %v2049_v39  ;;  %v2096_v47 = vsel %vm8546_vm0, 0.0, %v2093_v40  ;;  %v2099_v49 = vsel %vm8550_vm1, 0.0, %v2093_v40  ;;  %2696 = vmatpush2.bf16.msra.mxu1 %v7578_v36  ;;  %v7591_v36 = vld [vmem:[%s10465_s7 + $0x128] ss:$12 sps:$4 sm:$0xff]  }
 0x353   : > { %v7278_v44 = vpop.f32.mrf.mxu0 }
 0x354   : > { %v2094_v45 = vmax.f32 %v2090_v42, 0.0 }
 0x356   : > { %v2095_v50 = vpack.c.bf16 %v2094_v45, %v2093_v40  ;;  %v2097_v52 = vsel %vm8554_vm2, 0.0, %v2094_v45  ;;  %v2100_v53 = vsel %vm8558_vm3, 0.0, %v2094_v45 }
 0x357   : > { %v2098_v55 = vpack.c.bf16 %v2097_v52, %v2096_v47  ;;  %v2101_v56 = vpack.c.bf16 %v2100_v53, %v2099_v49  ;;  %v7582_v53 = vld [vmem:[%s10465_s7 + $0x170] ss:$12 sps:$4 sm:$0xff]  }
 0x358   : > { %v2114_v59 = vshrl.u32 %v2095_v50, 16  ;;  %v2117_v60 = vshll.u32 %v2095_v50, 16  ;;  %7118 = vmatprep.subr.bf16.mxu1 %v7582_v53  ;;  %v7603_v53 = vld [vmem:[%s10465_s7 + $0xc8] ss:$12 sps:$4 sm:$0xff]  }
 0x359   : > { %v2103_v62 = vshrl.u32 %v2098_v55, 16  ;;  %v2106_v63 = vshll.u32 %v2098_v55, 16  ;;  %v2125_v0 = vshrl.u32 %v2101_v56, 16  ;;  %v2128_v1 = vshll.u32 %v2101_v56, 16 }
 0x35a   : > { %v2116_v2 = vrot.slane %v2114_v59, 5  ;;  %v2119_v4 = vrot.slane %v2117_v60, 6 }
 0x35b   : > { %v2105_v5 = vrot.slane %v2103_v62, 5  ;;  %v2108_v6 = vrot.slane %v2106_v63, 6  ;;  %v2127_v7 = vrot.slane %v2125_v0, 5  ;;  %v2130_v8 = vrot.slane %v2128_v1, 6 }
 0x35c   : > { %v2120_v9 = vor.u32 %v2119_v4, %v2116_v2 }
 0x35d   : > { %v2131_v10 = vor.u32 %v2130_v8, %v2127_v7  ;;  %v2109_v12 = vor.u32 %v2108_v6, %v2105_v5 }
 0x35e   : > { %v2122_v19 = vsel %vm8584_vm9, 0, %v2120_v9  ;;  %v2123_v20 = vsel %vm8584_vm9, %v2120_v9, 0 }
 0x35f   : > { %v2133_v21 = vsel %vm8584_vm9, 0, %v2131_v10  ;;  %v2134_v22 = vsel %vm8584_vm9, %v2131_v10, 0  ;;  %v9016_v23 = vsel %vm8584_vm9, 0, %v2109_v12  ;;  %v2112_v24 = vsel %vm8584_vm9, %v2109_v12, 0  ;;  %v7577_v10 = vld [vmem:[%s10465_s7 + $0x230] ss:$12 sps:$4 sm:$0xff]  }
 0x360   : > { %v2193_v25 = vrot.slane %v2133_v21, 5  ;;  %v2194_v26 = vrot.slane %v2134_v22, 5  ;;  %v2174_v27 = vrot.slane %v2133_v21, 3  ;;  %v2175_v28 = vrot.slane %v2134_v22, 3 }
 0x361   : > { %v2179_v29 = vrot.slane %v9016_v23, 4  ;;  %v2180_v30 = vrot.slane %v2112_v24, 4  ;;  %v2151_v31 = vrot.slane %v2133_v21, 1  ;;  %v2136_v34 = vshrl.u32 %v2122_v19, 16 }
 0x362   : > { %v2195_v32 = vsel %vm10501_vm5, %v2193_v25, %v2194_v26  ;;  %v2176_v33 = vsel %vm10503_vm6, %v2174_v27, %v2175_v28  ;;  %v2138_v35 = vshll.u32 %v2122_v19, 16  ;;  %v2152_v40 = vrot.slane %v2134_v22, 1  ;;  %v7583_v26 = vld [vmem:[%s10465_s7 + $0x200] ss:$12 sps:$4 sm:$0xff]   ;;  %v7584_v28 = vld [vmem:[%s10465_s7 + $0xb0] ss:$12 sps:$4 sm:$0xff]  }
 0x363   : > { %6654 = vmatprep.mubr.msk.bf16.mxu0 %vm1050_vm8, %v2195_v32  ;;  %2177 = vrot.lane.b32.xlu1 %v2176_v33, %s8190_s21  ;;  %v2181_v39 = vsel %vm10500_vm10, %v2179_v29, %v2180_v30  ;;  %v2143_v41 = vshll.u32 %v2123_v20, 16  ;;  %v2166_v42 = vshrl.u32 %v2123_v20, 16  ;;  %v2184_v44 = vrot.slane %v2136_v34, 4  ;;  %s10537_s21 = smov 80   ;;  %v7581_v20 = vld [vmem:[%s10465_s7 + $0x218] ss:$12 sps:$4 sm:$0xff]  }
 0x364   : > { %2182 = vrot.lane.b32.xlu0 %v2181_v39, %s8192_s28  ;;  %v2185_v45 = vrot.slane %v2138_v35, 5  ;;  %v2163_v50 = vrot.slane %v2136_v34, 2  ;;  %v2164_v52 = vrot.slane %v2138_v35, 3  ;;  %v2153_v58 = vsel %vm999_vm7, %v2151_v31, %v2152_v40  ;;  %s10538_s28 = smov 64   ;;  %v7585_v30 = vld [vmem:[%s10465_s7 + $0x158] ss:$12 sps:$4 sm:$0xff]  }
 0x365   : > { %v2187_v47 = vrot.slane %v2166_v42, 4  ;;  %v2188_v49 = vrot.slane %v2143_v41, 5  ;;  %v2168_v56 = vrot.slane %v2166_v42, 2  ;;  %v2169_v57 = vrot.slane %v2143_v41, 3  ;;  %v7587_v33 = vld [vmem:[%s10465_s7 + $0x98] ss:$12 sps:$4 sm:$0xff]  }
 0x366   : > { %v2186_v55 = vor.u32 %v2185_v45, %v2184_v44  ;;  %v2165_v59 = vor.u32 %v2164_v52, %v2163_v50  ;;  %v2158_v62 = vrot.slane %v9016_v23, 2  ;;  %v2159_v63 = vrot.slane %v2112_v24, 2  ;;  %v7593_v39 = vld [vmem:[%s10465_s7 + $0x68] ss:$12 sps:$4 sm:$0xff]   ;;  %v7594_v40 = vld [vmem:[%s10465_s7 + $0x110] ss:$12 sps:$4 sm:$0xff]  }
 0x367   : > { %v2189_v54 = vor.u32 %v2188_v49, %v2187_v47  ;;  %v2170_v60 = vor.u32 %v2169_v57, %v2168_v56  ;;  %v2140_v0 = vrot.slane %v2138_v35, 1  ;;  %vm10539_vm10 = vcmask 1045504   ;;  %v7590_v35 = vld [vmem:[%s10465_s7 + $0x80] ss:$12 sps:$4 sm:$0xff]   ;;  %v7596_v42 = vld [vmem:[%s10465_s7 + $0x50] ss:$12 sps:$4 sm:$0xff]  }
 0x368   : > { %2154 = vrot.lane.b32.xlu0 %v2153_v58, %s8191_s3  ;;  %v2160_v2 = vsel %vm10539_vm10, %v2158_v62, %v2159_v63  ;;  %v2145_v5 = vrot.slane %v2143_v41, 1  ;;  %vm10541_vm5 = vsmask.f32 7424  ;;  %s10542_s3 = smov 48   ;;  %vm10544_vm6 = vcmask 654336   ;;  %v7607_v57 = vld [vmem:[%s10467_s9 + $0x78] sm:$0xff]  }
 0x369   : > { %v2190_v61 = vsel %vm1037_vm11, %v2186_v55, %v2189_v54  ;;  %v2171_v1 = vsel %vm10502_vm13, %v2165_v59, %v2170_v60  ;;  %v2141_v4 = vor.u32 %v2140_v0, %v2136_v34  ;;  %vm10543_vm13 = vcmask 261120   ;;  %v7589_v34 = vld [vmem:[%s10465_s7 + $0x1d0] ss:$12 sps:$4 sm:$0xff]   ;;  %v7595_v41 = vld [vmem:[%s10465_s7 + $0x1a0] ss:$12 sps:$4 sm:$0xff]  }
 0x36a   : > { %2191 = vrot.lane.b32.xlu1 %v2190_v61, %s10537_s21  ;;  %v7597_v44 = vld [vmem:[%s10465_s7 + $0xf8] ss:$12 sps:$4 sm:$0xff]   ;;  %v7598_v45 = vld [vmem:[%s10465_s7 + $0x188] ss:$12 sps:$4 sm:$0xff]   ;;  %v7600_v49 = vld [vmem:[%s10465_s7 + $0xe0] ss:$12 sps:$4 sm:$0xff]  }
 0x36b   : > { %v2146_v6 = vsel %vm10541_vm5, %v2141_v4, %v2145_v5  ;;  %vm10545_vm5 = vcmask 785408   ;;  %v7599_v47 = vld [vmem:[%s10465_s7 + $0x38] ss:$12 sps:$4 sm:$0xff]   ;;  %v7602_v52 = vld [vmem:[%s10465_s7 + $0x20] ss:$12 sps:$4 sm:$0xff]   ;;  %v7609_v59 = vld [vmem:[%s10467_s9 + $0x70] sm:$0xff]  }
 0x36c   : > { %2172 = vrot.lane.b32.xlu0 %v2171_v1, %s10538_s28  ;;  %v7601_v50 = vld [vmem:[%s10465_s7 + $0x278] ss:$12 sps:$4 sm:$0xff]   ;;  %v7604_v55 = vld [vmem:[%s10465_s7 + $0x260] ss:$12 sps:$4 sm:$0xff]   ;;  %v7605_v56 = vld [vmem:[%s10465_s7 + $0x8] ss:$12 sps:$4 sm:$0xff]  }
 0x36d   : > { %v7606_v58 = vld [vmem:[%s10465_s7 + $0x248] ss:$12 sps:$4 sm:$0xff]   ;;  %v7608_v54 = vld [vmem:[%s10467_s9 + $0x38] sm:$0xff]   ;;  %v7613_v63 = vld [vmem:[%s10467_s9 + $0x60] sm:$0xff]   ;;  %s7039_s21 = sshll.u32 %s10558_s22, 4  ;;  %s8133_s22 = scalar_lea.vmem %s8132_s4, 32 }
 0x36e   : > { %2161 = vrot.lane.b32.xlu1 %v2160_v2, %s10540_s27  ;;  %v7610_v60 = vld [vmem:[%s10467_s9 + $0x30] sm:$0xff]   ;;  %v7611_v61 = vld [vmem:[%s10467_s9 + $0x68] sm:$0xff]   ;;  %v7614_v0 = vld [vmem:[%s10467_s9 + $0x20] sm:$0xff]   ;;  %s6383_s26 = scalar_lea.hbm %s10560_s1, %s7039_s21 }
 0x36f   : > { %v7612_v62 = vld [vmem:[%s10467_s9 + $0x28] sm:$0xff]   ;;  %v7615_v1 = vld [vmem:[%s10467_s9 + $0x58] sm:$0xff]   ;;  %v7617_v4 = vld [vmem:[%s10467_s9 + $0x50] sm:$0xff]  }
 0x370   : > { %v7616_v2 = vld [vmem:[%s10467_s9 + $0x18] sm:$0xff]   ;;  %v7618_v5 = vld [vmem:[%s10467_s9 + $0x10] sm:$0xff]  }
 0x372   : > { %2147 = vrot.lane.b32.xlu1 %v2146_v6, %s10542_s3  ;;  %v7619_v6 = vld [vmem:[%s10467_s9 + $0x48] sm:$0xff]  }
 0x3d5   : > { %v2178_v7 = vpop.permute.xlu1 %2177 }
 0x3d6   : > { %v2183_v8 = vpop.permute.xlu0 %2182 }
 0x3d7   : > { %v2210_v12 = vsel %vm10543_vm13, %v2178_v7, %v2183_v8  ;;  %v7621_v8 = vld [vmem:[%s10467_s9 + $0x40] sm:$0xff]   ;;  %vm10549_vm13 = vcmask 1042432  }
 0x3da   : > { %v2155_v9 = vpop.permute.xlu0 %2154 }
 0x3dc   : > { %v2192_v13 = vpop.permute.xlu1 %2191 }
 0x3dd   : > { %v9052_v16 = vsel %vm10544_vm6, %v2210_v12, %v2192_v13  ;;  %v7624_v12 = vld [vmem:[%s10467_s9 + $0xb0] sm:$0xff]   ;;  %v7625_v13 = vld [vmem:[%s10467_s9 + $0xa8] sm:$0xff]   ;;  %vm10546_vm6 = vmmov %vm10539_vm10  ;;  %vm10548_vm10 = vcmask 1044480  }
 0x3de   : > { %2741 = vmatmul.mubr.bf16.vlgmr.msra.gmra.mxu0 %v9052_v16  ;;  %v2173_v19 = vpop.permute.xlu0 %2172 }
 0x3df   : > { %2793 = vmatpush1.bf16.msra.mxu0 %v7577_v10  ;;  %6655 = vmatprep.mubr.msk.bf16.mxu0 %vm1050_vm8, %v2195_v32  ;;  %v7586_v32 = vld [vmem:[%s10465_s7 + $0x1e8] ss:$12 sps:$4 sm:$0xff]   ;;  %v7623_v10 = vld [vmem:[%s10467_s9 + $0xb8] sm:$0xff]  }
 0x3e0   : > { %v2162_v21 = vpop.permute.xlu1 %2161  ;;  %2794 = vmatprep.subr.bf16.mxu0 %v8189_v51 }
 0x3e1   : > { %v2203_v22 = vsel %vm1058_vm12, %v2155_v9, %v2162_v21  ;;  %v7629_v21 = vld [vmem:[%s10467_s9 + $0x88] sm:$0xff]  }
 0x3e2   : > { %v2205_v24 = vsel %vm1061_vm14, %v2203_v22, %v2173_v19  ;;  %v7627_v19 = vld [vmem:[%s10467_s9 + $0x98] sm:$0xff]   ;;  %v7630_v22 = vld [vmem:[%s10467_s9 + $0x80] sm:$0xff]  }
 0x3e3   : > { %2795 = vmatpush1.bf16.msra.mxu0 %v7581_v20  ;;  %v2207_v25 = vsel %vm1064_vm15, %v2205_v24, %v2178_v7  ;;  %v7620_v7 = vld [vmem:[%s10467_s9 + $0x8] sm:$0xff]   ;;  %v7628_v20 = vld [vmem:[%s10467_s9 + $0x90] sm:$0xff]   ;;  %vm10550_vm15 = vsmask.f32 5376 }
 0x3e4   : > { %2697 = vmatprep.mubr.bf16.mxu1 %v2207_v25  ;;  %v2148_v27 = vpop.permute.xlu1 %2147  ;;  %2796 = vmatprep.subr.bf16.mxu0 %v8189_v51 }
 0x3e5   : > { %v2198_v29 = vsel %vm1050_vm8, %v9016_v23, %v2148_v27  ;;  %v7588_v23 = vld [vmem:[%s10465_s7 + $0x140] ss:$12 sps:$4 sm:$0xff]   ;;  %vm10547_vm8 = vsmask.f32 7424 }
 0x3e6   : > { %v2200_v31 = vsel %vm10545_vm5, %v2198_v29, %v2155_v9  ;;  %v7622_v9 = vld [vmem:[%s10467_s9] sm:$0xff]  }
 0x3e7   : > { %2797 = vmatpush1.bf16.msra.mxu0 %v7583_v26  ;;  %2698 = vmatmul.mubr.bf16.vlgmr.msra.gmra.mxu1 %v2200_v31 }
 0x3e8   : > { %7119 = vmatpush3.bf16.msra.mxu1 %v7584_v28  ;;  %2783 = vmatprep.mubr.bf16.mxu1 %v2207_v25  ;;  %v1860_v25 = vld [vmem:[%s10466_s8] sm:$0x7] }
 0x3e9   : > { %2798 = vmatprep.subr.bf16.mxu0 %v8189_v51  ;;  %7120 = vmatprep.subr.bf16.mxu1 %v7585_v30  ;;  %v2222_v26 = vrot.slane %v1860_v25, %v8824_v46  ;;  %v2218_v28 = vrot.slane %v1860_v25, %v8827_v48 }
 0x3eb   : > { %2799 = vmatpush1.bf16.msra.mxu0 %v7586_v32 }
 0x3ec   : > { %7121 = vmatpush3.bf16.msra.mxu1 %v7587_v33  ;;  %2800 = vmatprep.subr.bf16.mxu0 %v8189_v51 }
 0x3ed   : > { %7122 = vmatprep.subr.bf16.mxu1 %v7588_v23 }
 0x3ef   : > { %2801 = vmatpush1.bf16.msra.mxu0 %v7589_v34 }
 0x3f0   : > { %7123 = vmatpush3.bf16.msra.mxu1 %v7590_v35  ;;  %2802 = vmatprep.subr.bf16.mxu0 %v8189_v51 }
 0x3f1   : > { %7124 = vmatprep.subr.bf16.mxu1 %v7591_v36 }
 0x3f3   : > { %2803 = vmatpush1.bf16.msra.mxu0 %v7592_v38 }
 0x3f4   : > { %7125 = vmatpush3.bf16.msra.mxu1 %v7593_v39  ;;  %2804 = vmatprep.subr.bf16.mxu0 %v8189_v51 }
 0x3f5   : > { %7126 = vmatprep.subr.bf16.mxu1 %v7594_v40 }
 0x3f7   : > { %2805 = vmatpush1.bf16.msra.mxu0 %v7595_v41 }
 0x3f8   : > { %7127 = vmatpush3.bf16.msra.mxu1 %v7596_v42  ;;  %2806 = vmatprep.subr.bf16.mxu0 %v8189_v51 }
 0x3f9   : > { %7128 = vmatprep.subr.bf16.mxu1 %v7597_v44 }
 0x3fb   : > { %2807 = vmatpush1.bf16.msra.mxu0 %v7598_v45 }
 0x3fc   : > { %7129 = vmatpush3.bf16.msra.mxu1 %v7599_v47  ;;  %2818 = vmatprep.subr.bf16.mxu0 %v8189_v51 }
 0x3fd   : > { %7130 = vmatprep.subr.bf16.mxu1 %v7600_v49 }
 0x3ff   : > { %2819 = vmatpush2.bf16.msra.mxu0 %v7601_v50 }
 0x400   : > { %7131 = vmatpush3.bf16.msra.mxu1 %v7602_v52  ;;  %2820 = vmatprep.subr.bf16.mxu0 %v8189_v51 }
 0x401   : > { %7132 = vmatprep.subr.bf16.mxu1 %v7603_v53  ;;  %v2226_v53 = vrot.slane %v1860_v25, %v8835_v11  ;;  %v7649_v25 = vld [vmem:[%s10469_s11 + $0x2a0] ss:$16 sps:$4 sm:$0xff]  }
 0x403   : > { %2821 = vmatpush2.bf16.msra.mxu0 %v7604_v55 }
 0x404   : > { %7133 = vmatpush3.bf16.msra.mxu1 %v7605_v56  ;;  %2822 = vmatprep.subr.bf16.mxu0 %v8189_v51 }
 0x405   : > { %7140 = vmatprep.subr.bf16.mxu1 %v7607_v57 }
 0x407   : > { %2784 = vmatmul.mubr.bf16.vlgmr.msra.gmra.mxu1 %v2200_v31  ;;  %2823 = vmatpush2.bf16.msra.mxu0 %v7606_v58 }
 0x408   : > { %7141 = vmatpush3.bf16.msra.mxu1 %v7608_v54  ;;  %7279 = vmatprep.subr.bf16.mxu0 %v8197_v37 }
 0x409   : > { %7142 = vmatprep.subr.bf16.mxu1 %v7609_v59 }
 0x40a   : > { %2825 = vmatmul.mubr.bf16.vlgmr.msra.gmra.mxu0 %v9052_v16  ;;  %v7626_v16 = vld [vmem:[%s10467_s9 + $0xa0] sm:$0xff]  }
 0x40b   : > { %7295 = vmatprep.mubr.msk.bf16.mxu0 %vm8198_vm4, %v8197_v37  ;;  %7280 = vmatpush3.bf16.msra.mxu0 %v7623_v10  ;;  %v7637_v10 = vld [vmem:[%s10469_s11 + $0x2e0] ss:$16 sps:$4 sm:$0xff]   ;;  %vm10551_vm4 = vcmask 1043456  }
 0x40c   : > { %7143 = vmatpush3.bf16.msra.mxu1 %v7610_v60  ;;  %7281 = vmatprep.subr.bf16.mxu0 %v8197_v37 }
 0x40d   : > { %7144 = vmatprep.subr.bf16.mxu1 %v7611_v61 }
 0x40f   : > { %7282 = vmatpush3.bf16.msra.mxu0 %v7624_v12  ;;  %v7639_v12 = vld [vmem:[%s10469_s11 + $0x2e4] ss:$16 sps:$4 sm:$0xff]  }
 0x410   : > { %7145 = vmatpush3.bf16.msra.mxu1 %v7612_v62  ;;  %7283 = vmatprep.subr.bf16.mxu0 %v8197_v37 }
 0x411   : > { %7146 = vmatprep.subr.bf16.mxu1 %v7613_v63 }
 0x413   : > { %7284 = vmatpush3.bf16.msra.mxu0 %v7625_v13  ;;  %v7634_v13 = vld [vmem:[%s10469_s11 + $0xc0] ss:$16 sps:$4 sm:$0xff]  }
 0x414   : > { %7147 = vmatpush3.bf16.msra.mxu1 %v7614_v0  ;;  %7285 = vmatprep.subr.bf16.mxu0 %v8197_v37 }
 0x415   : > { %7148 = vmatprep.subr.bf16.mxu1 %v7615_v1 }
 0x417   : > { %7286 = vmatpush3.bf16.msra.mxu0 %v7626_v16  ;;  %v7645_v16 = vld [vmem:[%s10469_s11 + $0x2c4] ss:$16 sps:$4 sm:$0xff]  }
 0x418   : > { %7149 = vmatpush3.bf16.msra.mxu1 %v7616_v2  ;;  %7287 = vmatprep.subr.bf16.mxu0 %v8197_v37 }
 0x419   : > { %7150 = vmatprep.subr.bf16.mxu1 %v7617_v4 }
 0x41b   : > { %7288 = vmatpush3.bf16.msra.mxu0 %v7627_v19  ;;  %v7642_v19 = vld [vmem:[%s10469_s11 + $0xa4] ss:$16 sps:$4 sm:$0xff]  }
 0x41c   : > { %7151 = vmatpush3.bf16.msra.mxu1 %v7618_v5  ;;  %7289 = vmatprep.subr.bf16.mxu0 %v8197_v37 }
 0x41d   : > { %7152 = vmatprep.subr.bf16.mxu1 %v7619_v6 }
 0x41f   : > { %7290 = vmatpush3.bf16.msra.mxu0 %v7628_v20  ;;  %v7643_v20 = vld [vmem:[%s10469_s11 + $0x2c0] ss:$16 sps:$4 sm:$0xff]  }
 0x420   : > { %7153 = vmatpush3.bf16.msra.mxu1 %v7620_v7  ;;  %7291 = vmatprep.subr.bf16.mxu0 %v8197_v37  ;;  %v7631_v7 = vld [vmem:[%s10469_s11 + $0xe0] ss:$16 sps:$4 sm:$0xff]  }
 0x421   : > { %7154 = vmatprep.subr.bf16.mxu1 %v7621_v8  ;;  %v7633_v8 = vld [vmem:[%s10469_s11 + $0xe4] ss:$16 sps:$4 sm:$0xff]  }
 0x423   : > { %7292 = vmatpush3.bf16.msra.mxu0 %v7629_v21  ;;  %v7651_v21 = vld [vmem:[%s10469_s11 + $0x2a4] ss:$16 sps:$4 sm:$0xff]  }
 0x424   : > { %7155 = vmatpush3.bf16.msra.mxu1 %v7622_v9  ;;  %7293 = vmatprep.subr.bf16.mxu0 %v8197_v37  ;;  %v7636_v9 = vld [vmem:[%s10469_s11 + $0xc4] ss:$16 sps:$4 sm:$0xff]  }
 0x425   : > { %4125 = vmatprep.subr.bf16.mxu1 %v7633_v8  ;;  %v7714_v8 = vld [vmem:[%s10469_s11 + $0x124] ss:$16 sps:$4 sm:$0xff]  }
 0x427   : > { %7294 = vmatpush3.bf16.msra.mxu0 %v7630_v22  ;;  %v7640_v22 = vld [vmem:[%s10469_s11 + $0xa0] ss:$16 sps:$4 sm:$0xff]  }
 0x428   : > { %4168 = vmatprep.subr.bf16.mxu0 %v7639_v12  ;;  %v7712_v12 = vld [vmem:[%s10469_s11 + $0x120] ss:$16 sps:$4 sm:$0xff]  }
 0x49e   : > { %v2742_v24 = vpop.f32.mrf.mxu0 }
 0x4a0   : > { %v2744_v27 = vpop.f32.mrf.mxu0 }
 0x4a2   : > { %v2746_v32 = vpop.f32.mrf.mxu0 }
 0x4a4   : > { %v2748_v39 = vpop.f32.mrf.mxu0 }
 0x4a7   : > { %v2699_v29 = vpop.f32.mrf.mxu1 }
 0x4a8   : > { %v2700_v37 = vadd.f32 %v2699_v29, %v2218_v28  ;;  %v7655_v29 = vld [vmem:[%s10469_s11 + $0x280] ss:$16 sps:$4 sm:$0xff]  }
 0x4a9   : > { %v2701_v30 = vpop.f32.mrf.mxu1 }
 0x4aa   : > { %v2702_v31 = vadd.f32 %v2701_v30, %v2222_v26  ;;  %v2743_v40 = vadd.f32 %v2742_v24, %v2700_v37  ;;  %v7648_v24 = vld [vmem:[%s10469_s11 + $0x84] ss:$16 sps:$4 sm:$0xff]   ;;  %v7661_v37 = vld [vmem:[%s10469_s11 + $0x260] ss:$16 sps:$4 sm:$0xff]  }
 0x4ab   : > { %v2703_v33 = vpop.f32.mrf.mxu1  ;;  %v7663_v30 = vld [vmem:[%s10469_s11 + $0x264] ss:$16 sps:$4 sm:$0xff]  }
 0x4ac   : > { %v2704_v23 = vadd.f32 %v2703_v33, %v2218_v28  ;;  %v2745_v35 = vadd.f32 %v2744_v27, %v2702_v31  ;;  %v2833_v47 = vmax.f32 %v2743_v40, 0.0  ;;  %v7646_v27 = vld [vmem:[%s10469_s11 + $0x80] ss:$16 sps:$4 sm:$0xff]   ;;  %v7654_v28 = vld [vmem:[%s10469_s11 + $0x64] ss:$16 sps:$4 sm:$0xff]  }
 0x4ad   : > { %v2705_v34 = vpop.f32.mrf.mxu1  ;;  %v7652_v31 = vld [vmem:[%s10469_s11 + $0x60] ss:$16 sps:$4 sm:$0xff]   ;;  %v7669_v33 = vld [vmem:[%s10469_s11 + $0x244] ss:$16 sps:$4 sm:$0xff]  }
 0x4ae   : > { %v2747_v36 = vadd.f32 %v2746_v32, %v2704_v23  ;;  %v2706_v38 = vadd.f32 %v2705_v34, %v2222_v26  ;;  %v2834_v44 = vmax.f32 %v2745_v35, 0.0  ;;  %v7657_v26 = vld [vmem:[%s10469_s11 + $0x284] ss:$16 sps:$4 sm:$0xff]   ;;  %v7658_v23 = vld [vmem:[%s10469_s11 + $0x40] ss:$16 sps:$4 sm:$0xff]  }
 0x4af   : > { %v7660_v32 = vld [vmem:[%s10469_s11 + $0x44] ss:$16 sps:$4 sm:$0xff]   ;;  %v7667_v35 = vld [vmem:[%s10469_s11 + $0x240] ss:$16 sps:$4 sm:$0xff]  }
 0x4b0   : > { %v2749_v41 = vadd.f32 %v2748_v39, %v2706_v38  ;;  %v2836_v42 = vmax.f32 %v2747_v36, 0.0  ;;  %v7666_v34 = vld [vmem:[%s10469_s11 + $0x24] ss:$16 sps:$4 sm:$0xff]   ;;  %v7664_v38 = vld [vmem:[%s10469_s11 + $0x20] ss:$16 sps:$4 sm:$0xff]  }
 0x4b1   : > { %v7675_v36 = vld [vmem:[%s10469_s11 + $0x224] ss:$16 sps:$4 sm:$0xff]   ;;  %v7673_v40 = vld [vmem:[%s10469_s11 + $0x220] ss:$16 sps:$4 sm:$0xff]  }
 0x4b2   : > { %v2837_v45 = vmax.f32 %v2749_v41, 0.0  ;;  %v2839_v50 = vpack.c.bf16 %v2836_v42, %v2833_v47  ;;  %v7672_v39 = vld [vmem:[%s10469_s11 + $0x4] ss:$16 sps:$4 sm:$0xff]   ;;  %v7670_v42 = vld [vmem:[%s10469_s11] ss:$16 sps:$4 sm:$0xff]  }
 0x4b3   : > { %v7681_v41 = vld [vmem:[%s10469_s11 + $0x204] ss:$16 sps:$4 sm:$0xff]  }
 0x4b4   : > { %v2840_v49 = vpack.c.bf16 %v2837_v45, %v2834_v44  ;;  %v7678_v44 = vld [vmem:[%s10469_s11 + $0x1e4] ss:$16 sps:$4 sm:$0xff]   ;;  %v7679_v45 = vld [vmem:[%s10469_s11 + $0x200] ss:$16 sps:$4 sm:$0xff]  }
 0x4b5   : > { %v7687_v47 = vld [vmem:[%s10469_s11 + $0x3e4] ss:$16 sps:$4 sm:$0xff]  }
 0x4b6   : > { %3218 = vmatprep.mubr.bf16.mxu1 %v2840_v49  ;;  %v7676_v49 = vld [vmem:[%s10469_s11 + $0x1e0] ss:$16 sps:$4 sm:$0xff]  }
 0x4b7   : > { %3219 = vmatmul.mubr.bf16.vlgmr.msra.gmra.mxu1 %v2839_v50  ;;  %v7684_v50 = vld [vmem:[%s10469_s11 + $0x1c4] ss:$16 sps:$4 sm:$0xff]  }
 0x4b8   : > { %4126 = vmatpush1.bf16.msra.mxu1 %v7631_v7  ;;  %v7706_v7 = vld [vmem:[%s10469_s11 + $0x140] ss:$16 sps:$4 sm:$0xff]  }
 0x4b9   : > { %4127 = vmatprep.subr.bf16.mxu1 %v7636_v9  ;;  %v7715_v9 = vld [vmem:[%s10469_s11 + $0x340] ss:$16 sps:$4 sm:$0xff]  }
 0x4bc   : > { %4128 = vmatpush1.bf16.msra.mxu1 %v7634_v13  ;;  %v7720_v13 = vld [vmem:[%s10469_s11 + $0x104] ss:$16 sps:$4 sm:$0xff]  }
 0x4bd   : > { %4129 = vmatprep.subr.bf16.mxu1 %v7642_v19  ;;  %v7718_v19 = vld [vmem:[%s10469_s11 + $0x100] ss:$16 sps:$4 sm:$0xff]  }
 0x4c0   : > { %4130 = vmatpush1.bf16.msra.mxu1 %v7640_v22 }
 0x4c1   : > { %4131 = vmatprep.subr.bf16.mxu1 %v7648_v24 }
 0x4c4   : > { %4132 = vmatpush1.bf16.msra.mxu1 %v7646_v27 }
 0x4c5   : > { %4133 = vmatprep.subr.bf16.mxu1 %v7654_v28 }
 0x4c7   : > { %v7134_v52 = vpop.f32.mrf.mxu1 }
 0x4c8   : > { %4134 = vmatpush1.bf16.msra.mxu1 %v7652_v31 }
 0x4c9   : > { %v7135_v55 = vpop.f32.mrf.mxu1  ;;  %4135 = vmatprep.subr.bf16.mxu1 %v7660_v32 }
 0x4ca   : > { %v7136_v56 = vadd.f32 %v7135_v55, %v7134_v52  ;;  %v2826_v57 = vpop.f32.mrf.mxu0  ;;  %v7685_v52 = vld [vmem:[%s10469_s11 + $0x3e0] ss:$16 sps:$4 sm:$0xff]  }
 0x4cb   : > { %v7137_v58 = vpop.f32.mrf.mxu1  ;;  %v7682_v55 = vld [vmem:[%s10469_s11 + $0x1c0] ss:$16 sps:$4 sm:$0xff]  }
 0x4cc   : > { %v2786_v54 = vadd.f32 %v7136_v56, %v2226_v53  ;;  %v2828_v59 = vpop.f32.mrf.mxu0  ;;  %4136 = vmatpush1.bf16.msra.mxu1 %v7658_v23  ;;  %v7690_v56 = vld [vmem:[%s10469_s11 + $0x1a4] ss:$16 sps:$4 sm:$0xff]  }
 0x4cd   : > { %v7138_v60 = vpop.f32.mrf.mxu1  ;;  %4137 = vmatprep.subr.bf16.mxu1 %v7666_v34  ;;  %v7696_v59 = vld [vmem:[%s10469_s11 + $0x184] ss:$16 sps:$4 sm:$0xff]  }
 0x4ce   : > { %v7139_v61 = vadd.f32 %v7138_v60, %v7137_v58  ;;  %v2829_v62 = vpop.f32.mrf.mxu0  ;;  %v2827_v63 = vadd.f32 %v2826_v57, %v2786_v54  ;;  %v7691_v57 = vld [vmem:[%s10469_s11 + $0x3c0] ss:$16 sps:$4 sm:$0xff]   ;;  %v7699_v58 = vld [vmem:[%s10469_s11 + $0x3a4] ss:$16 sps:$4 sm:$0xff]  }
 0x4cf   : > { %v7688_v54 = vld [vmem:[%s10469_s11 + $0x1a0] ss:$16 sps:$4 sm:$0xff]  }
 0x4d0   : > { %v2789_v0 = vadd.f32 %v7139_v61, %v2226_v53  ;;  %v2831_v1 = vpop.f32.mrf.mxu0  ;;  %v2835_v4 = vmax.f32 %v2827_v63, 0.0  ;;  %4138 = vmatpush1.bf16.msra.mxu1 %v7664_v38  ;;  %v7693_v53 = vld [vmem:[%s10469_s11 + $0x3c4] ss:$16 sps:$4 sm:$0xff]   ;;  %v7697_v60 = vld [vmem:[%s10469_s11 + $0x3a0] ss:$16 sps:$4 sm:$0xff]  }
 0x4d1   : > { %4139 = vmatprep.subr.bf16.mxu1 %v7672_v39  ;;  %v7705_v61 = vld [vmem:[%s10469_s11 + $0x384] ss:$16 sps:$4 sm:$0xff]  }
 0x4d2   : > { %v2830_v2 = vadd.f32 %v2829_v62, %v2789_v0  ;;  %v7694_v62 = vld [vmem:[%s10469_s11 + $0x180] ss:$16 sps:$4 sm:$0xff]   ;;  %v7702_v63 = vld [vmem:[%s10469_s11 + $0x164] ss:$16 sps:$4 sm:$0xff]  }
 0x4d3   : > { %v7703_v0 = vld [vmem:[%s10469_s11 + $0x380] ss:$16 sps:$4 sm:$0xff]   ;;  %v7711_v1 = vld [vmem:[%s10469_s11 + $0x364] ss:$16 sps:$4 sm:$0xff]  }
 0x4d4   : > { %v2838_v5 = vmax.f32 %v2830_v2, 0.0  ;;  %4140 = vmatpush1.bf16.msra.mxu1 %v7670_v42  ;;  %v7700_v2 = vld [vmem:[%s10469_s11 + $0x160] ss:$16 sps:$4 sm:$0xff]  }
 0x4d5   : > { %4141 = vmatprep.subr.bf16.mxu1 %v7678_v44 }
 0x4d6   : > { %v2841_v6 = vpack.c.bf16 %v2838_v5, %v2835_v4  ;;  %v7708_v4 = vld [vmem:[%s10469_s11 + $0x144] ss:$16 sps:$4 sm:$0xff]   ;;  %v7709_v5 = vld [vmem:[%s10469_s11 + $0x360] ss:$16 sps:$4 sm:$0xff]  }
 0x4d8   : > { %7296 = vmatmul.mubr.bf16.vlgmr.msra.gmra.mxu0 %v2841_v6  ;;  %4142 = vmatpush2.bf16.msra.mxu1 %v7676_v49  ;;  %v7717_v6 = vld [vmem:[%s10469_s11 + $0x344] ss:$16 sps:$4 sm:$0xff]  }
 0x4d9   : > { %4169 = vmatpush1.bf16.msra.mxu0 %v7637_v10  ;;  %4143 = vmatprep.subr.bf16.mxu1 %v7684_v50  ;;  %v7723_v10 = vld [vmem:[%s10469_s11 + $0x324] ss:$16 sps:$4 sm:$0xff]  }
 0x4da   : > { %4170 = vmatprep.subr.bf16.mxu0 %v7645_v16  ;;  %v7721_v16 = vld [vmem:[%s10469_s11 + $0x320] ss:$16 sps:$4 sm:$0xff]  }
 0x4dc   : > { %4144 = vmatpush2.bf16.msra.mxu1 %v7682_v55  ;;  %v7724_v55 = vld [vmem:[%s10469_s11 + $0x300] ss:$16 sps:$4 sm:$0xff]  }
 0x4dd   : > { %4171 = vmatpush1.bf16.msra.mxu0 %v7643_v20  ;;  %4145 = vmatprep.subr.bf16.mxu1 %v7690_v56 }
 0x4de   : > { %4172 = vmatprep.subr.bf16.mxu0 %v7651_v21 }
 0x4e0   : > { %4146 = vmatpush2.bf16.msra.mxu1 %v7688_v54 }
 0x4e1   : > { %4173 = vmatpush1.bf16.msra.mxu0 %v7649_v25  ;;  %4147 = vmatprep.subr.bf16.mxu1 %v7696_v59 }
 0x4e2   : > { %4174 = vmatprep.subr.bf16.mxu0 %v7657_v26  ;;  %v6656_v26 = vld [vmem:[%s10468_s10] ss:$0 sm:$0xff] }
 0x4e4   : > { %4148 = vmatpush2.bf16.msra.mxu1 %v7694_v62  ;;  %v7729_v62 = vld [vmem:[%s10469_s11 + $0x464] ss:$16 sps:$4 sm:$0xff]  }
 0x4e5   : > { %4175 = vmatpush1.bf16.msra.mxu0 %v7655_v29  ;;  %4149 = vmatprep.subr.bf16.mxu1 %v7702_v63 }
 0x4e6   : > { %4176 = vmatprep.subr.bf16.mxu0 %v7663_v30 }
 0x4e8   : > { %4150 = vmatpush2.bf16.msra.mxu1 %v7700_v2 }
 0x4e9   : > { %4177 = vmatpush1.bf16.msra.mxu0 %v7661_v37  ;;  %4151 = vmatprep.subr.bf16.mxu1 %v7708_v4 }
 0x4ea   : > { %4178 = vmatprep.subr.bf16.mxu0 %v7669_v33 }
 0x4ec   : > { %4152 = vmatpush2.bf16.msra.mxu1 %v7706_v7 }
 0x4ed   : > { %4179 = vmatpush1.bf16.msra.mxu0 %v7667_v35  ;;  %4153 = vmatprep.subr.bf16.mxu1 %v7714_v8 }
 0x4ee   : > { %4180 = vmatprep.subr.bf16.mxu0 %v7675_v36 }
 0x4f0   : > { %4154 = vmatpush2.bf16.msra.mxu1 %v7712_v12 }
 0x4f1   : > { %4181 = vmatpush1.bf16.msra.mxu0 %v7673_v40  ;;  %4155 = vmatprep.subr.bf16.mxu1 %v7720_v13 }
 0x4f2   : > { %4182 = vmatprep.subr.bf16.mxu0 %v7681_v41 }
 0x4f4   : > { %4156 = vmatpush2.bf16.msra.mxu1 %v7718_v19 }
 0x4f5   : > { %4183 = vmatpush1.bf16.msra.mxu0 %v7679_v45  ;;  %4219 = vmatprep.subr.bf16.mxu1 %v7729_v62 }
 0x4f6   : > { %4184 = vmatprep.subr.bf16.mxu0 %v7687_v47 }
 0x4f9   : > { %4185 = vmatpush2.bf16.msra.mxu0 %v7685_v52 }
 0x4fa   : > { %4186 = vmatprep.subr.bf16.mxu0 %v7693_v53 }
 0x4fd   : > { %4187 = vmatpush2.bf16.msra.mxu0 %v7691_v57 }
 0x4fe   : > { %4188 = vmatprep.subr.bf16.mxu0 %v7699_v58  ;;  %v7726_v58 = vld [vmem:[%s10469_s11 + $0x304] ss:$16 sps:$4 sm:$0xff]  }
 0x501   : > { %4189 = vmatpush2.bf16.msra.mxu0 %v7697_v60 }
 0x502   : > { %4190 = vmatprep.subr.bf16.mxu0 %v7705_v61 }
 0x505   : > { %4191 = vmatpush2.bf16.msra.mxu0 %v7703_v0 }
 0x506   : > { %4192 = vmatprep.subr.bf16.mxu0 %v7711_v1 }
 0x509   : > { %4193 = vmatpush2.bf16.msra.mxu0 %v7709_v5  ;;  %v7735_v5 = vld [vmem:[%s10469_s11 + $0xec] ss:$16 sps:$4 sm:$0xff]  }
 0x50a   : > { %4194 = vmatprep.subr.bf16.mxu0 %v7717_v6 }
 0x50d   : > { %4195 = vmatpush2.bf16.msra.mxu0 %v7715_v9 }
 0x50e   : > { %4196 = vmatprep.subr.bf16.mxu0 %v7723_v10 }
 0x511   : > { %4197 = vmatpush2.bf16.msra.mxu0 %v7721_v16 }
 0x512   : > { %4198 = vmatprep.subr.bf16.mxu0 %v7726_v58  ;;  %v7727_v58 = vld [vmem:[%s10469_s11 + $0x460] ss:$16 sps:$4 sm:$0xff]  }
 0x515   : > { %4199 = vmatpush2.bf16.msra.mxu0 %v7724_v55 }
 0x516   : > { %4254 = vmatprep.subr.bf16.mxu0 %v7735_v5 }
 0x577   : > { %v7156_v20 = vpop.f32.mrf.mxu1 }
 0x579   : > { %v7157_v21 = vpop.f32.mrf.mxu1 }
 0x57a   : > { %v7158_v24 = vadd.f32 %v7157_v21, %v7156_v20 }
 0x57b   : > { %v7159_v22 = vpop.f32.mrf.mxu1 }
 0x57c   : > { %v3221_v28 = vadd.f32 %v7158_v24, %v6656_v26 }
 0x57d   : > { %v7160_v25 = vpop.f32.mrf.mxu1 }
 0x57e   : > { %v7161_v27 = vadd.f32 %v7160_v25, %v7159_v22 }
 0x580   : > { %v3224_v32 = vadd.f32 %v7161_v27, %v6656_v26 }
 0x598   : > { %v3261_v29 = vpop.f32.mrf.mxu0 }
 0x599   : > { %v3262_v30 = vadd.f32 %v3261_v29, %v3221_v28 }
 0x59a   : > { %v7297_v31 = vpop.f32.mrf.mxu0 }
 0x59b   : > { %v3268_v37 = vmax.f32 %v3262_v30, 0.0 }
 0x59c   : > { %v3264_v33 = vpop.f32.mrf.mxu0 }
 0x59d   : > { %v3265_v23 = vadd.f32 %v3264_v33, %v3224_v32  ;;  %v3271_v36 = vsel %vm8546_vm0, 0.0, %v3268_v37  ;;  %v3274_v38 = vsel %vm8550_vm1, 0.0, %v3268_v37 }
 0x59e   : > { %v7298_v34 = vpop.f32.mrf.mxu0 }
 0x59f   : > { %v3269_v35 = vmax.f32 %v3265_v23, 0.0 }
 0x5a1   : > { %v3270_v39 = vpack.c.bf16 %v3269_v35, %v3268_v37  ;;  %v3272_v40 = vsel %vm8554_vm2, 0.0, %v3269_v35  ;;  %v3275_v41 = vsel %vm8558_vm3, 0.0, %v3269_v35 }
 0x5a2   : > { %v3273_v42 = vpack.c.bf16 %v3272_v40, %v3271_v36  ;;  %v3276_v44 = vpack.c.bf16 %v3275_v41, %v3274_v38 }
 0x5a3   : > { %v3289_v45 = vshrl.u32 %v3270_v39, 16  ;;  %v3292_v47 = vshll.u32 %v3270_v39, 16 }
 0x5a4   : > { %v3278_v49 = vshrl.u32 %v3273_v42, 16  ;;  %v3281_v50 = vshll.u32 %v3273_v42, 16  ;;  %v3300_v52 = vshrl.u32 %v3276_v44, 16  ;;  %v3303_v53 = vshll.u32 %v3276_v44, 16 }
 0x5a5   : > { %v3291_v56 = vrot.slane %v3289_v45, 5  ;;  %v3294_v57 = vrot.slane %v3292_v47, 6 }
 0x5a6   : > { %v3280_v54 = vrot.slane %v3278_v49, 5  ;;  %v3283_v59 = vrot.slane %v3281_v50, 6  ;;  %v3302_v60 = vrot.slane %v3300_v52, 5  ;;  %v3305_v61 = vrot.slane %v3303_v53, 6 }
 0x5a7   : > { %v3295_v63 = vor.u32 %v3294_v57, %v3291_v56 }
 0x5a8   : > { %v3284_v0 = vor.u32 %v3283_v59, %v3280_v54  ;;  %v3306_v4 = vor.u32 %v3305_v61, %v3302_v60  ;;  %v7732_v59 = vld [vmem:[%s10469_s11 + $0x444] ss:$16 sps:$4 sm:$0xff]  }
 0x5a9   : > { %v3297_v1 = vsel %vm8584_vm9, 0, %v3295_v63  ;;  %v3298_v2 = vsel %vm8584_vm9, %v3295_v63, 0 }
 0x5aa   : > { %v3286_v6 = vsel %vm8584_vm9, 0, %v3284_v0  ;;  %v3287_v7 = vsel %vm8584_vm9, %v3284_v0, 0  ;;  %v3311_v8 = vshrl.u32 %v3297_v1, 16  ;;  %v3313_v9 = vshll.u32 %v3297_v1, 16  ;;  %v7730_v0 = vld [vmem:[%s10469_s11 + $0x440] ss:$16 sps:$4 sm:$0xff]  }
 0x5ab   : > { %v3331_v10 = vrot.slane %v3286_v6, 2  ;;  %v3332_v12 = vrot.slane %v3287_v7, 2  ;;  %v3318_v13 = vshll.u32 %v3298_v2, 16  ;;  %v3339_v19 = vshrl.u32 %v3298_v2, 16  ;;  %v7733_v1 = vld [vmem:[%s10469_s11 + $0xe8] ss:$16 sps:$4 sm:$0xff]  }
 0x5ac   : > { %v3315_v16 = vrot.slane %v3313_v9, 1  ;;  %v3353_v20 = vrot.slane %v3311_v8, 4  ;;  %v3354_v21 = vrot.slane %v3313_v9, 5  ;;  %v3308_v26 = vsel %vm8584_vm9, 0, %v3306_v4 }
 0x5ad   : > { %v3333_v22 = vsel %vm10546_vm6, %v3331_v10, %v3332_v12  ;;  %v3320_v24 = vrot.slane %v3318_v13, 1  ;;  %v3357_v25 = vrot.slane %v3318_v13, 5  ;;  %v3356_v29 = vrot.slane %v3339_v19, 4  ;;  %v7747_v10 = vld [vmem:[%s10469_s11 + $0xac] ss:$16 sps:$4 sm:$0xff]  }
 0x5ae   : > { %3334 = vrot.lane.b32.xlu0 %v3333_v22, %s10538_s28  ;;  %v3316_v27 = vor.u32 %v3315_v16, %v3311_v8  ;;  %v3355_v28 = vor.u32 %v3354_v21, %v3353_v20  ;;  %v3309_v30 = vsel %vm8584_vm9, %v3306_v4, 0  ;;  %v3345_v31 = vrot.slane %v3308_v26, 3  ;;  %v7738_v4 = vld [vmem:[%s10469_s11 + $0x424] ss:$16 sps:$4 sm:$0xff]   ;;  %v7742_v12 = vld [vmem:[%s10469_s11 + $0x400] ss:$16 sps:$4 sm:$0xff]  }
 0x5af   : > { %v3326_v32 = vrot.slane %v3308_v26, 1  ;;  %v3327_v37 = vrot.slane %v3309_v30, 1  ;;  %v3358_v23 = vor.u32 %v3357_v25, %v3356_v29  ;;  %v3346_v34 = vrot.slane %v3309_v30, 3  ;;  %v7750_v16 = vld [vmem:[%s10469_s11 + $0x8c] ss:$16 sps:$4 sm:$0xff]  }
 0x5b0   : > { %v3321_v33 = vsel %vm10547_vm8, %v3316_v27, %v3320_v24  ;;  %v3336_v35 = vrot.slane %v3311_v8, 2  ;;  %v3337_v38 = vrot.slane %v3313_v9, 3  ;;  %v3341_v39 = vrot.slane %v3339_v19, 2  ;;  %v7739_v8 = vld [vmem:[%s10469_s11 + $0xc8] ss:$16 sps:$4 sm:$0xff]  }
 0x5b1   : > { %3322 = vrot.lane.b32.xlu1 %v3321_v33, %s10538_s28  ;;  %v3328_v36 = vsel %vm999_vm7, %v3326_v32, %v3327_v37  ;;  %v3359_v40 = vsel %vm1037_vm11, %v3355_v28, %v3358_v23  ;;  %v3342_v41 = vrot.slane %v3318_v13, 3  ;;  %v3362_v42 = vrot.slane %v3308_v26, 5  ;;  %v7744_v9 = vld [vmem:[%s10469_s11 + $0x404] ss:$16 sps:$4 sm:$0xff]   ;;  %v7745_v13 = vld [vmem:[%s10469_s11 + $0xa8] ss:$16 sps:$4 sm:$0xff]  }
 0x5b2   : > { %3360 = vrot.lane.b32.xlu0 %v3359_v40, %s10538_s28  ;;  %v3338_v44 = vor.u32 %v3337_v38, %v3336_v35  ;;  %v3363_v45 = vrot.slane %v3309_v30, 5  ;;  %v3347_v47 = vsel %vm10548_vm10, %v3345_v31, %v3346_v34  ;;  %v3351_v55 = vrot.slane %v3287_v7, 4  ;;  %v7736_v7 = vld [vmem:[%s10469_s11 + $0x420] ss:$16 sps:$4 sm:$0xff]   ;;  %v7753_v19 = vld [vmem:[%s10469_s11 + $0x2ec] ss:$16 sps:$4 sm:$0xff]  }
 0x5b3   : > { %v3343_v49 = vor.u32 %v3342_v41, %v3341_v39  ;;  %v3350_v57 = vrot.slane %v3286_v6, 4  ;;  %v7748_v20 = vld [vmem:[%s10469_s11 + $0x88] ss:$16 sps:$4 sm:$0xff]   ;;  %v7756_v22 = vld [vmem:[%s10469_s11 + $0x6c] ss:$16 sps:$4 sm:$0xff]  }
 0x5b4   : > { %v9467_v50 = vsel %vm10549_vm13, %v3362_v42, %v3363_v45  ;;  %v7751_v21 = vld [vmem:[%s10469_s11 + $0x2e8] ss:$16 sps:$4 sm:$0xff]   ;;  %v7759_v24 = vld [vmem:[%s10469_s11 + $0x2cc] ss:$16 sps:$4 sm:$0xff]  }
 0x5b5   : > { %3348 = vrot.lane.b32.xlu1 %v3347_v47, %s10538_s28  ;;  %v3344_v52 = vsel %vm10550_vm15, %v3338_v44, %v3343_v49  ;;  %v3352_v62 = vsel %vm10551_vm4, %v3350_v57, %v3351_v55  ;;  %v7754_v25 = vld [vmem:[%s10469_s11 + $0x68] ss:$16 sps:$4 sm:$0xff]   ;;  %v7762_v27 = vld [vmem:[%s10469_s11 + $0x4c] ss:$16 sps:$4 sm:$0xff]  }
 0x5b6   : > { %v7757_v26 = vld [vmem:[%s10469_s11 + $0x2c8] ss:$16 sps:$4 sm:$0xff]   ;;  %v7765_v28 = vld [vmem:[%s10469_s11 + $0x2ac] ss:$16 sps:$4 sm:$0xff]  }
 0x5b7   : > { %v7760_v29 = vld [vmem:[%s10469_s11 + $0x48] ss:$16 sps:$4 sm:$0xff]   ;;  %v7768_v31 = vld [vmem:[%s10469_s11 + $0x2c] ss:$16 sps:$4 sm:$0xff]  }
 0x5b8   : > { %v7763_v30 = vld [vmem:[%s10469_s11 + $0x2a8] ss:$16 sps:$4 sm:$0xff]   ;;  %v7771_v32 = vld [vmem:[%s10469_s11 + $0x28c] ss:$16 sps:$4 sm:$0xff]  }
 0x5b9   : > { %v7766_v37 = vld [vmem:[%s10469_s11 + $0x28] ss:$16 sps:$4 sm:$0xff]   ;;  %v7774_v23 = vld [vmem:[%s10469_s11 + $0xc] ss:$16 sps:$4 sm:$0xff]  }
 0x5ba   : > { %v7769_v33 = vld [vmem:[%s10469_s11 + $0x288] ss:$16 sps:$4 sm:$0xff]   ;;  %v7777_v34 = vld [vmem:[%s10469_s11 + $0x26c] ss:$16 sps:$4 sm:$0xff]  }
 0x5bb   : > { %v7772_v35 = vld [vmem:[%s10469_s11 + $0x8] ss:$16 sps:$4 sm:$0xff]   ;;  %v7780_v38 = vld [vmem:[%s10469_s11 + $0x1ec] ss:$16 sps:$4 sm:$0xff]  }
 0x5bc   : > { %v7783_v39 = vld [vmem:[%s10469_s11 + $0x24c] ss:$16 sps:$4 sm:$0xff]   ;;  %v7778_v40 = vld [vmem:[%s10469_s11 + $0x1e8] ss:$16 sps:$4 sm:$0xff]  }
 0x5bd   : > { %v7781_v41 = vld [vmem:[%s10469_s11 + $0x248] ss:$16 sps:$4 sm:$0xff]   ;;  %v7786_v42 = vld [vmem:[%s10469_s11 + $0x1cc] ss:$16 sps:$4 sm:$0xff]  }
 0x5be   : > { %v7789_v44 = vld [vmem:[%s10469_s11 + $0x22c] ss:$16 sps:$4 sm:$0xff]   ;;  %v7784_v45 = vld [vmem:[%s10469_s11 + $0x1c8] ss:$16 sps:$4 sm:$0xff]  }
 0x5bf   : > { %v7787_v47 = vld [vmem:[%s10469_s11 + $0x228] ss:$16 sps:$4 sm:$0xff]   ;;  %v7792_v49 = vld [vmem:[%s10469_s11 + $0x1ac] ss:$16 sps:$4 sm:$0xff]  }
 0x5c0   : > { %v7793_v55 = vld [vmem:[%s10469_s11 + $0x208] ss:$16 sps:$4 sm:$0xff]   ;;  %v7801_v57 = vld [vmem:[%s10469_s11 + $0x3ec] ss:$16 sps:$4 sm:$0xff]  }
 0x620   : > { %v3335_v53 = vpop.permute.xlu0 %3334 }
 0x621   : > { %v3371_v56 = vsel %vm1061_vm14, %v3328_v36, %v3335_v53  ;;  %v7775_v36 = vld [vmem:[%s10469_s11 + $0x268] ss:$16 sps:$4 sm:$0xff]  }
 0x622   : > { %4157 = vmatprep.mubr.bf16.mxu1 %v3371_v56  ;;  %v7790_v53 = vld [vmem:[%s10469_s11 + $0x1a8] ss:$16 sps:$4 sm:$0xff]  }
 0x623   : > { %v3323_v54 = vpop.permute.xlu1 %3322 }
 0x624   : > { %v9478_v60 = vsel %vm1061_vm14, %v3286_v6, %v3323_v54  ;;  %v3361_v61 = vpop.permute.xlu0 %3360  ;;  %v7741_v6 = vld [vmem:[%s10469_s11 + $0xcc] ss:$16 sps:$4 sm:$0xff]   ;;  %v7799_v54 = vld [vmem:[%s10469_s11 + $0x3e8] ss:$16 sps:$4 sm:$0xff]  }
 0x625   : > { %4158 = vmatmul.mubr.bf16.vlgmr.msra.gmra.mxu1 %v9478_v60  ;;  %v3379_v63 = vsel %vm1061_vm14, %v3352_v62, %v3361_v61  ;;  %v7807_v61 = vld [vmem:[%s10469_s11 + $0x3cc] ss:$16 sps:$4 sm:$0xff]   ;;  %v7802_v62 = vld [vmem:[%s10469_s11 + $0x168] ss:$16 sps:$4 sm:$0xff]  }
 0x626   : > { %4220 = vmatpush1.bf16.msra.mxu1 %v7727_v58  ;;  %4243 = vmatprep.mubr.bf16.mxu1 %v8189_v51  ;;  %v7796_v58 = vld [vmem:[%s10469_s11 + $0x188] ss:$16 sps:$4 sm:$0xff]  }
 0x627   : > { %4200 = vmatprep.mubr.bf16.mxu0 %v3379_v63  ;;  %v3349_v2 = vpop.permute.xlu1 %3348  ;;  %4221 = vmatprep.subr.bf16.mxu1 %v7732_v59  ;;  %v7804_v59 = vld [vmem:[%s10469_s11 + $0x16c] ss:$16 sps:$4 sm:$0xff]  }
 0x628   : > { %v9494_v5 = vsel %vm1061_vm14, %v3344_v52, %v3349_v2  ;;  %v7795_v52 = vld [vmem:[%s10469_s11 + $0x20c] ss:$16 sps:$4 sm:$0xff]   ;;  %v7808_v2 = vld [vmem:[%s10469_s11 + $0x148] ss:$16 sps:$4 sm:$0xff]  }
 0x629   : > { %4201 = vmatmul.mubr.bf16.vlgmr.msra.gmra.mxu0 %v9494_v5 }
 0x62a   : > { %4222 = vmatpush1.bf16.msra.mxu1 %v7730_v0  ;;  %4255 = vmatpush1.bf16.msra.mxu0 %v7733_v1  ;;  %v7810_v0 = vld [vmem:[%s10469_s11 + $0x14c] ss:$16 sps:$4 sm:$0xff]  }
 0x62b   : > { %4286 = vmatprep.mubr.bf16.mxu0 %v3371_v56  ;;  %4223 = vmatprep.subr.bf16.mxu1 %v7738_v4  ;;  %v7798_v56 = vld [vmem:[%s10469_s11 + $0x18c] ss:$16 sps:$4 sm:$0xff]   ;;  %v7811_v4 = vld [vmem:[%s10469_s11 + $0x3a8] ss:$16 sps:$4 sm:$0xff]  }
 0x62c   : > { %4256 = vmatprep.subr.bf16.mxu0 %v7741_v6  ;;  %v7813_v1 = vld [vmem:[%s10469_s11 + $0x3ac] ss:$16 sps:$4 sm:$0xff]  }
 0x62d   : > { %v7816_v6 = vld [vmem:[%s10469_s11 + $0x12c] ss:$16 sps:$4 sm:$0xff]  }
 0x62e   : > { %4224 = vmatpush1.bf16.msra.mxu1 %v7736_v7  ;;  %4257 = vmatpush1.bf16.msra.mxu0 %v7739_v8  ;;  %v7819_v7 = vld [vmem:[%s10469_s11 + $0x38c] ss:$16 sps:$4 sm:$0xff]   ;;  %v7814_v8 = vld [vmem:[%s10469_s11 + $0x128] ss:$16 sps:$4 sm:$0xff]  }
 0x62f   : > { %4225 = vmatprep.subr.bf16.mxu1 %v7744_v9  ;;  %4258 = vmatprep.subr.bf16.mxu0 %v7747_v10  ;;  %v7817_v9 = vld [vmem:[%s10469_s11 + $0x388] ss:$16 sps:$4 sm:$0xff]   ;;  %v7822_v10 = vld [vmem:[%s10469_s11 + $0x10c] ss:$16 sps:$4 sm:$0xff]  }
 0x632   : > { %4226 = vmatpush1.bf16.msra.mxu1 %v7742_v12  ;;  %4259 = vmatpush1.bf16.msra.mxu0 %v7745_v13  ;;  %v7825_v12 = vld [vmem:[%s10469_s11 + $0x36c] ss:$16 sps:$4 sm:$0xff]   ;;  %v7820_v13 = vld [vmem:[%s10469_s11 + $0x108] ss:$16 sps:$4 sm:$0xff]  }
 0x633   : > { %4260 = vmatprep.subr.bf16.mxu0 %v7750_v16  ;;  %4297 = vmatprep.subr.bf16.mxu1 %v7753_v19  ;;  %v7823_v16 = vld [vmem:[%s10469_s11 + $0x368] ss:$16 sps:$4 sm:$0xff]   ;;  %v7828_v19 = vld [vmem:[%s10469_s11 + $0x34c] ss:$16 sps:$4 sm:$0xff]  }
 0x635   : > { %6825 = vmatmul.mubr.msk.bf16.vlgmr.msra.gmra.mxu1 %vm1061_vm14, %v9467_v50 }
 0x636   : > { %4261 = vmatpush1.bf16.msra.mxu0 %v7748_v20  ;;  %4298 = vmatpush1.bf16.msra.mxu1 %v7751_v21  ;;  %v7831_v20 = vld [vmem:[%s10469_s11 + $0x46c] ss:$16 sps:$4 sm:$0xff]   ;;  %v7826_v21 = vld [vmem:[%s10469_s11 + $0x348] ss:$16 sps:$4 sm:$0xff]  }
 0x637   : > { %4329 = vmatprep.mubr.bf16.mxu1 %v3379_v63  ;;  %4262 = vmatprep.subr.bf16.mxu0 %v7756_v22  ;;  %v7805_v63 = vld [vmem:[%s10469_s11 + $0x3c8] ss:$16 sps:$4 sm:$0xff]  }
 0x638   : > { %4299 = vmatprep.subr.bf16.mxu1 %v7759_v24  ;;  %v7829_v22 = vld [vmem:[%s10469_s11 + $0x468] ss:$16 sps:$4 sm:$0xff]   ;;  %v7834_v24 = vld [vmem:[%s10469_s11 + $0x32c] ss:$16 sps:$4 sm:$0xff]  }
 0x63a   : > { %4263 = vmatpush1.bf16.msra.mxu0 %v7754_v25  ;;  %4300 = vmatpush1.bf16.msra.mxu1 %v7757_v26  ;;  %v7837_v25 = vld [vmem:[%s10469_s11 + $0x44c] ss:$16 sps:$4 sm:$0xff]   ;;  %v7832_v26 = vld [vmem:[%s10469_s11 + $0x328] ss:$16 sps:$4 sm:$0xff]  }
 0x63b   : > { %4264 = vmatprep.subr.bf16.mxu0 %v7762_v27  ;;  %4301 = vmatprep.subr.bf16.mxu1 %v7765_v28  ;;  %v7835_v27 = vld [vmem:[%s10469_s11 + $0x448] ss:$16 sps:$4 sm:$0xff]   ;;  %v7840_v28 = vld [vmem:[%s10469_s11 + $0x30c] ss:$16 sps:$4 sm:$0xff]  }
 0x63e   : > { %4265 = vmatpush1.bf16.msra.mxu0 %v7760_v29  ;;  %4302 = vmatpush1.bf16.msra.mxu1 %v7763_v30  ;;  %v7838_v29 = vld [vmem:[%s10469_s11 + $0x308] ss:$16 sps:$4 sm:$0xff]  }
 0x63f   : > { %4266 = vmatprep.subr.bf16.mxu0 %v7768_v31  ;;  %4303 = vmatprep.subr.bf16.mxu1 %v7771_v32  ;;  %v7841_v30 = vld [vmem:[%s10469_s11 + $0x428] ss:$16 sps:$4 sm:$0xff]   ;;  %v7846_v31 = vld [vmem:[%s10469_s11 + $0x40c] ss:$16 sps:$4 sm:$0xff]  }
 0x640   : > { %v7847_v32 = vld [vmem:[%s10471_s13 + $0x78] sm:$0xff]  }
 0x642   : > { %4267 = vmatpush1.bf16.msra.mxu0 %v7766_v37  ;;  %4304 = vmatpush1.bf16.msra.mxu1 %v7769_v33  ;;  %v7844_v37 = vld [vmem:[%s10469_s11 + $0x408] ss:$16 sps:$4 sm:$0xff]  }
 0x643   : > { %4268 = vmatprep.subr.bf16.mxu0 %v7774_v23  ;;  %4305 = vmatprep.subr.bf16.mxu1 %v7777_v34  ;;  %v7848_v33 = vld [vmem:[%s10471_s13 + $0x38] sm:$0xff]   ;;  %v7849_v23 = vld [vmem:[%s10471_s13 + $0x70] sm:$0xff]  }
 0x644   : > { %v7850_v34 = vld [vmem:[%s10471_s13 + $0x30] sm:$0xff]  }
 0x646   : > { %4269 = vmatpush1.bf16.msra.mxu0 %v7772_v35  ;;  %4306 = vmatpush1.bf16.msra.mxu1 %v7775_v36  ;;  %v7851_v35 = vld [vmem:[%s10471_s13 + $0x68] sm:$0xff]  }
 0x647   : > { %4270 = vmatprep.subr.bf16.mxu0 %v7780_v38  ;;  %4307 = vmatprep.subr.bf16.mxu1 %v7783_v39  ;;  %v7852_v36 = vld [vmem:[%s10471_s13 + $0x28] sm:$0xff]   ;;  %v7854_v38 = vld [vmem:[%s10471_s13 + $0x20] sm:$0xff]   ;;  %v7856_v39 = vld [vmem:[%s10471_s13 + $0x18] sm:$0xff]  }
 0x64a   : > { %4271 = vmatpush2.bf16.msra.mxu0 %v7778_v40  ;;  %4308 = vmatpush1.bf16.msra.mxu1 %v7781_v41  ;;  %v7857_v40 = vld [vmem:[%s10471_s13 + $0x50] sm:$0xff]   ;;  %v7863_v41 = vld [vmem:[%s10471_s13 + $0xf8] sm:$0xff]  }
 0x64b   : > { %4272 = vmatprep.subr.bf16.mxu0 %v7786_v42  ;;  %4309 = vmatprep.subr.bf16.mxu1 %v7789_v44  ;;  %v7864_v42 = vld [vmem:[%s10471_s13 + $0xb8] sm:$0xff]   ;;  %v7858_v44 = vld [vmem:[%s10471_s13 + $0x10] sm:$0xff]  }
 0x64e   : > { %4273 = vmatpush2.bf16.msra.mxu0 %v7784_v45  ;;  %4310 = vmatpush1.bf16.msra.mxu1 %v7787_v47  ;;  %v7859_v45 = vld [vmem:[%s10471_s13 + $0x48] sm:$0xff]  }
 0x64f   : > { %4274 = vmatprep.subr.bf16.mxu0 %v7792_v49  ;;  %4311 = vmatprep.subr.bf16.mxu1 %v7795_v52  ;;  %v7860_v47 = vld [vmem:[%s10471_s13 + $0x8] sm:$0xff]   ;;  %v7861_v49 = vld [vmem:[%s10471_s13 + $0x40] sm:$0xff]  }
 0x650   : > { %v7862_v52 = vld [vmem:[%s10471_s13] sm:$0xff]  }
 0x652   : > { %4275 = vmatpush2.bf16.msra.mxu0 %v7790_v53  ;;  %4312 = vmatpush1.bf16.msra.mxu1 %v7793_v55  ;;  %v7865_v53 = vld [vmem:[%s10471_s13 + $0xf0] sm:$0xff]  }
 0x653   : > { %4276 = vmatprep.subr.bf16.mxu0 %v7798_v56  ;;  %4313 = vmatprep.subr.bf16.mxu1 %v7801_v57  ;;  %v7866_v55 = vld [vmem:[%s10471_s13 + $0xb0] sm:$0xff]   ;;  %v7867_v56 = vld [vmem:[%s10471_s13 + $0xe8] sm:$0xff]  }
 0x654   : > { %v7868_v57 = vld [vmem:[%s10471_s13 + $0xa8] sm:$0xff]  }
 0x656   : > { %4277 = vmatpush2.bf16.msra.mxu0 %v7796_v58  ;;  %4314 = vmatpush2.bf16.msra.mxu1 %v7799_v54  ;;  %v7869_v58 = vld [vmem:[%s10471_s13 + $0xe0] sm:$0xff]  }
 0x657   : > { %4278 = vmatprep.subr.bf16.mxu0 %v7804_v59  ;;  %4315 = vmatprep.subr.bf16.mxu1 %v7807_v61  ;;  %v7870_v54 = vld [vmem:[%s10471_s13 + $0xa0] sm:$0xff]   ;;  %v7871_v59 = vld [vmem:[%s10471_s13 + $0xd8] sm:$0xff]  }
 0x658   : > { %v7872_v61 = vld [vmem:[%s10471_s13 + $0x98] sm:$0xff]  }
 0x65a   : > { %4279 = vmatpush2.bf16.msra.mxu0 %v7802_v62  ;;  %4316 = vmatpush2.bf16.msra.mxu1 %v7805_v63  ;;  %v7873_v62 = vld [vmem:[%s10471_s13 + $0xd0] sm:$0xff]  }
 0x65b   : > { %4280 = vmatprep.subr.bf16.mxu0 %v7810_v0  ;;  %4317 = vmatprep.subr.bf16.mxu1 %v7813_v1  ;;  %v7874_v63 = vld [vmem:[%s10471_s13 + $0x90] sm:$0xff]   ;;  %v7875_v0 = vld [vmem:[%s10471_s13 + $0xc8] sm:$0xff]  }
 0x65c   : > { %v7876_v1 = vld [vmem:[%s10471_s13 + $0x88] sm:$0xff]  }
 0x65e   : > { %4281 = vmatpush2.bf16.msra.mxu0 %v7808_v2  ;;  %4318 = vmatpush2.bf16.msra.mxu1 %v7811_v4  ;;  %v7877_v2 = vld [vmem:[%s10471_s13 + $0xc0] sm:$0xff]  }
 0x65f   : > { %4282 = vmatprep.subr.bf16.mxu0 %v7816_v6  ;;  %4319 = vmatprep.subr.bf16.mxu1 %v7819_v7  ;;  %v7878_v4 = vld [vmem:[%s10471_s13 + $0x80] sm:$0xff]  }
 0x662   : > { %4283 = vmatpush2.bf16.msra.mxu0 %v7814_v8  ;;  %4320 = vmatpush2.bf16.msra.mxu1 %v7817_v9 }
 0x663   : > { %4284 = vmatprep.subr.bf16.mxu0 %v7822_v10  ;;  %4321 = vmatprep.subr.bf16.mxu1 %v7825_v12  ;;  %v3035_v12 = vld [vmem:[%s10470_s12] sm:$0xf] }
 0x666   : > { %4285 = vmatpush2.bf16.msra.mxu0 %v7820_v13  ;;  %4322 = vmatpush2.bf16.msra.mxu1 %v7823_v16  ;;  %v3389_v13 = vrot.slane %v3035_v12, %v8824_v46  ;;  %v3385_v16 = vrot.slane %v3035_v12, %v8827_v48 }
 0x667   : > { %4323 = vmatprep.subr.bf16.mxu1 %v7828_v19  ;;  %4348 = vmatprep.subr.bf16.mxu0 %v7831_v20 }
 0x669   : > { %4287 = vmatmul.mubr.bf16.vlgmr.msra.gmra.mxu0 %v9478_v60  ;;  %v7843_v60 = vld [vmem:[%s10469_s11 + $0x42c] ss:$16 sps:$4 sm:$0xff]  }
 0x66a   : > { %4324 = vmatpush2.bf16.msra.mxu1 %v7826_v21  ;;  %4349 = vmatpush1.bf16.msra.mxu0 %v7829_v22 }
 0x66b   : > { %4325 = vmatprep.subr.bf16.mxu1 %v7834_v24  ;;  %4350 = vmatprep.subr.bf16.mxu0 %v7837_v25 }
 0x66c   : > { %4372 = vmatprep.mubr.bf16.mxu0 %v8189_v51 }
 0x66e   : > { %4326 = vmatpush2.bf16.msra.mxu1 %v7832_v26  ;;  %4351 = vmatpush1.bf16.msra.mxu0 %v7835_v27 }
 0x66f   : > { %4327 = vmatprep.subr.bf16.mxu1 %v7840_v28  ;;  %4352 = vmatprep.subr.bf16.mxu0 %v7843_v60 }
 0x672   : > { %4328 = vmatpush2.bf16.msra.mxu1 %v7838_v29  ;;  %4353 = vmatpush1.bf16.msra.mxu0 %v7841_v30 }
 0x673   : > { %4354 = vmatprep.subr.bf16.mxu0 %v7846_v31  ;;  %7171 = vmatprep.subr.bf16.mxu1 %v7847_v32 }
 0x675   : > { %4330 = vmatmul.mubr.bf16.vlgmr.msra.gmra.mxu1 %v9494_v5  ;;  %v7853_v5 = vld [vmem:[%s10471_s13 + $0x60] sm:$0xff]  }
 0x676   : > { %4355 = vmatpush1.bf16.msra.mxu0 %v7844_v37  ;;  %7172 = vmatpush3.bf16.msra.mxu1 %v7848_v33 }
 0x677   : > { %7173 = vmatprep.subr.bf16.mxu1 %v7849_v23  ;;  %7193 = vmatprep.subr.bf16.mxu0 %v7863_v41 }
 0x679   : > { %6826 = vmatmul.mubr.msk.bf16.vlgmr.msra.gmra.mxu0 %vm1061_vm14, %v9467_v50  ;;  %v7855_v50 = vld [vmem:[%s10471_s13 + $0x58] sm:$0xff]  }
 0x67a   : > { %7174 = vmatpush3.bf16.msra.mxu1 %v7850_v34  ;;  %7194 = vmatpush3.bf16.msra.mxu0 %v7864_v42 }
 0x67b   : > { %7175 = vmatprep.subr.bf16.mxu1 %v7851_v35  ;;  %7195 = vmatprep.subr.bf16.mxu0 %v7865_v53 }
 0x67e   : > { %7176 = vmatpush3.bf16.msra.mxu1 %v7852_v36  ;;  %7196 = vmatpush3.bf16.msra.mxu0 %v7866_v55 }
 0x67f   : > { %7177 = vmatprep.subr.bf16.mxu1 %v7853_v5  ;;  %7197 = vmatprep.subr.bf16.mxu0 %v7867_v56 }
 0x682   : > { %7178 = vmatpush3.bf16.msra.mxu1 %v7854_v38  ;;  %7198 = vmatpush3.bf16.msra.mxu0 %v7868_v57 }
 0x683   : > { %7179 = vmatprep.subr.bf16.mxu1 %v7855_v50  ;;  %7199 = vmatprep.subr.bf16.mxu0 %v7869_v58 }
 0x686   : > { %7180 = vmatpush3.bf16.msra.mxu1 %v7856_v39  ;;  %7200 = vmatpush3.bf16.msra.mxu0 %v7870_v54 }
 0x687   : > { %7181 = vmatprep.subr.bf16.mxu1 %v7857_v40  ;;  %7201 = vmatprep.subr.bf16.mxu0 %v7871_v59 }
 0x68a   : > { %7182 = vmatpush3.bf16.msra.mxu1 %v7858_v44  ;;  %7202 = vmatpush3.bf16.msra.mxu0 %v7872_v61  ;;  %v3396_v44 = vsub.s32 3, %v8542_v3 }
 0x68b   : > { %7183 = vmatprep.subr.bf16.mxu1 %v7859_v45  ;;  %7203 = vmatprep.subr.bf16.mxu0 %v7873_v62 }
 0x68e   : > { %7184 = vmatpush3.bf16.msra.mxu1 %v7860_v47  ;;  %7204 = vmatpush3.bf16.msra.mxu0 %v7874_v63 }
 0x68f   : > { %7185 = vmatprep.subr.bf16.mxu1 %v7861_v49  ;;  %7205 = vmatprep.subr.bf16.mxu0 %v7875_v0  ;;  %v3397_v49 = vrot.slane %v3035_v12, %v3396_v44 }
 0x692   : > { %7186 = vmatpush3.bf16.msra.mxu1 %v7862_v52  ;;  %7206 = vmatpush3.bf16.msra.mxu0 %v7876_v1  ;;  %v3393_v52 = vrot.slane %v3035_v12, %v8835_v11 }
 0x693   : > { %7207 = vmatprep.subr.bf16.mxu0 %v7877_v2 }
 0x696   : > { %7208 = vmatpush3.bf16.msra.mxu0 %v7878_v4 }
 0x6e5   : > { %v4159_v6 = vpop.f32.mrf.mxu1 }
 0x6e6   : > { %v4160_v25 = vadd.f32 %v4159_v6, %v3385_v16 }
 0x6e7   : > { %v4161_v7 = vpop.f32.mrf.mxu1 }
 0x6e8   : > { %v4162_v22 = vadd.f32 %v4161_v7, %v3389_v13 }
 0x6e9   : > { %v4202_v8 = vpop.f32.mrf.mxu0  ;;  %v4163_v9 = vpop.f32.mrf.mxu1 }
 0x6ea   : > { %v4164_v24 = vadd.f32 %v4163_v9, %v3385_v16  ;;  %v4203_v30 = vadd.f32 %v4202_v8, %v4160_v25  ;;  %v7881_v25 = vld [vmem:[%s10473_s15 + $0xe4] ss:$16 sps:$4 sm:$0xff]  }
 0x6eb   : > { %v4204_v10 = vpop.f32.mrf.mxu0  ;;  %v4165_v19 = vpop.f32.mrf.mxu1  ;;  %5742 = vmatprep.subr.bf16.mxu1 %v7881_v25  ;;  %v7954_v25 = vld [vmem:[%s10473_s15 + $0x140] ss:$16 sps:$4 sm:$0xff]  }
 0x6ec   : > { %v4166_v28 = vadd.f32 %v4165_v19, %v3389_v13  ;;  %v4205_v60 = vadd.f32 %v4204_v10, %v4162_v22 }
 0x6ed   : > { %v4206_v20 = vpop.f32.mrf.mxu0 }
 0x6ee   : > { %v4207_v29 = vadd.f32 %v4206_v20, %v4164_v24  ;;  %v7879_v24 = vld [vmem:[%s10473_s15 + $0xe0] ss:$16 sps:$4 sm:$0xff]  }
 0x6ef   : > { %v4208_v26 = vpop.f32.mrf.mxu0 }
 0x6f0   : > { %v4209_v32 = vadd.f32 %v4208_v26, %v4166_v28  ;;  %v7884_v26 = vld [vmem:[%s10473_s15 + $0xc4] ss:$16 sps:$4 sm:$0xff]  }
 0x6f1   : > { %v7887_v28 = vld [vmem:[%s10473_s15 + $0x2e4] ss:$16 sps:$4 sm:$0xff]  }
 0x6f2   : > { %5785 = vmatprep.subr.bf16.mxu0 %v7887_v28  ;;  %v7971_v28 = vld [vmem:[%s10473_s15 + $0x324] ss:$16 sps:$4 sm:$0xff]  }
 0x6f5   : > { %v4245_v21 = vpop.f32.mrf.mxu1 }
 0x6f6   : > { %v4246_v23 = vadd.f32 %v4245_v21, %v4203_v30  ;;  %v7890_v30 = vld [vmem:[%s10473_s15 + $0xa4] ss:$16 sps:$4 sm:$0xff]  }
 0x6f7   : > { %v4247_v27 = vpop.f32.mrf.mxu1 }
 0x6f8   : > { %v4248_v37 = vadd.f32 %v4247_v27, %v4205_v60  ;;  %v4383_v50 = vmax.f32 %v4246_v23, 0.0  ;;  %v7885_v27 = vld [vmem:[%s10473_s15 + $0x2e0] ss:$16 sps:$4 sm:$0xff]  }
 0x6f9   : > { %v4249_v31 = vpop.f32.mrf.mxu1  ;;  %v7882_v60 = vld [vmem:[%s10473_s15 + $0xc0] ss:$16 sps:$4 sm:$0xff]  }
 0x6fa   : > { %v4250_v33 = vadd.f32 %v4249_v31, %v4207_v29  ;;  %v4384_v5 = vmax.f32 %v4248_v37, 0.0  ;;  %v7893_v29 = vld [vmem:[%s10473_s15 + $0x2c4] ss:$16 sps:$4 sm:$0xff]   ;;  %v7891_v31 = vld [vmem:[%s10473_s15 + $0x2c0] ss:$16 sps:$4 sm:$0xff]  }
 0x6fb   : > { %v4251_v34 = vpop.f32.mrf.mxu1  ;;  %v7888_v37 = vld [vmem:[%s10473_s15 + $0xa0] ss:$16 sps:$4 sm:$0xff]  }
 0x6fc   : > { %v4252_v35 = vadd.f32 %v4251_v34, %v4209_v32  ;;  %v4387_v36 = vmax.f32 %v4250_v33, 0.0  ;;  %v7899_v32 = vld [vmem:[%s10473_s15 + $0x2a4] ss:$16 sps:$4 sm:$0xff]   ;;  %v7897_v23 = vld [vmem:[%s10473_s15 + $0x2a0] ss:$16 sps:$4 sm:$0xff]  }
 0x6fd   : > { %v7896_v33 = vld [vmem:[%s10473_s15 + $0x84] ss:$16 sps:$4 sm:$0xff]  }
 0x6fe   : > { %v4388_v38 = vmax.f32 %v4252_v35, 0.0  ;;  %v4391_v40 = vpack.c.bf16 %v4387_v36, %v4383_v50  ;;  %v7905_v34 = vld [vmem:[%s10473_s15 + $0x284] ss:$16 sps:$4 sm:$0xff]   ;;  %v7894_v35 = vld [vmem:[%s10473_s15 + $0x80] ss:$16 sps:$4 sm:$0xff]  }
 0x6ff   : > { %v7902_v36 = vld [vmem:[%s10473_s15 + $0x64] ss:$16 sps:$4 sm:$0xff]   ;;  %v7900_v50 = vld [vmem:[%s10473_s15 + $0x60] ss:$16 sps:$4 sm:$0xff]  }
 0x700   : > { %v4392_v39 = vpack.c.bf16 %v4388_v38, %v4384_v5  ;;  %v7903_v5 = vld [vmem:[%s10473_s15 + $0x280] ss:$16 sps:$4 sm:$0xff]   ;;  %v7911_v38 = vld [vmem:[%s10473_s15 + $0x264] ss:$16 sps:$4 sm:$0xff]  }
 0x702   : > { %4835 = vmatprep.mubr.bf16.mxu1 %v4392_v39  ;;  %v7908_v39 = vld [vmem:[%s10473_s15 + $0x44] ss:$16 sps:$4 sm:$0xff]  }
 0x703   : > { %4836 = vmatmul.mubr.bf16.vlgmr.msra.gmra.mxu1 %v4391_v40  ;;  %v7909_v40 = vld [vmem:[%s10473_s15 + $0x260] ss:$16 sps:$4 sm:$0xff]  }
 0x704   : > { %5743 = vmatpush1.bf16.msra.mxu1 %v7879_v24  ;;  %v7965_v24 = vld [vmem:[%s10473_s15 + $0x344] ss:$16 sps:$4 sm:$0xff]  }
 0x705   : > { %5744 = vmatprep.subr.bf16.mxu1 %v7884_v26  ;;  %v7962_v26 = vld [vmem:[%s10473_s15 + $0x124] ss:$16 sps:$4 sm:$0xff]  }
 0x708   : > { %5745 = vmatpush1.bf16.msra.mxu1 %v7882_v60  ;;  %v7960_v60 = vld [vmem:[%s10473_s15 + $0x120] ss:$16 sps:$4 sm:$0xff]  }
 0x709   : > { %5746 = vmatprep.subr.bf16.mxu1 %v7890_v30  ;;  %v7969_v30 = vld [vmem:[%s10473_s15 + $0x320] ss:$16 sps:$4 sm:$0xff]  }
 0x70c   : > { %5747 = vmatpush1.bf16.msra.mxu1 %v7888_v37 }
 0x70d   : > { %5748 = vmatprep.subr.bf16.mxu1 %v7896_v33 }
 0x710   : > { %5749 = vmatpush1.bf16.msra.mxu1 %v7894_v35 }
 0x711   : > { %5750 = vmatprep.subr.bf16.mxu1 %v7902_v36 }
 0x714   : > { %5751 = vmatpush1.bf16.msra.mxu1 %v7900_v50 }
 0x715   : > { %5752 = vmatprep.subr.bf16.mxu1 %v7908_v39 }
 0x729   : > { %v4288_v41 = vpop.f32.mrf.mxu0 }
 0x72a   : > { %v4289_v59 = vadd.f32 %v4288_v41, %v3393_v52  ;;  %v7917_v41 = vld [vmem:[%s10473_s15 + $0x244] ss:$16 sps:$4 sm:$0xff]  }
 0x72b   : > { %v4290_v42 = vpop.f32.mrf.mxu0 }
 0x72c   : > { %v4291_v58 = vadd.f32 %v4290_v42, %v3397_v49  ;;  %v7906_v42 = vld [vmem:[%s10473_s15 + $0x40] ss:$16 sps:$4 sm:$0xff]  }
 0x72d   : > { %v4292_v45 = vpop.f32.mrf.mxu0  ;;  %5753 = vmatpush1.bf16.msra.mxu1 %v7906_v42 }
 0x72e   : > { %v4293_v54 = vadd.f32 %v4292_v45, %v3393_v52  ;;  %v7914_v45 = vld [vmem:[%s10473_s15 + $0x24] ss:$16 sps:$4 sm:$0xff]   ;;  %v7912_v52 = vld [vmem:[%s10473_s15 + $0x20] ss:$16 sps:$4 sm:$0xff]  }
 0x72f   : > { %v4294_v53 = vpop.f32.mrf.mxu0  ;;  %5754 = vmatprep.subr.bf16.mxu1 %v7914_v45 }
 0x730   : > { %v4295_v63 = vadd.f32 %v4294_v53, %v3397_v49  ;;  %v7923_v49 = vld [vmem:[%s10473_s15 + $0x224] ss:$16 sps:$4 sm:$0xff]  }
 0x731   : > { %v7920_v53 = vld [vmem:[%s10473_s15 + $0x4] ss:$16 sps:$4 sm:$0xff]   ;;  %5755 = vmatpush1.bf16.msra.mxu1 %v7912_v52 }
 0x732   : > { %5756 = vmatprep.subr.bf16.mxu1 %v7920_v53 }
 0x735   : > { %v4331_v47 = vpop.f32.mrf.mxu1 }
 0x736   : > { %v4332_v2 = vadd.f32 %v4331_v47, %v4289_v59  ;;  %v7915_v47 = vld [vmem:[%s10473_s15 + $0x240] ss:$16 sps:$4 sm:$0xff]   ;;  %v7935_v59 = vld [vmem:[%s10473_s15 + $0x3e4] ss:$16 sps:$4 sm:$0xff]  }
 0x737   : > { %v4333_v55 = vpop.f32.mrf.mxu1 }
 0x738   : > { %v4334_v0 = vadd.f32 %v4333_v55, %v4291_v58  ;;  %v7921_v55 = vld [vmem:[%s10473_s15 + $0x220] ss:$16 sps:$4 sm:$0xff]   ;;  %v7926_v58 = vld [vmem:[%s10473_s15 + $0x1e4] ss:$16 sps:$4 sm:$0xff]  }
 0x739   : > { %v4335_v56 = vpop.f32.mrf.mxu1  ;;  %v4374_v57 = vpop.f32.mrf.mxu0 }
 0x73a   : > { %v4336_v1 = vadd.f32 %v4335_v56, %v4293_v54  ;;  %v4375_v9 = vadd.f32 %v4374_v57, %v4332_v2  ;;  %v7929_v56 = vld [vmem:[%s10473_s15 + $0x204] ss:$16 sps:$4 sm:$0xff]   ;;  %v7918_v57 = vld [vmem:[%s10473_s15] ss:$16 sps:$4 sm:$0xff]  }
 0x73b   : > { %v4337_v61 = vpop.f32.mrf.mxu1  ;;  %v4376_v62 = vpop.f32.mrf.mxu0  ;;  %v7927_v54 = vld [vmem:[%s10473_s15 + $0x200] ss:$16 sps:$4 sm:$0xff]   ;;  %5757 = vmatpush1.bf16.msra.mxu1 %v7918_v57  ;;  %v7938_v2 = vld [vmem:[%s10473_s15 + $0x1a4] ss:$16 sps:$4 sm:$0xff]  }
 0x73c   : > { %v4338_v6 = vadd.f32 %v4337_v61, %v4295_v63  ;;  %v4377_v7 = vadd.f32 %v4376_v62, %v4334_v0  ;;  %v4385_v20 = vmax.f32 %v4375_v9, 0.0  ;;  %v7924_v61 = vld [vmem:[%s10473_s15 + $0x1e0] ss:$16 sps:$4 sm:$0xff]   ;;  %5758 = vmatprep.subr.bf16.mxu1 %v7926_v58  ;;  %v7932_v62 = vld [vmem:[%s10473_s15 + $0x1c4] ss:$16 sps:$4 sm:$0xff]  }
 0x73d   : > { %v4378_v4 = vpop.f32.mrf.mxu0  ;;  %v7933_v63 = vld [vmem:[%s10473_s15 + $0x3e0] ss:$16 sps:$4 sm:$0xff]   ;;  %v7941_v0 = vld [vmem:[%s10473_s15 + $0x3c4] ss:$16 sps:$4 sm:$0xff]  }
 0x73e   : > { %v4379_v8 = vadd.f32 %v4378_v4, %v4336_v1  ;;  %v4386_v16 = vmax.f32 %v4377_v7, 0.0  ;;  %v7930_v1 = vld [vmem:[%s10473_s15 + $0x1c0] ss:$16 sps:$4 sm:$0xff]  }
 0x73f   : > { %v4380_v10 = vpop.f32.mrf.mxu0  ;;  %5759 = vmatpush2.bf16.msra.mxu1 %v7924_v61  ;;  %v7939_v4 = vld [vmem:[%s10473_s15 + $0x3c0] ss:$16 sps:$4 sm:$0xff]  }
 0x740   : > { %v4381_v12 = vadd.f32 %v4380_v10, %v4338_v6  ;;  %v4389_v13 = vmax.f32 %v4379_v8, 0.0  ;;  %5760 = vmatprep.subr.bf16.mxu1 %v7932_v62  ;;  %v7947_v6 = vld [vmem:[%s10473_s15 + $0x3a4] ss:$16 sps:$4 sm:$0xff]   ;;  %v7936_v7 = vld [vmem:[%s10473_s15 + $0x1a0] ss:$16 sps:$4 sm:$0xff]  }
 0x741   : > { %v7944_v8 = vld [vmem:[%s10473_s15 + $0x184] ss:$16 sps:$4 sm:$0xff]   ;;  %v7945_v9 = vld [vmem:[%s10473_s15 + $0x3a0] ss:$16 sps:$4 sm:$0xff]  }
 0x742   : > { %v4390_v19 = vmax.f32 %v4381_v12, 0.0  ;;  %v4393_v22 = vpack.c.bf16 %v4389_v13, %v4385_v20  ;;  %v7953_v10 = vld [vmem:[%s10473_s15 + $0x384] ss:$16 sps:$4 sm:$0xff]   ;;  %v7942_v12 = vld [vmem:[%s10473_s15 + $0x180] ss:$16 sps:$4 sm:$0xff]  }
 0x743   : > { %5761 = vmatpush2.bf16.msra.mxu1 %v7930_v1  ;;  %v7950_v13 = vld [vmem:[%s10473_s15 + $0x164] ss:$16 sps:$4 sm:$0xff]   ;;  %v7948_v20 = vld [vmem:[%s10473_s15 + $0x160] ss:$16 sps:$4 sm:$0xff]  }
 0x744   : > { %v4394_v21 = vpack.c.bf16 %v4390_v19, %v4386_v16  ;;  %5762 = vmatprep.subr.bf16.mxu1 %v7938_v2  ;;  %v7951_v16 = vld [vmem:[%s10473_s15 + $0x380] ss:$16 sps:$4 sm:$0xff]   ;;  %v7959_v19 = vld [vmem:[%s10473_s15 + $0x364] ss:$16 sps:$4 sm:$0xff]  }
 0x746   : > { %4876 = vmatprep.mubr.bf16.mxu0 %v4394_v21  ;;  %v7956_v21 = vld [vmem:[%s10473_s15 + $0x144] ss:$16 sps:$4 sm:$0xff]  }
 0x747   : > { %4877 = vmatmul.mubr.bf16.vlgmr.msra.gmra.mxu0 %v4393_v22  ;;  %5763 = vmatpush2.bf16.msra.mxu1 %v7936_v7  ;;  %v7957_v22 = vld [vmem:[%s10473_s15 + $0x360] ss:$16 sps:$4 sm:$0xff]  }
 0x748   : > { %5786 = vmatpush1.bf16.msra.mxu0 %v7885_v27  ;;  %5764 = vmatprep.subr.bf16.mxu1 %v7944_v8  ;;  %v7963_v27 = vld [vmem:[%s10473_s15 + $0x340] ss:$16 sps:$4 sm:$0xff]  }
 0x749   : > { %5787 = vmatprep.subr.bf16.mxu0 %v7893_v29  ;;  %v7968_v29 = vld [vmem:[%s10473_s15 + $0x104] ss:$16 sps:$4 sm:$0xff]  }
 0x74b   : > { %5765 = vmatpush2.bf16.msra.mxu1 %v7942_v12 }
 0x74c   : > { %5788 = vmatpush1.bf16.msra.mxu0 %v7891_v31  ;;  %5766 = vmatprep.subr.bf16.mxu1 %v7950_v13  ;;  %v7966_v31 = vld [vmem:[%s10473_s15 + $0x100] ss:$16 sps:$4 sm:$0xff]  }
 0x74d   : > { %5789 = vmatprep.subr.bf16.mxu0 %v7899_v32 }
 0x74f   : > { %5767 = vmatpush2.bf16.msra.mxu1 %v7948_v20 }
 0x750   : > { %5790 = vmatpush1.bf16.msra.mxu0 %v7897_v23  ;;  %5768 = vmatprep.subr.bf16.mxu1 %v7956_v21  ;;  %v7983_v21 = vld [vmem:[%s10473_s15 + $0xec] ss:$16 sps:$4 sm:$0xff]  }
 0x751   : > { %5791 = vmatprep.subr.bf16.mxu0 %v7905_v34  ;;  %v6827_v34 = vld [vmem:[%s10472_s14] ss:$0 sm:$0xff] }
 0x753   : > { %5769 = vmatpush2.bf16.msra.mxu1 %v7954_v25 }
 0x754   : > { %5792 = vmatpush1.bf16.msra.mxu0 %v7903_v5  ;;  %5770 = vmatprep.subr.bf16.mxu1 %v7962_v26 }
 0x755   : > { %5793 = vmatprep.subr.bf16.mxu0 %v7911_v38 }
 0x757   : > { %5771 = vmatpush2.bf16.msra.mxu1 %v7960_v60 }
 0x758   : > { %5794 = vmatpush1.bf16.msra.mxu0 %v7909_v40  ;;  %5772 = vmatprep.subr.bf16.mxu1 %v7968_v29 }
 0x759   : > { %5795 = vmatprep.subr.bf16.mxu0 %v7917_v41 }
 0x75b   : > { %5773 = vmatpush2.bf16.msra.mxu1 %v7966_v31 }
 0x75c   : > { %5796 = vmatpush1.bf16.msra.mxu0 %v7915_v47 }
 0x75d   : > { %5797 = vmatprep.subr.bf16.mxu0 %v7923_v49 }
 0x760   : > { %5798 = vmatpush1.bf16.msra.mxu0 %v7921_v55 }
 0x761   : > { %5799 = vmatprep.subr.bf16.mxu0 %v7929_v56 }
 0x764   : > { %5800 = vmatpush1.bf16.msra.mxu0 %v7927_v54 }
 0x765   : > { %5801 = vmatprep.subr.bf16.mxu0 %v7935_v59 }
 0x768   : > { %5802 = vmatpush2.bf16.msra.mxu0 %v7933_v63 }
 0x769   : > { %5803 = vmatprep.subr.bf16.mxu0 %v7941_v0 }
 0x76c   : > { %5804 = vmatpush2.bf16.msra.mxu0 %v7939_v4 }
 0x76d   : > { %5805 = vmatprep.subr.bf16.mxu0 %v7947_v6 }
 0x770   : > { %5806 = vmatpush2.bf16.msra.mxu0 %v7945_v9 }
 0x771   : > { %5807 = vmatprep.subr.bf16.mxu0 %v7953_v10  ;;  %v7977_v10 = vld [vmem:[%s10473_s15 + $0x464] ss:$16 sps:$4 sm:$0xff]  }
 0x772   : > { %5836 = vmatprep.subr.bf16.mxu1 %v7977_v10 }
 0x774   : > { %5808 = vmatpush2.bf16.msra.mxu0 %v7951_v16 }
 0x775   : > { %5809 = vmatprep.subr.bf16.mxu0 %v7959_v19 }
 0x778   : > { %5810 = vmatpush2.bf16.msra.mxu0 %v7957_v22 }
 0x779   : > { %5811 = vmatprep.subr.bf16.mxu0 %v7965_v24 }
 0x77c   : > { %5812 = vmatpush2.bf16.msra.mxu0 %v7963_v27 }
 0x77d   : > { %5813 = vmatprep.subr.bf16.mxu0 %v7971_v28 }
 0x780   : > { %5814 = vmatpush2.bf16.msra.mxu0 %v7969_v30 }
 0x781   : > { %5815 = vmatprep.subr.bf16.mxu0 %v7974_v17 }
 0x784   : > { %5816 = vmatpush2.bf16.msra.mxu0 %v7972_v14 }
 0x785   : > { %5871 = vmatprep.subr.bf16.mxu0 %v7983_v21  ;;  %v7992_v21 = vld [vmem:[%s10473_s15 + $0x404] ss:$16 sps:$4 sm:$0xff]  }
 0x7c3   : > { %v7187_v32 = vpop.f32.mrf.mxu1 }
 0x7c5   : > { %v7188_v37 = vpop.f32.mrf.mxu1 }
 0x7c6   : > { %v7189_v23 = vadd.f32 %v7188_v37, %v7187_v32 }
 0x7c7   : > { %v7190_v33 = vpop.f32.mrf.mxu1 }
 0x7c8   : > { %v4838_v38 = vadd.f32 %v7189_v23, %v6827_v34 }
 0x7c9   : > { %v7191_v35 = vpop.f32.mrf.mxu1 }
 0x7ca   : > { %v7192_v50 = vadd.f32 %v7191_v35, %v7190_v33 }
 0x7cc   : > { %v4841_v45 = vadd.f32 %v7192_v50, %v6827_v34 }
 0x807   : > { %v7209_v36 = vpop.f32.mrf.mxu0 }
 0x809   : > { %v7210_v5 = vpop.f32.mrf.mxu0 }
 0x80a   : > { %v7211_v39 = vadd.f32 %v7210_v5, %v7209_v36 }
 0x80b   : > { %v7212_v40 = vpop.f32.mrf.mxu0 }
 0x80c   : > { %v4879_v41 = vadd.f32 %v7211_v39, %v4838_v38 }
 0x80d   : > { %v7213_v42 = vpop.f32.mrf.mxu0 }
 0x80e   : > { %v7214_v47 = vadd.f32 %v7213_v42, %v7212_v40  ;;  %v4885_v49 = vmax.f32 %v4879_v41, 0.0 }
 0x810   : > { %v4882_v52 = vadd.f32 %v7214_v47, %v4841_v45  ;;  %v4888_v55 = vsel %vm8546_vm0, 0.0, %v4885_v49  ;;  %v4891_v56 = vsel %vm8550_vm1, 0.0, %v4885_v49  ;;  %vm10552_vm0 = vmmov %vm10546_vm6 }
 0x811   : > { %vm10553_vm1 = vmmov %vm10547_vm8 }
 0x812   : > { %v4886_v53 = vmax.f32 %v4882_v52, 0.0 }
 0x814   : > { %v4887_v57 = vpack.c.bf16 %v4886_v53, %v4885_v49  ;;  %v4889_v58 = vsel %vm8554_vm2, 0.0, %v4886_v53  ;;  %v4892_v54 = vsel %vm8558_vm3, 0.0, %v4886_v53  ;;  %vm10554_vm2 = vmmov %vm10548_vm10 }
 0x815   : > { %v4890_v59 = vpack.c.bf16 %v4889_v58, %v4888_v55  ;;  %v4893_v61 = vpack.c.bf16 %v4892_v54, %v4891_v56  ;;  %vm10555_vm3 = vmmov %vm10549_vm13 }
 0x816   : > { %v4906_v62 = vshrl.u32 %v4887_v57, 16  ;;  %v4909_v63 = vshll.u32 %v4887_v57, 16 }
 0x817   : > { %v4895_v0 = vshrl.u32 %v4890_v59, 16  ;;  %v4898_v1 = vshll.u32 %v4890_v59, 16  ;;  %v4917_v2 = vshrl.u32 %v4893_v61, 16  ;;  %v4920_v4 = vshll.u32 %v4893_v61, 16 }
 0x818   : > { %v4908_v15 = vrot.slane %v4906_v62, 5  ;;  %v4911_v6 = vrot.slane %v4909_v63, 6 }
 0x819   : > { %v4897_v18 = vrot.slane %v4895_v0, 5  ;;  %v4900_v7 = vrot.slane %v4898_v1, 6  ;;  %v4919_v8 = vrot.slane %v4917_v2, 5  ;;  %v4922_v9 = vrot.slane %v4920_v4, 6  ;;  %v7975_v4 = vld [vmem:[%s10473_s15 + $0x460] ss:$16 sps:$4 sm:$0xff]  }
 0x81a   : > { %v4912_v12 = vor.u32 %v4911_v6, %v4908_v15  ;;  %v7980_v15 = vld [vmem:[%s10473_s15 + $0x444] ss:$16 sps:$4 sm:$0xff]  }
 0x81b   : > { %v4901_v13 = vor.u32 %v4900_v7, %v4897_v18  ;;  %v4923_v20 = vor.u32 %v4922_v9, %v4919_v8  ;;  %v7978_v8 = vld [vmem:[%s10473_s15 + $0x440] ss:$16 sps:$4 sm:$0xff]   ;;  %v7981_v9 = vld [vmem:[%s10473_s15 + $0xe8] ss:$16 sps:$4 sm:$0xff]  }
 0x81c   : > { %v4914_v16 = vsel %vm8584_vm9, 0, %v4912_v12  ;;  %v4915_v19 = vsel %vm8584_vm9, %v4912_v12, 0  ;;  %v7986_v12 = vld [vmem:[%s10473_s15 + $0x424] ss:$16 sps:$4 sm:$0xff]  }
 0x81d   : > { %v4903_v22 = vsel %vm8584_vm9, 0, %v4901_v13  ;;  %v4904_v24 = vsel %vm8584_vm9, %v4901_v13, 0  ;;  %v4928_v25 = vshrl.u32 %v4914_v16, 16  ;;  %v4930_v26 = vshll.u32 %v4914_v16, 16  ;;  %v7989_v16 = vld [vmem:[%s10473_s15 + $0xcc] ss:$16 sps:$4 sm:$0xff]  }
 0x81e   : > { %v4948_v27 = vrot.slane %v4903_v22, 2  ;;  %v4949_v28 = vrot.slane %v4904_v24, 2  ;;  %v4935_v60 = vshll.u32 %v4915_v19, 16  ;;  %v4956_v30 = vshrl.u32 %v4915_v19, 16  ;;  %v7984_v19 = vld [vmem:[%s10473_s15 + $0x420] ss:$16 sps:$4 sm:$0xff]  }
 0x81f   : > { %v4932_v29 = vrot.slane %v4930_v26, 1  ;;  %v4970_v31 = vrot.slane %v4928_v25, 4  ;;  %v4971_v32 = vrot.slane %v4930_v26, 5  ;;  %v4925_v34 = vsel %vm8584_vm9, 0, %v4923_v20 }
 0x820   : > { %v4950_v37 = vsel %vm10552_vm0, %v4948_v27, %v4949_v28  ;;  %v4937_v33 = vrot.slane %v4935_v60, 1  ;;  %v4974_v23 = vrot.slane %v4935_v60, 5  ;;  %v4973_v5 = vrot.slane %v4956_v30, 4  ;;  %v8001_v27 = vld [vmem:[%s10473_s15 + $0x2ec] ss:$16 sps:$4 sm:$0xff]  }
 0x821   : > { %4951 = vrot.lane.b32.xlu0 %v4950_v37, %s10538_s28  ;;  %v4933_v35 = vor.u32 %v4932_v29, %v4928_v25  ;;  %v4972_v36 = vor.u32 %v4971_v32, %v4970_v31  ;;  %v4926_v38 = vsel %vm8584_vm9, %v4923_v20, 0  ;;  %v4962_v50 = vrot.slane %v4925_v34, 3  ;;  %vm10556_vm9 = vmmov %vm10550_vm15  ;;  %v7987_v20 = vld [vmem:[%s10473_s15 + $0xc8] ss:$16 sps:$4 sm:$0xff]   ;;  %v8004_v29 = vld [vmem:[%s10473_s15 + $0x6c] ss:$16 sps:$4 sm:$0xff]  }
 0x822   : > { %v4943_v39 = vrot.slane %v4925_v34, 1  ;;  %v4944_v40 = vrot.slane %v4926_v38, 1  ;;  %v4975_v42 = vor.u32 %v4974_v23, %v4973_v5  ;;  %v4963_v45 = vrot.slane %v4926_v38, 3  ;;  %v7996_v28 = vld [vmem:[%s10473_s15 + $0x88] ss:$16 sps:$4 sm:$0xff]  }
 0x823   : > { %v4938_v41 = vsel %vm10553_vm1, %v4933_v35, %v4937_v33  ;;  %v4953_v47 = vrot.slane %v4928_v25, 2  ;;  %v4954_v52 = vrot.slane %v4930_v26, 3  ;;  %v4958_v53 = vrot.slane %v4956_v30, 2  ;;  %v7993_v25 = vld [vmem:[%s10473_s15 + $0xa8] ss:$16 sps:$4 sm:$0xff]  }
 0x824   : > { %4939 = vrot.lane.b32.xlu1 %v4938_v41, %s10538_s28  ;;  %v4945_v49 = vsel %vm999_vm7, %v4943_v39, %v4944_v40  ;;  %v4976_v55 = vsel %vm1037_vm11, %v4972_v36, %v4975_v42  ;;  %v4959_v56 = vrot.slane %v4935_v60, 3  ;;  %v4979_v57 = vrot.slane %v4925_v34, 5  ;;  %vm10557_vm7 = vmmov %vm10551_vm4  ;;  %v7998_v26 = vld [vmem:[%s10473_s15 + $0x8c] ss:$16 sps:$4 sm:$0xff]   ;;  %v7999_v60 = vld [vmem:[%s10473_s15 + $0x2e8] ss:$16 sps:$4 sm:$0xff]  }
 0x825   : > { %4977 = vrot.lane.b32.xlu0 %v4976_v55, %s10538_s28  ;;  %v4955_v43 = vor.u32 %v4954_v52, %v4953_v47  ;;  %v4980_v58 = vrot.slane %v4926_v38, 5  ;;  %v4964_v54 = vsel %vm10554_vm2, %v4962_v50, %v4963_v45  ;;  %v4968_v0 = vrot.slane %v4904_v24, 4  ;;  %v7990_v24 = vld [vmem:[%s10473_s15 + $0x400] ss:$16 sps:$4 sm:$0xff]   ;;  %v8007_v30 = vld [vmem:[%s10473_s15 + $0x2cc] ss:$16 sps:$4 sm:$0xff]  }
 0x826   : > { %v4960_v59 = vor.u32 %v4959_v56, %v4958_v53  ;;  %v4967_v2 = vrot.slane %v4903_v22, 4  ;;  %v8002_v31 = vld [vmem:[%s10473_s15 + $0x68] ss:$16 sps:$4 sm:$0xff]   ;;  %v8010_v37 = vld [vmem:[%s10473_s15 + $0x4c] ss:$16 sps:$4 sm:$0xff]   ;;  %vm6370_vm11 = vcmask 122880  }
 0x827   : > { %v10059_v61 = vsel %vm10555_vm3, %v4979_v57, %v4980_v58  ;;  %v8005_v32 = vld [vmem:[%s10473_s15 + $0x2c8] ss:$16 sps:$4 sm:$0xff]   ;;  %v8013_v33 = vld [vmem:[%s10473_s15 + $0x2ac] ss:$16 sps:$4 sm:$0xff]  }
 0x828   : > { %4965 = vrot.lane.b32.xlu1 %v4964_v54, %s10538_s28  ;;  %v4961_v62 = vsel %vm10556_vm9, %v4955_v43, %v4960_v59  ;;  %v4969_v18 = vsel %vm10557_vm7, %v4967_v2, %v4968_v0  ;;  %v8008_v23 = vld [vmem:[%s10473_s15 + $0x48] ss:$16 sps:$4 sm:$0xff]   ;;  %v8016_v35 = vld [vmem:[%s10473_s15 + $0x2c] ss:$16 sps:$4 sm:$0xff]   ;;  %s593_s28 = sand.u32 1, %s8179_s30  }
 0x829   : > { %v8011_v34 = vld [vmem:[%s10473_s15 + $0x2a8] ss:$16 sps:$4 sm:$0xff]   ;;  %v8019_v36 = vld [vmem:[%s10473_s15 + $0x28c] ss:$16 sps:$4 sm:$0xff]   ;;  %s594_s27 = scalar_lea.vmem [#allocation2], %s593_s28  ;;  %s6373_s25 = scalar_lea.sflag [#allocation3], %s593_s28 }
 0x82a   : > { %v8014_v5 = vld [vmem:[%s10473_s15 + $0x28] ss:$16 sps:$4 sm:$0xff]   ;;  %v8022_v50 = vld [vmem:[%s10473_s15 + $0xc] ss:$16 sps:$4 sm:$0xff]   ;;  %s6385_s3 = sshll.u32 %s594_s27, 4  ;;  %s6386_s3 = int_to_ptr.vmem [resolvable:$true] %s6385_s3 }
 0x82b   : > { %v8017_v38 = vld [vmem:[%s10473_s15 + $0x288] ss:$16 sps:$4 sm:$0xff]   ;;  %v8025_v39 = vld [vmem:[%s10473_s15 + $0x26c] ss:$16 sps:$4 sm:$0xff]   ;;  %s8127_s20 = scalar_lea.vmem %s6386_s3, 16  ;;  %p8134_p0 = scmp.lt.s32.totalorder %s6386_s3, %s8132_s4 }
 0x82c   : > { %v8020_v40 = vld [vmem:[%s10473_s15 + $0x8] ss:$16 sps:$4 sm:$0xff]   ;;  %v8028_v42 = vld [vmem:[%s10473_s15 + $0x1ec] ss:$16 sps:$4 sm:$0xff]   ;;  %p8128_p11 = scmp.ne.s32.totalorder %s6386_s3, %s8127_s20  ;;  %p8135_p1 = scmp.lt.s32.totalorder %s8133_s22, %s8127_s20 }
 0x82d   : > { %v8023_v41 = vld [vmem:[%s10473_s15 + $0x268] ss:$16 sps:$4 sm:$0xff]   ;;  %v8031_v45 = vld [vmem:[%s10473_s15 + $0x24c] ss:$16 sps:$4 sm:$0xff]  }
 0x82e   : > { %v8026_v47 = vld [vmem:[%s10473_s15 + $0x1e8] ss:$16 sps:$4 sm:$0xff]   ;;  %v8034_v52 = vld [vmem:[%s10473_s15 + $0x1cc] ss:$16 sps:$4 sm:$0xff]   ;;  %p8129_p12 = pnand %p8128_p11, %p8338_p5  ;;  %p8136_p2 = por %p8135_p1, %p8134_p0 }
 0x82f   : > { %v8037_v53 = vld [vmem:[%s10473_s15 + $0x22c] ss:$16 sps:$4 sm:$0xff]   ;;  %v8032_v55 = vld [vmem:[%s10473_s15 + $0x1c8] ss:$16 sps:$4 sm:$0xff]  }
 0x830   : > { %v8035_v56 = vld [vmem:[%s10473_s15 + $0x228] ss:$16 sps:$4 sm:$0xff]   ;;  %v8040_v57 = vld [vmem:[%s10473_s15 + $0x1ac] ss:$16 sps:$4 sm:$0xff]   ;;  %p8130_p13 = pneg %p8129_p12 }
 0x831   : > { %v8043_v43 = vld [vmem:[%s10473_s15 + $0x20c] ss:$16 sps:$4 sm:$0xff]   ;;  %v8038_v58 = vld [vmem:[%s10473_s15 + $0x1a8] ss:$16 sps:$4 sm:$0xff]  }
 0x832   : > { %v8041_v54 = vld [vmem:[%s10473_s15 + $0x208] ss:$16 sps:$4 sm:$0xff]   ;;  %v8046_v59 = vld [vmem:[%s10473_s15 + $0x18c] ss:$16 sps:$4 sm:$0xff]   ;;  %p8137_p3 = pnand %p8136_p2, %p8130_p13 }
 0x833   : > { %v8047_v0 = vld [vmem:[%s10473_s15 + $0x3e8] ss:$16 sps:$4 sm:$0xff]   ;;  %v8055_v2 = vld [vmem:[%s10473_s15 + $0x3cc] ss:$16 sps:$4 sm:$0xff]  }
 0x893   : > { %v4952_v63 = vpop.permute.xlu0 %4951 }
 0x894   : > { %v4988_v1 = vsel %vm1061_vm14, %v4945_v49, %v4952_v63  ;;  %v8029_v49 = vld [vmem:[%s10473_s15 + $0x248] ss:$16 sps:$4 sm:$0xff]  }
 0x895   : > { %5774 = vmatprep.mubr.bf16.mxu1 %v4988_v1  ;;  %v8044_v63 = vld [vmem:[%s10473_s15 + $0x188] ss:$16 sps:$4 sm:$0xff]  }
 0x896   : > { %v4940_v14 = vpop.permute.xlu1 %4939 }
 0x897   : > { %v10070_v6 = vsel %vm1061_vm14, %v4903_v22, %v4940_v14  ;;  %v4978_v17 = vpop.permute.xlu0 %4977  ;;  %v7995_v22 = vld [vmem:[%s10473_s15 + $0xac] ss:$16 sps:$4 sm:$0xff]   ;;  %v8053_v14 = vld [vmem:[%s10473_s15 + $0x3c8] ss:$16 sps:$4 sm:$0xff]  }
 0x898   : > { %5775 = vmatmul.mubr.bf16.vlgmr.msra.gmra.mxu1 %v10070_v6  ;;  %v4996_v7 = vsel %vm1061_vm14, %v4969_v18, %v4978_v17  ;;  %v8061_v17 = vld [vmem:[%s10473_s15 + $0x3ac] ss:$16 sps:$4 sm:$0xff]   ;;  %v8056_v18 = vld [vmem:[%s10473_s15 + $0x148] ss:$16 sps:$4 sm:$0xff]  }
 0x899   : > { %5837 = vmatpush1.bf16.msra.mxu1 %v7975_v4  ;;  %5860 = vmatprep.mubr.bf16.mxu1 %v8189_v51  ;;  %v8050_v4 = vld [vmem:[%s10473_s15 + $0x168] ss:$16 sps:$4 sm:$0xff]  }
 0x89a   : > { %5817 = vmatprep.mubr.bf16.mxu0 %v4996_v7  ;;  %v4966_v10 = vpop.permute.xlu1 %4965  ;;  %5838 = vmatprep.subr.bf16.mxu1 %v7980_v15  ;;  %v8058_v15 = vld [vmem:[%s10473_s15 + $0x14c] ss:$16 sps:$4 sm:$0xff]  }
 0x89b   : > { %v10086_v13 = vsel %vm1061_vm14, %v4961_v62, %v4966_v10  ;;  %v8049_v62 = vld [vmem:[%s10473_s15 + $0x3ec] ss:$16 sps:$4 sm:$0xff]   ;;  %v8062_v10 = vld [vmem:[%s10473_s15 + $0x128] ss:$16 sps:$4 sm:$0xff]  }
 0x89c   : > { %5818 = vmatmul.mubr.bf16.vlgmr.msra.gmra.mxu0 %v10086_v13 }
 0x89d   : > { %5839 = vmatpush1.bf16.msra.mxu1 %v7978_v8  ;;  %5872 = vmatpush1.bf16.msra.mxu0 %v7981_v9  ;;  %v8064_v8 = vld [vmem:[%s10473_s15 + $0x12c] ss:$16 sps:$4 sm:$0xff]  }
 0x89e   : > { %5903 = vmatprep.mubr.bf16.mxu0 %v4988_v1  ;;  %5840 = vmatprep.subr.bf16.mxu1 %v7986_v12  ;;  %v8052_v1 = vld [vmem:[%s10473_s15 + $0x16c] ss:$16 sps:$4 sm:$0xff]   ;;  %v8065_v12 = vld [vmem:[%s10473_s15 + $0x388] ss:$16 sps:$4 sm:$0xff]  }
 0x89f   : > { %5873 = vmatprep.subr.bf16.mxu0 %v7989_v16  ;;  %v8067_v9 = vld [vmem:[%s10473_s15 + $0x38c] ss:$16 sps:$4 sm:$0xff]  }
 0x8a0   : > { %v8070_v16 = vld [vmem:[%s10473_s15 + $0x10c] ss:$16 sps:$4 sm:$0xff]  }
 0x8a1   : > { %5841 = vmatpush1.bf16.msra.mxu1 %v7984_v19  ;;  %5874 = vmatpush1.bf16.msra.mxu0 %v7987_v20  ;;  %v8073_v19 = vld [vmem:[%s10473_s15 + $0x36c] ss:$16 sps:$4 sm:$0xff]   ;;  %v8068_v20 = vld [vmem:[%s10473_s15 + $0x108] ss:$16 sps:$4 sm:$0xff]  }
 0x8a2   : > { %5842 = vmatprep.subr.bf16.mxu1 %v7992_v21  ;;  %5875 = vmatprep.subr.bf16.mxu0 %v7995_v22  ;;  %v8071_v21 = vld [vmem:[%s10473_s15 + $0x368] ss:$16 sps:$4 sm:$0xff]   ;;  %v8076_v22 = vld [vmem:[%s10473_s15 + $0x34c] ss:$16 sps:$4 sm:$0xff]  }
 0x8a5   : > { %5843 = vmatpush1.bf16.msra.mxu1 %v7990_v24  ;;  %5876 = vmatpush1.bf16.msra.mxu0 %v7993_v25  ;;  %v8079_v24 = vld [vmem:[%s10473_s15 + $0x46c] ss:$16 sps:$4 sm:$0xff]   ;;  %v8074_v25 = vld [vmem:[%s10473_s15 + $0x348] ss:$16 sps:$4 sm:$0xff]  }
 0x8a6   : > { %5877 = vmatprep.subr.bf16.mxu0 %v7998_v26  ;;  %5914 = vmatprep.subr.bf16.mxu1 %v8001_v27  ;;  %v8077_v26 = vld [vmem:[%s10473_s15 + $0x468] ss:$16 sps:$4 sm:$0xff]   ;;  %v8082_v27 = vld [vmem:[%s10473_s15 + $0x32c] ss:$16 sps:$4 sm:$0xff]  }
 0x8a8   : > { %7004 = vmatmul.mubr.msk.bf16.vlgmr.msra.gmra.mxu1 %vm1061_vm14, %v10059_v61 }
 0x8a9   : > { %5878 = vmatpush1.bf16.msra.mxu0 %v7996_v28  ;;  %5915 = vmatpush1.bf16.msra.mxu1 %v7999_v60  ;;  %v8085_v28 = vld [vmem:[%s10473_s15 + $0x44c] ss:$16 sps:$4 sm:$0xff]   ;;  %v8080_v60 = vld [vmem:[%s10473_s15 + $0x328] ss:$16 sps:$4 sm:$0xff]  }
 0x8aa   : > { %5946 = vmatprep.mubr.bf16.mxu1 %v4996_v7  ;;  %5879 = vmatprep.subr.bf16.mxu0 %v8004_v29  ;;  %v8059_v7 = vld [vmem:[%s10473_s15 + $0x3a8] ss:$16 sps:$4 sm:$0xff]  }
 0x8ab   : > { %5916 = vmatprep.subr.bf16.mxu1 %v8007_v30  ;;  %v8083_v29 = vld [vmem:[%s10473_s15 + $0x448] ss:$16 sps:$4 sm:$0xff]   ;;  %v8088_v30 = vld [vmem:[%s10473_s15 + $0x30c] ss:$16 sps:$4 sm:$0xff]  }
 0x8ad   : > { %5880 = vmatpush1.bf16.msra.mxu0 %v8002_v31  ;;  %5917 = vmatpush1.bf16.msra.mxu1 %v8005_v32  ;;  %v8086_v31 = vld [vmem:[%s10473_s15 + $0x308] ss:$16 sps:$4 sm:$0xff]  }
 0x8ae   : > { %5881 = vmatprep.subr.bf16.mxu0 %v8010_v37  ;;  %5918 = vmatprep.subr.bf16.mxu1 %v8013_v33  ;;  %v8089_v32 = vld [vmem:[%s10473_s15 + $0x428] ss:$16 sps:$4 sm:$0xff]   ;;  %v8094_v37 = vld [vmem:[%s10473_s15 + $0x40c] ss:$16 sps:$4 sm:$0xff]  }
 0x8af   : > { %v8092_v33 = vld [vmem:[%s10473_s15 + $0x408] ss:$16 sps:$4 sm:$0xff]  }
 0x8b1   : > { %5882 = vmatpush1.bf16.msra.mxu0 %v8008_v23  ;;  %5919 = vmatpush1.bf16.msra.mxu1 %v8011_v34  ;;  %v8096_v23 = vld [vmem:[%s10475_s17 + $0x38] sm:$0xff]   ;;  %v8097_v34 = vld [vmem:[%s10475_s17 + $0x70] sm:$0xff]  }
 0x8b2   : > { %5883 = vmatprep.subr.bf16.mxu0 %v8016_v35  ;;  %5920 = vmatprep.subr.bf16.mxu1 %v8019_v36  ;;  %v8098_v35 = vld [vmem:[%s10475_s17 + $0x30] sm:$0xff]   ;;  %v8099_v36 = vld [vmem:[%s10475_s17 + $0x68] sm:$0xff]  }
 0x8b5   : > { %5884 = vmatpush1.bf16.msra.mxu0 %v8014_v5  ;;  %5921 = vmatpush1.bf16.msra.mxu1 %v8017_v38  ;;  %v8100_v5 = vld [vmem:[%s10475_s17 + $0x28] sm:$0xff]   ;;  %v8102_v38 = vld [vmem:[%s10475_s17 + $0x20] sm:$0xff]  }
 0x8b6   : > { %5885 = vmatprep.subr.bf16.mxu0 %v8022_v50  ;;  %5922 = vmatprep.subr.bf16.mxu1 %v8025_v39  ;;  %v8104_v50 = vld [vmem:[%s10475_s17 + $0x18] sm:$0xff]   ;;  %v8105_v39 = vld [vmem:[%s10475_s17 + $0x50] sm:$0xff]  }
 0x8b9   : > { %5886 = vmatpush1.bf16.msra.mxu0 %v8020_v40  ;;  %5923 = vmatpush1.bf16.msra.mxu1 %v8023_v41  ;;  %v8111_v40 = vld [vmem:[%s10475_s17 + $0xf8] sm:$0xff]  }
 0x8ba   : > { %5887 = vmatprep.subr.bf16.mxu0 %v8028_v42  ;;  %5924 = vmatprep.subr.bf16.mxu1 %v8031_v45  ;;  %v8112_v41 = vld [vmem:[%s10475_s17 + $0xb8] sm:$0xff]   ;;  %v8106_v42 = vld [vmem:[%s10475_s17 + $0x10] sm:$0xff]   ;;  %v8107_v45 = vld [vmem:[%s10475_s17 + $0x48] sm:$0xff]  }
 0x8bd   : > { %5888 = vmatpush2.bf16.msra.mxu0 %v8026_v47  ;;  %5925 = vmatpush1.bf16.msra.mxu1 %v8029_v49  ;;  %v8108_v47 = vld [vmem:[%s10475_s17 + $0x8] sm:$0xff]   ;;  %v8109_v49 = vld [vmem:[%s10475_s17 + $0x40] sm:$0xff]  }
 0x8be   : > { %5889 = vmatprep.subr.bf16.mxu0 %v8034_v52  ;;  %5926 = vmatprep.subr.bf16.mxu1 %v8037_v53  ;;  %v8110_v52 = vld [vmem:[%s10475_s17] sm:$0xff]   ;;  %v8113_v53 = vld [vmem:[%s10475_s17 + $0xf0] sm:$0xff]  }
 0x8c1   : > { %5890 = vmatpush2.bf16.msra.mxu0 %v8032_v55  ;;  %5927 = vmatpush1.bf16.msra.mxu1 %v8035_v56  ;;  %v8114_v55 = vld [vmem:[%s10475_s17 + $0xb0] sm:$0xff]   ;;  %v8115_v56 = vld [vmem:[%s10475_s17 + $0xe8] sm:$0xff]  }
 0x8c2   : > { %5891 = vmatprep.subr.bf16.mxu0 %v8040_v57  ;;  %5928 = vmatprep.subr.bf16.mxu1 %v8043_v43  ;;  %v8116_v57 = vld [vmem:[%s10475_s17 + $0xa8] sm:$0xff]   ;;  %v8117_v43 = vld [vmem:[%s10475_s17 + $0xe0] sm:$0xff]  }
 0x8c5   : > { %5892 = vmatpush2.bf16.msra.mxu0 %v8038_v58  ;;  %5929 = vmatpush1.bf16.msra.mxu1 %v8041_v54  ;;  %v8118_v58 = vld [vmem:[%s10475_s17 + $0xa0] sm:$0xff]   ;;  %v8119_v54 = vld [vmem:[%s10475_s17 + $0xd8] sm:$0xff]  }
 0x8c6   : > { %5893 = vmatprep.subr.bf16.mxu0 %v8046_v59  ;;  %5930 = vmatprep.subr.bf16.mxu1 %v8049_v62  ;;  %v8120_v59 = vld [vmem:[%s10475_s17 + $0x98] sm:$0xff]   ;;  %v8121_v62 = vld [vmem:[%s10475_s17 + $0xd0] sm:$0xff]  }
 0x8c9   : > { %5894 = vmatpush2.bf16.msra.mxu0 %v8044_v63  ;;  %5931 = vmatpush2.bf16.msra.mxu1 %v8047_v0  ;;  %v8122_v63 = vld [vmem:[%s10475_s17 + $0x90] sm:$0xff]   ;;  %v8123_v0 = vld [vmem:[%s10475_s17 + $0xc8] sm:$0xff]  }
 0x8ca   : > { %5895 = vmatprep.subr.bf16.mxu0 %v8052_v1  ;;  %5932 = vmatprep.subr.bf16.mxu1 %v8055_v2  ;;  %v8124_v1 = vld [vmem:[%s10475_s17 + $0x88] sm:$0xff]   ;;  %v8125_v2 = vld [vmem:[%s10475_s17 + $0xc0] sm:$0xff]  }
 0x8cd   : > { %5896 = vmatpush2.bf16.msra.mxu0 %v8050_v4  ;;  %5933 = vmatpush2.bf16.msra.mxu1 %v8053_v14  ;;  %v8126_v4 = vld [vmem:[%s10475_s17 + $0x80] sm:$0xff]  }
 0x8ce   : > { %5897 = vmatprep.subr.bf16.mxu0 %v8058_v15  ;;  %5934 = vmatprep.subr.bf16.mxu1 %v8061_v17 }
 0x8d1   : > { %5898 = vmatpush2.bf16.msra.mxu0 %v8056_v18  ;;  %5935 = vmatpush2.bf16.msra.mxu1 %v8059_v7 }
 0x8d2   : > { %5899 = vmatprep.subr.bf16.mxu0 %v8064_v8  ;;  %5936 = vmatprep.subr.bf16.mxu1 %v8067_v9  ;;  %v4604_v8 = vld [vmem:[%s10474_s16] sm:$0xf] }
 0x8d3   : > { %v5006_v9 = vrot.slane %v4604_v8, %v8824_v46 }
 0x8d5   : > { %5900 = vmatpush2.bf16.msra.mxu0 %v8062_v10  ;;  %5937 = vmatpush2.bf16.msra.mxu1 %v8065_v12  ;;  %v5002_v10 = vrot.slane %v4604_v8, %v8827_v48 }
 0x8d6   : > { %5901 = vmatprep.subr.bf16.mxu0 %v8070_v16  ;;  %5938 = vmatprep.subr.bf16.mxu1 %v8073_v19 }
 0x8d9   : > { %5902 = vmatpush2.bf16.msra.mxu0 %v8068_v20  ;;  %5939 = vmatpush2.bf16.msra.mxu1 %v8071_v21 }
 0x8da   : > { %5940 = vmatprep.subr.bf16.mxu1 %v8076_v22  ;;  %5965 = vmatprep.subr.bf16.mxu0 %v8079_v24 }
 0x8dc   : > { %5904 = vmatmul.mubr.bf16.vlgmr.msra.gmra.mxu0 %v10070_v6  ;;  %v8091_v6 = vld [vmem:[%s10473_s15 + $0x42c] ss:$16 sps:$4 sm:$0xff]  }
 0x8dd   : > { %5941 = vmatpush2.bf16.msra.mxu1 %v8074_v25  ;;  %5966 = vmatpush1.bf16.msra.mxu0 %v8077_v26 }
 0x8de   : > { %5942 = vmatprep.subr.bf16.mxu1 %v8082_v27  ;;  %5967 = vmatprep.subr.bf16.mxu0 %v8085_v28 }
 0x8df   : > { %5989 = vmatprep.mubr.bf16.mxu0 %v8189_v51  ;;  %v8095_v51 = vld [vmem:[%s10475_s17 + $0x78] sm:$0xff]  }
 0x8e1   : > { %5943 = vmatpush2.bf16.msra.mxu1 %v8080_v60  ;;  %5968 = vmatpush1.bf16.msra.mxu0 %v8083_v29 }
 0x8e2   : > { %5944 = vmatprep.subr.bf16.mxu1 %v8088_v30  ;;  %5969 = vmatprep.subr.bf16.mxu0 %v8091_v6 }
 0x8e5   : > { %5945 = vmatpush2.bf16.msra.mxu1 %v8086_v31  ;;  %5970 = vmatpush1.bf16.msra.mxu0 %v8089_v32 }
 0x8e6   : > { %5971 = vmatprep.subr.bf16.mxu0 %v8094_v37  ;;  %7215 = vmatprep.subr.bf16.mxu1 %v8095_v51 }
 0x8e8   : > { %5947 = vmatmul.mubr.bf16.vlgmr.msra.gmra.mxu1 %v10086_v13  ;;  %v8101_v13 = vld [vmem:[%s10475_s17 + $0x60] sm:$0xff]  }
 0x8e9   : > { %5972 = vmatpush1.bf16.msra.mxu0 %v8092_v33  ;;  %7216 = vmatpush3.bf16.msra.mxu1 %v8096_v23 }
 0x8ea   : > { %7217 = vmatprep.subr.bf16.mxu1 %v8097_v34  ;;  %7237 = vmatprep.subr.bf16.mxu0 %v8111_v40 }
 0x8ec   : > { %7005 = vmatmul.mubr.msk.bf16.vlgmr.msra.gmra.mxu0 %vm1061_vm14, %v10059_v61  ;;  %v8103_v61 = vld [vmem:[%s10475_s17 + $0x58] sm:$0xff]  }
 0x8ed   : > { %7218 = vmatpush3.bf16.msra.mxu1 %v8098_v35  ;;  %7238 = vmatpush3.bf16.msra.mxu0 %v8112_v41 }
 0x8ee   : > { %7219 = vmatprep.subr.bf16.mxu1 %v8099_v36  ;;  %7239 = vmatprep.subr.bf16.mxu0 %v8113_v53 }
 0x8f1   : > { %7220 = vmatpush3.bf16.msra.mxu1 %v8100_v5  ;;  %7240 = vmatpush3.bf16.msra.mxu0 %v8114_v55 }
 0x8f2   : > { %7221 = vmatprep.subr.bf16.mxu1 %v8101_v13  ;;  %7241 = vmatprep.subr.bf16.mxu0 %v8115_v56 }
 0x8f5   : > { %7222 = vmatpush3.bf16.msra.mxu1 %v8102_v38  ;;  %7242 = vmatpush3.bf16.msra.mxu0 %v8116_v57 }
 0x8f6   : > { %7223 = vmatprep.subr.bf16.mxu1 %v8103_v61  ;;  %7243 = vmatprep.subr.bf16.mxu0 %v8117_v43  ;;  %v5014_v61 = vrot.slane %v4604_v8, %v3396_v44 }
 0x8f9   : > { %7224 = vmatpush3.bf16.msra.mxu1 %v8104_v50  ;;  %7244 = vmatpush3.bf16.msra.mxu0 %v8118_v58  ;;  %v5010_v50 = vrot.slane %v4604_v8, %v8835_v11  ;;  %v7006_v8 = vld [vmem:[%s10476_s18] ss:$0 sm:$0xff] }
 0x8fa   : > { %7225 = vmatprep.subr.bf16.mxu1 %v8105_v39  ;;  %7245 = vmatprep.subr.bf16.mxu0 %v8119_v54 }
 0x8fd   : > { %7226 = vmatpush3.bf16.msra.mxu1 %v8106_v42  ;;  %7246 = vmatpush3.bf16.msra.mxu0 %v8120_v59 }
 0x8fe   : > { %7227 = vmatprep.subr.bf16.mxu1 %v8107_v45  ;;  %7247 = vmatprep.subr.bf16.mxu0 %v8121_v62 }
 0x901   : > { %7228 = vmatpush3.bf16.msra.mxu1 %v8108_v47  ;;  %7248 = vmatpush3.bf16.msra.mxu0 %v8122_v63 }
 0x902   : > { %7229 = vmatprep.subr.bf16.mxu1 %v8109_v49  ;;  %7249 = vmatprep.subr.bf16.mxu0 %v8123_v0 }
 0x905   : > { %7230 = vmatpush3.bf16.msra.mxu1 %v8110_v52  ;;  %7250 = vmatpush3.bf16.msra.mxu0 %v8124_v1 }
 0x906   : > { %7251 = vmatprep.subr.bf16.mxu0 %v8125_v2 }
 0x909   : > { %7252 = vmatpush3.bf16.msra.mxu0 %v8126_v4 }
 0x958   : > { %v5776_v14 = vpop.f32.mrf.mxu1 }
 0x959   : > { %v5777_v22 = vadd.f32 %v5776_v14, %v5002_v10 }
 0x95a   : > { %v5778_v15 = vpop.f32.mrf.mxu1 }
 0x95b   : > { %v5779_v20 = vadd.f32 %v5778_v15, %v5006_v9 }
 0x95c   : > { %v5819_v17 = vpop.f32.mrf.mxu0  ;;  %v5780_v18 = vpop.f32.mrf.mxu1 }
 0x95d   : > { %v5781_v21 = vadd.f32 %v5780_v18, %v5002_v10  ;;  %v5820_v60 = vadd.f32 %v5819_v17, %v5777_v22 }
 0x95e   : > { %v5821_v7 = vpop.f32.mrf.mxu0  ;;  %v5782_v12 = vpop.f32.mrf.mxu1 }
 0x95f   : > { %v5783_v26 = vadd.f32 %v5782_v12, %v5006_v9  ;;  %v5822_v27 = vadd.f32 %v5821_v7, %v5779_v20 }
 0x960   : > { %v5823_v16 = vpop.f32.mrf.mxu0 }
 0x961   : > { %v5824_v28 = vadd.f32 %v5823_v16, %v5781_v21 }
 0x962   : > { %v5825_v24 = vpop.f32.mrf.mxu0 }
 0x963   : > { %v5826_v30 = vadd.f32 %v5825_v24, %v5783_v26 }
 0x968   : > { %v5862_v19 = vpop.f32.mrf.mxu1 }
 0x969   : > { %v5863_v32 = vadd.f32 %v5862_v19, %v5820_v60 }
 0x96a   : > { %v5864_v25 = vpop.f32.mrf.mxu1 }
 0x96b   : > { %v5865_v6 = vadd.f32 %v5864_v25, %v5822_v27  ;;  %v6000_v23 = vmax.f32 %v5863_v32, 0.0 }
 0x96c   : > { %v5866_v29 = vpop.f32.mrf.mxu1 }
 0x96d   : > { %v5867_v31 = vadd.f32 %v5866_v29, %v5824_v28  ;;  %v6001_v51 = vmax.f32 %v5865_v6, 0.0 }
 0x96e   : > { %v5868_v46 = vpop.f32.mrf.mxu1 }
 0x96f   : > { %v5869_v37 = vadd.f32 %v5868_v46, %v5826_v30  ;;  %v6004_v48 = vmax.f32 %v5867_v31, 0.0 }
 0x971   : > { %v6005_v33 = vmax.f32 %v5869_v37, 0.0  ;;  %v6008_v35 = vpack.c.bf16 %v6004_v48, %v6000_v23 }
 0x973   : > { %v6009_v34 = vpack.c.bf16 %v6005_v33, %v6001_v51 }
 0x975   : > { %6307 = vmatprep.mubr.bf16.mxu1 %v6009_v34 }
 0x976   : > { %6308 = vmatmul.mubr.bf16.vlgmr.msra.gmra.mxu1 %v6008_v35 }
 0x99c   : > { %v5905_v36 = vpop.f32.mrf.mxu0 }
 0x99d   : > { %v5906_v49 = vadd.f32 %v5905_v36, %v5010_v50 }
 0x99e   : > { %v5907_v5 = vpop.f32.mrf.mxu0 }
 0x99f   : > { %v5908_v45 = vadd.f32 %v5907_v5, %v5014_v61 }
 0x9a0   : > { %v5909_v13 = vpop.f32.mrf.mxu0 }
 0x9a1   : > { %v5910_v47 = vadd.f32 %v5909_v13, %v5010_v50 }
 0x9a2   : > { %v5911_v39 = vpop.f32.mrf.mxu0 }
 0x9a3   : > { %v5912_v55 = vadd.f32 %v5911_v39, %v5014_v61 }
 0x9a8   : > { %v5948_v38 = vpop.f32.mrf.mxu1 }
 0x9a9   : > { %v5949_v43 = vadd.f32 %v5948_v38, %v5906_v49 }
 0x9aa   : > { %v5950_v40 = vpop.f32.mrf.mxu1 }
 0x9ab   : > { %v5951_v56 = vadd.f32 %v5950_v40, %v5908_v45 }
 0x9ac   : > { %v5952_v41 = vpop.f32.mrf.mxu1  ;;  %v5991_v42 = vpop.f32.mrf.mxu0 }
 0x9ad   : > { %v5953_v57 = vadd.f32 %v5952_v41, %v5910_v47  ;;  %v5992_v44 = vadd.f32 %v5991_v42, %v5949_v43 }
 0x9ae   : > { %v5954_v52 = vpop.f32.mrf.mxu1  ;;  %v5993_v53 = vpop.f32.mrf.mxu0 }
 0x9af   : > { %v5955_v54 = vadd.f32 %v5954_v52, %v5912_v55  ;;  %v5994_v59 = vadd.f32 %v5993_v53, %v5951_v56  ;;  %v6002_v2 = vmax.f32 %v5992_v44, 0.0 }
 0x9b0   : > { %v5995_v58 = vpop.f32.mrf.mxu0 }
 0x9b1   : > { %v5996_v3 = vadd.f32 %v5995_v58, %v5953_v57  ;;  %v6003_v0 = vmax.f32 %v5994_v59, 0.0 }
 0x9b2   : > { %v5997_v62 = vpop.f32.mrf.mxu0 }
 0x9b3   : > { %v5998_v11 = vadd.f32 %v5997_v62, %v5955_v54  ;;  %v6006_v63 = vmax.f32 %v5996_v3, 0.0 }
 0x9b5   : > { %v6007_v1 = vmax.f32 %v5998_v11, 0.0  ;;  %v6010_v14 = vpack.c.bf16 %v6006_v63, %v6002_v2 }
 0x9b7   : > { %v6011_v4 = vpack.c.bf16 %v6007_v1, %v6003_v0 }
 0x9b9   : > { %6348 = vmatprep.mubr.bf16.mxu0 %v6011_v4 }
 0x9ba   : > { %6349 = vmatmul.mubr.bf16.vlgmr.msra.gmra.mxu0 %v6010_v14 }
 0xa36   : > { %v7231_v15 = vpop.f32.mrf.mxu1 }
 0xa38   : > { %v7232_v17 = vpop.f32.mrf.mxu1 }
 0xa39   : > { %v7233_v7 = vadd.f32 %v7232_v17, %v7231_v15 }
 0xa3a   : > { %v7234_v18 = vpop.f32.mrf.mxu1 }
 0xa3b   : > { %v6310_v16 = vadd.f32 %v7233_v7, %v7006_v8 }
 0xa3c   : > { %v7235_v9 = vpop.f32.mrf.mxu1 }
 0xa3d   : > { %v7236_v19 = vadd.f32 %v7235_v9, %v7234_v18 }
 0xa3f   : > { %v6313_v25 = vadd.f32 %v7236_v19, %v7006_v8 }
 0xa7a   : > { %v7253_v10 = vpop.f32.mrf.mxu0 }
 0xa7c   : > { %v7254_v12 = vpop.f32.mrf.mxu0 }
 0xa7d   : > { %v7255_v20 = vadd.f32 %v7254_v12, %v7253_v10 }
 0xa7e   : > { %v7256_v21 = vpop.f32.mrf.mxu0 }
 0xa7f   : > { %v6351_v22 = vadd.f32 %v7255_v20, %v6310_v16 }
 0xa80   : > { %v7257_v24 = vpop.f32.mrf.mxu0 }
 0xa81   : > { %v7258_v26 = vadd.f32 %v7257_v24, %v7256_v21  ;;  %v6357_v27 = vmax.f32 %v6351_v22, 0.0 }
 0xa83   : > { %v6354_v28 = vadd.f32 %v7258_v26, %v6313_v25  ;;  %v6359_v29 = vsel %vm1058_vm12, %v6357_v27, 0.0 }
 0xa85   : > { %v6358_v60 = vmax.f32 %v6354_v28, 0.0 }
 0xa87   : > { %v6360_v30 = vsel %vm1058_vm12, %v6358_v60, 0.0 }
 0xa88   : > { %v6361_v6 = vadd.f32 %v6360_v30, %v6359_v29 }
 0xa8a   : > { %v6362_v31 = vrot.slane %v6361_v6, 4 }
 0xa8c   : > { %v6363_v32 = vadd.f32 %v6362_v31, %v6361_v6 }
 0xa8e   : > { %v6364_v46 = vrot.slane %v6363_v32, 2 }
 0xa90   : > { %v6365_v37 = vadd.f32 %v6364_v46, %v6363_v32 }
 0xa92   : > { %v6366_v48 = vrot.slane %v6365_v37, 1 }
 0xa94   : > { %v6367_v51 = vadd.f32 %v6366_v48, %v6365_v37 }
 0xa96   : > { %v6369_v33 = vmul.f32 0.0625, %v6367_v51 }
 0xa98   : > { %6371 = vst.msk [vmem:[%s594_s27] sm:$0x1] %vm6370_vm11, %v6369_v33 }
 0xa99   : > { %8140 = shalt.err (!%p8137_p3)
}
 0xa9a   : > { %s8141_s5 = scalar_lea.hbm %s6383_s26, 16  ;;  %s8145_s27 = scalar_lea.hbm %s10560_s1, 32 }
 0xa9b   : > { %p8142_p4 = scmp.ne.s32.totalorder %s6383_s26, %s8141_s5  ;;  %p8146_p9 = scmp.lt.s32.totalorder %s6383_s26, %s10560_s1 }
 0xa9c   : > { %p8147_p10 = scmp.lt.s32.totalorder %s8145_s27, %s8141_s5 }
 0xa9d   : > { %p8143_p7 = pnand %p8142_p4, %p8338_p5 }
 0xa9e   : > { %p8148_p11 = por %p8147_p10, %p8146_p9 }
 0xa9f   : > { %p8144_p8 = pneg %p8143_p7 }
 0xaa1   : > { %p8149_p12 = pnand %p8148_p11, %p8144_p8 }
 0xaa3   : > { %8152 = shalt.err (!%p8149_p12)
}
 0xaa4   : > { %7299 = dma.vmem_to_hbm [thread:$0]  (%p8338_p5), %s6386_s3, 16, %s6383_s26, %s6373_s25  }
 0xaa5 PF: > { %s10561_s4 = sld [smem:[#allocation7_spill]] }
 0xaa6   : > { %s10562_s20 = sld [smem:[#allocation5_spill]] }
 0xaab   : > { %p7305_p13 = scmp.ge.s32.totalorder %s10561_s4, 2 }
 0xaac   : > { %s6397_s22 = sand.u32 1, %s10562_s20  }
 0xaad   : > { %p7302_p0 = pnand %p7305_p13, %p8342_p6  ;;  %s6398_s28 = scalar_lea.sflag [#allocation3], %s6397_s22 }
 0xaaf   : > { %p7303_p1 = pneg %p7302_p0 }
 0xab1   : > { %8170 = dma.done.wait (%p7303_p1), %s6398_s28, 16  }
 0xab2   : > { %8172 = vsyncadd (%p7303_p1), %s6398_s28, 4294967280  ;;  %s10564_s21 = sld [smem:[#allocation9_spill]]  ;;  %s10567_s0 = smov %s8179_s30 }
 0xab3   : > { %s10565_s5 = sld [smem:[#allocation6_spill]] }
 0xab4   : > { %s10566_s20 = sld [smem:[#allocation10_spill]] }
 0xab8   : > { %p29_p2 = scmp.ge.s32.totalorder %s10564_s21, 4  }
 0xab9   : > { %s10568_s30 = smov %s10565_s5 }
 0xaba   :  { %31 = sbr.rel (!%p29_p2) target bundleno = 11 (0xb), region = 131 }
 0xabf   :  { %6402 = vsyncpa [#allocation3], 1 }
 0xac0   :  { %6404 = vsyncpa [#allocation3 + $0x1], 1 }

</bundles_post_ra>
